<compile_context>
chip_gen: v7x
topology: tpu7x:2x2x1
jax: 0.10.0
libtpu: 0.0.40
codegen_flags: <defaults>
</compile_context>

<pallas_src>
import functools

import numpy as np
import jax
import jax.numpy as jnp
from jax.experimental import pallas as pl
from jax.experimental.pallas import tpu as pltpu

MAX_TM = 256                        # row tile; stem/layer1 get >=2 tiles (v7x megacore)
VMEM_TILE_BUDGET = 24 * 1024 * 1024  # double-buffered per-step bytes cap (v7x headroom)
FUSED_BLOCK_G_BYTES = 256 * 1024     # ResBlocks whose gather matrices fit this run
                                     # as a single fused pallas_call (layers 3 & 4)


def _round_up(x, m):
    return (x + m - 1) // m * m


def _bn_fold(bn, eps=1e-5):
    gamma, beta, mean, var = bn
    scale = gamma / jnp.sqrt(var + eps)
    return scale, beta - mean * scale


# ----------------------------------------------------------------------------
# Fused GEMM (+ BN shift, + optional residual, + column-masked ReLU) kernels.
# Single K step -> epilogue applied directly on the dot result, no scratch.
# ----------------------------------------------------------------------------
def _apply_relu(y, relu_cols):
    n = y.shape[-1]
    if relu_cols <= 0:
        return y
    if relu_cols >= n:
        return jnp.maximum(y, 0.0)
    # Partial ReLU: only the first `relu_cols` columns (conv1 path) are
    # activated; the trailing downsample columns pass through un-activated.
    col = jax.lax.broadcasted_iota(jnp.int32, y.shape, 1)
    return jnp.where(col < relu_cols, jnp.maximum(y, 0.0), y)


def _gemm_kernel(a_ref, b_ref, shift_ref, o_ref, *, relu_cols):
    y = jnp.dot(a_ref[...], b_ref[...], preferred_element_type=jnp.float32)
    y = _apply_relu(y + shift_ref[...], relu_cols)
    o_ref[...] = y.astype(o_ref.dtype)


def _gemm_res_kernel(a_ref, b_ref, shift_ref, res_ref, o_ref, *, relu_cols):
    y = jnp.dot(a_ref[...], b_ref[...], preferred_element_type=jnp.float32)
    y = _apply_relu(y + shift_ref[...] + res_ref[...].astype(jnp.float32),
                    relu_cols)
    o_ref[...] = y.astype(o_ref.dtype)


def matmul_fused(a, b, shift, residual=None, relu_cols=0,
                 out_dtype=jnp.bfloat16):
    """out = relu?( a @ b + shift[None, :] (+ residual) ).

    ReLU is applied to the first `relu_cols` output columns (0 = none,
    >= N = all).  a:(M,K), b:(K,N) with any BN scale already folded into its
    columns, shift:(N,) f32.  a/b/residual are fed to the MXU as bf16.
    """
    M, K = a.shape
    N = b.shape[1]

    a = a.astype(jnp.bfloat16)
    b = b.astype(jnp.bfloat16)
    shift2 = shift.reshape(1, N).astype(jnp.float32)

    # Keep the contraction dim a multiple of 128 so the MXU only ever sees
    # explicit zeros in padding lanes (no extra MXU passes).
    Kp = _round_up(K, 128)
    if Kp != K:
        a = jnp.pad(a, ((0, 0), (0, Kp - K)))
        b = jnp.pad(b, ((0, Kp - K), (0, 0)))

    out_bytes = jnp.dtype(out_dtype).itemsize
    if M <= MAX_TM:
        # Single row block; round tiny M (FC rows) up to the bf16 sublane pack.
        TM = _round_up(M, 16)
        Mp = TM
    else:
        # Tile rows.  TM=256 gives the stem 8 tiles / layer1 2 tiles so a v7x
        # megacore can shard the "parallel" axis; also clamp by a VMEM byte
        # budget so bigger batches/widths keep double-buffered pipelining.
        TM = MAX_TM
        while TM > 16 and 2 * (TM * Kp * 2 + Kp * N * 2 + TM * N * out_bytes
                               + (TM * N * 2 if residual is not None else 0)) \
                > VMEM_TILE_BUDGET:
            TM //= 2
        Mp = _round_up(M, TM)
    if Mp != M:
        a = jnp.pad(a, ((0, Mp - M), (0, 0)))
        if residual is not None:
            residual = jnp.pad(residual, ((0, Mp - M), (0, 0)))
    grid = (Mp // TM,)

    in_specs = [
        pl.BlockSpec((TM, Kp), lambda i: (i, 0)),
        pl.BlockSpec((Kp, N), lambda i: (0, 0)),
        pl.BlockSpec((1, N), lambda i: (0, 0)),
    ]
    args = [a, b, shift2]
    if residual is None:
        kernel = functools.partial(_gemm_kernel, relu_cols=relu_cols)
    else:
        kernel = functools.partial(_gemm_res_kernel, relu_cols=relu_cols)
        in_specs.append(pl.BlockSpec((TM, N), lambda i: (i, 0)))
        args.append(residual.astype(jnp.bfloat16))

    out = pl.pallas_call(
        kernel,
        out_shape=jax.ShapeDtypeStruct((Mp, N), out_dtype),
        grid_spec=pltpu.PrefetchScalarGridSpec(
            num_scalar_prefetch=0,
            grid=grid,
            in_specs=in_specs,
            out_specs=pl.BlockSpec((TM, N), lambda i: (i, 0)),
        ),
        compiler_params=pltpu.CompilerParams(
            dimension_semantics=("parallel",)),
    )(*args)
    return out[:M] if Mp != M else out


# ----------------------------------------------------------------------------
# MaxPool(kernel=3, stride=2, padding=1).
# Per perf review: no Pallas launch / no 9x stacked-window HBM materialization
# for this ~64 KiB op — let XLA fuse the windowing.
# ----------------------------------------------------------------------------
def maxpool_3x3_s2_p1(x):
    return jax.lax.reduce_window(
        x, jnp.asarray(-jnp.inf, dtype=x.dtype), jax.lax.max,
        window_dimensions=(1, 3, 3, 1), window_strides=(1, 2, 2, 1),
        padding=((0, 0), (1, 1), (1, 1), (0, 0)))


# ----------------------------------------------------------------------------
# Conv (im2col) + folded BN + optional fused 1x1 downsample + optional residual
# + ReLU, as a single Pallas GEMM.
# ----------------------------------------------------------------------------
def conv_bn_act(x, w, bn, stride, relu, residual=None, down=None, eps=1e-5):
    # x: (N, H, W, Cin) bf16; w: (O, Cin, KH, KW) in PyTorch layout.
    # down: optional (down_conv_weight (Od,Cin,1,1), down_bn) fused into the
    # same GEMM via center-tap weight columns.
    N, H, W, C = x.shape
    O, Ci, KH, KW = w.shape
    assert Ci == C
    ph, pw = KH // 2, KW // 2
    Ho = (H + 2 * ph - KH) // stride + 1
    Wo = (W + 2 * pw - KW) // stride + 1

    scale, shift = _bn_fold(bn, eps)
    # Fold BN scale into the GEMM weight columns (constant-folded under jit).
    bmat = jnp.transpose(w, (2, 3, 1, 0)).reshape(KH * KW * Ci, O) * scale[None, :]

    if down is not None:
        dw, dbn = down                       # dw: (Od, Ci, 1, 1), stride == `stride`
        Od = dw.shape[0]
        dscale, dshift = _bn_fold(dbn, eps)
        # The 1x1 stride-s downsample reads exactly the center tap of conv1's
        # stride-s im2col, so its columns live in the center-tap rows.
        dmat = jnp.zeros((KH * KW * Ci, Od), jnp.float32)
        center = (KH // 2) * KW + (KW // 2)
        dmat = dmat.at[center * Ci:(center + 1) * Ci, :].set(
            dw.reshape(Od, Ci).T * dscale[None, :])
        bmat = jnp.concatenate([bmat, dmat], axis=1)
        shift = jnp.concatenate([shift, dshift])
    bmat = bmat.astype(jnp.bfloat16)

    if KH == 1 and KW == 1:
        a = x[:, ::stride, ::stride, :].reshape(N * Ho * Wo, C)
    else:
        # TODO(synk): im2col still materializes a KH*KW-wider A matrix in HBM;
        # a tap-indexed reduction grid axis would remove that round trip.
        xp = jnp.pad(x, ((0, 0), (ph, ph), (pw, pw), (0, 0)))
        cols = [
            xp[:, ki:ki + stride * (Ho - 1) + 1:stride,
               kj:kj + stride * (Wo - 1) + 1:stride, :]
            for ki in range(KH) for kj in range(KW)
        ]
        a = jnp.concatenate(cols, axis=-1).reshape(N * Ho * Wo, KH * KW * C)

    res = None if residual is None else residual.reshape(N * Ho * Wo, O)
    out = matmul_fused(a.astype(jnp.bfloat16), bmat, shift,
                       residual=res, relu_cols=(O if relu else 0))
    if down is not None:
        main = out[:, :O].reshape(N, Ho, Wo, O)
        idn = out[:, O:].reshape(N, Ho, Wo, out.shape[1] - O)
        return main, idn
    return out.reshape(N, Ho, Wo, O)


# ----------------------------------------------------------------------------
# Fully-fused ResBlock (layers 3 & 4): one pallas_call runs conv1+bn1+relu,
# the optional 1x1 downsample+bn, conv2+bn2, skip add and the output ReLU.
# Spatial windowing (stride + implicit zero padding) is expressed with tiny
# constant 0/1 gather matrices so everything is plain 2-D MXU matmuls.
# ----------------------------------------------------------------------------
def _gather_mats(n, hi, wi, ho, wo, stride, kh, kw):
    """g[t, m, i] = 1 iff tap t of output row m reads input row i (rows index
    flattened N*H*W positions); out-of-bounds taps give all-zero rows, which
    reproduces the conv's implicit zero padding."""
    ph, pw = kh // 2, kw // 2
    g = np.zeros((kh * kw, n * ho * wo, n * hi * wi), np.float32)
    for t in range(kh * kw):
        ki, kj = t // kw, t % kw
        for b in range(n):
            for oh in range(ho):
                ih = stride * oh + ki - ph
                if ih < 0 or ih >= hi:
                    continue
                for ow in range(wo):
                    iw = stride * ow + kj - pw
                    if iw < 0 or iw >= wi:
                        continue
                    g[t, (b * ho + oh) * wo + ow, (b * hi + ih) * wi + iw] = 1.0
    return jnp.asarray(g, jnp.bfloat16)


def _resblock_fused_kernel(*refs, has_down):
    if has_down:
        (x_ref, g1_ref, w1_ref, s1_ref, wd_ref, sd_ref,
         g2_ref, w2_ref, s2_ref, o_ref) = refs
    else:
        (x_ref, g1_ref, w1_ref, s1_ref,
         g2_ref, w2_ref, s2_ref, o_ref) = refs
    taps, mo, _ = g1_ref.shape
    ci = x_ref.shape[1]
    co = w1_ref.shape[1]
    center = taps // 2

    x = x_ref[...]

    # conv1 (+ folded bn1) as `taps` gather-matmuls, then ReLU.
    acc1 = jnp.zeros((mo, co), jnp.float32)
    gx_center = None
    for t in range(taps):
        gx = jnp.dot(g1_ref[t], x,
                     preferred_element_type=jnp.float32).astype(jnp.bfloat16)
        if t == center:
            gx_center = gx
        acc1 = acc1 + jnp.dot(gx, w1_ref[t * ci:(t + 1) * ci, :],
                              preferred_element_type=jnp.float32)
    h = jnp.maximum(acc1 + s1_ref[...], 0.0).astype(jnp.bfloat16)

    # identity / 1x1 downsample branch (no ReLU before the skip add).
    if has_down:
        idn = jnp.dot(gx_center, wd_ref[...],
                      preferred_element_type=jnp.float32) + sd_ref[...]
    else:
        idn = x.astype(jnp.float32)

    # conv2 (+ folded bn2) + skip add + ReLU.
    acc2 = jnp.zeros((mo, co), jnp.float32)
    for t in range(taps):
        gh = jnp.dot(g2_ref[t], h,
                     preferred_element_type=jnp.float32).astype(jnp.bfloat16)
        acc2 = acc2 + jnp.dot(gh, w2_ref[t * co:(t + 1) * co, :],
                              preferred_element_type=jnp.float32)
    o_ref[...] = jnp.maximum(acc2 + s2_ref[...] + idn, 0.0).astype(o_ref.dtype)


def _zero_index_map(ndim):
    return lambda i: (0,) * ndim


def res_block_fused(x, blk, eps=1e-5):
    N, H, W, C = x.shape
    stride = blk['stride']
    w1, w2 = blk['conv1'], blk['conv2']
    O = w1.shape[0]
    Ho = (H + 2 - 3) // stride + 1
    Wo = (W + 2 - 3) // stride + 1
    mo = N * Ho * Wo

    g1 = _gather_mats(N, H, W, Ho, Wo, stride, 3, 3)
    g2 = _gather_mats(N, Ho, Wo, Ho, Wo, 1, 3, 3)

    s1, b1 = _bn_fold(blk['bn1'], eps)
    s2, b2 = _bn_fold(blk['bn2'], eps)
    w1mat = (jnp.transpose(w1, (2, 3, 1, 0)).reshape(9 * C, O)
             * s1[None, :]).astype(jnp.bfloat16)
    w2mat = (jnp.transpose(w2, (2, 3, 1, 0)).reshape(9 * O, O)
             * s2[None, :]).astype(jnp.bfloat16)

    args = [x.reshape(N * H * W, C).astype(jnp.bfloat16), g1, w1mat,
            b1.reshape(1, O).astype(jnp.float32)]
    has_down = blk['down_conv'] is not None
    if has_down:
        sd, bd = _bn_fold(blk['down_bn'], eps)
        wdmat = (blk['down_conv'].reshape(O, C).T
                 * sd[None, :]).astype(jnp.bfloat16)
        args += [wdmat, bd.reshape(1, O).astype(jnp.float32)]
    args += [g2, w2mat, b2.reshape(1, O).astype(jnp.float32)]

    out = pl.pallas_call(
        functools.partial(_resblock_fused_kernel, has_down=has_down),
        out_shape=jax.ShapeDtypeStruct((mo, O), jnp.bfloat16),
        grid=(1,),
        in_specs=[pl.BlockSpec(a.shape, _zero_index_map(a.ndim)) for a in args],
        out_specs=pl.BlockSpec((mo, O), lambda i: (0, 0)),
    )(*args)
    return out.reshape(N, Ho, Wo, O)


# ----------------------------------------------------------------------------
# ResBlock dispatch + forward
# ----------------------------------------------------------------------------
def res_block_gemm(x, blk):
    stride = blk['stride']
    if blk['down_conv'] is not None:
        # conv1+bn1+relu and the 1x1 downsample+bn share one im2col A and one
        # Pallas GEMM (downsample weights occupy the center-tap rows).
        h, idn = conv_bn_act(x, blk['conv1'], blk['bn1'], stride, relu=True,
                             down=(blk['down_conv'], blk['down_bn']))
    else:
        h = conv_bn_act(x, blk['conv1'], blk['bn1'], stride, relu=True)
        idn = x
    # conv2 + bn2 + skip-add + ReLU fused into one Pallas GEMM.
    return conv_bn_act(h, blk['conv2'], blk['bn2'], 1, relu=True, residual=idn)


def res_block(x, blk):
    N, H, W, _ = x.shape
    stride = blk['stride']
    Ho = (H + 2 - 3) // stride + 1
    Wo = (W + 2 - 3) // stride + 1
    mi, mo = N * H * W, N * Ho * Wo
    if 2 * 9 * (mo * mi + mo * mo) <= FUSED_BLOCK_G_BYTES:
        return res_block_fused(x, blk)     # layers 3 & 4: one launch per block
    return res_block_gemm(x, blk)          # stem-side layers: two launches


def resnet_forward(params, x_nchw):
    x = jnp.transpose(x_nchw, (0, 2, 3, 1)).astype(jnp.bfloat16)  # NCHW -> NHWC
    x = conv_bn_act(x, params['stem_conv'], params['stem_bn'], stride=2, relu=True)
    x = maxpool_3x3_s2_p1(x)
    for layer in params['layers']:
        for blk in layer:
            x = res_block(x, blk)
    feat = jnp.mean(x.astype(jnp.float32), axis=(1, 2))  # AdaptiveAvgPool2d((1,1)) + squeeze
    W, b = params['fc']
    ncls = W.shape[0]
    npad = _round_up(ncls, 128)  # lane-dense FC stores; padded columns are zero
    wt = jnp.pad(W.T, ((0, 0), (0, npad - ncls)))
    bp = jnp.pad(b, (0, npad - ncls))
    logits = matmul_fused(feat, wt, bp, relu_cols=0, out_dtype=jnp.float32)
    return logits[:, :ncls]


# ----------------------------------------------------------------------------
# Deterministic parameter construction (shapes follow the PyTorch __init__)
# ----------------------------------------------------------------------------
def init_params(key, n_colors=3, width_mult=0.25, num_classes=1000):
    keys = iter(jax.random.split(key, 256))

    def conv_w(o, i, k):
        # PQConv: torch.rand(...) * 0.001
        return jax.random.uniform(next(keys), (o, i, k, k), jnp.float32) * 0.001

    def bn_p(c):
        gamma = 1.0 + 0.1 * jax.random.normal(next(keys), (c,), jnp.float32)
        beta = 0.1 * jax.random.normal(next(keys), (c,), jnp.float32)
        mean = 0.01 * jax.random.normal(next(keys), (c,), jnp.float32)
        var = 1.0 + 0.1 * jax.random.uniform(next(keys), (c,), jnp.float32)
        return (gamma, beta, mean, var)

    c64 = int(64 * width_mult)
    params = {'stem_conv': conv_w(c64, n_colors, 7), 'stem_bn': bn_p(c64)}

    in_ch = c64
    plan = [(int(64 * width_mult), 1), (int(128 * width_mult), 2),
            (int(256 * width_mult), 2), (int(512 * width_mult), 2)]
    layers = []
    for planes, stride in plan:
        blocks = []
        for bi in range(2):
            st = stride if bi == 0 else 1
            blk = {
                'stride': st,
                'conv1': conv_w(planes, in_ch, 3),
                'bn1': bn_p(planes),
                'conv2': conv_w(planes, planes, 3),
                'bn2': bn_p(planes),
            }
            if st != 1 or in_ch != planes:
                blk['down_conv'] = conv_w(planes, in_ch, 1)
                blk['down_bn'] = bn_p(planes)
            else:
                blk['down_conv'] = None
            blocks.append(blk)
            in_ch = planes
        layers.append(blocks)
    params['layers'] = layers

    c512 = int(512 * width_mult)
    bound = 1.0 / (float(c512) ** 0.5)
    W = jax.random.uniform(next(keys), (num_classes, c512), jnp.float32,
                           -bound, bound)
    b = jax.random.uniform(next(keys), (num_classes,), jnp.float32,
                           -bound, bound)
    params['fc'] = (W, b)
    return params


if __name__ == "__main__":
    key = jax.random.PRNGKey(0)
    pkey, xkey = jax.random.split(key)
    params = init_params(pkey, n_colors=3, width_mult=0.25, num_classes=1000)
    x = jax.random.normal(xkey, (2, 3, 64, 64), jnp.float32)  # NCHW like PyTorch
    # Close over params: strides stay Python ints; weight transpose / BN-fold /
    # gather-matrix construction become jit-time constants.
    fwd = jax.jit(functools.partial(resnet_forward, params))
    y = jax.block_until_ready(fwd(x))
    assert y.shape == (2, 1000), y.shape
    assert bool(jnp.all(jnp.isfinite(y)))
    print("KERNEL_OK")
</pallas_src>

<mosaic_0001>
module attributes {stable_mosaic.version = 11 : i64} {
  func.func @_gemm_kernel(%arg0: i32, %arg1: memref<256x256xbf16, #tpu.memory_space<vmem>>, %arg2: memref<256x16xbf16, #tpu.memory_space<vmem>>, %arg3: memref<1x16xf32, #tpu.memory_space<vmem>>, %arg4: memref<256x16xbf16, #tpu.memory_space<vmem>>) attributes {dimension_semantics = [#tpu.dimension_semantics<parallel>], iteration_bounds = array<i64: 8>, scalar_prefetch = 0 : i64, scratch_operands = 0 : i64, tpu.core_type = #tpu.core_type<tc>, window_params = [{transform_indices = @transform_0, window_bounds = array<i64: 256, 256>}, {pipeline_mode = #tpu.pipeline_mode<synchronous>, transform_indices = @transform_1, window_bounds = array<i64: 256, 16>}, {pipeline_mode = #tpu.pipeline_mode<synchronous>, transform_indices = @transform_2, window_bounds = array<i64: 1, 16>}, {transform_indices = @transform_3, window_bounds = array<i64: 256, 16>}]} {
    %c0 = arith.constant 0 : index
    %c0_0 = arith.constant 0 : index
    %0 = vector.load %arg1[%c0, %c0_0] : memref<256x256xbf16, #tpu.memory_space<vmem>>, vector<256x256xbf16>
    %c0_1 = arith.constant 0 : index
    %c0_2 = arith.constant 0 : index
    %1 = vector.load %arg2[%c0_1, %c0_2] : memref<256x16xbf16, #tpu.memory_space<vmem>>, vector<256x16xbf16>
    %cst = arith.constant dense<0.000000e+00> : vector<256x16xf32>
    %2 = tpu.matmul %0, %1, %cst {dimension_numbers = #tpu.dot_dimension_numbers<[1], [0], [0], [1], [0, 0, 1, 1], [], []>} : vector<256x256xbf16>, vector<256x16xbf16>, vector<256x16xf32> -> vector<256x16xf32>
    %c0_3 = arith.constant 0 : index
    %c0_4 = arith.constant 0 : index
    %3 = vector.load %arg3[%c0_3, %c0_4] : memref<1x16xf32, #tpu.memory_space<vmem>>, vector<1x16xf32>
    %4 = vector.broadcast %3 : vector<1x16xf32> to vector<256x16xf32>
    %5 = arith.addf %2, %4 : vector<256x16xf32>
    %cst_5 = arith.constant 0.000000e+00 : f32
    %6 = vector.broadcast %cst_5 : f32 to vector<256x16xf32>
    %7 = arith.maximumf %5, %6 : vector<256x16xf32>
    %8 = arith.truncf %7 : vector<256x16xf32> to vector<256x16xbf16>
    %c0_6 = arith.constant 0 : index
    %c0_7 = arith.constant 0 : index
    %9 = vector.load %arg4[%c0_6, %c0_7] : memref<256x16xbf16, #tpu.memory_space<vmem>>, vector<256x16xbf16>
    tpu.vector_store %arg4[%c0_6, %c0_7], %8 {strides = array<i32>} : memref<256x16xbf16, #tpu.memory_space<vmem>>, vector<256x16xbf16>,
    return
  }
  func.func @transform_0(%arg0: i32) -> (i32, i32) {
    %c0_i32 = arith.constant 0 : i32
    %c0_i32_0 = arith.constant 0 : i32
    return %arg0, %c0_i32 : i32, i32
  }
  func.func @transform_1(%arg0: i32) -> (i32, i32) {
    %c0_i32 = arith.constant 0 : i32
    %c0_i32_0 = arith.constant 0 : i32
    %c0_i32_1 = arith.constant 0 : i32
    return %c0_i32, %c0_i32_0 : i32, i32
  }
  func.func @transform_2(%arg0: i32) -> (i32, i32) {
    %c0_i32 = arith.constant 0 : i32
    %c0_i32_0 = arith.constant 0 : i32
    %c0_i32_1 = arith.constant 0 : i32
    return %c0_i32, %c0_i32_0 : i32, i32
  }
  func.func @transform_3(%arg0: i32) -> (i32, i32) {
    %c0_i32 = arith.constant 0 : i32
    %c0_i32_0 = arith.constant 0 : i32
    return %arg0, %c0_i32 : i32, i32
  }
}

module attributes {stable_mosaic.version = 11 : i64} {
  func.func @_gemm_kernel(%arg0: i32, %arg1: memref<256x256xbf16, #tpu.memory_space<vmem>>, %arg2: memref<256x16xbf16, #tpu.memory_space<vmem>>, %arg3: memref<1x16xf32, #tpu.memory_space<vmem>>, %arg4: memref<256x16xbf16, #tpu.memory_space<vmem>>) attributes {dimension_semantics = [#tpu.dimension_semantics<parallel>], iteration_bounds = array<i64: 2>, scalar_prefetch = 0 : i64, scratch_operands = 0 : i64, tpu.core_type = #tpu.core_type<tc>, window_params = [{transform_indices = @transform_0, window_bounds = array<i64: 256, 256>}, {pipeline_mode = #tpu.pipeline_mode<synchronous>, transform_indices = @transform_1, window_bounds = array<i64: 256, 16>}, {pipeline_mode = #tpu.pipeline_mode<synchronous>, transform_indices = @transform_2, window_bounds = array<i64: 1, 16>}, {transform_indices = @transform_3, window_bounds = array<i64: 256, 16>}]} {
    %c0 = arith.constant 0 : index
    %c0_0 = arith.constant 0 : index
    %0 = vector.load %arg1[%c0, %c0_0] : memref<256x256xbf16, #tpu.memory_space<vmem>>, vector<256x256xbf16>
    %c0_1 = arith.constant 0 : index
    %c0_2 = arith.constant 0 : index
    %1 = vector.load %arg2[%c0_1, %c0_2] : memref<256x16xbf16, #tpu.memory_space<vmem>>, vector<256x16xbf16>
    %cst = arith.constant dense<0.000000e+00> : vector<256x16xf32>
    %2 = tpu.matmul %0, %1, %cst {dimension_numbers = #tpu.dot_dimension_numbers<[1], [0], [0], [1], [0, 0, 1, 1], [], []>} : vector<256x256xbf16>, vector<256x16xbf16>, vector<256x16xf32> -> vector<256x16xf32>
    %c0_3 = arith.constant 0 : index
    %c0_4 = arith.constant 0 : index
    %3 = vector.load %arg3[%c0_3, %c0_4] : memref<1x16xf32, #tpu.memory_space<vmem>>, vector<1x16xf32>
    %4 = vector.broadcast %3 : vector<1x16xf32> to vector<256x16xf32>
    %5 = arith.addf %2, %4 : vector<256x16xf32>
    %cst_5 = arith.constant 0.000000e+00 : f32
    %6 = vector.broadcast %cst_5 : f32 to vector<256x16xf32>
    %7 = arith.maximumf %5, %6 : vector<256x16xf32>
    %8 = arith.truncf %7 : vector<256x16xf32> to vector<256x16xbf16>
    %c0_6 = arith.constant 0 : index
    %c0_7 = arith.constant 0 : index
    %9 = vector.load %arg4[%c0_6, %c0_7] : memref<256x16xbf16, #tpu.memory_space<vmem>>, vector<256x16xbf16>
    tpu.vector_store %arg4[%c0_6, %c0_7], %8 {strides = array<i32>} : memref<256x16xbf16, #tpu.memory_space<vmem>>, vector<256x16xbf16>,
    return
  }
  func.func @transform_0(%arg0: i32) -> (i32, i32) {
    %c0_i32 = arith.constant 0 : i32
    %c0_i32_0 = arith.constant 0 : i32
    return %arg0, %c0_i32 : i32, i32
  }
  func.func @transform_1(%arg0: i32) -> (i32, i32) {
    %c0_i32 = arith.constant 0 : i32
    %c0_i32_0 = arith.constant 0 : i32
    %c0_i32_1 = arith.constant 0 : i32
    return %c0_i32, %c0_i32_0 : i32, i32
  }
  func.func @transform_2(%arg0: i32) -> (i32, i32) {
    %c0_i32 = arith.constant 0 : i32
    %c0_i32_0 = arith.constant 0 : i32
    %c0_i32_1 = arith.constant 0 : i32
    return %c0_i32, %c0_i32_0 : i32, i32
  }
  func.func @transform_3(%arg0: i32) -> (i32, i32) {
    %c0_i32 = arith.constant 0 : i32
    %c0_i32_0 = arith.constant 0 : i32
    return %arg0, %c0_i32 : i32, i32
  }
}

module attributes {stable_mosaic.version = 11 : i64} {
  func.func @_gemm_res_kernel(%arg0: i32, %arg1: memref<256x256xbf16, #tpu.memory_space<vmem>>, %arg2: memref<256x16xbf16, #tpu.memory_space<vmem>>, %arg3: memref<1x16xf32, #tpu.memory_space<vmem>>, %arg4: memref<256x16xbf16, #tpu.memory_space<vmem>>, %arg5: memref<256x16xbf16, #tpu.memory_space<vmem>>) attributes {dimension_semantics = [#tpu.dimension_semantics<parallel>], iteration_bounds = array<i64: 2>, scalar_prefetch = 0 : i64, scratch_operands = 0 : i64, tpu.core_type = #tpu.core_type<tc>, window_params = [{transform_indices = @transform_0, window_bounds = array<i64: 256, 256>}, {pipeline_mode = #tpu.pipeline_mode<synchronous>, transform_indices = @transform_1, window_bounds = array<i64: 256, 16>}, {pipeline_mode = #tpu.pipeline_mode<synchronous>, transform_indices = @transform_2, window_bounds = array<i64: 1, 16>}, {transform_indices = @transform_3, window_bounds = array<i64: 256, 16>}, {transform_indices = @transform_4, window_bounds = array<i64: 256, 16>}]} {
    %c0 = arith.constant 0 : index
    %c0_0 = arith.constant 0 : index
    %0 = vector.load %arg1[%c0, %c0_0] : memref<256x256xbf16, #tpu.memory_space<vmem>>, vector<256x256xbf16>
    %c0_1 = arith.constant 0 : index
    %c0_2 = arith.constant 0 : index
    %1 = vector.load %arg2[%c0_1, %c0_2] : memref<256x16xbf16, #tpu.memory_space<vmem>>, vector<256x16xbf16>
    %cst = arith.constant dense<0.000000e+00> : vector<256x16xf32>
    %2 = tpu.matmul %0, %1, %cst {dimension_numbers = #tpu.dot_dimension_numbers<[1], [0], [0], [1], [0, 0, 1, 1], [], []>} : vector<256x256xbf16>, vector<256x16xbf16>, vector<256x16xf32> -> vector<256x16xf32>
    %c0_3 = arith.constant 0 : index
    %c0_4 = arith.constant 0 : index
    %3 = vector.load %arg3[%c0_3, %c0_4] : memref<1x16xf32, #tpu.memory_space<vmem>>, vector<1x16xf32>
    %4 = vector.broadcast %3 : vector<1x16xf32> to vector<256x16xf32>
    %5 = arith.addf %2, %4 : vector<256x16xf32>
    %c0_5 = arith.constant 0 : index
    %c0_6 = arith.constant 0 : index
    %6 = vector.load %arg4[%c0_5, %c0_6] : memref<256x16xbf16, #tpu.memory_space<vmem>>, vector<256x16xbf16>
    %7 = arith.extf %6 : vector<256x16xbf16> to vector<256x16xf32>
    %8 = arith.addf %5, %7 : vector<256x16xf32>
    %cst_7 = arith.constant 0.000000e+00 : f32
    %9 = vector.broadcast %cst_7 : f32 to vector<256x16xf32>
    %10 = arith.maximumf %8, %9 : vector<256x16xf32>
    %11 = arith.truncf %10 : vector<256x16xf32> to vector<256x16xbf16>
    %c0_8 = arith.constant 0 : index
    %c0_9 = arith.constant 0 : index
    %12 = vector.load %arg5[%c0_8, %c0_9] : memref<256x16xbf16, #tpu.memory_space<vmem>>, vector<256x16xbf16>
    tpu.vector_store %arg5[%c0_8, %c0_9], %11 {strides = array<i32>} : memref<256x16xbf16, #tpu.memory_space<vmem>>, vector<256x16xbf16>,
    return
  }
  func.func @transform_0(%arg0: i32) -> (i32, i32) {
    %c0_i32 = arith.constant 0 : i32
    %c0_i32_0 = arith.constant 0 : i32
    return %arg0, %c0_i32 : i32, i32
  }
  func.func @transform_1(%arg0: i32) -> (i32, i32) {
    %c0_i32 = arith.constant 0 : i32
    %c0_i32_0 = arith.constant 0 : i32
    %c0_i32_1 = arith.constant 0 : i32
    return %c0_i32, %c0_i32_0 : i32, i32
  }
  func.func @transform_2(%arg0: i32) -> (i32, i32) {
    %c0_i32 = arith.constant 0 : i32
    %c0_i32_0 = arith.constant 0 : i32
    %c0_i32_1 = arith.constant 0 : i32
    return %c0_i32, %c0_i32_0 : i32, i32
  }
  func.func @transform_3(%arg0: i32) -> (i32, i32) {
    %c0_i32 = arith.constant 0 : i32
    %c0_i32_0 = arith.constant 0 : i32
    return %arg0, %c0_i32 : i32, i32
  }
  func.func @transform_4(%arg0: i32) -> (i32, i32) {
    %c0_i32 = arith.constant 0 : i32
    %c0_i32_0 = arith.constant 0 : i32
    return %arg0, %c0_i32 : i32, i32
  }
}

module attributes {stable_mosaic.version = 11 : i64} {
  func.func @_gemm_kernel(%arg0: i32, %arg1: memref<128x256xbf16, #tpu.memory_space<vmem>>, %arg2: memref<256x64xbf16, #tpu.memory_space<vmem>>, %arg3: memref<1x64xf32, #tpu.memory_space<vmem>>, %arg4: memref<128x64xbf16, #tpu.memory_space<vmem>>) attributes {dimension_semantics = [#tpu.dimension_semantics<parallel>], iteration_bounds = array<i64: 1>, scalar_prefetch = 0 : i64, scratch_operands = 0 : i64, tpu.core_type = #tpu.core_type<tc>, window_params = [{transform_indices = @transform_0, window_bounds = array<i64: 128, 256>}, {pipeline_mode = #tpu.pipeline_mode<synchronous>, transform_indices = @transform_1, window_bounds = array<i64: 256, 64>}, {pipeline_mode = #tpu.pipeline_mode<synchronous>, transform_indices = @transform_2, window_bounds = array<i64: 1, 64>}, {transform_indices = @transform_3, window_bounds = array<i64: 128, 64>}]} {
    %c0 = arith.constant 0 : index
    %c0_0 = arith.constant 0 : index
    %0 = vector.load %arg1[%c0, %c0_0] : memref<128x256xbf16, #tpu.memory_space<vmem>>, vector<128x256xbf16>
    %c0_1 = arith.constant 0 : index
    %c0_2 = arith.constant 0 : index
    %1 = vector.load %arg2[%c0_1, %c0_2] : memref<256x64xbf16, #tpu.memory_space<vmem>>, vector<256x64xbf16>
    %cst = arith.constant dense<0.000000e+00> : vector<128x64xf32>
    %2 = tpu.matmul %0, %1, %cst {dimension_numbers = #tpu.dot_dimension_numbers<[1], [0], [0], [1], [0, 0, 1, 1], [], []>} : vector<128x256xbf16>, vector<256x64xbf16>, vector<128x64xf32> -> vector<128x64xf32>
    %c0_3 = arith.constant 0 : index
    %c0_4 = arith.constant 0 : index
    %3 = vector.load %arg3[%c0_3, %c0_4] : memref<1x64xf32, #tpu.memory_space<vmem>>, vector<1x64xf32>
    %4 = vector.broadcast %3 : vector<1x64xf32> to vector<128x64xf32>
    %5 = arith.addf %2, %4 : vector<128x64xf32>
    %6 = tpu.iota {dimensions = array<i32: 1>} : vector<128x64xi32>
    %c32_i32 = arith.constant 32 : i32
    %7 = vector.broadcast %c32_i32 : i32 to vector<128x64xi32>
    %8 = arith.cmpi slt, %6, %7 : vector<128x64xi32>
    %cst_5 = arith.constant 0.000000e+00 : f32
    %9 = vector.broadcast %cst_5 : f32 to vector<128x64xf32>
    %10 = arith.maximumf %5, %9 : vector<128x64xf32>
    %11 = arith.select %8, %10, %5 : vector<128x64xi1>, vector<128x64xf32>
    %12 = arith.truncf %11 : vector<128x64xf32> to vector<128x64xbf16>
    %c0_6 = arith.constant 0 : index
    %c0_7 = arith.constant 0 : index
    %13 = vector.load %arg4[%c0_6, %c0_7] : memref<128x64xbf16, #tpu.memory_space<vmem>>, vector<128x64xbf16>
    tpu.vector_store %arg4[%c0_6, %c0_7], %12 {strides = array<i32>} : memref<128x64xbf16, #tpu.memory_space<vmem>>, vector<128x64xbf16>,
    return
  }
  func.func @transform_0(%arg0: i32) -> (i32, i32) {
    %c0_i32 = arith.constant 0 : i32
    %c0_i32_0 = arith.constant 0 : i32
    return %arg0, %c0_i32 : i32, i32
  }
  func.func @transform_1(%arg0: i32) -> (i32, i32) {
    %c0_i32 = arith.constant 0 : i32
    %c0_i32_0 = arith.constant 0 : i32
    %c0_i32_1 = arith.constant 0 : i32
    return %c0_i32, %c0_i32_0 : i32, i32
  }
  func.func @transform_2(%arg0: i32) -> (i32, i32) {
    %c0_i32 = arith.constant 0 : i32
    %c0_i32_0 = arith.constant 0 : i32
    %c0_i32_1 = arith.constant 0 : i32
    return %c0_i32, %c0_i32_0 : i32, i32
  }
  func.func @transform_3(%arg0: i32) -> (i32, i32) {
    %c0_i32 = arith.constant 0 : i32
    %c0_i32_0 = arith.constant 0 : i32
    return %arg0, %c0_i32 : i32, i32
  }
}

module attributes {stable_mosaic.version = 11 : i64} {
  func.func @_gemm_res_kernel(%arg0: i32, %arg1: memref<128x384xbf16, #tpu.memory_space<vmem>>, %arg2: memref<384x32xbf16, #tpu.memory_space<vmem>>, %arg3: memref<1x32xf32, #tpu.memory_space<vmem>>, %arg4: memref<128x32xbf16, #tpu.memory_space<vmem>>, %arg5: memref<128x32xbf16, #tpu.memory_space<vmem>>) attributes {dimension_semantics = [#tpu.dimension_semantics<parallel>], iteration_bounds = array<i64: 1>, scalar_prefetch = 0 : i64, scratch_operands = 0 : i64, tpu.core_type = #tpu.core_type<tc>, window_params = [{transform_indices = @transform_0, window_bounds = array<i64: 128, 384>}, {pipeline_mode = #tpu.pipeline_mode<synchronous>, transform_indices = @transform_1, window_bounds = array<i64: 384, 32>}, {pipeline_mode = #tpu.pipeline_mode<synchronous>, transform_indices = @transform_2, window_bounds = array<i64: 1, 32>}, {transform_indices = @transform_3, window_bounds = array<i64: 128, 32>}, {transform_indices = @transform_4, window_bounds = array<i64: 128, 32>}]} {
    %c0 = arith.constant 0 : index
    %c0_0 = arith.constant 0 : index
    %0 = vector.load %arg1[%c0, %c0_0] : memref<128x384xbf16, #tpu.memory_space<vmem>>, vector<128x384xbf16>
    %c0_1 = arith.constant 0 : index
    %c0_2 = arith.constant 0 : index
    %1 = vector.load %arg2[%c0_1, %c0_2] : memref<384x32xbf16, #tpu.memory_space<vmem>>, vector<384x32xbf16>
    %cst = arith.constant dense<0.000000e+00> : vector<128x32xf32>
    %2 = tpu.matmul %0, %1, %cst {dimension_numbers = #tpu.dot_dimension_numbers<[1], [0], [0], [1], [0, 0, 1, 1], [], []>} : vector<128x384xbf16>, vector<384x32xbf16>, vector<128x32xf32> -> vector<128x32xf32>
    %c0_3 = arith.constant 0 : index
    %c0_4 = arith.constant 0 : index
    %3 = vector.load %arg3[%c0_3, %c0_4] : memref<1x32xf32, #tpu.memory_space<vmem>>, vector<1x32xf32>
    %4 = vector.broadcast %3 : vector<1x32xf32> to vector<128x32xf32>
    %5 = arith.addf %2, %4 : vector<128x32xf32>
    %c0_5 = arith.constant 0 : index
    %c0_6 = arith.constant 0 : index
    %6 = vector.load %arg4[%c0_5, %c0_6] : memref<128x32xbf16, #tpu.memory_space<vmem>>, vector<128x32xbf16>
    %7 = arith.extf %6 : vector<128x32xbf16> to vector<128x32xf32>
    %8 = arith.addf %5, %7 : vector<128x32xf32>
    %cst_7 = arith.constant 0.000000e+00 : f32
    %9 = vector.broadcast %cst_7 : f32 to vector<128x32xf32>
    %10 = arith.maximumf %8, %9 : vector<128x32xf32>
    %11 = arith.truncf %10 : vector<128x32xf32> to vector<128x32xbf16>
    %c0_8 = arith.constant 0 : index
    %c0_9 = arith.constant 0 : index
    %12 = vector.load %arg5[%c0_8, %c0_9] : memref<128x32xbf16, #tpu.memory_space<vmem>>, vector<128x32xbf16>
    tpu.vector_store %arg5[%c0_8, %c0_9], %11 {strides = array<i32>} : memref<128x32xbf16, #tpu.memory_space<vmem>>, vector<128x32xbf16>,
    return
  }
  func.func @transform_0(%arg0: i32) -> (i32, i32) {
    %c0_i32 = arith.constant 0 : i32
    %c0_i32_0 = arith.constant 0 : i32
    return %arg0, %c0_i32 : i32, i32
  }
  func.func @transform_1(%arg0: i32) -> (i32, i32) {
    %c0_i32 = arith.constant 0 : i32
    %c0_i32_0 = arith.constant 0 : i32
    %c0_i32_1 = arith.constant 0 : i32
    return %c0_i32, %c0_i32_0 : i32, i32
  }
  func.func @transform_2(%arg0: i32) -> (i32, i32) {
    %c0_i32 = arith.constant 0 : i32
    %c0_i32_0 = arith.constant 0 : i32
    %c0_i32_1 = arith.constant 0 : i32
    return %c0_i32, %c0_i32_0 : i32, i32
  }
  func.func @transform_3(%arg0: i32) -> (i32, i32) {
    %c0_i32 = arith.constant 0 : i32
    %c0_i32_0 = arith.constant 0 : i32
    return %arg0, %c0_i32 : i32, i32
  }
  func.func @transform_4(%arg0: i32) -> (i32, i32) {
    %c0_i32 = arith.constant 0 : i32
    %c0_i32_0 = arith.constant 0 : i32
    return %arg0, %c0_i32 : i32, i32
  }
}

module attributes {stable_mosaic.version = 11 : i64} {
  func.func @_gemm_kernel(%arg0: i32, %arg1: memref<128x384xbf16, #tpu.memory_space<vmem>>, %arg2: memref<384x32xbf16, #tpu.memory_space<vmem>>, %arg3: memref<1x32xf32, #tpu.memory_space<vmem>>, %arg4: memref<128x32xbf16, #tpu.memory_space<vmem>>) attributes {dimension_semantics = [#tpu.dimension_semantics<parallel>], iteration_bounds = array<i64: 1>, scalar_prefetch = 0 : i64, scratch_operands = 0 : i64, tpu.core_type = #tpu.core_type<tc>, window_params = [{transform_indices = @transform_0, window_bounds = array<i64: 128, 384>}, {pipeline_mode = #tpu.pipeline_mode<synchronous>, transform_indices = @transform_1, window_bounds = array<i64: 384, 32>}, {pipeline_mode = #tpu.pipeline_mode<synchronous>, transform_indices = @transform_2, window_bounds = array<i64: 1, 32>}, {transform_indices = @transform_3, window_bounds = array<i64: 128, 32>}]} {
    %c0 = arith.constant 0 : index
    %c0_0 = arith.constant 0 : index
    %0 = vector.load %arg1[%c0, %c0_0] : memref<128x384xbf16, #tpu.memory_space<vmem>>, vector<128x384xbf16>
    %c0_1 = arith.constant 0 : index
    %c0_2 = arith.constant 0 : index
    %1 = vector.load %arg2[%c0_1, %c0_2] : memref<384x32xbf16, #tpu.memory_space<vmem>>, vector<384x32xbf16>
    %cst = arith.constant dense<0.000000e+00> : vector<128x32xf32>
    %2 = tpu.matmul %0, %1, %cst {dimension_numbers = #tpu.dot_dimension_numbers<[1], [0], [0], [1], [0, 0, 1, 1], [], []>} : vector<128x384xbf16>, vector<384x32xbf16>, vector<128x32xf32> -> vector<128x32xf32>
    %c0_3 = arith.constant 0 : index
    %c0_4 = arith.constant 0 : index
    %3 = vector.load %arg3[%c0_3, %c0_4] : memref<1x32xf32, #tpu.memory_space<vmem>>, vector<1x32xf32>
    %4 = vector.broadcast %3 : vector<1x32xf32> to vector<128x32xf32>
    %5 = arith.addf %2, %4 : vector<128x32xf32>
    %cst_5 = arith.constant 0.000000e+00 : f32
    %6 = vector.broadcast %cst_5 : f32 to vector<128x32xf32>
    %7 = arith.maximumf %5, %6 : vector<128x32xf32>
    %8 = arith.truncf %7 : vector<128x32xf32> to vector<128x32xbf16>
    %c0_6 = arith.constant 0 : index
    %c0_7 = arith.constant 0 : index
    %9 = vector.load %arg4[%c0_6, %c0_7] : memref<128x32xbf16, #tpu.memory_space<vmem>>, vector<128x32xbf16>
    tpu.vector_store %arg4[%c0_6, %c0_7], %8 {strides = array<i32>} : memref<128x32xbf16, #tpu.memory_space<vmem>>, vector<128x32xbf16>,
    return
  }
  func.func @transform_0(%arg0: i32) -> (i32, i32) {
    %c0_i32 = arith.constant 0 : i32
    %c0_i32_0 = arith.constant 0 : i32
    return %arg0, %c0_i32 : i32, i32
  }
  func.func @transform_1(%arg0: i32) -> (i32, i32) {
    %c0_i32 = arith.constant 0 : i32
    %c0_i32_0 = arith.constant 0 : i32
    %c0_i32_1 = arith.constant 0 : i32
    return %c0_i32, %c0_i32_0 : i32, i32
  }
  func.func @transform_2(%arg0: i32) -> (i32, i32) {
    %c0_i32 = arith.constant 0 : i32
    %c0_i32_0 = arith.constant 0 : i32
    %c0_i32_1 = arith.constant 0 : i32
    return %c0_i32, %c0_i32_0 : i32, i32
  }
  func.func @transform_3(%arg0: i32) -> (i32, i32) {
    %c0_i32 = arith.constant 0 : i32
    %c0_i32_0 = arith.constant 0 : i32
    return %arg0, %c0_i32 : i32, i32
  }
}

module attributes {stable_mosaic.version = 11 : i64} {
  func.func @_resblock_fused_kernel(%arg0: i32, %arg1: memref<128x32xbf16, #tpu.memory_space<vmem>>, %arg2: memref<9x32x128xbf16, #tpu.memory_space<vmem>>, %arg3: memref<288x64xbf16, #tpu.memory_space<vmem>>, %arg4: memref<1x64xf32, #tpu.memory_space<vmem>>, %arg5: memref<32x64xbf16, #tpu.memory_space<vmem>>, %arg6: memref<1x64xf32, #tpu.memory_space<vmem>>, %arg7: memref<9x32x32xbf16, #tpu.memory_space<vmem>>, %arg8: memref<576x64xbf16, #tpu.memory_space<vmem>>, %arg9: memref<1x64xf32, #tpu.memory_space<vmem>>, %arg10: memref<32x64xbf16, #tpu.memory_space<vmem>>) attributes {dimension_semantics = [#tpu.dimension_semantics<arbitrary>], iteration_bounds = array<i64: 1>, scalar_prefetch = 0 : i64, scratch_operands = 0 : i64, tpu.core_type = #tpu.core_type<tc>, window_params = [{pipeline_mode = #tpu.pipeline_mode<synchronous>, transform_indices = @transform_0, window_bounds = array<i64: 128, 32>}, {pipeline_mode = #tpu.pipeline_mode<synchronous>, transform_indices = @transform_1, window_bounds = array<i64: 9, 32, 128>}, {pipeline_mode = #tpu.pipeline_mode<synchronous>, transform_indices = @transform_2, window_bounds = array<i64: 288, 64>}, {pipeline_mode = #tpu.pipeline_mode<synchronous>, transform_indices = @transform_3, window_bounds = array<i64: 1, 64>}, {pipeline_mode = #tpu.pipeline_mode<synchronous>, transform_indices = @transform_4, window_bounds = array<i64: 32, 64>}, {pipeline_mode = #tpu.pipeline_mode<synchronous>, transform_indices = @transform_5, window_bounds = array<i64: 1, 64>}, {pipeline_mode = #tpu.pipeline_mode<synchronous>, transform_indices = @transform_6, window_bounds = array<i64: 9, 32, 32>}, {pipeline_mode = #tpu.pipeline_mode<synchronous>, transform_indices = @transform_7, window_bounds = array<i64: 576, 64>}, {pipeline_mode = #tpu.pipeline_mode<synchronous>, transform_indices = @transform_8, window_bounds = array<i64: 1, 64>}, {pipeline_mode = #tpu.pipeline_mode<synchronous>, transform_indices = @transform_9, window_bounds = array<i64: 32, 64>}]} {
    %c0 = arith.constant 0 : index
    %c0_0 = arith.constant 0 : index
    %0 = vector.load %arg1[%c0, %c0_0] : memref<128x32xbf16, #tpu.memory_space<vmem>>, vector<128x32xbf16>
    %cst = arith.constant 0.000000e+00 : f32
    %1 = vector.broadcast %cst : f32 to vector<32x64xf32>
    %c0_1 = arith.constant 0 : index
    %c0_2 = arith.constant 0 : index
    %c0_3 = arith.constant 0 : index
    %2 = vector.load %arg2[%c0_1, %c0_2, %c0_3] : memref<9x32x128xbf16, #tpu.memory_space<vmem>>, vector<1x32x128xbf16>
    %3 = vector.shape_cast %2 : vector<1x32x128xbf16> to vector<32x128xbf16>
    %cst_4 = arith.constant dense<0.000000e+00> : vector<32x32xf32>
    %4 = tpu.matmul %3, %0, %cst_4 {dimension_numbers = #tpu.dot_dimension_numbers<[1], [0], [0], [1], [0, 0, 1, 1], [], []>} : vector<32x128xbf16>, vector<128x32xbf16>, vector<32x32xf32> -> vector<32x32xf32>
    %5 = arith.truncf %4 : vector<32x32xf32> to vector<32x32xbf16>
    %c0_5 = arith.constant 0 : index
    %c0_6 = arith.constant 0 : index
    %6 = vector.load %arg3[%c0_5, %c0_6] : memref<288x64xbf16, #tpu.memory_space<vmem>>, vector<32x64xbf16>
    %cst_7 = arith.constant dense<0.000000e+00> : vector<32x64xf32>
    %7 = tpu.matmul %5, %6, %cst_7 {dimension_numbers = #tpu.dot_dimension_numbers<[1], [0], [0], [1], [0, 0, 1, 1], [], []>} : vector<32x32xbf16>, vector<32x64xbf16>, vector<32x64xf32> -> vector<32x64xf32>
    %8 = arith.addf %1, %7 : vector<32x64xf32>
    %c1 = arith.constant 1 : index
    %c0_8 = arith.constant 0 : index
    %c0_9 = arith.constant 0 : index
    %9 = vector.load %arg2[%c1, %c0_8, %c0_9] : memref<9x32x128xbf16, #tpu.memory_space<vmem>>, vector<1x32x128xbf16>
    %10 = vector.shape_cast %9 : vector<1x32x128xbf16> to vector<32x128xbf16>
    %cst_10 = arith.constant dense<0.000000e+00> : vector<32x32xf32>
    %11 = tpu.matmul %10, %0, %cst_10 {dimension_numbers = #tpu.dot_dimension_numbers<[1], [0], [0], [1], [0, 0, 1, 1], [], []>} : vector<32x128xbf16>, vector<128x32xbf16>, vector<32x32xf32> -> vector<32x32xf32>
    %12 = arith.truncf %11 : vector<32x32xf32> to vector<32x32xbf16>
    %c32 = arith.constant 32 : index
    %c0_11 = arith.constant 0 : index
    %13 = vector.load %arg3[%c32, %c0_11] : memref<288x64xbf16, #tpu.memory_space<vmem>>, vector<32x64xbf16>
    %cst_12 = arith.constant dense<0.000000e+00> : vector<32x64xf32>
    %14 = tpu.matmul %12, %13, %cst_12 {dimension_numbers = #tpu.dot_dimension_numbers<[1], [0], [0], [1], [0, 0, 1, 1], [], []>} : vector<32x32xbf16>, vector<32x64xbf16>, vector<32x64xf32> -> vector<32x64xf32>
    %15 = arith.addf %8, %14 : vector<32x64xf32>
    %c2 = arith.constant 2 : index
    %c0_13 = arith.constant 0 : index
    %c0_14 = arith.constant 0 : index
    %16 = vector.load %arg2[%c2, %c0_13, %c0_14] : memref<9x32x128xbf16, #tpu.memory_space<vmem>>, vector<1x32x128xbf16>
    %17 = vector.shape_cast %16 : vector<1x32x128xbf16> to vector<32x128xbf16>
    %cst_15 = arith.constant dense<0.000000e+00> : vector<32x32xf32>
    %18 = tpu.matmul %17, %0, %cst_15 {dimension_numbers = #tpu.dot_dimension_numbers<[1], [0], [0], [1], [0, 0, 1, 1], [], []>} : vector<32x128xbf16>, vector<128x32xbf16>, vector<32x32xf32> -> vector<32x32xf32>
    %19 = arith.truncf %18 : vector<32x32xf32> to vector<32x32xbf16>
    %c64 = arith.constant 64 : index
    %c0_16 = arith.constant 0 : index
    %20 = vector.load %arg3[%c64, %c0_16] : memref<288x64xbf16, #tpu.memory_space<vmem>>, vector<32x64xbf16>
    %cst_17 = arith.constant dense<0.000000e+00> : vector<32x64xf32>
    %21 = tpu.matmul %19, %20, %cst_17 {dimension_numbers = #tpu.dot_dimension_numbers<[1], [0], [0], [1], [0, 0, 1, 1], [], []>} : vector<32x32xbf16>, vector<32x64xbf16>, vector<32x64xf32> -> vector<32x64xf32>
    %22 = arith.addf %15, %21 : vector<32x64xf32>
    %c3 = arith.constant 3 : index
    %c0_18 = arith.constant 0 : index
    %c0_19 = arith.constant 0 : index
    %23 = vector.load %arg2[%c3, %c0_18, %c0_19] : memref<9x32x128xbf16, #tpu.memory_space<vmem>>, vector<1x32x128xbf16>
    %24 = vector.shape_cast %23 : vector<1x32x128xbf16> to vector<32x128xbf16>
    %cst_20 = arith.constant dense<0.000000e+00> : vector<32x32xf32>
    %25 = tpu.matmul %24, %0, %cst_20 {dimension_numbers = #tpu.dot_dimension_numbers<[1], [0], [0], [1], [0, 0, 1, 1], [], []>} : vector<32x128xbf16>, vector<128x32xbf16>, vector<32x32xf32> -> vector<32x32xf32>
    %26 = arith.truncf %25 : vector<32x32xf32> to vector<32x32xbf16>
    %c96 = arith.constant 96 : index
    %c0_21 = arith.constant 0 : index
    %27 = vector.load %arg3[%c96, %c0_21] : memref<288x64xbf16, #tpu.memory_space<vmem>>, vector<32x64xbf16>
    %cst_22 = arith.constant dense<0.000000e+00> : vector<32x64xf32>
    %28 = tpu.matmul %26, %27, %cst_22 {dimension_numbers = #tpu.dot_dimension_numbers<[1], [0], [0], [1], [0, 0, 1, 1], [], []>} : vector<32x32xbf16>, vector<32x64xbf16>, vector<32x64xf32> -> vector<32x64xf32>
    %29 = arith.addf %22, %28 : vector<32x64xf32>
    %c4 = arith.constant 4 : index
    %c0_23 = arith.constant 0 : index
    %c0_24 = arith.constant 0 : index
    %30 = vector.load %arg2[%c4, %c0_23, %c0_24] : memref<9x32x128xbf16, #tpu.memory_space<vmem>>, vector<1x32x128xbf16>
    %31 = vector.shape_cast %30 : vector<1x32x128xbf16> to vector<32x128xbf16>
    %cst_25 = arith.constant dense<0.000000e+00> : vector<32x32xf32>
    %32 = tpu.matmul %31, %0, %cst_25 {dimension_numbers = #tpu.dot_dimension_numbers<[1], [0], [0], [1], [0, 0, 1, 1], [], []>} : vector<32x128xbf16>, vector<128x32xbf16>, vector<32x32xf32> -> vector<32x32xf32>
    %33 = arith.truncf %32 : vector<32x32xf32> to vector<32x32xbf16>
    %c128 = arith.constant 128 : index
    %c0_26 = arith.constant 0 : index
    %34 = vector.load %arg3[%c128, %c0_26] : memref<288x64xbf16, #tpu.memory_space<vmem>>, vector<32x64xbf16>
    %cst_27 = arith.constant dense<0.000000e+00> : vector<32x64xf32>
    %35 = tpu.matmul %33, %34, %cst_27 {dimension_numbers = #tpu.dot_dimension_numbers<[1], [0], [0], [1], [0, 0, 1, 1], [], []>} : vector<32x32xbf16>, vector<32x64xbf16>, vector<32x64xf32> -> vector<32x64xf32>
    %36 = arith.addf %29, %35 : vector<32x64xf32>
    %c5 = arith.constant 5 : index
    %c0_28 = arith.constant 0 : index
    %c0_29 = arith.constant 0 : index
    %37 = vector.load %arg2[%c5, %c0_28, %c0_29] : memref<9x32x128xbf16, #tpu.memory_space<vmem>>, vector<1x32x128xbf16>
    %38 = vector.shape_cast %37 : vector<1x32x128xbf16> to vector<32x128xbf16>
    %cst_30 = arith.constant dense<0.000000e+00> : vector<32x32xf32>
    %39 = tpu.matmul %38, %0, %cst_30 {dimension_numbers = #tpu.dot_dimension_numbers<[1], [0], [0], [1], [0, 0, 1, 1], [], []>} : vector<32x128xbf16>, vector<128x32xbf16>, vector<32x32xf32> -> vector<32x32xf32>
    %40 = arith.truncf %39 : vector<32x32xf32> to vector<32x32xbf16>
    %c160 = arith.constant 160 : index
    %c0_31 = arith.constant 0 : index
    %41 = vector.load %arg3[%c160, %c0_31] : memref<288x64xbf16, #tpu.memory_space<vmem>>, vector<32x64xbf16>
    %cst_32 = arith.constant dense<0.000000e+00> : vector<32x64xf32>
    %42 = tpu.matmul %40, %41, %cst_32 {dimension_numbers = #tpu.dot_dimension_numbers<[1], [0], [0], [1], [0, 0, 1, 1], [], []>} : vector<32x32xbf16>, vector<32x64xbf16>, vector<32x64xf32> -> vector<32x64xf32>
    %43 = arith.addf %36, %42 : vector<32x64xf32>
    %c6 = arith.constant 6 : index
    %c0_33 = arith.constant 0 : index
    %c0_34 = arith.constant 0 : index
    %44 = vector.load %arg2[%c6, %c0_33, %c0_34] : memref<9x32x128xbf16, #tpu.memory_space<vmem>>, vector<1x32x128xbf16>
    %45 = vector.shape_cast %44 : vector<1x32x128xbf16> to vector<32x128xbf16>
    %cst_35 = arith.constant dense<0.000000e+00> : vector<32x32xf32>
    %46 = tpu.matmul %45, %0, %cst_35 {dimension_numbers = #tpu.dot_dimension_numbers<[1], [0], [0], [1], [0, 0, 1, 1], [], []>} : vector<32x128xbf16>, vector<128x32xbf16>, vector<32x32xf32> -> vector<32x32xf32>
    %47 = arith.truncf %46 : vector<32x32xf32> to vector<32x32xbf16>
    %c192 = arith.constant 192 : index
    %c0_36 = arith.constant 0 : index
    %48 = vector.load %arg3[%c192, %c0_36] : memref<288x64xbf16, #tpu.memory_space<vmem>>, vector<32x64xbf16>
    %cst_37 = arith.constant dense<0.000000e+00> : vector<32x64xf32>
    %49 = tpu.matmul %47, %48, %cst_37 {dimension_numbers = #tpu.dot_dimension_numbers<[1], [0], [0], [1], [0, 0, 1, 1], [], []>} : vector<32x32xbf16>, vector<32x64xbf16>, vector<32x64xf32> -> vector<32x64xf32>
    %50 = arith.addf %43, %49 : vector<32x64xf32>
    %c7 = arith.constant 7 : index
    %c0_38 = arith.constant 0 : index
    %c0_39 = arith.constant 0 : index
    %51 = vector.load %arg2[%c7, %c0_38, %c0_39] : memref<9x32x128xbf16, #tpu.memory_space<vmem>>, vector<1x32x128xbf16>
    %52 = vector.shape_cast %51 : vector<1x32x128xbf16> to vector<32x128xbf16>
    %cst_40 = arith.constant dense<0.000000e+00> : vector<32x32xf32>
    %53 = tpu.matmul %52, %0, %cst_40 {dimension_numbers = #tpu.dot_dimension_numbers<[1], [0], [0], [1], [0, 0, 1, 1], [], []>} : vector<32x128xbf16>, vector<128x32xbf16>, vector<32x32xf32> -> vector<32x32xf32>
    %54 = arith.truncf %53 : vector<32x32xf32> to vector<32x32xbf16>
    %c224 = arith.constant 224 : index
    %c0_41 = arith.constant 0 : index
    %55 = vector.load %arg3[%c224, %c0_41] : memref<288x64xbf16, #tpu.memory_space<vmem>>, vector<32x64xbf16>
    %cst_42 = arith.constant dense<0.000000e+00> : vector<32x64xf32>
    %56 = tpu.matmul %54, %55, %cst_42 {dimension_numbers = #tpu.dot_dimension_numbers<[1], [0], [0], [1], [0, 0, 1, 1], [], []>} : vector<32x32xbf16>, vector<32x64xbf16>, vector<32x64xf32> -> vector<32x64xf32>
    %57 = arith.addf %50, %56 : vector<32x64xf32>
    %c8 = arith.constant 8 : index
    %c0_43 = arith.constant 0 : index
    %c0_44 = arith.constant 0 : index
    %58 = vector.load %arg2[%c8, %c0_43, %c0_44] : memref<9x32x128xbf16, #tpu.memory_space<vmem>>, vector<1x32x128xbf16>
    %59 = vector.shape_cast %58 : vector<1x32x128xbf16> to vector<32x128xbf16>
    %cst_45 = arith.constant dense<0.000000e+00> : vector<32x32xf32>
    %60 = tpu.matmul %59, %0, %cst_45 {dimension_numbers = #tpu.dot_dimension_numbers<[1], [0], [0], [1], [0, 0, 1, 1], [], []>} : vector<32x128xbf16>, vector<128x32xbf16>, vector<32x32xf32> -> vector<32x32xf32>
    %61 = arith.truncf %60 : vector<32x32xf32> to vector<32x32xbf16>
    %c256 = arith.constant 256 : index
    %c0_46 = arith.constant 0 : index
    %62 = vector.load %arg3[%c256, %c0_46] : memref<288x64xbf16, #tpu.memory_space<vmem>>, vector<32x64xbf16>
    %cst_47 = arith.constant dense<0.000000e+00> : vector<32x64xf32>
    %63 = tpu.matmul %61, %62, %cst_47 {dimension_numbers = #tpu.dot_dimension_numbers<[1], [0], [0], [1], [0, 0, 1, 1], [], []>} : vector<32x32xbf16>, vector<32x64xbf16>, vector<32x64xf32> -> vector<32x64xf32>
    %64 = arith.addf %57, %63 : vector<32x64xf32>
    %c0_48 = arith.constant 0 : index
    %c0_49 = arith.constant 0 : index
    %65 = vector.load %arg4[%c0_48, %c0_49] : memref<1x64xf32, #tpu.memory_space<vmem>>, vector<1x64xf32>
    %66 = vector.broadcast %65 : vector<1x64xf32> to vector<32x64xf32>
    %67 = arith.addf %64, %66 : vector<32x64xf32>
    %cst_50 = arith.constant 0.000000e+00 : f32
    %68 = vector.broadcast %cst_50 : f32 to vector<32x64xf32>
    %69 = arith.maximumf %67, %68 : vector<32x64xf32>
    %70 = arith.truncf %69 : vector<32x64xf32> to vector<32x64xbf16>
    %c0_51 = arith.constant 0 : index
    %c0_52 = arith.constant 0 : index
    %71 = vector.load %arg5[%c0_51, %c0_52] : memref<32x64xbf16, #tpu.memory_space<vmem>>, vector<32x64xbf16>
    %cst_53 = arith.constant dense<0.000000e+00> : vector<32x64xf32>
    %72 = tpu.matmul %33, %71, %cst_53 {dimension_numbers = #tpu.dot_dimension_numbers<[1], [0], [0], [1], [0, 0, 1, 1], [], []>} : vector<32x32xbf16>, vector<32x64xbf16>, vector<32x64xf32> -> vector<32x64xf32>
    %c0_54 = arith.constant 0 : index
    %c0_55 = arith.constant 0 : index
    %73 = vector.load %arg6[%c0_54, %c0_55] : memref<1x64xf32, #tpu.memory_space<vmem>>, vector<1x64xf32>
    %74 = vector.broadcast %73 : vector<1x64xf32> to vector<32x64xf32>
    %75 = arith.addf %72, %74 : vector<32x64xf32>
    %cst_56 = arith.constant 0.000000e+00 : f32
    %76 = vector.broadcast %cst_56 : f32 to vector<32x64xf32>
    %c0_57 = arith.constant 0 : index
    %c0_58 = arith.constant 0 : index
    %c0_59 = arith.constant 0 : index
    %77 = vector.load %arg7[%c0_57, %c0_58, %c0_59] : memref<9x32x32xbf16, #tpu.memory_space<vmem>>, vector<1x32x32xbf16>
    %78 = vector.shape_cast %77 : vector<1x32x32xbf16> to vector<32x32xbf16>
    %cst_60 = arith.constant dense<0.000000e+00> : vector<32x64xf32>
    %79 = tpu.matmul %78, %70, %cst_60 {dimension_numbers = #tpu.dot_dimension_numbers<[1], [0], [0], [1], [0, 0, 1, 1], [], []>} : vector<32x32xbf16>, vector<32x64xbf16>, vector<32x64xf32> -> vector<32x64xf32>
    %80 = arith.truncf %79 : vector<32x64xf32> to vector<32x64xbf16>
    %c0_61 = arith.constant 0 : index
    %c0_62 = arith.constant 0 : index
    %81 = vector.load %arg8[%c0_61, %c0_62] : memref<576x64xbf16, #tpu.memory_space<vmem>>, vector<64x64xbf16>
    %cst_63 = arith.constant dense<0.000000e+00> : vector<32x64xf32>
    %82 = tpu.matmul %80, %81, %cst_63 {dimension_numbers = #tpu.dot_dimension_numbers<[1], [0], [0], [1], [0, 0, 1, 1], [], []>} : vector<32x64xbf16>, vector<64x64xbf16>, vector<32x64xf32> -> vector<32x64xf32>
    %83 = arith.addf %76, %82 : vector<32x64xf32>
    %c1_64 = arith.constant 1 : index
    %c0_65 = arith.constant 0 : index
    %c0_66 = arith.constant 0 : index
    %84 = vector.load %arg7[%c1_64, %c0_65, %c0_66] : memref<9x32x32xbf16, #tpu.memory_space<vmem>>, vector<1x32x32xbf16>
    %85 = vector.shape_cast %84 : vector<1x32x32xbf16> to vector<32x32xbf16>
    %cst_67 = arith.constant dense<0.000000e+00> : vector<32x64xf32>
    %86 = tpu.matmul %85, %70, %cst_67 {dimension_numbers = #tpu.dot_dimension_numbers<[1], [0], [0], [1], [0, 0, 1, 1], [], []>} : vector<32x32xbf16>, vector<32x64xbf16>, vector<32x64xf32> -> vector<32x64xf32>
    %87 = arith.truncf %86 : vector<32x64xf32> to vector<32x64xbf16>
    %c64_68 = arith.constant 64 : index
    %c0_69 = arith.constant 0 : index
    %88 = vector.load %arg8[%c64_68, %c0_69] : memref<576x64xbf16, #tpu.memory_space<vmem>>, vector<64x64xbf16>
    %cst_70 = arith.constant dense<0.000000e+00> : vector<32x64xf32>
    %89 = tpu.matmul %87, %88, %cst_70 {dimension_numbers = #tpu.dot_dimension_numbers<[1], [0], [0], [1], [0, 0, 1, 1], [], []>} : vector<32x64xbf16>, vector<64x64xbf16>, vector<32x64xf32> -> vector<32x64xf32>
    %90 = arith.addf %83, %89 : vector<32x64xf32>
    %c2_71 = arith.constant 2 : index
    %c0_72 = arith.constant 0 : index
    %c0_73 = arith.constant 0 : index
    %91 = vector.load %arg7[%c2_71, %c0_72, %c0_73] : memref<9x32x32xbf16, #tpu.memory_space<vmem>>, vector<1x32x32xbf16>
    %92 = vector.shape_cast %91 : vector<1x32x32xbf16> to vector<32x32xbf16>
    %cst_74 = arith.constant dense<0.000000e+00> : vector<32x64xf32>
    %93 = tpu.matmul %92, %70, %cst_74 {dimension_numbers = #tpu.dot_dimension_numbers<[1], [0], [0], [1], [0, 0, 1, 1], [], []>} : vector<32x32xbf16>, vector<32x64xbf16>, vector<32x64xf32> -> vector<32x64xf32>
    %94 = arith.truncf %93 : vector<32x64xf32> to vector<32x64xbf16>
    %c128_75 = arith.constant 128 : index
    %c0_76 = arith.constant 0 : index
    %95 = vector.load %arg8[%c128_75, %c0_76] : memref<576x64xbf16, #tpu.memory_space<vmem>>, vector<64x64xbf16>
    %cst_77 = arith.constant dense<0.000000e+00> : vector<32x64xf32>
    %96 = tpu.matmul %94, %95, %cst_77 {dimension_numbers = #tpu.dot_dimension_numbers<[1], [0], [0], [1], [0, 0, 1, 1], [], []>} : vector<32x64xbf16>, vector<64x64xbf16>, vector<32x64xf32> -> vector<32x64xf32>
    %97 = arith.addf %90, %96 : vector<32x64xf32>
    %c3_78 = arith.constant 3 : index
    %c0_79 = arith.constant 0 : index
    %c0_80 = arith.constant 0 : index
    %98 = vector.load %arg7[%c3_78, %c0_79, %c0_80] : memref<9x32x32xbf16, #tpu.memory_space<vmem>>, vector<1x32x32xbf16>
    %99 = vector.shape_cast %98 : vector<1x32x32xbf16> to vector<32x32xbf16>
    %cst_81 = arith.constant dense<0.000000e+00> : vector<32x64xf32>
    %100 = tpu.matmul %99, %70, %cst_81 {dimension_numbers = #tpu.dot_dimension_numbers<[1], [0], [0], [1], [0, 0, 1, 1], [], []>} : vector<32x32xbf16>, vector<32x64xbf16>, vector<32x64xf32> -> vector<32x64xf32>
    %101 = arith.truncf %100 : vector<32x64xf32> to vector<32x64xbf16>
    %c192_82 = arith.constant 192 : index
    %c0_83 = arith.constant 0 : index
    %102 = vector.load %arg8[%c192_82, %c0_83] : memref<576x64xbf16, #tpu.memory_space<vmem>>, vector<64x64xbf16>
    %cst_84 = arith.constant dense<0.000000e+00> : vector<32x64xf32>
    %103 = tpu.matmul %101, %102, %cst_84 {dimension_numbers = #tpu.dot_dimension_numbers<[1], [0], [0], [1], [0, 0, 1, 1], [], []>} : vector<32x64xbf16>, vector<64x64xbf16>, vector<32x64xf32> -> vector<32x64xf32>
    %104 = arith.addf %97, %103 : vector<32x64xf32>
    %c4_85 = arith.constant 4 : index
    %c0_86 = arith.constant 0 : index
    %c0_87 = arith.constant 0 : index
    %105 = vector.load %arg7[%c4_85, %c0_86, %c0_87] : memref<9x32x32xbf16, #tpu.memory_space<vmem>>, vector<1x32x32xbf16>
    %106 = vector.shape_cast %105 : vector<1x32x32xbf16> to vector<32x32xbf16>
    %cst_88 = arith.constant dense<0.000000e+00> : vector<32x64xf32>
    %107 = tpu.matmul %106, %70, %cst_88 {dimension_numbers = #tpu.dot_dimension_numbers<[1], [0], [0], [1], [0, 0, 1, 1], [], []>} : vector<32x32xbf16>, vector<32x64xbf16>, vector<32x64xf32> -> vector<32x64xf32>
    %108 = arith.truncf %107 : vector<32x64xf32> to vector<32x64xbf16>
    %c256_89 = arith.constant 256 : index
    %c0_90 = arith.constant 0 : index
    %109 = vector.load %arg8[%c256_89, %c0_90] : memref<576x64xbf16, #tpu.memory_space<vmem>>, vector<64x64xbf16>
    %cst_91 = arith.constant dense<0.000000e+00> : vector<32x64xf32>
    %110 = tpu.matmul %108, %109, %cst_91 {dimension_numbers = #tpu.dot_dimension_numbers<[1], [0], [0], [1], [0, 0, 1, 1], [], []>} : vector<32x64xbf16>, vector<64x64xbf16>, vector<32x64xf32> -> vector<32x64xf32>
    %111 = arith.addf %104, %110 : vector<32x64xf32>
    %c5_92 = arith.constant 5 : index
    %c0_93 = arith.constant 0 : index
    %c0_94 = arith.constant 0 : index
    %112 = vector.load %arg7[%c5_92, %c0_93, %c0_94] : memref<9x32x32xbf16, #tpu.memory_space<vmem>>, vector<1x32x32xbf16>
    %113 = vector.shape_cast %112 : vector<1x32x32xbf16> to vector<32x32xbf16>
    %cst_95 = arith.constant dense<0.000000e+00> : vector<32x64xf32>
    %114 = tpu.matmul %113, %70, %cst_95 {dimension_numbers = #tpu.dot_dimension_numbers<[1], [0], [0], [1], [0, 0, 1, 1], [], []>} : vector<32x32xbf16>, vector<32x64xbf16>, vector<32x64xf32> -> vector<32x64xf32>
    %115 = arith.truncf %114 : vector<32x64xf32> to vector<32x64xbf16>
    %c320 = arith.constant 320 : index
    %c0_96 = arith.constant 0 : index
    %116 = vector.load %arg8[%c320, %c0_96] : memref<576x64xbf16, #tpu.memory_space<vmem>>, vector<64x64xbf16>
    %cst_97 = arith.constant dense<0.000000e+00> : vector<32x64xf32>
    %117 = tpu.matmul %115, %116, %cst_97 {dimension_numbers = #tpu.dot_dimension_numbers<[1], [0], [0], [1], [0, 0, 1, 1], [], []>} : vector<32x64xbf16>, vector<64x64xbf16>, vector<32x64xf32> -> vector<32x64xf32>
    %118 = arith.addf %111, %117 : vector<32x64xf32>
    %c6_98 = arith.constant 6 : index
    %c0_99 = arith.constant 0 : index
    %c0_100 = arith.constant 0 : index
    %119 = vector.load %arg7[%c6_98, %c0_99, %c0_100] : memref<9x32x32xbf16, #tpu.memory_space<vmem>>, vector<1x32x32xbf16>
    %120 = vector.shape_cast %119 : vector<1x32x32xbf16> to vector<32x32xbf16>
    %cst_101 = arith.constant dense<0.000000e+00> : vector<32x64xf32>
    %121 = tpu.matmul %120, %70, %cst_101 {dimension_numbers = #tpu.dot_dimension_numbers<[1], [0], [0], [1], [0, 0, 1, 1], [], []>} : vector<32x32xbf16>, vector<32x64xbf16>, vector<32x64xf32> -> vector<32x64xf32>
    %122 = arith.truncf %121 : vector<32x64xf32> to vector<32x64xbf16>
    %c384 = arith.constant 384 : index
    %c0_102 = arith.constant 0 : index
    %123 = vector.load %arg8[%c384, %c0_102] : memref<576x64xbf16, #tpu.memory_space<vmem>>, vector<64x64xbf16>
    %cst_103 = arith.constant dense<0.000000e+00> : vector<32x64xf32>
    %124 = tpu.matmul %122, %123, %cst_103 {dimension_numbers = #tpu.dot_dimension_numbers<[1], [0], [0], [1], [0, 0, 1, 1], [], []>} : vector<32x64xbf16>, vector<64x64xbf16>, vector<32x64xf32> -> vector<32x64xf32>
    %125 = arith.addf %118, %124 : vector<32x64xf32>
    %c7_104 = arith.constant 7 : index
    %c0_105 = arith.constant 0 : index
    %c0_106 = arith.constant 0 : index
    %126 = vector.load %arg7[%c7_104, %c0_105, %c0_106] : memref<9x32x32xbf16, #tpu.memory_space<vmem>>, vector<1x32x32xbf16>
    %127 = vector.shape_cast %126 : vector<1x32x32xbf16> to vector<32x32xbf16>
    %cst_107 = arith.constant dense<0.000000e+00> : vector<32x64xf32>
    %128 = tpu.matmul %127, %70, %cst_107 {dimension_numbers = #tpu.dot_dimension_numbers<[1], [0], [0], [1], [0, 0, 1, 1], [], []>} : vector<32x32xbf16>, vector<32x64xbf16>, vector<32x64xf32> -> vector<32x64xf32>
    %129 = arith.truncf %128 : vector<32x64xf32> to vector<32x64xbf16>
    %c448 = arith.constant 448 : index
    %c0_108 = arith.constant 0 : index
    %130 = vector.load %arg8[%c448, %c0_108] : memref<576x64xbf16, #tpu.memory_space<vmem>>, vector<64x64xbf16>
    %cst_109 = arith.constant dense<0.000000e+00> : vector<32x64xf32>
    %131 = tpu.matmul %129, %130, %cst_109 {dimension_numbers = #tpu.dot_dimension_numbers<[1], [0], [0], [1], [0, 0, 1, 1], [], []>} : vector<32x64xbf16>, vector<64x64xbf16>, vector<32x64xf32> -> vector<32x64xf32>
    %132 = arith.addf %125, %131 : vector<32x64xf32>
    %c8_110 = arith.constant 8 : index
    %c0_111 = arith.constant 0 : index
    %c0_112 = arith.constant 0 : index
    %133 = vector.load %arg7[%c8_110, %c0_111, %c0_112] : memref<9x32x32xbf16, #tpu.memory_space<vmem>>, vector<1x32x32xbf16>
    %134 = vector.shape_cast %133 : vector<1x32x32xbf16> to vector<32x32xbf16>
    %cst_113 = arith.constant dense<0.000000e+00> : vector<32x64xf32>
    %135 = tpu.matmul %134, %70, %cst_113 {dimension_numbers = #tpu.dot_dimension_numbers<[1], [0], [0], [1], [0, 0, 1, 1], [], []>} : vector<32x32xbf16>, vector<32x64xbf16>, vector<32x64xf32> -> vector<32x64xf32>
    %136 = arith.truncf %135 : vector<32x64xf32> to vector<32x64xbf16>
    %c512 = arith.constant 512 : index
    %c0_114 = arith.constant 0 : index
    %137 = vector.load %arg8[%c512, %c0_114] : memref<576x64xbf16, #tpu.memory_space<vmem>>, vector<64x64xbf16>
    %cst_115 = arith.constant dense<0.000000e+00> : vector<32x64xf32>
    %138 = tpu.matmul %136, %137, %cst_115 {dimension_numbers = #tpu.dot_dimension_numbers<[1], [0], [0], [1], [0, 0, 1, 1], [], []>} : vector<32x64xbf16>, vector<64x64xbf16>, vector<32x64xf32> -> vector<32x64xf32>
    %139 = arith.addf %132, %138 : vector<32x64xf32>
    %c0_116 = arith.constant 0 : index
    %c0_117 = arith.constant 0 : index
    %140 = vector.load %arg9[%c0_116, %c0_117] : memref<1x64xf32, #tpu.memory_space<vmem>>, vector<1x64xf32>
    %141 = vector.broadcast %140 : vector<1x64xf32> to vector<32x64xf32>
    %142 = arith.addf %139, %141 : vector<32x64xf32>
    %143 = arith.addf %142, %75 : vector<32x64xf32>
    %cst_118 = arith.constant 0.000000e+00 : f32
    %144 = vector.broadcast %cst_118 : f32 to vector<32x64xf32>
    %145 = arith.maximumf %143, %144 : vector<32x64xf32>
    %146 = arith.truncf %145 : vector<32x64xf32> to vector<32x64xbf16>
    %c0_119 = arith.constant 0 : index
    %c0_120 = arith.constant 0 : index
    %147 = vector.load %arg10[%c0_119, %c0_120] : memref<32x64xbf16, #tpu.memory_space<vmem>>, vector<32x64xbf16>
    tpu.vector_store %arg10[%c0_119, %c0_120], %146 {strides = array<i32>} : memref<32x64xbf16, #tpu.memory_space<vmem>>, vector<32x64xbf16>,
    return
  }
  func.func @transform_0(%arg0: i32) -> (i32, i32) {
    %c0_i32 = arith.constant 0 : i32
    %c0_i32_0 = arith.constant 0 : i32
    %c0_i32_1 = arith.constant 0 : i32
    return %c0_i32, %c0_i32_0 : i32, i32
  }
  func.func @transform_1(%arg0: i32) -> (i32, i32, i32) {
    %c0_i32 = arith.constant 0 : i32
    %c0_i32_0 = arith.constant 0 : i32
    %c0_i32_1 = arith.constant 0 : i32
    %c0_i32_2 = arith.constant 0 : i32
    return %c0_i32, %c0_i32_0, %c0_i32_1 : i32, i32, i32
  }
  func.func @transform_2(%arg0: i32) -> (i32, i32) {
    %c0_i32 = arith.constant 0 : i32
    %c0_i32_0 = arith.constant 0 : i32
    %c0_i32_1 = arith.constant 0 : i32
    return %c0_i32, %c0_i32_0 : i32, i32
  }
  func.func @transform_3(%arg0: i32) -> (i32, i32) {
    %c0_i32 = arith.constant 0 : i32
    %c0_i32_0 = arith.constant 0 : i32
    %c0_i32_1 = arith.constant 0 : i32
    return %c0_i32, %c0_i32_0 : i32, i32
  }
  func.func @transform_4(%arg0: i32) -> (i32, i32) {
    %c0_i32 = arith.constant 0 : i32
    %c0_i32_0 = arith.constant 0 : i32
    %c0_i32_1 = arith.constant 0 : i32
    return %c0_i32, %c0_i32_0 : i32, i32
  }
  func.func @transform_5(%arg0: i32) -> (i32, i32) {
    %c0_i32 = arith.constant 0 : i32
    %c0_i32_0 = arith.constant 0 : i32
    %c0_i32_1 = arith.constant 0 : i32
    return %c0_i32, %c0_i32_0 : i32, i32
  }
  func.func @transform_6(%arg0: i32) -> (i32, i32, i32) {
    %c0_i32 = arith.constant 0 : i32
    %c0_i32_0 = arith.constant 0 : i32
    %c0_i32_1 = arith.constant 0 : i32
    %c0_i32_2 = arith.constant 0 : i32
    return %c0_i32, %c0_i32_0, %c0_i32_1 : i32, i32, i32
  }
  func.func @transform_7(%arg0: i32) -> (i32, i32) {
    %c0_i32 = arith.constant 0 : i32
    %c0_i32_0 = arith.constant 0 : i32
    %c0_i32_1 = arith.constant 0 : i32
    return %c0_i32, %c0_i32_0 : i32, i32
  }
  func.func @transform_8(%arg0: i32) -> (i32, i32) {
    %c0_i32 = arith.constant 0 : i32
    %c0_i32_0 = arith.constant 0 : i32
    %c0_i32_1 = arith.constant 0 : i32
    return %c0_i32, %c0_i32_0 : i32, i32
  }
  func.func @transform_9(%arg0: i32) -> (i32, i32) {
    %c0_i32 = arith.constant 0 : i32
    %c0_i32_0 = arith.constant 0 : i32
    %c0_i32_1 = arith.constant 0 : i32
    return %c0_i32, %c0_i32_0 : i32, i32
  }
}

module attributes {stable_mosaic.version = 11 : i64} {
  func.func @_resblock_fused_kernel(%arg0: i32, %arg1: memref<32x64xbf16, #tpu.memory_space<vmem>>, %arg2: memref<9x32x32xbf16, #tpu.memory_space<vmem>>, %arg3: memref<576x64xbf16, #tpu.memory_space<vmem>>, %arg4: memref<1x64xf32, #tpu.memory_space<vmem>>, %arg5: memref<9x32x32xbf16, #tpu.memory_space<vmem>>, %arg6: memref<576x64xbf16, #tpu.memory_space<vmem>>, %arg7: memref<1x64xf32, #tpu.memory_space<vmem>>, %arg8: memref<32x64xbf16, #tpu.memory_space<vmem>>) attributes {dimension_semantics = [#tpu.dimension_semantics<arbitrary>], iteration_bounds = array<i64: 1>, scalar_prefetch = 0 : i64, scratch_operands = 0 : i64, tpu.core_type = #tpu.core_type<tc>, window_params = [{pipeline_mode = #tpu.pipeline_mode<synchronous>, transform_indices = @transform_0, window_bounds = array<i64: 32, 64>}, {pipeline_mode = #tpu.pipeline_mode<synchronous>, transform_indices = @transform_1, window_bounds = array<i64: 9, 32, 32>}, {pipeline_mode = #tpu.pipeline_mode<synchronous>, transform_indices = @transform_2, window_bounds = array<i64: 576, 64>}, {pipeline_mode = #tpu.pipeline_mode<synchronous>, transform_indices = @transform_3, window_bounds = array<i64: 1, 64>}, {pipeline_mode = #tpu.pipeline_mode<synchronous>, transform_indices = @transform_4, window_bounds = array<i64: 9, 32, 32>}, {pipeline_mode = #tpu.pipeline_mode<synchronous>, transform_indices = @transform_5, window_bounds = array<i64: 576, 64>}, {pipeline_mode = #tpu.pipeline_mode<synchronous>, transform_indices = @transform_6, window_bounds = array<i64: 1, 64>}, {pipeline_mode = #tpu.pipeline_mode<synchronous>, transform_indices = @transform_7, window_bounds = array<i64: 32, 64>}]} {
    %c0 = arith.constant 0 : index
    %c0_0 = arith.constant 0 : index
    %0 = vector.load %arg1[%c0, %c0_0] : memref<32x64xbf16, #tpu.memory_space<vmem>>, vector<32x64xbf16>
    %cst = arith.constant 0.000000e+00 : f32
    %1 = vector.broadcast %cst : f32 to vector<32x64xf32>
    %c0_1 = arith.constant 0 : index
    %c0_2 = arith.constant 0 : index
    %c0_3 = arith.constant 0 : index
    %2 = vector.load %arg2[%c0_1, %c0_2, %c0_3] : memref<9x32x32xbf16, #tpu.memory_space<vmem>>, vector<1x32x32xbf16>
    %3 = vector.shape_cast %2 : vector<1x32x32xbf16> to vector<32x32xbf16>
    %cst_4 = arith.constant dense<0.000000e+00> : vector<32x64xf32>
    %4 = tpu.matmul %3, %0, %cst_4 {dimension_numbers = #tpu.dot_dimension_numbers<[1], [0], [0], [1], [0, 0, 1, 1], [], []>} : vector<32x32xbf16>, vector<32x64xbf16>, vector<32x64xf32> -> vector<32x64xf32>
    %5 = arith.truncf %4 : vector<32x64xf32> to vector<32x64xbf16>
    %c0_5 = arith.constant 0 : index
    %c0_6 = arith.constant 0 : index
    %6 = vector.load %arg3[%c0_5, %c0_6] : memref<576x64xbf16, #tpu.memory_space<vmem>>, vector<64x64xbf16>
    %cst_7 = arith.constant dense<0.000000e+00> : vector<32x64xf32>
    %7 = tpu.matmul %5, %6, %cst_7 {dimension_numbers = #tpu.dot_dimension_numbers<[1], [0], [0], [1], [0, 0, 1, 1], [], []>} : vector<32x64xbf16>, vector<64x64xbf16>, vector<32x64xf32> -> vector<32x64xf32>
    %8 = arith.addf %1, %7 : vector<32x64xf32>
    %c1 = arith.constant 1 : index
    %c0_8 = arith.constant 0 : index
    %c0_9 = arith.constant 0 : index
    %9 = vector.load %arg2[%c1, %c0_8, %c0_9] : memref<9x32x32xbf16, #tpu.memory_space<vmem>>, vector<1x32x32xbf16>
    %10 = vector.shape_cast %9 : vector<1x32x32xbf16> to vector<32x32xbf16>
    %cst_10 = arith.constant dense<0.000000e+00> : vector<32x64xf32>
    %11 = tpu.matmul %10, %0, %cst_10 {dimension_numbers = #tpu.dot_dimension_numbers<[1], [0], [0], [1], [0, 0, 1, 1], [], []>} : vector<32x32xbf16>, vector<32x64xbf16>, vector<32x64xf32> -> vector<32x64xf32>
    %12 = arith.truncf %11 : vector<32x64xf32> to vector<32x64xbf16>
    %c64 = arith.constant 64 : index
    %c0_11 = arith.constant 0 : index
    %13 = vector.load %arg3[%c64, %c0_11] : memref<576x64xbf16, #tpu.memory_space<vmem>>, vector<64x64xbf16>
    %cst_12 = arith.constant dense<0.000000e+00> : vector<32x64xf32>
    %14 = tpu.matmul %12, %13, %cst_12 {dimension_numbers = #tpu.dot_dimension_numbers<[1], [0], [0], [1], [0, 0, 1, 1], [], []>} : vector<32x64xbf16>, vector<64x64xbf16>, vector<32x64xf32> -> vector<32x64xf32>
    %15 = arith.addf %8, %14 : vector<32x64xf32>
    %c2 = arith.constant 2 : index
    %c0_13 = arith.constant 0 : index
    %c0_14 = arith.constant 0 : index
    %16 = vector.load %arg2[%c2, %c0_13, %c0_14] : memref<9x32x32xbf16, #tpu.memory_space<vmem>>, vector<1x32x32xbf16>
    %17 = vector.shape_cast %16 : vector<1x32x32xbf16> to vector<32x32xbf16>
    %cst_15 = arith.constant dense<0.000000e+00> : vector<32x64xf32>
    %18 = tpu.matmul %17, %0, %cst_15 {dimension_numbers = #tpu.dot_dimension_numbers<[1], [0], [0], [1], [0, 0, 1, 1], [], []>} : vector<32x32xbf16>, vector<32x64xbf16>, vector<32x64xf32> -> vector<32x64xf32>
    %19 = arith.truncf %18 : vector<32x64xf32> to vector<32x64xbf16>
    %c128 = arith.constant 128 : index
    %c0_16 = arith.constant 0 : index
    %20 = vector.load %arg3[%c128, %c0_16] : memref<576x64xbf16, #tpu.memory_space<vmem>>, vector<64x64xbf16>
    %cst_17 = arith.constant dense<0.000000e+00> : vector<32x64xf32>
    %21 = tpu.matmul %19, %20, %cst_17 {dimension_numbers = #tpu.dot_dimension_numbers<[1], [0], [0], [1], [0, 0, 1, 1], [], []>} : vector<32x64xbf16>, vector<64x64xbf16>, vector<32x64xf32> -> vector<32x64xf32>
    %22 = arith.addf %15, %21 : vector<32x64xf32>
    %c3 = arith.constant 3 : index
    %c0_18 = arith.constant 0 : index
    %c0_19 = arith.constant 0 : index
    %23 = vector.load %arg2[%c3, %c0_18, %c0_19] : memref<9x32x32xbf16, #tpu.memory_space<vmem>>, vector<1x32x32xbf16>
    %24 = vector.shape_cast %23 : vector<1x32x32xbf16> to vector<32x32xbf16>
    %cst_20 = arith.constant dense<0.000000e+00> : vector<32x64xf32>
    %25 = tpu.matmul %24, %0, %cst_20 {dimension_numbers = #tpu.dot_dimension_numbers<[1], [0], [0], [1], [0, 0, 1, 1], [], []>} : vector<32x32xbf16>, vector<32x64xbf16>, vector<32x64xf32> -> vector<32x64xf32>
    %26 = arith.truncf %25 : vector<32x64xf32> to vector<32x64xbf16>
    %c192 = arith.constant 192 : index
    %c0_21 = arith.constant 0 : index
    %27 = vector.load %arg3[%c192, %c0_21] : memref<576x64xbf16, #tpu.memory_space<vmem>>, vector<64x64xbf16>
    %cst_22 = arith.constant dense<0.000000e+00> : vector<32x64xf32>
    %28 = tpu.matmul %26, %27, %cst_22 {dimension_numbers = #tpu.dot_dimension_numbers<[1], [0], [0], [1], [0, 0, 1, 1], [], []>} : vector<32x64xbf16>, vector<64x64xbf16>, vector<32x64xf32> -> vector<32x64xf32>
    %29 = arith.addf %22, %28 : vector<32x64xf32>
    %c4 = arith.constant 4 : index
    %c0_23 = arith.constant 0 : index
    %c0_24 = arith.constant 0 : index
    %30 = vector.load %arg2[%c4, %c0_23, %c0_24] : memref<9x32x32xbf16, #tpu.memory_space<vmem>>, vector<1x32x32xbf16>
    %31 = vector.shape_cast %30 : vector<1x32x32xbf16> to vector<32x32xbf16>
    %cst_25 = arith.constant dense<0.000000e+00> : vector<32x64xf32>
    %32 = tpu.matmul %31, %0, %cst_25 {dimension_numbers = #tpu.dot_dimension_numbers<[1], [0], [0], [1], [0, 0, 1, 1], [], []>} : vector<32x32xbf16>, vector<32x64xbf16>, vector<32x64xf32> -> vector<32x64xf32>
    %33 = arith.truncf %32 : vector<32x64xf32> to vector<32x64xbf16>
    %c256 = arith.constant 256 : index
    %c0_26 = arith.constant 0 : index
    %34 = vector.load %arg3[%c256, %c0_26] : memref<576x64xbf16, #tpu.memory_space<vmem>>, vector<64x64xbf16>
    %cst_27 = arith.constant dense<0.000000e+00> : vector<32x64xf32>
    %35 = tpu.matmul %33, %34, %cst_27 {dimension_numbers = #tpu.dot_dimension_numbers<[1], [0], [0], [1], [0, 0, 1, 1], [], []>} : vector<32x64xbf16>, vector<64x64xbf16>, vector<32x64xf32> -> vector<32x64xf32>
    %36 = arith.addf %29, %35 : vector<32x64xf32>
    %c5 = arith.constant 5 : index
    %c0_28 = arith.constant 0 : index
    %c0_29 = arith.constant 0 : index
    %37 = vector.load %arg2[%c5, %c0_28, %c0_29] : memref<9x32x32xbf16, #tpu.memory_space<vmem>>, vector<1x32x32xbf16>
    %38 = vector.shape_cast %37 : vector<1x32x32xbf16> to vector<32x32xbf16>
    %cst_30 = arith.constant dense<0.000000e+00> : vector<32x64xf32>
    %39 = tpu.matmul %38, %0, %cst_30 {dimension_numbers = #tpu.dot_dimension_numbers<[1], [0], [0], [1], [0, 0, 1, 1], [], []>} : vector<32x32xbf16>, vector<32x64xbf16>, vector<32x64xf32> -> vector<32x64xf32>
    %40 = arith.truncf %39 : vector<32x64xf32> to vector<32x64xbf16>
    %c320 = arith.constant 320 : index
    %c0_31 = arith.constant 0 : index
    %41 = vector.load %arg3[%c320, %c0_31] : memref<576x64xbf16, #tpu.memory_space<vmem>>, vector<64x64xbf16>
    %cst_32 = arith.constant dense<0.000000e+00> : vector<32x64xf32>
    %42 = tpu.matmul %40, %41, %cst_32 {dimension_numbers = #tpu.dot_dimension_numbers<[1], [0], [0], [1], [0, 0, 1, 1], [], []>} : vector<32x64xbf16>, vector<64x64xbf16>, vector<32x64xf32> -> vector<32x64xf32>
    %43 = arith.addf %36, %42 : vector<32x64xf32>
    %c6 = arith.constant 6 : index
    %c0_33 = arith.constant 0 : index
    %c0_34 = arith.constant 0 : index
    %44 = vector.load %arg2[%c6, %c0_33, %c0_34] : memref<9x32x32xbf16, #tpu.memory_space<vmem>>, vector<1x32x32xbf16>
    %45 = vector.shape_cast %44 : vector<1x32x32xbf16> to vector<32x32xbf16>
    %cst_35 = arith.constant dense<0.000000e+00> : vector<32x64xf32>
    %46 = tpu.matmul %45, %0, %cst_35 {dimension_numbers = #tpu.dot_dimension_numbers<[1], [0], [0], [1], [0, 0, 1, 1], [], []>} : vector<32x32xbf16>, vector<32x64xbf16>, vector<32x64xf32> -> vector<32x64xf32>
    %47 = arith.truncf %46 : vector<32x64xf32> to vector<32x64xbf16>
    %c384 = arith.constant 384 : index
    %c0_36 = arith.constant 0 : index
    %48 = vector.load %arg3[%c384, %c0_36] : memref<576x64xbf16, #tpu.memory_space<vmem>>, vector<64x64xbf16>
    %cst_37 = arith.constant dense<0.000000e+00> : vector<32x64xf32>
    %49 = tpu.matmul %47, %48, %cst_37 {dimension_numbers = #tpu.dot_dimension_numbers<[1], [0], [0], [1], [0, 0, 1, 1], [], []>} : vector<32x64xbf16>, vector<64x64xbf16>, vector<32x64xf32> -> vector<32x64xf32>
    %50 = arith.addf %43, %49 : vector<32x64xf32>
    %c7 = arith.constant 7 : index
    %c0_38 = arith.constant 0 : index
    %c0_39 = arith.constant 0 : index
    %51 = vector.load %arg2[%c7, %c0_38, %c0_39] : memref<9x32x32xbf16, #tpu.memory_space<vmem>>, vector<1x32x32xbf16>
    %52 = vector.shape_cast %51 : vector<1x32x32xbf16> to vector<32x32xbf16>
    %cst_40 = arith.constant dense<0.000000e+00> : vector<32x64xf32>
    %53 = tpu.matmul %52, %0, %cst_40 {dimension_numbers = #tpu.dot_dimension_numbers<[1], [0], [0], [1], [0, 0, 1, 1], [], []>} : vector<32x32xbf16>, vector<32x64xbf16>, vector<32x64xf32> -> vector<32x64xf32>
    %54 = arith.truncf %53 : vector<32x64xf32> to vector<32x64xbf16>
    %c448 = arith.constant 448 : index
    %c0_41 = arith.constant 0 : index
    %55 = vector.load %arg3[%c448, %c0_41] : memref<576x64xbf16, #tpu.memory_space<vmem>>, vector<64x64xbf16>
    %cst_42 = arith.constant dense<0.000000e+00> : vector<32x64xf32>
    %56 = tpu.matmul %54, %55, %cst_42 {dimension_numbers = #tpu.dot_dimension_numbers<[1], [0], [0], [1], [0, 0, 1, 1], [], []>} : vector<32x64xbf16>, vector<64x64xbf16>, vector<32x64xf32> -> vector<32x64xf32>
    %57 = arith.addf %50, %56 : vector<32x64xf32>
    %c8 = arith.constant 8 : index
    %c0_43 = arith.constant 0 : index
    %c0_44 = arith.constant 0 : index
    %58 = vector.load %arg2[%c8, %c0_43, %c0_44] : memref<9x32x32xbf16, #tpu.memory_space<vmem>>, vector<1x32x32xbf16>
    %59 = vector.shape_cast %58 : vector<1x32x32xbf16> to vector<32x32xbf16>
    %cst_45 = arith.constant dense<0.000000e+00> : vector<32x64xf32>
    %60 = tpu.matmul %59, %0, %cst_45 {dimension_numbers = #tpu.dot_dimension_numbers<[1], [0], [0], [1], [0, 0, 1, 1], [], []>} : vector<32x32xbf16>, vector<32x64xbf16>, vector<32x64xf32> -> vector<32x64xf32>
    %61 = arith.truncf %60 : vector<32x64xf32> to vector<32x64xbf16>
    %c512 = arith.constant 512 : index
    %c0_46 = arith.constant 0 : index
    %62 = vector.load %arg3[%c512, %c0_46] : memref<576x64xbf16, #tpu.memory_space<vmem>>, vector<64x64xbf16>
    %cst_47 = arith.constant dense<0.000000e+00> : vector<32x64xf32>
    %63 = tpu.matmul %61, %62, %cst_47 {dimension_numbers = #tpu.dot_dimension_numbers<[1], [0], [0], [1], [0, 0, 1, 1], [], []>} : vector<32x64xbf16>, vector<64x64xbf16>, vector<32x64xf32> -> vector<32x64xf32>
    %64 = arith.addf %57, %63 : vector<32x64xf32>
    %c0_48 = arith.constant 0 : index
    %c0_49 = arith.constant 0 : index
    %65 = vector.load %arg4[%c0_48, %c0_49] : memref<1x64xf32, #tpu.memory_space<vmem>>, vector<1x64xf32>
    %66 = vector.broadcast %65 : vector<1x64xf32> to vector<32x64xf32>
    %67 = arith.addf %64, %66 : vector<32x64xf32>
    %cst_50 = arith.constant 0.000000e+00 : f32
    %68 = vector.broadcast %cst_50 : f32 to vector<32x64xf32>
    %69 = arith.maximumf %67, %68 : vector<32x64xf32>
    %70 = arith.truncf %69 : vector<32x64xf32> to vector<32x64xbf16>
    %71 = arith.extf %0 : vector<32x64xbf16> to vector<32x64xf32>
    %cst_51 = arith.constant 0.000000e+00 : f32
    %72 = vector.broadcast %cst_51 : f32 to vector<32x64xf32>
    %c0_52 = arith.constant 0 : index
    %c0_53 = arith.constant 0 : index
    %c0_54 = arith.constant 0 : index
    %73 = vector.load %arg5[%c0_52, %c0_53, %c0_54] : memref<9x32x32xbf16, #tpu.memory_space<vmem>>, vector<1x32x32xbf16>
    %74 = vector.shape_cast %73 : vector<1x32x32xbf16> to vector<32x32xbf16>
    %cst_55 = arith.constant dense<0.000000e+00> : vector<32x64xf32>
    %75 = tpu.matmul %74, %70, %cst_55 {dimension_numbers = #tpu.dot_dimension_numbers<[1], [0], [0], [1], [0, 0, 1, 1], [], []>} : vector<32x32xbf16>, vector<32x64xbf16>, vector<32x64xf32> -> vector<32x64xf32>
    %76 = arith.truncf %75 : vector<32x64xf32> to vector<32x64xbf16>
    %c0_56 = arith.constant 0 : index
    %c0_57 = arith.constant 0 : index
    %77 = vector.load %arg6[%c0_56, %c0_57] : memref<576x64xbf16, #tpu.memory_space<vmem>>, vector<64x64xbf16>
    %cst_58 = arith.constant dense<0.000000e+00> : vector<32x64xf32>
    %78 = tpu.matmul %76, %77, %cst_58 {dimension_numbers = #tpu.dot_dimension_numbers<[1], [0], [0], [1], [0, 0, 1, 1], [], []>} : vector<32x64xbf16>, vector<64x64xbf16>, vector<32x64xf32> -> vector<32x64xf32>
    %79 = arith.addf %72, %78 : vector<32x64xf32>
    %c1_59 = arith.constant 1 : index
    %c0_60 = arith.constant 0 : index
    %c0_61 = arith.constant 0 : index
    %80 = vector.load %arg5[%c1_59, %c0_60, %c0_61] : memref<9x32x32xbf16, #tpu.memory_space<vmem>>, vector<1x32x32xbf16>
    %81 = vector.shape_cast %80 : vector<1x32x32xbf16> to vector<32x32xbf16>
    %cst_62 = arith.constant dense<0.000000e+00> : vector<32x64xf32>
    %82 = tpu.matmul %81, %70, %cst_62 {dimension_numbers = #tpu.dot_dimension_numbers<[1], [0], [0], [1], [0, 0, 1, 1], [], []>} : vector<32x32xbf16>, vector<32x64xbf16>, vector<32x64xf32> -> vector<32x64xf32>
    %83 = arith.truncf %82 : vector<32x64xf32> to vector<32x64xbf16>
    %c64_63 = arith.constant 64 : index
    %c0_64 = arith.constant 0 : index
    %84 = vector.load %arg6[%c64_63, %c0_64] : memref<576x64xbf16, #tpu.memory_space<vmem>>, vector<64x64xbf16>
    %cst_65 = arith.constant dense<0.000000e+00> : vector<32x64xf32>
    %85 = tpu.matmul %83, %84, %cst_65 {dimension_numbers = #tpu.dot_dimension_numbers<[1], [0], [0], [1], [0, 0, 1, 1], [], []>} : vector<32x64xbf16>, vector<64x64xbf16>, vector<32x64xf32> -> vector<32x64xf32>
    %86 = arith.addf %79, %85 : vector<32x64xf32>
    %c2_66 = arith.constant 2 : index
    %c0_67 = arith.constant 0 : index
    %c0_68 = arith.constant 0 : index
    %87 = vector.load %arg5[%c2_66, %c0_67, %c0_68] : memref<9x32x32xbf16, #tpu.memory_space<vmem>>, vector<1x32x32xbf16>
    %88 = vector.shape_cast %87 : vector<1x32x32xbf16> to vector<32x32xbf16>
    %cst_69 = arith.constant dense<0.000000e+00> : vector<32x64xf32>
    %89 = tpu.matmul %88, %70, %cst_69 {dimension_numbers = #tpu.dot_dimension_numbers<[1], [0], [0], [1], [0, 0, 1, 1], [], []>} : vector<32x32xbf16>, vector<32x64xbf16>, vector<32x64xf32> -> vector<32x64xf32>
    %90 = arith.truncf %89 : vector<32x64xf32> to vector<32x64xbf16>
    %c128_70 = arith.constant 128 : index
    %c0_71 = arith.constant 0 : index
    %91 = vector.load %arg6[%c128_70, %c0_71] : memref<576x64xbf16, #tpu.memory_space<vmem>>, vector<64x64xbf16>
    %cst_72 = arith.constant dense<0.000000e+00> : vector<32x64xf32>
    %92 = tpu.matmul %90, %91, %cst_72 {dimension_numbers = #tpu.dot_dimension_numbers<[1], [0], [0], [1], [0, 0, 1, 1], [], []>} : vector<32x64xbf16>, vector<64x64xbf16>, vector<32x64xf32> -> vector<32x64xf32>
    %93 = arith.addf %86, %92 : vector<32x64xf32>
    %c3_73 = arith.constant 3 : index
    %c0_74 = arith.constant 0 : index
    %c0_75 = arith.constant 0 : index
    %94 = vector.load %arg5[%c3_73, %c0_74, %c0_75] : memref<9x32x32xbf16, #tpu.memory_space<vmem>>, vector<1x32x32xbf16>
    %95 = vector.shape_cast %94 : vector<1x32x32xbf16> to vector<32x32xbf16>
    %cst_76 = arith.constant dense<0.000000e+00> : vector<32x64xf32>
    %96 = tpu.matmul %95, %70, %cst_76 {dimension_numbers = #tpu.dot_dimension_numbers<[1], [0], [0], [1], [0, 0, 1, 1], [], []>} : vector<32x32xbf16>, vector<32x64xbf16>, vector<32x64xf32> -> vector<32x64xf32>
    %97 = arith.truncf %96 : vector<32x64xf32> to vector<32x64xbf16>
    %c192_77 = arith.constant 192 : index
    %c0_78 = arith.constant 0 : index
    %98 = vector.load %arg6[%c192_77, %c0_78] : memref<576x64xbf16, #tpu.memory_space<vmem>>, vector<64x64xbf16>
    %cst_79 = arith.constant dense<0.000000e+00> : vector<32x64xf32>
    %99 = tpu.matmul %97, %98, %cst_79 {dimension_numbers = #tpu.dot_dimension_numbers<[1], [0], [0], [1], [0, 0, 1, 1], [], []>} : vector<32x64xbf16>, vector<64x64xbf16>, vector<32x64xf32> -> vector<32x64xf32>
    %100 = arith.addf %93, %99 : vector<32x64xf32>
    %c4_80 = arith.constant 4 : index
    %c0_81 = arith.constant 0 : index
    %c0_82 = arith.constant 0 : index
    %101 = vector.load %arg5[%c4_80, %c0_81, %c0_82] : memref<9x32x32xbf16, #tpu.memory_space<vmem>>, vector<1x32x32xbf16>
    %102 = vector.shape_cast %101 : vector<1x32x32xbf16> to vector<32x32xbf16>
    %cst_83 = arith.constant dense<0.000000e+00> : vector<32x64xf32>
    %103 = tpu.matmul %102, %70, %cst_83 {dimension_numbers = #tpu.dot_dimension_numbers<[1], [0], [0], [1], [0, 0, 1, 1], [], []>} : vector<32x32xbf16>, vector<32x64xbf16>, vector<32x64xf32> -> vector<32x64xf32>
    %104 = arith.truncf %103 : vector<32x64xf32> to vector<32x64xbf16>
    %c256_84 = arith.constant 256 : index
    %c0_85 = arith.constant 0 : index
    %105 = vector.load %arg6[%c256_84, %c0_85] : memref<576x64xbf16, #tpu.memory_space<vmem>>, vector<64x64xbf16>
    %cst_86 = arith.constant dense<0.000000e+00> : vector<32x64xf32>
    %106 = tpu.matmul %104, %105, %cst_86 {dimension_numbers = #tpu.dot_dimension_numbers<[1], [0], [0], [1], [0, 0, 1, 1], [], []>} : vector<32x64xbf16>, vector<64x64xbf16>, vector<32x64xf32> -> vector<32x64xf32>
    %107 = arith.addf %100, %106 : vector<32x64xf32>
    %c5_87 = arith.constant 5 : index
    %c0_88 = arith.constant 0 : index
    %c0_89 = arith.constant 0 : index
    %108 = vector.load %arg5[%c5_87, %c0_88, %c0_89] : memref<9x32x32xbf16, #tpu.memory_space<vmem>>, vector<1x32x32xbf16>
    %109 = vector.shape_cast %108 : vector<1x32x32xbf16> to vector<32x32xbf16>
    %cst_90 = arith.constant dense<0.000000e+00> : vector<32x64xf32>
    %110 = tpu.matmul %109, %70, %cst_90 {dimension_numbers = #tpu.dot_dimension_numbers<[1], [0], [0], [1], [0, 0, 1, 1], [], []>} : vector<32x32xbf16>, vector<32x64xbf16>, vector<32x64xf32> -> vector<32x64xf32>
    %111 = arith.truncf %110 : vector<32x64xf32> to vector<32x64xbf16>
    %c320_91 = arith.constant 320 : index
    %c0_92 = arith.constant 0 : index
    %112 = vector.load %arg6[%c320_91, %c0_92] : memref<576x64xbf16, #tpu.memory_space<vmem>>, vector<64x64xbf16>
    %cst_93 = arith.constant dense<0.000000e+00> : vector<32x64xf32>
    %113 = tpu.matmul %111, %112, %cst_93 {dimension_numbers = #tpu.dot_dimension_numbers<[1], [0], [0], [1], [0, 0, 1, 1], [], []>} : vector<32x64xbf16>, vector<64x64xbf16>, vector<32x64xf32> -> vector<32x64xf32>
    %114 = arith.addf %107, %113 : vector<32x64xf32>
    %c6_94 = arith.constant 6 : index
    %c0_95 = arith.constant 0 : index
    %c0_96 = arith.constant 0 : index
    %115 = vector.load %arg5[%c6_94, %c0_95, %c0_96] : memref<9x32x32xbf16, #tpu.memory_space<vmem>>, vector<1x32x32xbf16>
    %116 = vector.shape_cast %115 : vector<1x32x32xbf16> to vector<32x32xbf16>
    %cst_97 = arith.constant dense<0.000000e+00> : vector<32x64xf32>
    %117 = tpu.matmul %116, %70, %cst_97 {dimension_numbers = #tpu.dot_dimension_numbers<[1], [0], [0], [1], [0, 0, 1, 1], [], []>} : vector<32x32xbf16>, vector<32x64xbf16>, vector<32x64xf32> -> vector<32x64xf32>
    %118 = arith.truncf %117 : vector<32x64xf32> to vector<32x64xbf16>
    %c384_98 = arith.constant 384 : index
    %c0_99 = arith.constant 0 : index
    %119 = vector.load %arg6[%c384_98, %c0_99] : memref<576x64xbf16, #tpu.memory_space<vmem>>, vector<64x64xbf16>
    %cst_100 = arith.constant dense<0.000000e+00> : vector<32x64xf32>
    %120 = tpu.matmul %118, %119, %cst_100 {dimension_numbers = #tpu.dot_dimension_numbers<[1], [0], [0], [1], [0, 0, 1, 1], [], []>} : vector<32x64xbf16>, vector<64x64xbf16>, vector<32x64xf32> -> vector<32x64xf32>
    %121 = arith.addf %114, %120 : vector<32x64xf32>
    %c7_101 = arith.constant 7 : index
    %c0_102 = arith.constant 0 : index
    %c0_103 = arith.constant 0 : index
    %122 = vector.load %arg5[%c7_101, %c0_102, %c0_103] : memref<9x32x32xbf16, #tpu.memory_space<vmem>>, vector<1x32x32xbf16>
    %123 = vector.shape_cast %122 : vector<1x32x32xbf16> to vector<32x32xbf16>
    %cst_104 = arith.constant dense<0.000000e+00> : vector<32x64xf32>
    %124 = tpu.matmul %123, %70, %cst_104 {dimension_numbers = #tpu.dot_dimension_numbers<[1], [0], [0], [1], [0, 0, 1, 1], [], []>} : vector<32x32xbf16>, vector<32x64xbf16>, vector<32x64xf32> -> vector<32x64xf32>
    %125 = arith.truncf %124 : vector<32x64xf32> to vector<32x64xbf16>
    %c448_105 = arith.constant 448 : index
    %c0_106 = arith.constant 0 : index
    %126 = vector.load %arg6[%c448_105, %c0_106] : memref<576x64xbf16, #tpu.memory_space<vmem>>, vector<64x64xbf16>
    %cst_107 = arith.constant dense<0.000000e+00> : vector<32x64xf32>
    %127 = tpu.matmul %125, %126, %cst_107 {dimension_numbers = #tpu.dot_dimension_numbers<[1], [0], [0], [1], [0, 0, 1, 1], [], []>} : vector<32x64xbf16>, vector<64x64xbf16>, vector<32x64xf32> -> vector<32x64xf32>
    %128 = arith.addf %121, %127 : vector<32x64xf32>
    %c8_108 = arith.constant 8 : index
    %c0_109 = arith.constant 0 : index
    %c0_110 = arith.constant 0 : index
    %129 = vector.load %arg5[%c8_108, %c0_109, %c0_110] : memref<9x32x32xbf16, #tpu.memory_space<vmem>>, vector<1x32x32xbf16>
    %130 = vector.shape_cast %129 : vector<1x32x32xbf16> to vector<32x32xbf16>
    %cst_111 = arith.constant dense<0.000000e+00> : vector<32x64xf32>
    %131 = tpu.matmul %130, %70, %cst_111 {dimension_numbers = #tpu.dot_dimension_numbers<[1], [0], [0], [1], [0, 0, 1, 1], [], []>} : vector<32x32xbf16>, vector<32x64xbf16>, vector<32x64xf32> -> vector<32x64xf32>
    %132 = arith.truncf %131 : vector<32x64xf32> to vector<32x64xbf16>
    %c512_112 = arith.constant 512 : index
    %c0_113 = arith.constant 0 : index
    %133 = vector.load %arg6[%c512_112, %c0_113] : memref<576x64xbf16, #tpu.memory_space<vmem>>, vector<64x64xbf16>
    %cst_114 = arith.constant dense<0.000000e+00> : vector<32x64xf32>
    %134 = tpu.matmul %132, %133, %cst_114 {dimension_numbers = #tpu.dot_dimension_numbers<[1], [0], [0], [1], [0, 0, 1, 1], [], []>} : vector<32x64xbf16>, vector<64x64xbf16>, vector<32x64xf32> -> vector<32x64xf32>
    %135 = arith.addf %128, %134 : vector<32x64xf32>
    %c0_115 = arith.constant 0 : index
    %c0_116 = arith.constant 0 : index
    %136 = vector.load %arg7[%c0_115, %c0_116] : memref<1x64xf32, #tpu.memory_space<vmem>>, vector<1x64xf32>
    %137 = vector.broadcast %136 : vector<1x64xf32> to vector<32x64xf32>
    %138 = arith.addf %135, %137 : vector<32x64xf32>
    %139 = arith.addf %138, %71 : vector<32x64xf32>
    %cst_117 = arith.constant 0.000000e+00 : f32
    %140 = vector.broadcast %cst_117 : f32 to vector<32x64xf32>
    %141 = arith.maximumf %139, %140 : vector<32x64xf32>
    %142 = arith.truncf %141 : vector<32x64xf32> to vector<32x64xbf16>
    %c0_118 = arith.constant 0 : index
    %c0_119 = arith.constant 0 : index
    %143 = vector.load %arg8[%c0_118, %c0_119] : memref<32x64xbf16, #tpu.memory_space<vmem>>, vector<32x64xbf16>
    tpu.vector_store %arg8[%c0_118, %c0_119], %142 {strides = array<i32>} : memref<32x64xbf16, #tpu.memory_space<vmem>>, vector<32x64xbf16>,
    return
  }
  func.func @transform_0(%arg0: i32) -> (i32, i32) {
    %c0_i32 = arith.constant 0 : i32
    %c0_i32_0 = arith.constant 0 : i32
    %c0_i32_1 = arith.constant 0 : i32
    return %c0_i32, %c0_i32_0 : i32, i32
  }
  func.func @transform_1(%arg0: i32) -> (i32, i32, i32) {
    %c0_i32 = arith.constant 0 : i32
    %c0_i32_0 = arith.constant 0 : i32
    %c0_i32_1 = arith.constant 0 : i32
    %c0_i32_2 = arith.constant 0 : i32
    return %c0_i32, %c0_i32_0, %c0_i32_1 : i32, i32, i32
  }
  func.func @transform_2(%arg0: i32) -> (i32, i32) {
    %c0_i32 = arith.constant 0 : i32
    %c0_i32_0 = arith.constant 0 : i32
    %c0_i32_1 = arith.constant 0 : i32
    return %c0_i32, %c0_i32_0 : i32, i32
  }
  func.func @transform_3(%arg0: i32) -> (i32, i32) {
    %c0_i32 = arith.constant 0 : i32
    %c0_i32_0 = arith.constant 0 : i32
    %c0_i32_1 = arith.constant 0 : i32
    return %c0_i32, %c0_i32_0 : i32, i32
  }
  func.func @transform_4(%arg0: i32) -> (i32, i32, i32) {
    %c0_i32 = arith.constant 0 : i32
    %c0_i32_0 = arith.constant 0 : i32
    %c0_i32_1 = arith.constant 0 : i32
    %c0_i32_2 = arith.constant 0 : i32
    return %c0_i32, %c0_i32_0, %c0_i32_1 : i32, i32, i32
  }
  func.func @transform_5(%arg0: i32) -> (i32, i32) {
    %c0_i32 = arith.constant 0 : i32
    %c0_i32_0 = arith.constant 0 : i32
    %c0_i32_1 = arith.constant 0 : i32
    return %c0_i32, %c0_i32_0 : i32, i32
  }
  func.func @transform_6(%arg0: i32) -> (i32, i32) {
    %c0_i32 = arith.constant 0 : i32
    %c0_i32_0 = arith.constant 0 : i32
    %c0_i32_1 = arith.constant 0 : i32
    return %c0_i32, %c0_i32_0 : i32, i32
  }
  func.func @transform_7(%arg0: i32) -> (i32, i32) {
    %c0_i32 = arith.constant 0 : i32
    %c0_i32_0 = arith.constant 0 : i32
    %c0_i32_1 = arith.constant 0 : i32
    return %c0_i32, %c0_i32_0 : i32, i32
  }
}

module attributes {stable_mosaic.version = 11 : i64} {
  func.func @_resblock_fused_kernel(%arg0: i32, %arg1: memref<32x64xbf16, #tpu.memory_space<vmem>>, %arg2: memref<9x8x32xbf16, #tpu.memory_space<vmem>>, %arg3: memref<576x128xbf16, #tpu.memory_space<vmem>>, %arg4: memref<1x128xf32, #tpu.memory_space<vmem>>, %arg5: memref<64x128xbf16, #tpu.memory_space<vmem>>, %arg6: memref<1x128xf32, #tpu.memory_space<vmem>>, %arg7: memref<9x8x8xbf16, #tpu.memory_space<vmem>>, %arg8: memref<1152x128xbf16, #tpu.memory_space<vmem>>, %arg9: memref<1x128xf32, #tpu.memory_space<vmem>>, %arg10: memref<8x128xbf16, #tpu.memory_space<vmem>>) attributes {dimension_semantics = [#tpu.dimension_semantics<arbitrary>], iteration_bounds = array<i64: 1>, scalar_prefetch = 0 : i64, scratch_operands = 0 : i64, tpu.core_type = #tpu.core_type<tc>, window_params = [{pipeline_mode = #tpu.pipeline_mode<synchronous>, transform_indices = @transform_0, window_bounds = array<i64: 32, 64>}, {pipeline_mode = #tpu.pipeline_mode<synchronous>, transform_indices = @transform_1, window_bounds = array<i64: 9, 8, 32>}, {pipeline_mode = #tpu.pipeline_mode<synchronous>, transform_indices = @transform_2, window_bounds = array<i64: 576, 128>}, {pipeline_mode = #tpu.pipeline_mode<synchronous>, transform_indices = @transform_3, window_bounds = array<i64: 1, 128>}, {pipeline_mode = #tpu.pipeline_mode<synchronous>, transform_indices = @transform_4, window_bounds = array<i64: 64, 128>}, {pipeline_mode = #tpu.pipeline_mode<synchronous>, transform_indices = @transform_5, window_bounds = array<i64: 1, 128>}, {pipeline_mode = #tpu.pipeline_mode<synchronous>, transform_indices = @transform_6, window_bounds = array<i64: 9, 8, 8>}, {pipeline_mode = #tpu.pipeline_mode<synchronous>, transform_indices = @transform_7, window_bounds = array<i64: 1152, 128>}, {pipeline_mode = #tpu.pipeline_mode<synchronous>, transform_indices = @transform_8, window_bounds = array<i64: 1, 128>}, {pipeline_mode = #tpu.pipeline_mode<synchronous>, transform_indices = @transform_9, window_bounds = array<i64: 8, 128>}]} {
    %c0 = arith.constant 0 : index
    %c0_0 = arith.constant 0 : index
    %0 = vector.load %arg1[%c0, %c0_0] : memref<32x64xbf16, #tpu.memory_space<vmem>>, vector<32x64xbf16>
    %cst = arith.constant 0.000000e+00 : f32
    %1 = vector.broadcast %cst : f32 to vector<8x128xf32>
    %c0_1 = arith.constant 0 : index
    %c0_2 = arith.constant 0 : index
    %c0_3 = arith.constant 0 : index
    %2 = vector.load %arg2[%c0_1, %c0_2, %c0_3] : memref<9x8x32xbf16, #tpu.memory_space<vmem>>, vector<1x8x32xbf16>
    %3 = vector.shape_cast %2 : vector<1x8x32xbf16> to vector<8x32xbf16>
    %cst_4 = arith.constant dense<0.000000e+00> : vector<8x64xf32>
    %4 = tpu.matmul %3, %0, %cst_4 {dimension_numbers = #tpu.dot_dimension_numbers<[1], [0], [0], [1], [0, 0, 1, 1], [], []>} : vector<8x32xbf16>, vector<32x64xbf16>, vector<8x64xf32> -> vector<8x64xf32>
    %5 = arith.truncf %4 : vector<8x64xf32> to vector<8x64xbf16>
    %c0_5 = arith.constant 0 : index
    %c0_6 = arith.constant 0 : index
    %6 = vector.load %arg3[%c0_5, %c0_6] : memref<576x128xbf16, #tpu.memory_space<vmem>>, vector<64x128xbf16>
    %cst_7 = arith.constant dense<0.000000e+00> : vector<8x128xf32>
    %7 = tpu.matmul %5, %6, %cst_7 {dimension_numbers = #tpu.dot_dimension_numbers<[1], [0], [0], [1], [0, 0, 1, 1], [], []>} : vector<8x64xbf16>, vector<64x128xbf16>, vector<8x128xf32> -> vector<8x128xf32>
    %8 = arith.addf %1, %7 : vector<8x128xf32>
    %c1 = arith.constant 1 : index
    %c0_8 = arith.constant 0 : index
    %c0_9 = arith.constant 0 : index
    %9 = vector.load %arg2[%c1, %c0_8, %c0_9] : memref<9x8x32xbf16, #tpu.memory_space<vmem>>, vector<1x8x32xbf16>
    %10 = vector.shape_cast %9 : vector<1x8x32xbf16> to vector<8x32xbf16>
    %cst_10 = arith.constant dense<0.000000e+00> : vector<8x64xf32>
    %11 = tpu.matmul %10, %0, %cst_10 {dimension_numbers = #tpu.dot_dimension_numbers<[1], [0], [0], [1], [0, 0, 1, 1], [], []>} : vector<8x32xbf16>, vector<32x64xbf16>, vector<8x64xf32> -> vector<8x64xf32>
    %12 = arith.truncf %11 : vector<8x64xf32> to vector<8x64xbf16>
    %c64 = arith.constant 64 : index
    %c0_11 = arith.constant 0 : index
    %13 = vector.load %arg3[%c64, %c0_11] : memref<576x128xbf16, #tpu.memory_space<vmem>>, vector<64x128xbf16>
    %cst_12 = arith.constant dense<0.000000e+00> : vector<8x128xf32>
    %14 = tpu.matmul %12, %13, %cst_12 {dimension_numbers = #tpu.dot_dimension_numbers<[1], [0], [0], [1], [0, 0, 1, 1], [], []>} : vector<8x64xbf16>, vector<64x128xbf16>, vector<8x128xf32> -> vector<8x128xf32>
    %15 = arith.addf %8, %14 : vector<8x128xf32>
    %c2 = arith.constant 2 : index
    %c0_13 = arith.constant 0 : index
    %c0_14 = arith.constant 0 : index
    %16 = vector.load %arg2[%c2, %c0_13, %c0_14] : memref<9x8x32xbf16, #tpu.memory_space<vmem>>, vector<1x8x32xbf16>
    %17 = vector.shape_cast %16 : vector<1x8x32xbf16> to vector<8x32xbf16>
    %cst_15 = arith.constant dense<0.000000e+00> : vector<8x64xf32>
    %18 = tpu.matmul %17, %0, %cst_15 {dimension_numbers = #tpu.dot_dimension_numbers<[1], [0], [0], [1], [0, 0, 1, 1], [], []>} : vector<8x32xbf16>, vector<32x64xbf16>, vector<8x64xf32> -> vector<8x64xf32>
    %19 = arith.truncf %18 : vector<8x64xf32> to vector<8x64xbf16>
    %c128 = arith.constant 128 : index
    %c0_16 = arith.constant 0 : index
    %20 = vector.load %arg3[%c128, %c0_16] : memref<576x128xbf16, #tpu.memory_space<vmem>>, vector<64x128xbf16>
    %cst_17 = arith.constant dense<0.000000e+00> : vector<8x128xf32>
    %21 = tpu.matmul %19, %20, %cst_17 {dimension_numbers = #tpu.dot_dimension_numbers<[1], [0], [0], [1], [0, 0, 1, 1], [], []>} : vector<8x64xbf16>, vector<64x128xbf16>, vector<8x128xf32> -> vector<8x128xf32>
    %22 = arith.addf %15, %21 : vector<8x128xf32>
    %c3 = arith.constant 3 : index
    %c0_18 = arith.constant 0 : index
    %c0_19 = arith.constant 0 : index
    %23 = vector.load %arg2[%c3, %c0_18, %c0_19] : memref<9x8x32xbf16, #tpu.memory_space<vmem>>, vector<1x8x32xbf16>
    %24 = vector.shape_cast %23 : vector<1x8x32xbf16> to vector<8x32xbf16>
    %cst_20 = arith.constant dense<0.000000e+00> : vector<8x64xf32>
    %25 = tpu.matmul %24, %0, %cst_20 {dimension_numbers = #tpu.dot_dimension_numbers<[1], [0], [0], [1], [0, 0, 1, 1], [], []>} : vector<8x32xbf16>, vector<32x64xbf16>, vector<8x64xf32> -> vector<8x64xf32>
    %26 = arith.truncf %25 : vector<8x64xf32> to vector<8x64xbf16>
    %c192 = arith.constant 192 : index
    %c0_21 = arith.constant 0 : index
    %27 = vector.load %arg3[%c192, %c0_21] : memref<576x128xbf16, #tpu.memory_space<vmem>>, vector<64x128xbf16>
    %cst_22 = arith.constant dense<0.000000e+00> : vector<8x128xf32>
    %28 = tpu.matmul %26, %27, %cst_22 {dimension_numbers = #tpu.dot_dimension_numbers<[1], [0], [0], [1], [0, 0, 1, 1], [], []>} : vector<8x64xbf16>, vector<64x128xbf16>, vector<8x128xf32> -> vector<8x128xf32>
    %29 = arith.addf %22, %28 : vector<8x128xf32>
    %c4 = arith.constant 4 : index
    %c0_23 = arith.constant 0 : index
    %c0_24 = arith.constant 0 : index
    %30 = vector.load %arg2[%c4, %c0_23, %c0_24] : memref<9x8x32xbf16, #tpu.memory_space<vmem>>, vector<1x8x32xbf16>
    %31 = vector.shape_cast %30 : vector<1x8x32xbf16> to vector<8x32xbf16>
    %cst_25 = arith.constant dense<0.000000e+00> : vector<8x64xf32>
    %32 = tpu.matmul %31, %0, %cst_25 {dimension_numbers = #tpu.dot_dimension_numbers<[1], [0], [0], [1], [0, 0, 1, 1], [], []>} : vector<8x32xbf16>, vector<32x64xbf16>, vector<8x64xf32> -> vector<8x64xf32>
    %33 = arith.truncf %32 : vector<8x64xf32> to vector<8x64xbf16>
    %c256 = arith.constant 256 : index
    %c0_26 = arith.constant 0 : index
    %34 = vector.load %arg3[%c256, %c0_26] : memref<576x128xbf16, #tpu.memory_space<vmem>>, vector<64x128xbf16>
    %cst_27 = arith.constant dense<0.000000e+00> : vector<8x128xf32>
    %35 = tpu.matmul %33, %34, %cst_27 {dimension_numbers = #tpu.dot_dimension_numbers<[1], [0], [0], [1], [0, 0, 1, 1], [], []>} : vector<8x64xbf16>, vector<64x128xbf16>, vector<8x128xf32> -> vector<8x128xf32>
    %36 = arith.addf %29, %35 : vector<8x128xf32>
    %c5 = arith.constant 5 : index
    %c0_28 = arith.constant 0 : index
    %c0_29 = arith.constant 0 : index
    %37 = vector.load %arg2[%c5, %c0_28, %c0_29] : memref<9x8x32xbf16, #tpu.memory_space<vmem>>, vector<1x8x32xbf16>
    %38 = vector.shape_cast %37 : vector<1x8x32xbf16> to vector<8x32xbf16>
    %cst_30 = arith.constant dense<0.000000e+00> : vector<8x64xf32>
    %39 = tpu.matmul %38, %0, %cst_30 {dimension_numbers = #tpu.dot_dimension_numbers<[1], [0], [0], [1], [0, 0, 1, 1], [], []>} : vector<8x32xbf16>, vector<32x64xbf16>, vector<8x64xf32> -> vector<8x64xf32>
    %40 = arith.truncf %39 : vector<8x64xf32> to vector<8x64xbf16>
    %c320 = arith.constant 320 : index
    %c0_31 = arith.constant 0 : index
    %41 = vector.load %arg3[%c320, %c0_31] : memref<576x128xbf16, #tpu.memory_space<vmem>>, vector<64x128xbf16>
    %cst_32 = arith.constant dense<0.000000e+00> : vector<8x128xf32>
    %42 = tpu.matmul %40, %41, %cst_32 {dimension_numbers = #tpu.dot_dimension_numbers<[1], [0], [0], [1], [0, 0, 1, 1], [], []>} : vector<8x64xbf16>, vector<64x128xbf16>, vector<8x128xf32> -> vector<8x128xf32>
    %43 = arith.addf %36, %42 : vector<8x128xf32>
    %c6 = arith.constant 6 : index
    %c0_33 = arith.constant 0 : index
    %c0_34 = arith.constant 0 : index
    %44 = vector.load %arg2[%c6, %c0_33, %c0_34] : memref<9x8x32xbf16, #tpu.memory_space<vmem>>, vector<1x8x32xbf16>
    %45 = vector.shape_cast %44 : vector<1x8x32xbf16> to vector<8x32xbf16>
    %cst_35 = arith.constant dense<0.000000e+00> : vector<8x64xf32>
    %46 = tpu.matmul %45, %0, %cst_35 {dimension_numbers = #tpu.dot_dimension_numbers<[1], [0], [0], [1], [0, 0, 1, 1], [], []>} : vector<8x32xbf16>, vector<32x64xbf16>, vector<8x64xf32> -> vector<8x64xf32>
    %47 = arith.truncf %46 : vector<8x64xf32> to vector<8x64xbf16>
    %c384 = arith.constant 384 : index
    %c0_36 = arith.constant 0 : index
    %48 = vector.load %arg3[%c384, %c0_36] : memref<576x128xbf16, #tpu.memory_space<vmem>>, vector<64x128xbf16>
    %cst_37 = arith.constant dense<0.000000e+00> : vector<8x128xf32>
    %49 = tpu.matmul %47, %48, %cst_37 {dimension_numbers = #tpu.dot_dimension_numbers<[1], [0], [0], [1], [0, 0, 1, 1], [], []>} : vector<8x64xbf16>, vector<64x128xbf16>, vector<8x128xf32> -> vector<8x128xf32>
    %50 = arith.addf %43, %49 : vector<8x128xf32>
    %c7 = arith.constant 7 : index
    %c0_38 = arith.constant 0 : index
    %c0_39 = arith.constant 0 : index
    %51 = vector.load %arg2[%c7, %c0_38, %c0_39] : memref<9x8x32xbf16, #tpu.memory_space<vmem>>, vector<1x8x32xbf16>
    %52 = vector.shape_cast %51 : vector<1x8x32xbf16> to vector<8x32xbf16>
    %cst_40 = arith.constant dense<0.000000e+00> : vector<8x64xf32>
    %53 = tpu.matmul %52, %0, %cst_40 {dimension_numbers = #tpu.dot_dimension_numbers<[1], [0], [0], [1], [0, 0, 1, 1], [], []>} : vector<8x32xbf16>, vector<32x64xbf16>, vector<8x64xf32> -> vector<8x64xf32>
    %54 = arith.truncf %53 : vector<8x64xf32> to vector<8x64xbf16>
    %c448 = arith.constant 448 : index
    %c0_41 = arith.constant 0 : index
    %55 = vector.load %arg3[%c448, %c0_41] : memref<576x128xbf16, #tpu.memory_space<vmem>>, vector<64x128xbf16>
    %cst_42 = arith.constant dense<0.000000e+00> : vector<8x128xf32>
    %56 = tpu.matmul %54, %55, %cst_42 {dimension_numbers = #tpu.dot_dimension_numbers<[1], [0], [0], [1], [0, 0, 1, 1], [], []>} : vector<8x64xbf16>, vector<64x128xbf16>, vector<8x128xf32> -> vector<8x128xf32>
    %57 = arith.addf %50, %56 : vector<8x128xf32>
    %c8 = arith.constant 8 : index
    %c0_43 = arith.constant 0 : index
    %c0_44 = arith.constant 0 : index
    %58 = vector.load %arg2[%c8, %c0_43, %c0_44] : memref<9x8x32xbf16, #tpu.memory_space<vmem>>, vector<1x8x32xbf16>
    %59 = vector.shape_cast %58 : vector<1x8x32xbf16> to vector<8x32xbf16>
    %cst_45 = arith.constant dense<0.000000e+00> : vector<8x64xf32>
    %60 = tpu.matmul %59, %0, %cst_45 {dimension_numbers = #tpu.dot_dimension_numbers<[1], [0], [0], [1], [0, 0, 1, 1], [], []>} : vector<8x32xbf16>, vector<32x64xbf16>, vector<8x64xf32> -> vector<8x64xf32>
    %61 = arith.truncf %60 : vector<8x64xf32> to vector<8x64xbf16>
    %c512 = arith.constant 512 : index
    %c0_46 = arith.constant 0 : index
    %62 = vector.load %arg3[%c512, %c0_46] : memref<576x128xbf16, #tpu.memory_space<vmem>>, vector<64x128xbf16>
    %cst_47 = arith.constant dense<0.000000e+00> : vector<8x128xf32>
    %63 = tpu.matmul %61, %62, %cst_47 {dimension_numbers = #tpu.dot_dimension_numbers<[1], [0], [0], [1], [0, 0, 1, 1], [], []>} : vector<8x64xbf16>, vector<64x128xbf16>, vector<8x128xf32> -> vector<8x128xf32>
    %64 = arith.addf %57, %63 : vector<8x128xf32>
    %c0_48 = arith.constant 0 : index
    %c0_49 = arith.constant 0 : index
    %65 = vector.load %arg4[%c0_48, %c0_49] : memref<1x128xf32, #tpu.memory_space<vmem>>, vector<1x128xf32>
    %66 = vector.broadcast %65 : vector<1x128xf32> to vector<8x128xf32>
    %67 = arith.addf %64, %66 : vector<8x128xf32>
    %cst_50 = arith.constant 0.000000e+00 : f32
    %68 = vector.broadcast %cst_50 : f32 to vector<8x128xf32>
    %69 = arith.maximumf %67, %68 : vector<8x128xf32>
    %70 = arith.truncf %69 : vector<8x128xf32> to vector<8x128xbf16>
    %c0_51 = arith.constant 0 : index
    %c0_52 = arith.constant 0 : index
    %71 = vector.load %arg5[%c0_51, %c0_52] : memref<64x128xbf16, #tpu.memory_space<vmem>>, vector<64x128xbf16>
    %cst_53 = arith.constant dense<0.000000e+00> : vector<8x128xf32>
    %72 = tpu.matmul %33, %71, %cst_53 {dimension_numbers = #tpu.dot_dimension_numbers<[1], [0], [0], [1], [0, 0, 1, 1], [], []>} : vector<8x64xbf16>, vector<64x128xbf16>, vector<8x128xf32> -> vector<8x128xf32>
    %c0_54 = arith.constant 0 : index
    %c0_55 = arith.constant 0 : index
    %73 = vector.load %arg6[%c0_54, %c0_55] : memref<1x128xf32, #tpu.memory_space<vmem>>, vector<1x128xf32>
    %74 = vector.broadcast %73 : vector<1x128xf32> to vector<8x128xf32>
    %75 = arith.addf %72, %74 : vector<8x128xf32>
    %cst_56 = arith.constant 0.000000e+00 : f32
    %76 = vector.broadcast %cst_56 : f32 to vector<8x128xf32>
    %c0_57 = arith.constant 0 : index
    %c0_58 = arith.constant 0 : index
    %c0_59 = arith.constant 0 : index
    %77 = vector.load %arg7[%c0_57, %c0_58, %c0_59] : memref<9x8x8xbf16, #tpu.memory_space<vmem>>, vector<1x8x8xbf16>
    %78 = vector.shape_cast %77 : vector<1x8x8xbf16> to vector<8x8xbf16>
    %cst_60 = arith.constant dense<0.000000e+00> : vector<8x128xf32>
    %79 = tpu.matmul %78, %70, %cst_60 {dimension_numbers = #tpu.dot_dimension_numbers<[1], [0], [0], [1], [0, 0, 1, 1], [], []>} : vector<8x8xbf16>, vector<8x128xbf16>, vector<8x128xf32> -> vector<8x128xf32>
    %80 = arith.truncf %79 : vector<8x128xf32> to vector<8x128xbf16>
    %c0_61 = arith.constant 0 : index
    %c0_62 = arith.constant 0 : index
    %81 = vector.load %arg8[%c0_61, %c0_62] : memref<1152x128xbf16, #tpu.memory_space<vmem>>, vector<128x128xbf16>
    %cst_63 = arith.constant dense<0.000000e+00> : vector<8x128xf32>
    %82 = tpu.matmul %80, %81, %cst_63 {dimension_numbers = #tpu.dot_dimension_numbers<[1], [0], [0], [1], [0, 0, 1, 1], [], []>} : vector<8x128xbf16>, vector<128x128xbf16>, vector<8x128xf32> -> vector<8x128xf32>
    %83 = arith.addf %76, %82 : vector<8x128xf32>
    %c1_64 = arith.constant 1 : index
    %c0_65 = arith.constant 0 : index
    %c0_66 = arith.constant 0 : index
    %84 = vector.load %arg7[%c1_64, %c0_65, %c0_66] : memref<9x8x8xbf16, #tpu.memory_space<vmem>>, vector<1x8x8xbf16>
    %85 = vector.shape_cast %84 : vector<1x8x8xbf16> to vector<8x8xbf16>
    %cst_67 = arith.constant dense<0.000000e+00> : vector<8x128xf32>
    %86 = tpu.matmul %85, %70, %cst_67 {dimension_numbers = #tpu.dot_dimension_numbers<[1], [0], [0], [1], [0, 0, 1, 1], [], []>} : vector<8x8xbf16>, vector<8x128xbf16>, vector<8x128xf32> -> vector<8x128xf32>
    %87 = arith.truncf %86 : vector<8x128xf32> to vector<8x128xbf16>
    %c128_68 = arith.constant 128 : index
    %c0_69 = arith.constant 0 : index
    %88 = vector.load %arg8[%c128_68, %c0_69] : memref<1152x128xbf16, #tpu.memory_space<vmem>>, vector<128x128xbf16>
    %cst_70 = arith.constant dense<0.000000e+00> : vector<8x128xf32>
    %89 = tpu.matmul %87, %88, %cst_70 {dimension_numbers = #tpu.dot_dimension_numbers<[1], [0], [0], [1], [0, 0, 1, 1], [], []>} : vector<8x128xbf16>, vector<128x128xbf16>, vector<8x128xf32> -> vector<8x128xf32>
    %90 = arith.addf %83, %89 : vector<8x128xf32>
    %c2_71 = arith.constant 2 : index
    %c0_72 = arith.constant 0 : index
    %c0_73 = arith.constant 0 : index
    %91 = vector.load %arg7[%c2_71, %c0_72, %c0_73] : memref<9x8x8xbf16, #tpu.memory_space<vmem>>, vector<1x8x8xbf16>
    %92 = vector.shape_cast %91 : vector<1x8x8xbf16> to vector<8x8xbf16>
    %cst_74 = arith.constant dense<0.000000e+00> : vector<8x128xf32>
    %93 = tpu.matmul %92, %70, %cst_74 {dimension_numbers = #tpu.dot_dimension_numbers<[1], [0], [0], [1], [0, 0, 1, 1], [], []>} : vector<8x8xbf16>, vector<8x128xbf16>, vector<8x128xf32> -> vector<8x128xf32>
    %94 = arith.truncf %93 : vector<8x128xf32> to vector<8x128xbf16>
    %c256_75 = arith.constant 256 : index
    %c0_76 = arith.constant 0 : index
    %95 = vector.load %arg8[%c256_75, %c0_76] : memref<1152x128xbf16, #tpu.memory_space<vmem>>, vector<128x128xbf16>
    %cst_77 = arith.constant dense<0.000000e+00> : vector<8x128xf32>
    %96 = tpu.matmul %94, %95, %cst_77 {dimension_numbers = #tpu.dot_dimension_numbers<[1], [0], [0], [1], [0, 0, 1, 1], [], []>} : vector<8x128xbf16>, vector<128x128xbf16>, vector<8x128xf32> -> vector<8x128xf32>
    %97 = arith.addf %90, %96 : vector<8x128xf32>
    %c3_78 = arith.constant 3 : index
    %c0_79 = arith.constant 0 : index
    %c0_80 = arith.constant 0 : index
    %98 = vector.load %arg7[%c3_78, %c0_79, %c0_80] : memref<9x8x8xbf16, #tpu.memory_space<vmem>>, vector<1x8x8xbf16>
    %99 = vector.shape_cast %98 : vector<1x8x8xbf16> to vector<8x8xbf16>
    %cst_81 = arith.constant dense<0.000000e+00> : vector<8x128xf32>
    %100 = tpu.matmul %99, %70, %cst_81 {dimension_numbers = #tpu.dot_dimension_numbers<[1], [0], [0], [1], [0, 0, 1, 1], [], []>} : vector<8x8xbf16>, vector<8x128xbf16>, vector<8x128xf32> -> vector<8x128xf32>
    %101 = arith.truncf %100 : vector<8x128xf32> to vector<8x128xbf16>
    %c384_82 = arith.constant 384 : index
    %c0_83 = arith.constant 0 : index
    %102 = vector.load %arg8[%c384_82, %c0_83] : memref<1152x128xbf16, #tpu.memory_space<vmem>>, vector<128x128xbf16>
    %cst_84 = arith.constant dense<0.000000e+00> : vector<8x128xf32>
    %103 = tpu.matmul %101, %102, %cst_84 {dimension_numbers = #tpu.dot_dimension_numbers<[1], [0], [0], [1], [0, 0, 1, 1], [], []>} : vector<8x128xbf16>, vector<128x128xbf16>, vector<8x128xf32> -> vector<8x128xf32>
    %104 = arith.addf %97, %103 : vector<8x128xf32>
    %c4_85 = arith.constant 4 : index
    %c0_86 = arith.constant 0 : index
    %c0_87 = arith.constant 0 : index
    %105 = vector.load %arg7[%c4_85, %c0_86, %c0_87] : memref<9x8x8xbf16, #tpu.memory_space<vmem>>, vector<1x8x8xbf16>
    %106 = vector.shape_cast %105 : vector<1x8x8xbf16> to vector<8x8xbf16>
    %cst_88 = arith.constant dense<0.000000e+00> : vector<8x128xf32>
    %107 = tpu.matmul %106, %70, %cst_88 {dimension_numbers = #tpu.dot_dimension_numbers<[1], [0], [0], [1], [0, 0, 1, 1], [], []>} : vector<8x8xbf16>, vector<8x128xbf16>, vector<8x128xf32> -> vector<8x128xf32>
    %108 = arith.truncf %107 : vector<8x128xf32> to vector<8x128xbf16>
    %c512_89 = arith.constant 512 : index
    %c0_90 = arith.constant 0 : index
    %109 = vector.load %arg8[%c512_89, %c0_90] : memref<1152x128xbf16, #tpu.memory_space<vmem>>, vector<128x128xbf16>
    %cst_91 = arith.constant dense<0.000000e+00> : vector<8x128xf32>
    %110 = tpu.matmul %108, %109, %cst_91 {dimension_numbers = #tpu.dot_dimension_numbers<[1], [0], [0], [1], [0, 0, 1, 1], [], []>} : vector<8x128xbf16>, vector<128x128xbf16>, vector<8x128xf32> -> vector<8x128xf32>
    %111 = arith.addf %104, %110 : vector<8x128xf32>
    %c5_92 = arith.constant 5 : index
    %c0_93 = arith.constant 0 : index
    %c0_94 = arith.constant 0 : index
    %112 = vector.load %arg7[%c5_92, %c0_93, %c0_94] : memref<9x8x8xbf16, #tpu.memory_space<vmem>>, vector<1x8x8xbf16>
    %113 = vector.shape_cast %112 : vector<1x8x8xbf16> to vector<8x8xbf16>
    %cst_95 = arith.constant dense<0.000000e+00> : vector<8x128xf32>
    %114 = tpu.matmul %113, %70, %cst_95 {dimension_numbers = #tpu.dot_dimension_numbers<[1], [0], [0], [1], [0, 0, 1, 1], [], []>} : vector<8x8xbf16>, vector<8x128xbf16>, vector<8x128xf32> -> vector<8x128xf32>
    %115 = arith.truncf %114 : vector<8x128xf32> to vector<8x128xbf16>
    %c640 = arith.constant 640 : index
    %c0_96 = arith.constant 0 : index
    %116 = vector.load %arg8[%c640, %c0_96] : memref<1152x128xbf16, #tpu.memory_space<vmem>>, vector<128x128xbf16>
    %cst_97 = arith.constant dense<0.000000e+00> : vector<8x128xf32>
    %117 = tpu.matmul %115, %116, %cst_97 {dimension_numbers = #tpu.dot_dimension_numbers<[1], [0], [0], [1], [0, 0, 1, 1], [], []>} : vector<8x128xbf16>, vector<128x128xbf16>, vector<8x128xf32> -> vector<8x128xf32>
    %118 = arith.addf %111, %117 : vector<8x128xf32>
    %c6_98 = arith.constant 6 : index
    %c0_99 = arith.constant 0 : index
    %c0_100 = arith.constant 0 : index
    %119 = vector.load %arg7[%c6_98, %c0_99, %c0_100] : memref<9x8x8xbf16, #tpu.memory_space<vmem>>, vector<1x8x8xbf16>
    %120 = vector.shape_cast %119 : vector<1x8x8xbf16> to vector<8x8xbf16>
    %cst_101 = arith.constant dense<0.000000e+00> : vector<8x128xf32>
    %121 = tpu.matmul %120, %70, %cst_101 {dimension_numbers = #tpu.dot_dimension_numbers<[1], [0], [0], [1], [0, 0, 1, 1], [], []>} : vector<8x8xbf16>, vector<8x128xbf16>, vector<8x128xf32> -> vector<8x128xf32>
    %122 = arith.truncf %121 : vector<8x128xf32> to vector<8x128xbf16>
    %c768 = arith.constant 768 : index
    %c0_102 = arith.constant 0 : index
    %123 = vector.load %arg8[%c768, %c0_102] : memref<1152x128xbf16, #tpu.memory_space<vmem>>, vector<128x128xbf16>
    %cst_103 = arith.constant dense<0.000000e+00> : vector<8x128xf32>
    %124 = tpu.matmul %122, %123, %cst_103 {dimension_numbers = #tpu.dot_dimension_numbers<[1], [0], [0], [1], [0, 0, 1, 1], [], []>} : vector<8x128xbf16>, vector<128x128xbf16>, vector<8x128xf32> -> vector<8x128xf32>
    %125 = arith.addf %118, %124 : vector<8x128xf32>
    %c7_104 = arith.constant 7 : index
    %c0_105 = arith.constant 0 : index
    %c0_106 = arith.constant 0 : index
    %126 = vector.load %arg7[%c7_104, %c0_105, %c0_106] : memref<9x8x8xbf16, #tpu.memory_space<vmem>>, vector<1x8x8xbf16>
    %127 = vector.shape_cast %126 : vector<1x8x8xbf16> to vector<8x8xbf16>
    %cst_107 = arith.constant dense<0.000000e+00> : vector<8x128xf32>
    %128 = tpu.matmul %127, %70, %cst_107 {dimension_numbers = #tpu.dot_dimension_numbers<[1], [0], [0], [1], [0, 0, 1, 1], [], []>} : vector<8x8xbf16>, vector<8x128xbf16>, vector<8x128xf32> -> vector<8x128xf32>
    %129 = arith.truncf %128 : vector<8x128xf32> to vector<8x128xbf16>
    %c896 = arith.constant 896 : index
    %c0_108 = arith.constant 0 : index
    %130 = vector.load %arg8[%c896, %c0_108] : memref<1152x128xbf16, #tpu.memory_space<vmem>>, vector<128x128xbf16>
    %cst_109 = arith.constant dense<0.000000e+00> : vector<8x128xf32>
    %131 = tpu.matmul %129, %130, %cst_109 {dimension_numbers = #tpu.dot_dimension_numbers<[1], [0], [0], [1], [0, 0, 1, 1], [], []>} : vector<8x128xbf16>, vector<128x128xbf16>, vector<8x128xf32> -> vector<8x128xf32>
    %132 = arith.addf %125, %131 : vector<8x128xf32>
    %c8_110 = arith.constant 8 : index
    %c0_111 = arith.constant 0 : index
    %c0_112 = arith.constant 0 : index
    %133 = vector.load %arg7[%c8_110, %c0_111, %c0_112] : memref<9x8x8xbf16, #tpu.memory_space<vmem>>, vector<1x8x8xbf16>
    %134 = vector.shape_cast %133 : vector<1x8x8xbf16> to vector<8x8xbf16>
    %cst_113 = arith.constant dense<0.000000e+00> : vector<8x128xf32>
    %135 = tpu.matmul %134, %70, %cst_113 {dimension_numbers = #tpu.dot_dimension_numbers<[1], [0], [0], [1], [0, 0, 1, 1], [], []>} : vector<8x8xbf16>, vector<8x128xbf16>, vector<8x128xf32> -> vector<8x128xf32>
    %136 = arith.truncf %135 : vector<8x128xf32> to vector<8x128xbf16>
    %c1024 = arith.constant 1024 : index
    %c0_114 = arith.constant 0 : index
    %137 = vector.load %arg8[%c1024, %c0_114] : memref<1152x128xbf16, #tpu.memory_space<vmem>>, vector<128x128xbf16>
    %cst_115 = arith.constant dense<0.000000e+00> : vector<8x128xf32>
    %138 = tpu.matmul %136, %137, %cst_115 {dimension_numbers = #tpu.dot_dimension_numbers<[1], [0], [0], [1], [0, 0, 1, 1], [], []>} : vector<8x128xbf16>, vector<128x128xbf16>, vector<8x128xf32> -> vector<8x128xf32>
    %139 = arith.addf %132, %138 : vector<8x128xf32>
    %c0_116 = arith.constant 0 : index
    %c0_117 = arith.constant 0 : index
    %140 = vector.load %arg9[%c0_116, %c0_117] : memref<1x128xf32, #tpu.memory_space<vmem>>, vector<1x128xf32>
    %141 = vector.broadcast %140 : vector<1x128xf32> to vector<8x128xf32>
    %142 = arith.addf %139, %141 : vector<8x128xf32>
    %143 = arith.addf %142, %75 : vector<8x128xf32>
    %cst_118 = arith.constant 0.000000e+00 : f32
    %144 = vector.broadcast %cst_118 : f32 to vector<8x128xf32>
    %145 = arith.maximumf %143, %144 : vector<8x128xf32>
    %146 = arith.truncf %145 : vector<8x128xf32> to vector<8x128xbf16>
    %c0_119 = arith.constant 0 : index
    %c0_120 = arith.constant 0 : index
    %147 = vector.load %arg10[%c0_119, %c0_120] : memref<8x128xbf16, #tpu.memory_space<vmem>>, vector<8x128xbf16>
    tpu.vector_store %arg10[%c0_119, %c0_120], %146 {strides = array<i32>} : memref<8x128xbf16, #tpu.memory_space<vmem>>, vector<8x128xbf16>,
    return
  }
  func.func @transform_0(%arg0: i32) -> (i32, i32) {
    %c0_i32 = arith.constant 0 : i32
    %c0_i32_0 = arith.constant 0 : i32
    %c0_i32_1 = arith.constant 0 : i32
    return %c0_i32, %c0_i32_0 : i32, i32
  }
  func.func @transform_1(%arg0: i32) -> (i32, i32, i32) {
    %c0_i32 = arith.constant 0 : i32
    %c0_i32_0 = arith.constant 0 : i32
    %c0_i32_1 = arith.constant 0 : i32
    %c0_i32_2 = arith.constant 0 : i32
    return %c0_i32, %c0_i32_0, %c0_i32_1 : i32, i32, i32
  }
  func.func @transform_2(%arg0: i32) -> (i32, i32) {
    %c0_i32 = arith.constant 0 : i32
    %c0_i32_0 = arith.constant 0 : i32
    %c0_i32_1 = arith.constant 0 : i32
    return %c0_i32, %c0_i32_0 : i32, i32
  }
  func.func @transform_3(%arg0: i32) -> (i32, i32) {
    %c0_i32 = arith.constant 0 : i32
    %c0_i32_0 = arith.constant 0 : i32
    %c0_i32_1 = arith.constant 0 : i32
    return %c0_i32, %c0_i32_0 : i32, i32
  }
  func.func @transform_4(%arg0: i32) -> (i32, i32) {
    %c0_i32 = arith.constant 0 : i32
    %c0_i32_0 = arith.constant 0 : i32
    %c0_i32_1 = arith.constant 0 : i32
    return %c0_i32, %c0_i32_0 : i32, i32
  }
  func.func @transform_5(%arg0: i32) -> (i32, i32) {
    %c0_i32 = arith.constant 0 : i32
    %c0_i32_0 = arith.constant 0 : i32
    %c0_i32_1 = arith.constant 0 : i32
    return %c0_i32, %c0_i32_0 : i32, i32
  }
  func.func @transform_6(%arg0: i32) -> (i32, i32, i32) {
    %c0_i32 = arith.constant 0 : i32
    %c0_i32_0 = arith.constant 0 : i32
    %c0_i32_1 = arith.constant 0 : i32
    %c0_i32_2 = arith.constant 0 : i32
    return %c0_i32, %c0_i32_0, %c0_i32_1 : i32, i32, i32
  }
  func.func @transform_7(%arg0: i32) -> (i32, i32) {
    %c0_i32 = arith.constant 0 : i32
    %c0_i32_0 = arith.constant 0 : i32
    %c0_i32_1 = arith.constant 0 : i32
    return %c0_i32, %c0_i32_0 : i32, i32
  }
  func.func @transform_8(%arg0: i32) -> (i32, i32) {
    %c0_i32 = arith.constant 0 : i32
    %c0_i32_0 = arith.constant 0 : i32
    %c0_i32_1 = arith.constant 0 : i32
    return %c0_i32, %c0_i32_0 : i32, i32
  }
  func.func @transform_9(%arg0: i32) -> (i32, i32) {
    %c0_i32 = arith.constant 0 : i32
    %c0_i32_0 = arith.constant 0 : i32
    %c0_i32_1 = arith.constant 0 : i32
    return %c0_i32, %c0_i32_0 : i32, i32
  }
}

module attributes {stable_mosaic.version = 11 : i64} {
  func.func @_resblock_fused_kernel(%arg0: i32, %arg1: memref<8x128xbf16, #tpu.memory_space<vmem>>, %arg2: memref<9x8x8xbf16, #tpu.memory_space<vmem>>, %arg3: memref<1152x128xbf16, #tpu.memory_space<vmem>>, %arg4: memref<1x128xf32, #tpu.memory_space<vmem>>, %arg5: memref<9x8x8xbf16, #tpu.memory_space<vmem>>, %arg6: memref<1152x128xbf16, #tpu.memory_space<vmem>>, %arg7: memref<1x128xf32, #tpu.memory_space<vmem>>, %arg8: memref<8x128xbf16, #tpu.memory_space<vmem>>) attributes {dimension_semantics = [#tpu.dimension_semantics<arbitrary>], iteration_bounds = array<i64: 1>, scalar_prefetch = 0 : i64, scratch_operands = 0 : i64, tpu.core_type = #tpu.core_type<tc>, window_params = [{pipeline_mode = #tpu.pipeline_mode<synchronous>, transform_indices = @transform_0, window_bounds = array<i64: 8, 128>}, {pipeline_mode = #tpu.pipeline_mode<synchronous>, transform_indices = @transform_1, window_bounds = array<i64: 9, 8, 8>}, {pipeline_mode = #tpu.pipeline_mode<synchronous>, transform_indices = @transform_2, window_bounds = array<i64: 1152, 128>}, {pipeline_mode = #tpu.pipeline_mode<synchronous>, transform_indices = @transform_3, window_bounds = array<i64: 1, 128>}, {pipeline_mode = #tpu.pipeline_mode<synchronous>, transform_indices = @transform_4, window_bounds = array<i64: 9, 8, 8>}, {pipeline_mode = #tpu.pipeline_mode<synchronous>, transform_indices = @transform_5, window_bounds = array<i64: 1152, 128>}, {pipeline_mode = #tpu.pipeline_mode<synchronous>, transform_indices = @transform_6, window_bounds = array<i64: 1, 128>}, {pipeline_mode = #tpu.pipeline_mode<synchronous>, transform_indices = @transform_7, window_bounds = array<i64: 8, 128>}]} {
    %c0 = arith.constant 0 : index
    %c0_0 = arith.constant 0 : index
    %0 = vector.load %arg1[%c0, %c0_0] : memref<8x128xbf16, #tpu.memory_space<vmem>>, vector<8x128xbf16>
    %cst = arith.constant 0.000000e+00 : f32
    %1 = vector.broadcast %cst : f32 to vector<8x128xf32>
    %c0_1 = arith.constant 0 : index
    %c0_2 = arith.constant 0 : index
    %c0_3 = arith.constant 0 : index
    %2 = vector.load %arg2[%c0_1, %c0_2, %c0_3] : memref<9x8x8xbf16, #tpu.memory_space<vmem>>, vector<1x8x8xbf16>
    %3 = vector.shape_cast %2 : vector<1x8x8xbf16> to vector<8x8xbf16>
    %cst_4 = arith.constant dense<0.000000e+00> : vector<8x128xf32>
    %4 = tpu.matmul %3, %0, %cst_4 {dimension_numbers = #tpu.dot_dimension_numbers<[1], [0], [0], [1], [0, 0, 1, 1], [], []>} : vector<8x8xbf16>, vector<8x128xbf16>, vector<8x128xf32> -> vector<8x128xf32>
    %5 = arith.truncf %4 : vector<8x128xf32> to vector<8x128xbf16>
    %c0_5 = arith.constant 0 : index
    %c0_6 = arith.constant 0 : index
    %6 = vector.load %arg3[%c0_5, %c0_6] : memref<1152x128xbf16, #tpu.memory_space<vmem>>, vector<128x128xbf16>
    %cst_7 = arith.constant dense<0.000000e+00> : vector<8x128xf32>
    %7 = tpu.matmul %5, %6, %cst_7 {dimension_numbers = #tpu.dot_dimension_numbers<[1], [0], [0], [1], [0, 0, 1, 1], [], []>} : vector<8x128xbf16>, vector<128x128xbf16>, vector<8x128xf32> -> vector<8x128xf32>
    %8 = arith.addf %1, %7 : vector<8x128xf32>
    %c1 = arith.constant 1 : index
    %c0_8 = arith.constant 0 : index
    %c0_9 = arith.constant 0 : index
    %9 = vector.load %arg2[%c1, %c0_8, %c0_9] : memref<9x8x8xbf16, #tpu.memory_space<vmem>>, vector<1x8x8xbf16>
    %10 = vector.shape_cast %9 : vector<1x8x8xbf16> to vector<8x8xbf16>
    %cst_10 = arith.constant dense<0.000000e+00> : vector<8x128xf32>
    %11 = tpu.matmul %10, %0, %cst_10 {dimension_numbers = #tpu.dot_dimension_numbers<[1], [0], [0], [1], [0, 0, 1, 1], [], []>} : vector<8x8xbf16>, vector<8x128xbf16>, vector<8x128xf32> -> vector<8x128xf32>
    %12 = arith.truncf %11 : vector<8x128xf32> to vector<8x128xbf16>
    %c128 = arith.constant 128 : index
    %c0_11 = arith.constant 0 : index
    %13 = vector.load %arg3[%c128, %c0_11] : memref<1152x128xbf16, #tpu.memory_space<vmem>>, vector<128x128xbf16>
    %cst_12 = arith.constant dense<0.000000e+00> : vector<8x128xf32>
    %14 = tpu.matmul %12, %13, %cst_12 {dimension_numbers = #tpu.dot_dimension_numbers<[1], [0], [0], [1], [0, 0, 1, 1], [], []>} : vector<8x128xbf16>, vector<128x128xbf16>, vector<8x128xf32> -> vector<8x128xf32>
    %15 = arith.addf %8, %14 : vector<8x128xf32>
    %c2 = arith.constant 2 : index
    %c0_13 = arith.constant 0 : index
    %c0_14 = arith.constant 0 : index
    %16 = vector.load %arg2[%c2, %c0_13, %c0_14] : memref<9x8x8xbf16, #tpu.memory_space<vmem>>, vector<1x8x8xbf16>
    %17 = vector.shape_cast %16 : vector<1x8x8xbf16> to vector<8x8xbf16>
    %cst_15 = arith.constant dense<0.000000e+00> : vector<8x128xf32>
    %18 = tpu.matmul %17, %0, %cst_15 {dimension_numbers = #tpu.dot_dimension_numbers<[1], [0], [0], [1], [0, 0, 1, 1], [], []>} : vector<8x8xbf16>, vector<8x128xbf16>, vector<8x128xf32> -> vector<8x128xf32>
    %19 = arith.truncf %18 : vector<8x128xf32> to vector<8x128xbf16>
    %c256 = arith.constant 256 : index
    %c0_16 = arith.constant 0 : index
    %20 = vector.load %arg3[%c256, %c0_16] : memref<1152x128xbf16, #tpu.memory_space<vmem>>, vector<128x128xbf16>
    %cst_17 = arith.constant dense<0.000000e+00> : vector<8x128xf32>
    %21 = tpu.matmul %19, %20, %cst_17 {dimension_numbers = #tpu.dot_dimension_numbers<[1], [0], [0], [1], [0, 0, 1, 1], [], []>} : vector<8x128xbf16>, vector<128x128xbf16>, vector<8x128xf32> -> vector<8x128xf32>
    %22 = arith.addf %15, %21 : vector<8x128xf32>
    %c3 = arith.constant 3 : index
    %c0_18 = arith.constant 0 : index
    %c0_19 = arith.constant 0 : index
    %23 = vector.load %arg2[%c3, %c0_18, %c0_19] : memref<9x8x8xbf16, #tpu.memory_space<vmem>>, vector<1x8x8xbf16>
    %24 = vector.shape_cast %23 : vector<1x8x8xbf16> to vector<8x8xbf16>
    %cst_20 = arith.constant dense<0.000000e+00> : vector<8x128xf32>
    %25 = tpu.matmul %24, %0, %cst_20 {dimension_numbers = #tpu.dot_dimension_numbers<[1], [0], [0], [1], [0, 0, 1, 1], [], []>} : vector<8x8xbf16>, vector<8x128xbf16>, vector<8x128xf32> -> vector<8x128xf32>
    %26 = arith.truncf %25 : vector<8x128xf32> to vector<8x128xbf16>
    %c384 = arith.constant 384 : index
    %c0_21 = arith.constant 0 : index
    %27 = vector.load %arg3[%c384, %c0_21] : memref<1152x128xbf16, #tpu.memory_space<vmem>>, vector<128x128xbf16>
    %cst_22 = arith.constant dense<0.000000e+00> : vector<8x128xf32>
    %28 = tpu.matmul %26, %27, %cst_22 {dimension_numbers = #tpu.dot_dimension_numbers<[1], [0], [0], [1], [0, 0, 1, 1], [], []>} : vector<8x128xbf16>, vector<128x128xbf16>, vector<8x128xf32> -> vector<8x128xf32>
    %29 = arith.addf %22, %28 : vector<8x128xf32>
    %c4 = arith.constant 4 : index
    %c0_23 = arith.constant 0 : index
    %c0_24 = arith.constant 0 : index
    %30 = vector.load %arg2[%c4, %c0_23, %c0_24] : memref<9x8x8xbf16, #tpu.memory_space<vmem>>, vector<1x8x8xbf16>
    %31 = vector.shape_cast %30 : vector<1x8x8xbf16> to vector<8x8xbf16>
    %cst_25 = arith.constant dense<0.000000e+00> : vector<8x128xf32>
    %32 = tpu.matmul %31, %0, %cst_25 {dimension_numbers = #tpu.dot_dimension_numbers<[1], [0], [0], [1], [0, 0, 1, 1], [], []>} : vector<8x8xbf16>, vector<8x128xbf16>, vector<8x128xf32> -> vector<8x128xf32>
    %33 = arith.truncf %32 : vector<8x128xf32> to vector<8x128xbf16>
    %c512 = arith.constant 512 : index
    %c0_26 = arith.constant 0 : index
    %34 = vector.load %arg3[%c512, %c0_26] : memref<1152x128xbf16, #tpu.memory_space<vmem>>, vector<128x128xbf16>
    %cst_27 = arith.constant dense<0.000000e+00> : vector<8x128xf32>
    %35 = tpu.matmul %33, %34, %cst_27 {dimension_numbers = #tpu.dot_dimension_numbers<[1], [0], [0], [1], [0, 0, 1, 1], [], []>} : vector<8x128xbf16>, vector<128x128xbf16>, vector<8x128xf32> -> vector<8x128xf32>
    %36 = arith.addf %29, %35 : vector<8x128xf32>
    %c5 = arith.constant 5 : index
    %c0_28 = arith.constant 0 : index
    %c0_29 = arith.constant 0 : index
    %37 = vector.load %arg2[%c5, %c0_28, %c0_29] : memref<9x8x8xbf16, #tpu.memory_space<vmem>>, vector<1x8x8xbf16>
    %38 = vector.shape_cast %37 : vector<1x8x8xbf16> to vector<8x8xbf16>
    %cst_30 = arith.constant dense<0.000000e+00> : vector<8x128xf32>
    %39 = tpu.matmul %38, %0, %cst_30 {dimension_numbers = #tpu.dot_dimension_numbers<[1], [0], [0], [1], [0, 0, 1, 1], [], []>} : vector<8x8xbf16>, vector<8x128xbf16>, vector<8x128xf32> -> vector<8x128xf32>
    %40 = arith.truncf %39 : vector<8x128xf32> to vector<8x128xbf16>
    %c640 = arith.constant 640 : index
    %c0_31 = arith.constant 0 : index
    %41 = vector.load %arg3[%c640, %c0_31] : memref<1152x128xbf16, #tpu.memory_space<vmem>>, vector<128x128xbf16>
    %cst_32 = arith.constant dense<0.000000e+00> : vector<8x128xf32>
    %42 = tpu.matmul %40, %41, %cst_32 {dimension_numbers = #tpu.dot_dimension_numbers<[1], [0], [0], [1], [0, 0, 1, 1], [], []>} : vector<8x128xbf16>, vector<128x128xbf16>, vector<8x128xf32> -> vector<8x128xf32>
    %43 = arith.addf %36, %42 : vector<8x128xf32>
    %c6 = arith.constant 6 : index
    %c0_33 = arith.constant 0 : index
    %c0_34 = arith.constant 0 : index
    %44 = vector.load %arg2[%c6, %c0_33, %c0_34] : memref<9x8x8xbf16, #tpu.memory_space<vmem>>, vector<1x8x8xbf16>
    %45 = vector.shape_cast %44 : vector<1x8x8xbf16> to vector<8x8xbf16>
    %cst_35 = arith.constant dense<0.000000e+00> : vector<8x128xf32>
    %46 = tpu.matmul %45, %0, %cst_35 {dimension_numbers = #tpu.dot_dimension_numbers<[1], [0], [0], [1], [0, 0, 1, 1], [], []>} : vector<8x8xbf16>, vector<8x128xbf16>, vector<8x128xf32> -> vector<8x128xf32>
    %47 = arith.truncf %46 : vector<8x128xf32> to vector<8x128xbf16>
    %c768 = arith.constant 768 : index
    %c0_36 = arith.constant 0 : index
    %48 = vector.load %arg3[%c768, %c0_36] : memref<1152x128xbf16, #tpu.memory_space<vmem>>, vector<128x128xbf16>
    %cst_37 = arith.constant dense<0.000000e+00> : vector<8x128xf32>
    %49 = tpu.matmul %47, %48, %cst_37 {dimension_numbers = #tpu.dot_dimension_numbers<[1], [0], [0], [1], [0, 0, 1, 1], [], []>} : vector<8x128xbf16>, vector<128x128xbf16>, vector<8x128xf32> -> vector<8x128xf32>
    %50 = arith.addf %43, %49 : vector<8x128xf32>
    %c7 = arith.constant 7 : index
    %c0_38 = arith.constant 0 : index
    %c0_39 = arith.constant 0 : index
    %51 = vector.load %arg2[%c7, %c0_38, %c0_39] : memref<9x8x8xbf16, #tpu.memory_space<vmem>>, vector<1x8x8xbf16>
    %52 = vector.shape_cast %51 : vector<1x8x8xbf16> to vector<8x8xbf16>
    %cst_40 = arith.constant dense<0.000000e+00> : vector<8x128xf32>
    %53 = tpu.matmul %52, %0, %cst_40 {dimension_numbers = #tpu.dot_dimension_numbers<[1], [0], [0], [1], [0, 0, 1, 1], [], []>} : vector<8x8xbf16>, vector<8x128xbf16>, vector<8x128xf32> -> vector<8x128xf32>
    %54 = arith.truncf %53 : vector<8x128xf32> to vector<8x128xbf16>
    %c896 = arith.constant 896 : index
    %c0_41 = arith.constant 0 : index
    %55 = vector.load %arg3[%c896, %c0_41] : memref<1152x128xbf16, #tpu.memory_space<vmem>>, vector<128x128xbf16>
    %cst_42 = arith.constant dense<0.000000e+00> : vector<8x128xf32>
    %56 = tpu.matmul %54, %55, %cst_42 {dimension_numbers = #tpu.dot_dimension_numbers<[1], [0], [0], [1], [0, 0, 1, 1], [], []>} : vector<8x128xbf16>, vector<128x128xbf16>, vector<8x128xf32> -> vector<8x128xf32>
    %57 = arith.addf %50, %56 : vector<8x128xf32>
    %c8 = arith.constant 8 : index
    %c0_43 = arith.constant 0 : index
    %c0_44 = arith.constant 0 : index
    %58 = vector.load %arg2[%c8, %c0_43, %c0_44] : memref<9x8x8xbf16, #tpu.memory_space<vmem>>, vector<1x8x8xbf16>
    %59 = vector.shape_cast %58 : vector<1x8x8xbf16> to vector<8x8xbf16>
    %cst_45 = arith.constant dense<0.000000e+00> : vector<8x128xf32>
    %60 = tpu.matmul %59, %0, %cst_45 {dimension_numbers = #tpu.dot_dimension_numbers<[1], [0], [0], [1], [0, 0, 1, 1], [], []>} : vector<8x8xbf16>, vector<8x128xbf16>, vector<8x128xf32> -> vector<8x128xf32>
    %61 = arith.truncf %60 : vector<8x128xf32> to vector<8x128xbf16>
    %c1024 = arith.constant 1024 : index
    %c0_46 = arith.constant 0 : index
    %62 = vector.load %arg3[%c1024, %c0_46] : memref<1152x128xbf16, #tpu.memory_space<vmem>>, vector<128x128xbf16>
    %cst_47 = arith.constant dense<0.000000e+00> : vector<8x128xf32>
    %63 = tpu.matmul %61, %62, %cst_47 {dimension_numbers = #tpu.dot_dimension_numbers<[1], [0], [0], [1], [0, 0, 1, 1], [], []>} : vector<8x128xbf16>, vector<128x128xbf16>, vector<8x128xf32> -> vector<8x128xf32>
    %64 = arith.addf %57, %63 : vector<8x128xf32>
    %c0_48 = arith.constant 0 : index
    %c0_49 = arith.constant 0 : index
    %65 = vector.load %arg4[%c0_48, %c0_49] : memref<1x128xf32, #tpu.memory_space<vmem>>, vector<1x128xf32>
    %66 = vector.broadcast %65 : vector<1x128xf32> to vector<8x128xf32>
    %67 = arith.addf %64, %66 : vector<8x128xf32>
    %cst_50 = arith.constant 0.000000e+00 : f32
    %68 = vector.broadcast %cst_50 : f32 to vector<8x128xf32>
    %69 = arith.maximumf %67, %68 : vector<8x128xf32>
    %70 = arith.truncf %69 : vector<8x128xf32> to vector<8x128xbf16>
    %71 = arith.extf %0 : vector<8x128xbf16> to vector<8x128xf32>
    %cst_51 = arith.constant 0.000000e+00 : f32
    %72 = vector.broadcast %cst_51 : f32 to vector<8x128xf32>
    %c0_52 = arith.constant 0 : index
    %c0_53 = arith.constant 0 : index
    %c0_54 = arith.constant 0 : index
    %73 = vector.load %arg5[%c0_52, %c0_53, %c0_54] : memref<9x8x8xbf16, #tpu.memory_space<vmem>>, vector<1x8x8xbf16>
    %74 = vector.shape_cast %73 : vector<1x8x8xbf16> to vector<8x8xbf16>
    %cst_55 = arith.constant dense<0.000000e+00> : vector<8x128xf32>
    %75 = tpu.matmul %74, %70, %cst_55 {dimension_numbers = #tpu.dot_dimension_numbers<[1], [0], [0], [1], [0, 0, 1, 1], [], []>} : vector<8x8xbf16>, vector<8x128xbf16>, vector<8x128xf32> -> vector<8x128xf32>
    %76 = arith.truncf %75 : vector<8x128xf32> to vector<8x128xbf16>
    %c0_56 = arith.constant 0 : index
    %c0_57 = arith.constant 0 : index
    %77 = vector.load %arg6[%c0_56, %c0_57] : memref<1152x128xbf16, #tpu.memory_space<vmem>>, vector<128x128xbf16>
    %cst_58 = arith.constant dense<0.000000e+00> : vector<8x128xf32>
    %78 = tpu.matmul %76, %77, %cst_58 {dimension_numbers = #tpu.dot_dimension_numbers<[1], [0], [0], [1], [0, 0, 1, 1], [], []>} : vector<8x128xbf16>, vector<128x128xbf16>, vector<8x128xf32> -> vector<8x128xf32>
    %79 = arith.addf %72, %78 : vector<8x128xf32>
    %c1_59 = arith.constant 1 : index
    %c0_60 = arith.constant 0 : index
    %c0_61 = arith.constant 0 : index
    %80 = vector.load %arg5[%c1_59, %c0_60, %c0_61] : memref<9x8x8xbf16, #tpu.memory_space<vmem>>, vector<1x8x8xbf16>
    %81 = vector.shape_cast %80 : vector<1x8x8xbf16> to vector<8x8xbf16>
    %cst_62 = arith.constant dense<0.000000e+00> : vector<8x128xf32>
    %82 = tpu.matmul %81, %70, %cst_62 {dimension_numbers = #tpu.dot_dimension_numbers<[1], [0], [0], [1], [0, 0, 1, 1], [], []>} : vector<8x8xbf16>, vector<8x128xbf16>, vector<8x128xf32> -> vector<8x128xf32>
    %83 = arith.truncf %82 : vector<8x128xf32> to vector<8x128xbf16>
    %c128_63 = arith.constant 128 : index
    %c0_64 = arith.constant 0 : index
    %84 = vector.load %arg6[%c128_63, %c0_64] : memref<1152x128xbf16, #tpu.memory_space<vmem>>, vector<128x128xbf16>
    %cst_65 = arith.constant dense<0.000000e+00> : vector<8x128xf32>
    %85 = tpu.matmul %83, %84, %cst_65 {dimension_numbers = #tpu.dot_dimension_numbers<[1], [0], [0], [1], [0, 0, 1, 1], [], []>} : vector<8x128xbf16>, vector<128x128xbf16>, vector<8x128xf32> -> vector<8x128xf32>
    %86 = arith.addf %79, %85 : vector<8x128xf32>
    %c2_66 = arith.constant 2 : index
    %c0_67 = arith.constant 0 : index
    %c0_68 = arith.constant 0 : index
    %87 = vector.load %arg5[%c2_66, %c0_67, %c0_68] : memref<9x8x8xbf16, #tpu.memory_space<vmem>>, vector<1x8x8xbf16>
    %88 = vector.shape_cast %87 : vector<1x8x8xbf16> to vector<8x8xbf16>
    %cst_69 = arith.constant dense<0.000000e+00> : vector<8x128xf32>
    %89 = tpu.matmul %88, %70, %cst_69 {dimension_numbers = #tpu.dot_dimension_numbers<[1], [0], [0], [1], [0, 0, 1, 1], [], []>} : vector<8x8xbf16>, vector<8x128xbf16>, vector<8x128xf32> -> vector<8x128xf32>
    %90 = arith.truncf %89 : vector<8x128xf32> to vector<8x128xbf16>
    %c256_70 = arith.constant 256 : index
    %c0_71 = arith.constant 0 : index
    %91 = vector.load %arg6[%c256_70, %c0_71] : memref<1152x128xbf16, #tpu.memory_space<vmem>>, vector<128x128xbf16>
    %cst_72 = arith.constant dense<0.000000e+00> : vector<8x128xf32>
    %92 = tpu.matmul %90, %91, %cst_72 {dimension_numbers = #tpu.dot_dimension_numbers<[1], [0], [0], [1], [0, 0, 1, 1], [], []>} : vector<8x128xbf16>, vector<128x128xbf16>, vector<8x128xf32> -> vector<8x128xf32>
    %93 = arith.addf %86, %92 : vector<8x128xf32>
    %c3_73 = arith.constant 3 : index
    %c0_74 = arith.constant 0 : index
    %c0_75 = arith.constant 0 : index
    %94 = vector.load %arg5[%c3_73, %c0_74, %c0_75] : memref<9x8x8xbf16, #tpu.memory_space<vmem>>, vector<1x8x8xbf16>
    %95 = vector.shape_cast %94 : vector<1x8x8xbf16> to vector<8x8xbf16>
    %cst_76 = arith.constant dense<0.000000e+00> : vector<8x128xf32>
    %96 = tpu.matmul %95, %70, %cst_76 {dimension_numbers = #tpu.dot_dimension_numbers<[1], [0], [0], [1], [0, 0, 1, 1], [], []>} : vector<8x8xbf16>, vector<8x128xbf16>, vector<8x128xf32> -> vector<8x128xf32>
    %97 = arith.truncf %96 : vector<8x128xf32> to vector<8x128xbf16>
    %c384_77 = arith.constant 384 : index
    %c0_78 = arith.constant 0 : index
    %98 = vector.load %arg6[%c384_77, %c0_78] : memref<1152x128xbf16, #tpu.memory_space<vmem>>, vector<128x128xbf16>
    %cst_79 = arith.constant dense<0.000000e+00> : vector<8x128xf32>
    %99 = tpu.matmul %97, %98, %cst_79 {dimension_numbers = #tpu.dot_dimension_numbers<[1], [0], [0], [1], [0, 0, 1, 1], [], []>} : vector<8x128xbf16>, vector<128x128xbf16>, vector<8x128xf32> -> vector<8x128xf32>
    %100 = arith.addf %93, %99 : vector<8x128xf32>
    %c4_80 = arith.constant 4 : index
    %c0_81 = arith.constant 0 : index
    %c0_82 = arith.constant 0 : index
    %101 = vector.load %arg5[%c4_80, %c0_81, %c0_82] : memref<9x8x8xbf16, #tpu.memory_space<vmem>>, vector<1x8x8xbf16>
    %102 = vector.shape_cast %101 : vector<1x8x8xbf16> to vector<8x8xbf16>
    %cst_83 = arith.constant dense<0.000000e+00> : vector<8x128xf32>
    %103 = tpu.matmul %102, %70, %cst_83 {dimension_numbers = #tpu.dot_dimension_numbers<[1], [0], [0], [1], [0, 0, 1, 1], [], []>} : vector<8x8xbf16>, vector<8x128xbf16>, vector<8x128xf32> -> vector<8x128xf32>
    %104 = arith.truncf %103 : vector<8x128xf32> to vector<8x128xbf16>
    %c512_84 = arith.constant 512 : index
    %c0_85 = arith.constant 0 : index
    %105 = vector.load %arg6[%c512_84, %c0_85] : memref<1152x128xbf16, #tpu.memory_space<vmem>>, vector<128x128xbf16>
    %cst_86 = arith.constant dense<0.000000e+00> : vector<8x128xf32>
    %106 = tpu.matmul %104, %105, %cst_86 {dimension_numbers = #tpu.dot_dimension_numbers<[1], [0], [0], [1], [0, 0, 1, 1], [], []>} : vector<8x128xbf16>, vector<128x128xbf16>, vector<8x128xf32> -> vector<8x128xf32>
    %107 = arith.addf %100, %106 : vector<8x128xf32>
    %c5_87 = arith.constant 5 : index
    %c0_88 = arith.constant 0 : index
    %c0_89 = arith.constant 0 : index
    %108 = vector.load %arg5[%c5_87, %c0_88, %c0_89] : memref<9x8x8xbf16, #tpu.memory_space<vmem>>, vector<1x8x8xbf16>
    %109 = vector.shape_cast %108 : vector<1x8x8xbf16> to vector<8x8xbf16>
    %cst_90 = arith.constant dense<0.000000e+00> : vector<8x128xf32>
    %110 = tpu.matmul %109, %70, %cst_90 {dimension_numbers = #tpu.dot_dimension_numbers<[1], [0], [0], [1], [0, 0, 1, 1], [], []>} : vector<8x8xbf16>, vector<8x128xbf16>, vector<8x128xf32> -> vector<8x128xf32>
    %111 = arith.truncf %110 : vector<8x128xf32> to vector<8x128xbf16>
    %c640_91 = arith.constant 640 : index
    %c0_92 = arith.constant 0 : index
    %112 = vector.load %arg6[%c640_91, %c0_92] : memref<1152x128xbf16, #tpu.memory_space<vmem>>, vector<128x128xbf16>
    %cst_93 = arith.constant dense<0.000000e+00> : vector<8x128xf32>
    %113 = tpu.matmul %111, %112, %cst_93 {dimension_numbers = #tpu.dot_dimension_numbers<[1], [0], [0], [1], [0, 0, 1, 1], [], []>} : vector<8x128xbf16>, vector<128x128xbf16>, vector<8x128xf32> -> vector<8x128xf32>
    %114 = arith.addf %107, %113 : vector<8x128xf32>
    %c6_94 = arith.constant 6 : index
    %c0_95 = arith.constant 0 : index
    %c0_96 = arith.constant 0 : index
    %115 = vector.load %arg5[%c6_94, %c0_95, %c0_96] : memref<9x8x8xbf16, #tpu.memory_space<vmem>>, vector<1x8x8xbf16>
    %116 = vector.shape_cast %115 : vector<1x8x8xbf16> to vector<8x8xbf16>
    %cst_97 = arith.constant dense<0.000000e+00> : vector<8x128xf32>
    %117 = tpu.matmul %116, %70, %cst_97 {dimension_numbers = #tpu.dot_dimension_numbers<[1], [0], [0], [1], [0, 0, 1, 1], [], []>} : vector<8x8xbf16>, vector<8x128xbf16>, vector<8x128xf32> -> vector<8x128xf32>
    %118 = arith.truncf %117 : vector<8x128xf32> to vector<8x128xbf16>
    %c768_98 = arith.constant 768 : index
    %c0_99 = arith.constant 0 : index
    %119 = vector.load %arg6[%c768_98, %c0_99] : memref<1152x128xbf16, #tpu.memory_space<vmem>>, vector<128x128xbf16>
    %cst_100 = arith.constant dense<0.000000e+00> : vector<8x128xf32>
    %120 = tpu.matmul %118, %119, %cst_100 {dimension_numbers = #tpu.dot_dimension_numbers<[1], [0], [0], [1], [0, 0, 1, 1], [], []>} : vector<8x128xbf16>, vector<128x128xbf16>, vector<8x128xf32> -> vector<8x128xf32>
    %121 = arith.addf %114, %120 : vector<8x128xf32>
    %c7_101 = arith.constant 7 : index
    %c0_102 = arith.constant 0 : index
    %c0_103 = arith.constant 0 : index
    %122 = vector.load %arg5[%c7_101, %c0_102, %c0_103] : memref<9x8x8xbf16, #tpu.memory_space<vmem>>, vector<1x8x8xbf16>
    %123 = vector.shape_cast %122 : vector<1x8x8xbf16> to vector<8x8xbf16>
    %cst_104 = arith.constant dense<0.000000e+00> : vector<8x128xf32>
    %124 = tpu.matmul %123, %70, %cst_104 {dimension_numbers = #tpu.dot_dimension_numbers<[1], [0], [0], [1], [0, 0, 1, 1], [], []>} : vector<8x8xbf16>, vector<8x128xbf16>, vector<8x128xf32> -> vector<8x128xf32>
    %125 = arith.truncf %124 : vector<8x128xf32> to vector<8x128xbf16>
    %c896_105 = arith.constant 896 : index
    %c0_106 = arith.constant 0 : index
    %126 = vector.load %arg6[%c896_105, %c0_106] : memref<1152x128xbf16, #tpu.memory_space<vmem>>, vector<128x128xbf16>
    %cst_107 = arith.constant dense<0.000000e+00> : vector<8x128xf32>
    %127 = tpu.matmul %125, %126, %cst_107 {dimension_numbers = #tpu.dot_dimension_numbers<[1], [0], [0], [1], [0, 0, 1, 1], [], []>} : vector<8x128xbf16>, vector<128x128xbf16>, vector<8x128xf32> -> vector<8x128xf32>
    %128 = arith.addf %121, %127 : vector<8x128xf32>
    %c8_108 = arith.constant 8 : index
    %c0_109 = arith.constant 0 : index
    %c0_110 = arith.constant 0 : index
    %129 = vector.load %arg5[%c8_108, %c0_109, %c0_110] : memref<9x8x8xbf16, #tpu.memory_space<vmem>>, vector<1x8x8xbf16>
    %130 = vector.shape_cast %129 : vector<1x8x8xbf16> to vector<8x8xbf16>
    %cst_111 = arith.constant dense<0.000000e+00> : vector<8x128xf32>
    %131 = tpu.matmul %130, %70, %cst_111 {dimension_numbers = #tpu.dot_dimension_numbers<[1], [0], [0], [1], [0, 0, 1, 1], [], []>} : vector<8x8xbf16>, vector<8x128xbf16>, vector<8x128xf32> -> vector<8x128xf32>
    %132 = arith.truncf %131 : vector<8x128xf32> to vector<8x128xbf16>
    %c1024_112 = arith.constant 1024 : index
    %c0_113 = arith.constant 0 : index
    %133 = vector.load %arg6[%c1024_112, %c0_113] : memref<1152x128xbf16, #tpu.memory_space<vmem>>, vector<128x128xbf16>
    %cst_114 = arith.constant dense<0.000000e+00> : vector<8x128xf32>
    %134 = tpu.matmul %132, %133, %cst_114 {dimension_numbers = #tpu.dot_dimension_numbers<[1], [0], [0], [1], [0, 0, 1, 1], [], []>} : vector<8x128xbf16>, vector<128x128xbf16>, vector<8x128xf32> -> vector<8x128xf32>
    %135 = arith.addf %128, %134 : vector<8x128xf32>
    %c0_115 = arith.constant 0 : index
    %c0_116 = arith.constant 0 : index
    %136 = vector.load %arg7[%c0_115, %c0_116] : memref<1x128xf32, #tpu.memory_space<vmem>>, vector<1x128xf32>
    %137 = vector.broadcast %136 : vector<1x128xf32> to vector<8x128xf32>
    %138 = arith.addf %135, %137 : vector<8x128xf32>
    %139 = arith.addf %138, %71 : vector<8x128xf32>
    %cst_117 = arith.constant 0.000000e+00 : f32
    %140 = vector.broadcast %cst_117 : f32 to vector<8x128xf32>
    %141 = arith.maximumf %139, %140 : vector<8x128xf32>
    %142 = arith.truncf %141 : vector<8x128xf32> to vector<8x128xbf16>
    %c0_118 = arith.constant 0 : index
    %c0_119 = arith.constant 0 : index
    %143 = vector.load %arg8[%c0_118, %c0_119] : memref<8x128xbf16, #tpu.memory_space<vmem>>, vector<8x128xbf16>
    tpu.vector_store %arg8[%c0_118, %c0_119], %142 {strides = array<i32>} : memref<8x128xbf16, #tpu.memory_space<vmem>>, vector<8x128xbf16>,
    return
  }
  func.func @transform_0(%arg0: i32) -> (i32, i32) {
    %c0_i32 = arith.constant 0 : i32
    %c0_i32_0 = arith.constant 0 : i32
    %c0_i32_1 = arith.constant 0 : i32
    return %c0_i32, %c0_i32_0 : i32, i32
  }
  func.func @transform_1(%arg0: i32) -> (i32, i32, i32) {
    %c0_i32 = arith.constant 0 : i32
    %c0_i32_0 = arith.constant 0 : i32
    %c0_i32_1 = arith.constant 0 : i32
    %c0_i32_2 = arith.constant 0 : i32
    return %c0_i32, %c0_i32_0, %c0_i32_1 : i32, i32, i32
  }
  func.func @transform_2(%arg0: i32) -> (i32, i32) {
    %c0_i32 = arith.constant 0 : i32
    %c0_i32_0 = arith.constant 0 : i32
    %c0_i32_1 = arith.constant 0 : i32
    return %c0_i32, %c0_i32_0 : i32, i32
  }
  func.func @transform_3(%arg0: i32) -> (i32, i32) {
    %c0_i32 = arith.constant 0 : i32
    %c0_i32_0 = arith.constant 0 : i32
    %c0_i32_1 = arith.constant 0 : i32
    return %c0_i32, %c0_i32_0 : i32, i32
  }
  func.func @transform_4(%arg0: i32) -> (i32, i32, i32) {
    %c0_i32 = arith.constant 0 : i32
    %c0_i32_0 = arith.constant 0 : i32
    %c0_i32_1 = arith.constant 0 : i32
    %c0_i32_2 = arith.constant 0 : i32
    return %c0_i32, %c0_i32_0, %c0_i32_1 : i32, i32, i32
  }
  func.func @transform_5(%arg0: i32) -> (i32, i32) {
    %c0_i32 = arith.constant 0 : i32
    %c0_i32_0 = arith.constant 0 : i32
    %c0_i32_1 = arith.constant 0 : i32
    return %c0_i32, %c0_i32_0 : i32, i32
  }
  func.func @transform_6(%arg0: i32) -> (i32, i32) {
    %c0_i32 = arith.constant 0 : i32
    %c0_i32_0 = arith.constant 0 : i32
    %c0_i32_1 = arith.constant 0 : i32
    return %c0_i32, %c0_i32_0 : i32, i32
  }
  func.func @transform_7(%arg0: i32) -> (i32, i32) {
    %c0_i32 = arith.constant 0 : i32
    %c0_i32_0 = arith.constant 0 : i32
    %c0_i32_1 = arith.constant 0 : i32
    return %c0_i32, %c0_i32_0 : i32, i32
  }
}

module attributes {stable_mosaic.version = 11 : i64} {
  func.func @_gemm_kernel(%arg0: i32, %arg1: memref<16x128xbf16, #tpu.memory_space<vmem>>, %arg2: memref<128x1024xbf16, #tpu.memory_space<vmem>>, %arg3: memref<1x1024xf32, #tpu.memory_space<vmem>>, %arg4: memref<16x1024xf32, #tpu.memory_space<vmem>>) attributes {dimension_semantics = [#tpu.dimension_semantics<parallel>], iteration_bounds = array<i64: 1>, scalar_prefetch = 0 : i64, scratch_operands = 0 : i64, tpu.core_type = #tpu.core_type<tc>, window_params = [{transform_indices = @transform_0, window_bounds = array<i64: 16, 128>}, {pipeline_mode = #tpu.pipeline_mode<synchronous>, transform_indices = @transform_1, window_bounds = array<i64: 128, 1024>}, {pipeline_mode = #tpu.pipeline_mode<synchronous>, transform_indices = @transform_2, window_bounds = array<i64: 1, 1024>}, {transform_indices = @transform_3, window_bounds = array<i64: 16, 1024>}]} {
    %c0 = arith.constant 0 : index
    %c0_0 = arith.constant 0 : index
    %0 = vector.load %arg1[%c0, %c0_0] : memref<16x128xbf16, #tpu.memory_space<vmem>>, vector<16x128xbf16>
    %c0_1 = arith.constant 0 : index
    %c0_2 = arith.constant 0 : index
    %1 = vector.load %arg2[%c0_1, %c0_2] : memref<128x1024xbf16, #tpu.memory_space<vmem>>, vector<128x1024xbf16>
    %cst = arith.constant dense<0.000000e+00> : vector<16x1024xf32>
    %2 = tpu.matmul %0, %1, %cst {dimension_numbers = #tpu.dot_dimension_numbers<[1], [0], [0], [1], [0, 0, 1, 1], [], []>} : vector<16x128xbf16>, vector<128x1024xbf16>, vector<16x1024xf32> -> vector<16x1024xf32>
    %c0_3 = arith.constant 0 : index
    %c0_4 = arith.constant 0 : index
    %3 = vector.load %arg3[%c0_3, %c0_4] : memref<1x1024xf32, #tpu.memory_space<vmem>>, vector<1x1024xf32>
    %4 = vector.broadcast %3 : vector<1x1024xf32> to vector<16x1024xf32>
    %5 = arith.addf %2, %4 : vector<16x1024xf32>
    %c0_5 = arith.constant 0 : index
    %c0_6 = arith.constant 0 : index
    %6 = vector.load %arg4[%c0_5, %c0_6] : memref<16x1024xf32, #tpu.memory_space<vmem>>, vector<16x1024xf32>
    tpu.vector_store %arg4[%c0_5, %c0_6], %5 {strides = array<i32>} : memref<16x1024xf32, #tpu.memory_space<vmem>>, vector<16x1024xf32>,
    return
  }
  func.func @transform_0(%arg0: i32) -> (i32, i32) {
    %c0_i32 = arith.constant 0 : i32
    %c0_i32_0 = arith.constant 0 : i32
    return %arg0, %c0_i32 : i32, i32
  }
  func.func @transform_1(%arg0: i32) -> (i32, i32) {
    %c0_i32 = arith.constant 0 : i32
    %c0_i32_0 = arith.constant 0 : i32
    %c0_i32_1 = arith.constant 0 : i32
    return %c0_i32, %c0_i32_0 : i32, i32
  }
  func.func @transform_2(%arg0: i32) -> (i32, i32) {
    %c0_i32 = arith.constant 0 : i32
    %c0_i32_0 = arith.constant 0 : i32
    %c0_i32_1 = arith.constant 0 : i32
    return %c0_i32, %c0_i32_0 : i32, i32
  }
  func.func @transform_3(%arg0: i32) -> (i32, i32) {
    %c0_i32 = arith.constant 0 : i32
    %c0_i32_0 = arith.constant 0 : i32
    return %arg0, %c0_i32 : i32, i32
  }
}

</mosaic_0001>

<bundles_post_ra>
// kernel: resnet_forward.14
= control target key start
LH: loop header
LB: loop body
LE: loop exit
PB: predicated region body
PF: predicated region fallthrough
CT: control target
= control target key end

     0   :  { %s1269_s12 = smov 0   ;;  %s1475_s0 = inlined_call_operand.vmem [shape: bf16[2048,256], index: 0, kind: input, shape index: {}]   ;;  %s1476_s1 = inlined_call_operand.vmem [shape: bf16[256,16], index: 1, kind: input, shape index: {}]   ;;  %s1477_s2 = inlined_call_operand.vmem [shape: f32[1,16], index: 2, kind: input, shape index: {}]   ;;  %s1478_s3 = inlined_call_operand.vmem [shape: bf16[2048,16], index: 3, kind: output, shape index: {}]  }
   0x1 LB: > { %s915_s13 = sadd.s32 4294967295, %s1247_s12   ;;  %p919_p0 = scmp.ge.s32.totalorder %s1247_s12, 1  ;;  %s1247_s12 = sphi %s1269_s12, %s13_s12  }
   0x2   : > { %p139_p1 = scmp.lt.s32.totalorder %s1247_s12, 9 }
   0x4   : > { %p140_p2 = pnand %p919_p0, %p139_p1 }
   0x5   : > { %v1177_v0 = vld [vmem:[%s1476_s1 + $0x40] sm:$0xff] (!%p140_p2)   ;;  %s920_s16 = sshll.u32 (!%p140_p2), %s915_s13, 5  ;;  %v1179_v2 = vld [vmem:[%s1476_s1 + $0x48] sm:$0xff] (!%p140_p2)   ;;  %v1181_v4 = vld [vmem:[%s1476_s1 + $0x50] sm:$0xff] (!%p140_p2)   ;;  %vm826_vm0 = vcmask (!%p140_p2), 125952  }
   0x6   : > { %143 = sbr.rel (%p140_p2) target bundleno = 318 (0x13e), region = 32  ;;  %v1178_v1 = vld [vmem:[%s1476_s1] sm:$0xff] (!%p140_p2)   ;;  %1041 = vmatprep.subr.bf16.mxu0 (!%p140_p2), %v1177_v0  ;;  %1153 = vmatprep.subr.bf16.mxu1 (!%p140_p2), %v1177_v0  ;;  %v1180_v3 = vld [vmem:[%s1476_s1 + $0x8] sm:$0xff] (!%p140_p2)   ;;  %p165_p3 = scmp.lt.s32.totalorder (!%p140_p2), %s920_s16, 255  ;;  %v1182_v5 = vld [vmem:[%s1476_s1 + $0x10] sm:$0xff] (!%p140_p2)  }
   0x7   : > { %1042 = vmatpush3.bf16.msra.mxu0 (!%p140_p2), %v1178_v1  ;;  %1161 = vmatpush3.bf16.msra.mxu1 (!%p140_p2), %v1178_v1  ;;  %v1183_v6 = vld [vmem:[%s1476_s1 + $0x58] sm:$0xff] (!%p140_p2)   ;;  %v1185_v8 = vld [vmem:[%s1476_s1 + $0x60] sm:$0xff] (!%p140_p2)   ;;  %v1187_v10 = vld [vmem:[%s1476_s1 + $0x68] sm:$0xff] (!%p140_p2)  }
   0x8   : > { %1043 = vmatprep.subr.bf16.mxu0 (!%p140_p2), %v1179_v2  ;;  %1154 = vmatprep.subr.bf16.mxu1 (!%p140_p2), %v1179_v2  ;;  %v1184_v7 = vld [vmem:[%s1476_s1 + $0x18] sm:$0xff] (!%p140_p2)   ;;  %v1186_v9 = vld [vmem:[%s1476_s1 + $0x20] sm:$0xff] (!%p140_p2)   ;;  %v1188_v13 = vld [vmem:[%s1476_s1 + $0x28] sm:$0xff] (!%p140_p2)  }
   0x9   : > { %v1189_v14 = vld [vmem:[%s1476_s1 + $0x70] sm:$0xff] (!%p140_p2)   ;;  %v1191_v16 = vld [vmem:[%s1476_s1 + $0x78] sm:$0xff] (!%p140_p2)   ;;  %v1368_v50 = vld [vmem:[%s1477_s2] ss:$0 sm:$0xff] (!%p140_p2) }
   0xa   : > { %v1190_v15 = vld [vmem:[%s1476_s1 + $0x30] sm:$0xff] (!%p140_p2)   ;;  %v1192_v17 = vld [vmem:[%s1476_s1 + $0x38] sm:$0xff] (!%p140_p2)  }
   0xb   : > { %1044 = vmatpush3.bf16.msra.mxu0 (!%p140_p2), %v1180_v3  ;;  %1162 = vmatpush3.bf16.msra.mxu1 (!%p140_p2), %v1180_v3 }
   0xc   : > { %1045 = vmatprep.subr.bf16.mxu0 (!%p140_p2), %v1181_v4  ;;  %1155 = vmatprep.subr.bf16.mxu1 (!%p140_p2), %v1181_v4 }
   0xd   : > { %s1480_s16 = smov (!%p165_p3, %s920_s16), 255 }
   0xe   : > { %s1008_s4 = sshll.u32 %s1480_s16, 3  ;;  %s924_s28 = sshll.u32 %s1480_s16, 2 }
   0xf   : > { %1046 = vmatpush3.bf16.msra.mxu0 %v1182_v5  ;;  %1163 = vmatpush3.bf16.msra.mxu1 %v1182_v5  ;;  %s1310_s9 = scalar_lea.vmem %s1475_s0, %s1008_s4  ;;  %s1378_s4 = scalar_lea.vmem %s1478_s3, %s924_s28 }
  0x10   : > { %1047 = vmatprep.subr.bf16.mxu0 %v1183_v6  ;;  %1156 = vmatprep.subr.bf16.mxu1 %v1183_v6  ;;  %v1195_v11 = vld [vmem:[%s1310_s9 + $0x4] ss:$8 sps:$4 sm:$0xff]   ;;  %v1193_v18 = vld [vmem:[%s1310_s9] ss:$8 sps:$4 sm:$0xff]   ;;  %v1199_v20 = vld [vmem:[%s1310_s9 + $0x14] ss:$8 sps:$4 sm:$0xff]  }
  0x11   : > { %v1198_v12 = vld [vmem:[%s1310_s9 + $0x84] ss:$8 sps:$4 sm:$0xff]   ;;  %537 = vmatprep.mubr.bf16.mxu0 %v1195_v11  ;;  %v1196_v19 = vld [vmem:[%s1310_s9 + $0x80] ss:$8 sps:$4 sm:$0xff]   ;;  %v1201_v21 = vld [vmem:[%s1310_s9 + $0x94] ss:$8 sps:$4 sm:$0xff]  }
  0x12   : > { %601 = vmatprep.mubr.bf16.mxu1 %v1198_v12  ;;  %v1203_v22 = vld [vmem:[%s1310_s9 + $0x10] ss:$8 sps:$4 sm:$0xff]   ;;  %v1205_v24 = vld [vmem:[%s1310_s9 + $0x24] ss:$8 sps:$4 sm:$0xff]   ;;  %v1209_v26 = vld [vmem:[%s1310_s9 + $0x20] ss:$8 sps:$4 sm:$0xff]  }
  0x13   : > { %1048 = vmatpush3.bf16.msra.mxu0 %v1184_v7  ;;  %1164 = vmatpush3.bf16.msra.mxu1 %v1184_v7  ;;  %v1204_v23 = vld [vmem:[%s1310_s9 + $0x90] ss:$8 sps:$4 sm:$0xff]   ;;  %v1207_v25 = vld [vmem:[%s1310_s9 + $0xa4] ss:$8 sps:$4 sm:$0xff]   ;;  %v1210_v27 = vld [vmem:[%s1310_s9 + $0xa0] ss:$8 sps:$4 sm:$0xff]  }
  0x14   : > { %1049 = vmatprep.subr.bf16.mxu0 %v1185_v8  ;;  %1157 = vmatprep.subr.bf16.mxu1 %v1185_v8  ;;  %v1211_v28 = vld [vmem:[%s1310_s9 + $0x34] ss:$8 sps:$4 sm:$0xff]   ;;  %v1215_v30 = vld [vmem:[%s1310_s9 + $0x30] ss:$8 sps:$4 sm:$0xff]   ;;  %v1217_v32 = vld [vmem:[%s1310_s9 + $0x44] ss:$8 sps:$4 sm:$0xff]  }
  0x15   : > { %v1213_v29 = vld [vmem:[%s1310_s9 + $0xb4] ss:$8 sps:$4 sm:$0xff]   ;;  %v1216_v31 = vld [vmem:[%s1310_s9 + $0xb0] ss:$8 sps:$4 sm:$0xff]   ;;  %v1219_v33 = vld [vmem:[%s1310_s9 + $0xc4] ss:$8 sps:$4 sm:$0xff]  }
  0x16   : > { %v1221_v34 = vld [vmem:[%s1310_s9 + $0x40] ss:$8 sps:$4 sm:$0xff]   ;;  %v1223_v36 = vld [vmem:[%s1310_s9 + $0x54] ss:$8 sps:$4 sm:$0xff]   ;;  %v1227_v38 = vld [vmem:[%s1310_s9 + $0x50] ss:$8 sps:$4 sm:$0xff]  }
  0x17   : > { %1050 = vmatpush3.bf16.msra.mxu0 %v1186_v9  ;;  %1165 = vmatpush3.bf16.msra.mxu1 %v1186_v9  ;;  %v1222_v35 = vld [vmem:[%s1310_s9 + $0xc0] ss:$8 sps:$4 sm:$0xff]   ;;  %v1225_v37 = vld [vmem:[%s1310_s9 + $0xd4] ss:$8 sps:$4 sm:$0xff]   ;;  %v1228_v39 = vld [vmem:[%s1310_s9 + $0xd0] ss:$8 sps:$4 sm:$0xff]  }
  0x18   : > { %1051 = vmatprep.subr.bf16.mxu0 %v1187_v10  ;;  %1158 = vmatprep.subr.bf16.mxu1 %v1187_v10  ;;  %v1229_v40 = vld [vmem:[%s1310_s9 + $0x64] ss:$8 sps:$4 sm:$0xff]   ;;  %v1233_v42 = vld [vmem:[%s1310_s9 + $0x60] ss:$8 sps:$4 sm:$0xff]   ;;  %v1235_v44 = vld [vmem:[%s1310_s9 + $0x74] ss:$8 sps:$4 sm:$0xff]  }
  0x19   : > { %v1231_v41 = vld [vmem:[%s1310_s9 + $0xe4] ss:$8 sps:$4 sm:$0xff]   ;;  %v1234_v43 = vld [vmem:[%s1310_s9 + $0xe0] ss:$8 sps:$4 sm:$0xff]   ;;  %v1237_v45 = vld [vmem:[%s1310_s9 + $0xf4] ss:$8 sps:$4 sm:$0xff]  }
  0x1a   : > { %v1239_v46 = vld [vmem:[%s1310_s9 + $0x70] ss:$8 sps:$4 sm:$0xff]  }
  0x1b   : > { %1052 = vmatpush3.bf16.msra.mxu0 %v1188_v13  ;;  %1166 = vmatpush3.bf16.msra.mxu1 %v1188_v13  ;;  %v1240_v47 = vld [vmem:[%s1310_s9 + $0xf0] ss:$8 sps:$4 sm:$0xff]  }
  0x1c   : > { %1053 = vmatprep.subr.bf16.mxu0 %v1189_v14  ;;  %1159 = vmatprep.subr.bf16.mxu1 %v1189_v14 }
  0x1f   : > { %1054 = vmatpush3.bf16.msra.mxu0 %v1190_v15  ;;  %1167 = vmatpush3.bf16.msra.mxu1 %v1190_v15 }
  0x20   : > { %1055 = vmatprep.subr.bf16.mxu0 %v1191_v16  ;;  %1160 = vmatprep.subr.bf16.mxu1 %v1191_v16 }
  0x23   : > { %1056 = vmatpush3.bf16.msra.mxu0 %v1192_v17  ;;  %1168 = vmatpush3.bf16.msra.mxu1 %v1192_v17 }
  0x26   : > { %538 = vmatmul.mubr.bf16.vlgmr.msra.gmra.mrb[0].mxu0 %v1193_v18  ;;  %602 = vmatmul.mubr.bf16.vlgmr.msra.gmra.mrb[0].mxu1 %v1196_v19 }
  0x27   : > { %545 = vmatprep.mubr.bf16.mxu0 %v1199_v20  ;;  %609 = vmatprep.mubr.bf16.mxu1 %v1201_v21 }
  0x2e   : > { %546 = vmatmul.mubr.bf16.gmra.mrb[4].mxu0 %v1203_v22  ;;  %610 = vmatmul.mubr.bf16.gmra.mrb[4].mxu1 %v1204_v23 }
  0x2f   : > { %553 = vmatprep.mubr.bf16.mxu0 %v1205_v24  ;;  %617 = vmatprep.mubr.bf16.mxu1 %v1207_v25 }
  0x36   : > { %554 = vmatmul.mubr.bf16.gmra.mrb[8].mxu0 %v1209_v26  ;;  %618 = vmatmul.mubr.bf16.gmra.mrb[8].mxu1 %v1210_v27 }
  0x37   : > { %561 = vmatprep.mubr.bf16.mxu0 %v1211_v28  ;;  %625 = vmatprep.mubr.bf16.mxu1 %v1213_v29 }
  0x3e   : > { %562 = vmatmul.mubr.bf16.gmra.mrb[12].mxu0 %v1215_v30  ;;  %626 = vmatmul.mubr.bf16.gmra.mrb[12].mxu1 %v1216_v31 }
  0x3f   : > { %569 = vmatprep.mubr.bf16.mxu0 %v1217_v32  ;;  %633 = vmatprep.mubr.bf16.mxu1 %v1219_v33 }
  0x46   : > { %570 = vmatmul.mubr.bf16.gmra.mrb[16].mxu0 %v1221_v34  ;;  %634 = vmatmul.mubr.bf16.gmra.mrb[16].mxu1 %v1222_v35 }
  0x47   : > { %577 = vmatprep.mubr.bf16.mxu0 %v1223_v36  ;;  %641 = vmatprep.mubr.bf16.mxu1 %v1225_v37 }
  0x4e   : > { %578 = vmatmul.mubr.bf16.gmra.mrb[20].mxu0 %v1227_v38  ;;  %642 = vmatmul.mubr.bf16.gmra.mrb[20].mxu1 %v1228_v39 }
  0x4f   : > { %585 = vmatprep.mubr.bf16.mxu0 %v1229_v40  ;;  %649 = vmatprep.mubr.bf16.mxu1 %v1231_v41 }
  0x56   : > { %586 = vmatmul.mubr.bf16.gmra.mrb[24].mxu0 %v1233_v42  ;;  %650 = vmatmul.mubr.bf16.gmra.mrb[24].mxu1 %v1234_v43 }
  0x57   : > { %593 = vmatprep.mubr.bf16.mxu0 %v1235_v44  ;;  %657 = vmatprep.mubr.bf16.mxu1 %v1237_v45 }
  0x5e   : > { %594 = vmatmul.mubr.bf16.gmra.mrb[28].mxu0 %v1239_v46  ;;  %658 = vmatmul.mubr.bf16.gmra.mrb[28].mxu1 %v1240_v47 }
  0xf9   : > { %v1057_v48 = vpop.f32.mrb[0].mxu0  ;;  %v1105_v49 = vpop.f32.mrb[0].mxu1 }
  0xfa   : > { %v1058_v51 = vpop.f32.mrb[1].mxu0  ;;  %v1106_v52 = vpop.f32.mrb[1].mxu1 }
  0xfb   : > { %v1059_v53 = vadd.f32 %v1058_v51, %v1057_v48  ;;  %v1107_v54 = vadd.f32 %v1106_v52, %v1105_v49  ;;  %v1060_v55 = vpop.f32.mrb[2].mxu0  ;;  %v1108_v56 = vpop.f32.mrb[2].mxu1 }
  0xfc   : > { %v1061_v57 = vpop.f32.mrb[3].mxu0  ;;  %v1109_v58 = vpop.f32.mrb[3].mxu1 }
  0xfd   : > { %v540_v59 = vadd.f32 %v1059_v53, %v1368_v50  ;;  %v604_v60 = vadd.f32 %v1107_v54, %v1368_v50  ;;  %v1062_v61 = vadd.f32 %v1061_v57, %v1060_v55  ;;  %v1110_v62 = vadd.f32 %v1109_v58, %v1108_v56 }
  0xff   : > { %v666_v63 = vmax.f32 %v540_v59, 0.0  ;;  %v682_v0 = vmax.f32 %v604_v60, 0.0  ;;  %v543_v1 = vadd.f32 %v1062_v61, %v1368_v50  ;;  %v607_v2 = vadd.f32 %v1110_v62, %v1368_v50 }
 0x101   : > { %v1009_v3 = vpack.c.bf16 %v666_v63, %v666_v63  ;;  %v1025_v4 = vpack.c.bf16 %v682_v0, %v682_v0  ;;  %v667_v5 = vmax.f32 %v543_v1, 0.0  ;;  %v683_v6 = vmax.f32 %v607_v2, 0.0  ;;  %v1063_v7 = vpop.f32.mrb[4].mxu0  ;;  %v1111_v8 = vpop.f32.mrb[4].mxu1 }
 0x102   : > { %v1064_v9 = vpop.f32.mrb[5].mxu0  ;;  %v1112_v10 = vpop.f32.mrb[5].mxu1 }
 0x103   : > { %827 = vst.msk [vmem:[%s1378_s4] sm:$0xf] %vm826_vm0, %v1009_v3  ;;  %843 = vst.msk [vmem:[%s1378_s4 + $0x40] sm:$0xf] %vm826_vm0, %v1025_v4  ;;  %v1010_v11 = vpack.c.bf16 %v667_v5, %v667_v5  ;;  %v1026_v12 = vpack.c.bf16 %v683_v6, %v683_v6  ;;  %v1065_v13 = vadd.f32 %v1064_v9, %v1063_v7  ;;  %v1066_v15 = vpop.f32.mrb[6].mxu0  ;;  %v1114_v16 = vpop.f32.mrb[6].mxu1 }
 0x104   : > { %v1113_v14 = vadd.f32 %v1112_v10, %v1111_v8  ;;  %v1067_v17 = vpop.f32.mrb[7].mxu0  ;;  %v1115_v18 = vpop.f32.mrb[7].mxu1 }
 0x105   : > { %828 = vst.msk [vmem:[%s1378_s4 + $0x4] sm:$0xf] %vm826_vm0, %v1010_v11  ;;  %844 = vst.msk [vmem:[%s1378_s4 + $0x44] sm:$0xf] %vm826_vm0, %v1026_v12  ;;  %v548_v19 = vadd.f32 %v1065_v13, %v1368_v50  ;;  %v1068_v21 = vadd.f32 %v1067_v17, %v1066_v15  ;;  %v1116_v22 = vadd.f32 %v1115_v18, %v1114_v16 }
 0x106   : > { %v612_v20 = vadd.f32 %v1113_v14, %v1368_v50 }
 0x107   : > { %v668_v23 = vmax.f32 %v548_v19, 0.0  ;;  %v551_v25 = vadd.f32 %v1068_v21, %v1368_v50  ;;  %v615_v26 = vadd.f32 %v1116_v22, %v1368_v50 }
 0x108   : > { %v684_v24 = vmax.f32 %v612_v20, 0.0 }
 0x109   : > { %v1011_v27 = vpack.c.bf16 %v668_v23, %v668_v23  ;;  %v669_v29 = vmax.f32 %v551_v25, 0.0  ;;  %v685_v30 = vmax.f32 %v615_v26, 0.0  ;;  %v1069_v31 = vpop.f32.mrb[8].mxu0  ;;  %v1117_v32 = vpop.f32.mrb[8].mxu1 }
 0x10a   : > { %v1027_v28 = vpack.c.bf16 %v684_v24, %v684_v24  ;;  %v1070_v33 = vpop.f32.mrb[9].mxu0  ;;  %v1118_v34 = vpop.f32.mrb[9].mxu1 }
 0x10b   : > { %829 = vst.msk [vmem:[%s1378_s4 + $0x8] sm:$0xf] %vm826_vm0, %v1011_v27  ;;  %v1012_v35 = vpack.c.bf16 %v669_v29, %v669_v29  ;;  %v1028_v36 = vpack.c.bf16 %v685_v30, %v685_v30  ;;  %v1071_v37 = vadd.f32 %v1070_v33, %v1069_v31  ;;  %v1119_v38 = vadd.f32 %v1118_v34, %v1117_v32  ;;  %v1072_v39 = vpop.f32.mrb[10].mxu0  ;;  %v1120_v40 = vpop.f32.mrb[10].mxu1 }
 0x10c   : > { %845 = vst.msk [vmem:[%s1378_s4 + $0x48] sm:$0xf] %vm826_vm0, %v1027_v28  ;;  %v1073_v41 = vpop.f32.mrb[11].mxu0  ;;  %v1121_v42 = vpop.f32.mrb[11].mxu1 }
 0x10d   : > { %830 = vst.msk [vmem:[%s1378_s4 + $0xc] sm:$0xf] %vm826_vm0, %v1012_v35  ;;  %846 = vst.msk [vmem:[%s1378_s4 + $0x4c] sm:$0xf] %vm826_vm0, %v1028_v36  ;;  %v556_v43 = vadd.f32 %v1071_v37, %v1368_v50  ;;  %v620_v44 = vadd.f32 %v1119_v38, %v1368_v50  ;;  %v1074_v45 = vadd.f32 %v1073_v41, %v1072_v39 }
 0x10e   : > { %v1122_v46 = vadd.f32 %v1121_v42, %v1120_v40 }
 0x10f   : > { %v670_v47 = vmax.f32 %v556_v43, 0.0  ;;  %v686_v48 = vmax.f32 %v620_v44, 0.0  ;;  %v559_v49 = vadd.f32 %v1074_v45, %v1368_v50 }
 0x110   : > { %v623_v51 = vadd.f32 %v1122_v46, %v1368_v50 }
 0x111   : > { %v1013_v52 = vpack.c.bf16 %v670_v47, %v670_v47  ;;  %v1029_v53 = vpack.c.bf16 %v686_v48, %v686_v48  ;;  %v671_v54 = vmax.f32 %v559_v49, 0.0  ;;  %v1075_v56 = vpop.f32.mrb[12].mxu0  ;;  %v1123_v57 = vpop.f32.mrb[12].mxu1 }
 0x112   : > { %v687_v55 = vmax.f32 %v623_v51, 0.0  ;;  %v1076_v58 = vpop.f32.mrb[13].mxu0  ;;  %v1124_v59 = vpop.f32.mrb[13].mxu1 }
 0x113   : > { %831 = vst.msk [vmem:[%s1378_s4 + $0x10] sm:$0xf] %vm826_vm0, %v1013_v52  ;;  %847 = vst.msk [vmem:[%s1378_s4 + $0x50] sm:$0xf] %vm826_vm0, %v1029_v53  ;;  %v1014_v60 = vpack.c.bf16 %v671_v54, %v671_v54  ;;  %v1077_v62 = vadd.f32 %v1076_v58, %v1075_v56  ;;  %v1125_v63 = vadd.f32 %v1124_v59, %v1123_v57  ;;  %v1078_v0 = vpop.f32.mrb[14].mxu0  ;;  %v1126_v1 = vpop.f32.mrb[14].mxu1 }
 0x114   : > { %v1030_v61 = vpack.c.bf16 %v687_v55, %v687_v55  ;;  %v1079_v2 = vpop.f32.mrb[15].mxu0  ;;  %v1127_v3 = vpop.f32.mrb[15].mxu1 }
 0x115   : > { %832 = vst.msk [vmem:[%s1378_s4 + $0x14] sm:$0xf] %vm826_vm0, %v1014_v60  ;;  %v564_v4 = vadd.f32 %v1077_v62, %v1368_v50  ;;  %v628_v5 = vadd.f32 %v1125_v63, %v1368_v50  ;;  %v1080_v6 = vadd.f32 %v1079_v2, %v1078_v0  ;;  %v1128_v7 = vadd.f32 %v1127_v3, %v1126_v1 }
 0x116   : > { %848 = vst.msk [vmem:[%s1378_s4 + $0x54] sm:$0xf] %vm826_vm0, %v1030_v61 }
 0x117   : > { %v672_v8 = vmax.f32 %v564_v4, 0.0  ;;  %v688_v9 = vmax.f32 %v628_v5, 0.0  ;;  %v567_v10 = vadd.f32 %v1080_v6, %v1368_v50  ;;  %v631_v11 = vadd.f32 %v1128_v7, %v1368_v50 }
 0x119   : > { %v1015_v12 = vpack.c.bf16 %v672_v8, %v672_v8  ;;  %v1031_v13 = vpack.c.bf16 %v688_v9, %v688_v9  ;;  %v673_v14 = vmax.f32 %v567_v10, 0.0  ;;  %v689_v15 = vmax.f32 %v631_v11, 0.0  ;;  %v1081_v16 = vpop.f32.mrb[16].mxu0  ;;  %v1129_v17 = vpop.f32.mrb[16].mxu1 }
 0x11a   : > { %v1082_v18 = vpop.f32.mrb[17].mxu0  ;;  %v1130_v19 = vpop.f32.mrb[17].mxu1 }
 0x11b   : > { %833 = vst.msk [vmem:[%s1378_s4 + $0x18] sm:$0xf] %vm826_vm0, %v1015_v12  ;;  %849 = vst.msk [vmem:[%s1378_s4 + $0x58] sm:$0xf] %vm826_vm0, %v1031_v13  ;;  %v1016_v20 = vpack.c.bf16 %v673_v14, %v673_v14  ;;  %v1032_v21 = vpack.c.bf16 %v689_v15, %v689_v15  ;;  %v1083_v22 = vadd.f32 %v1082_v18, %v1081_v16  ;;  %v1084_v24 = vpop.f32.mrb[18].mxu0  ;;  %v1132_v25 = vpop.f32.mrb[18].mxu1 }
 0x11c   : > { %v1131_v23 = vadd.f32 %v1130_v19, %v1129_v17  ;;  %v1085_v26 = vpop.f32.mrb[19].mxu0  ;;  %v1133_v27 = vpop.f32.mrb[19].mxu1 }
 0x11d   : > { %834 = vst.msk [vmem:[%s1378_s4 + $0x1c] sm:$0xf] %vm826_vm0, %v1016_v20  ;;  %850 = vst.msk [vmem:[%s1378_s4 + $0x5c] sm:$0xf] %vm826_vm0, %v1032_v21  ;;  %v572_v28 = vadd.f32 %v1083_v22, %v1368_v50  ;;  %v1086_v30 = vadd.f32 %v1085_v26, %v1084_v24  ;;  %v1134_v31 = vadd.f32 %v1133_v27, %v1132_v25 }
 0x11e   : > { %v636_v29 = vadd.f32 %v1131_v23, %v1368_v50 }
 0x11f   : > { %v674_v32 = vmax.f32 %v572_v28, 0.0  ;;  %v575_v34 = vadd.f32 %v1086_v30, %v1368_v50  ;;  %v639_v35 = vadd.f32 %v1134_v31, %v1368_v50 }
 0x120   : > { %v690_v33 = vmax.f32 %v636_v29, 0.0 }
 0x121   : > { %v1017_v36 = vpack.c.bf16 %v674_v32, %v674_v32  ;;  %v675_v38 = vmax.f32 %v575_v34, 0.0  ;;  %v691_v39 = vmax.f32 %v639_v35, 0.0  ;;  %v1087_v40 = vpop.f32.mrb[20].mxu0  ;;  %v1135_v41 = vpop.f32.mrb[20].mxu1 }
 0x122   : > { %v1033_v37 = vpack.c.bf16 %v690_v33, %v690_v33  ;;  %v1088_v42 = vpop.f32.mrb[21].mxu0  ;;  %v1136_v43 = vpop.f32.mrb[21].mxu1 }
 0x123   : > { %835 = vst.msk [vmem:[%s1378_s4 + $0x20] sm:$0xf] %vm826_vm0, %v1017_v36  ;;  %v1018_v44 = vpack.c.bf16 %v675_v38, %v675_v38  ;;  %v1034_v45 = vpack.c.bf16 %v691_v39, %v691_v39  ;;  %v1089_v46 = vadd.f32 %v1088_v42, %v1087_v40  ;;  %v1137_v47 = vadd.f32 %v1136_v43, %v1135_v41  ;;  %v1090_v48 = vpop.f32.mrb[22].mxu0  ;;  %v1138_v49 = vpop.f32.mrb[22].mxu1 }
 0x124   : > { %851 = vst.msk [vmem:[%s1378_s4 + $0x60] sm:$0xf] %vm826_vm0, %v1033_v37  ;;  %v1091_v51 = vpop.f32.mrb[23].mxu0  ;;  %v1139_v52 = vpop.f32.mrb[23].mxu1 }
 0x125   : > { %836 = vst.msk [vmem:[%s1378_s4 + $0x24] sm:$0xf] %vm826_vm0, %v1018_v44  ;;  %852 = vst.msk [vmem:[%s1378_s4 + $0x64] sm:$0xf] %vm826_vm0, %v1034_v45  ;;  %v580_v53 = vadd.f32 %v1089_v46, %v1368_v50  ;;  %v644_v54 = vadd.f32 %v1137_v47, %v1368_v50  ;;  %v1092_v55 = vadd.f32 %v1091_v51, %v1090_v48 }
 0x126   : > { %v1140_v56 = vadd.f32 %v1139_v52, %v1138_v49 }
 0x127   : > { %v676_v57 = vmax.f32 %v580_v53, 0.0  ;;  %v692_v58 = vmax.f32 %v644_v54, 0.0  ;;  %v583_v59 = vadd.f32 %v1092_v55, %v1368_v50 }
 0x128   : > { %v647_v60 = vadd.f32 %v1140_v56, %v1368_v50 }
 0x129   : > { %v1019_v61 = vpack.c.bf16 %v676_v57, %v676_v57  ;;  %v1035_v62 = vpack.c.bf16 %v692_v58, %v692_v58  ;;  %v677_v63 = vmax.f32 %v583_v59, 0.0  ;;  %v1093_v1 = vpop.f32.mrb[24].mxu0  ;;  %v1141_v2 = vpop.f32.mrb[24].mxu1 }
 0x12a   : > { %v693_v0 = vmax.f32 %v647_v60, 0.0  ;;  %v1094_v3 = vpop.f32.mrb[25].mxu0  ;;  %v1142_v4 = vpop.f32.mrb[25].mxu1 }
 0x12b   : > { %837 = vst.msk [vmem:[%s1378_s4 + $0x28] sm:$0xf] %vm826_vm0, %v1019_v61  ;;  %853 = vst.msk [vmem:[%s1378_s4 + $0x68] sm:$0xf] %vm826_vm0, %v1035_v62  ;;  %v1020_v5 = vpack.c.bf16 %v677_v63, %v677_v63  ;;  %v1095_v7 = vadd.f32 %v1094_v3, %v1093_v1  ;;  %v1143_v8 = vadd.f32 %v1142_v4, %v1141_v2  ;;  %v1096_v9 = vpop.f32.mrb[26].mxu0  ;;  %v1144_v10 = vpop.f32.mrb[26].mxu1 }
 0x12c   : > { %v1036_v6 = vpack.c.bf16 %v693_v0, %v693_v0  ;;  %v1097_v11 = vpop.f32.mrb[27].mxu0  ;;  %v1145_v12 = vpop.f32.mrb[27].mxu1 }
 0x12d   : > { %838 = vst.msk [vmem:[%s1378_s4 + $0x2c] sm:$0xf] %vm826_vm0, %v1020_v5  ;;  %v588_v13 = vadd.f32 %v1095_v7, %v1368_v50  ;;  %v652_v14 = vadd.f32 %v1143_v8, %v1368_v50  ;;  %v1098_v15 = vadd.f32 %v1097_v11, %v1096_v9  ;;  %v1146_v16 = vadd.f32 %v1145_v12, %v1144_v10 }
 0x12e   : > { %854 = vst.msk [vmem:[%s1378_s4 + $0x6c] sm:$0xf] %vm826_vm0, %v1036_v6 }
 0x12f   : > { %v678_v17 = vmax.f32 %v588_v13, 0.0  ;;  %v694_v18 = vmax.f32 %v652_v14, 0.0  ;;  %v591_v19 = vadd.f32 %v1098_v15, %v1368_v50  ;;  %v655_v20 = vadd.f32 %v1146_v16, %v1368_v50 }
 0x131   : > { %v1021_v21 = vpack.c.bf16 %v678_v17, %v678_v17  ;;  %v1037_v22 = vpack.c.bf16 %v694_v18, %v694_v18  ;;  %v679_v23 = vmax.f32 %v591_v19, 0.0  ;;  %v695_v24 = vmax.f32 %v655_v20, 0.0  ;;  %v1099_v25 = vpop.f32.mrb[28].mxu0  ;;  %v1147_v26 = vpop.f32.mrb[28].mxu1 }
 0x132   : > { %v1100_v27 = vpop.f32.mrb[29].mxu0  ;;  %v1148_v28 = vpop.f32.mrb[29].mxu1 }
 0x133   : > { %839 = vst.msk [vmem:[%s1378_s4 + $0x30] sm:$0xf] %vm826_vm0, %v1021_v21  ;;  %855 = vst.msk [vmem:[%s1378_s4 + $0x70] sm:$0xf] %vm826_vm0, %v1037_v22  ;;  %v1022_v29 = vpack.c.bf16 %v679_v23, %v679_v23  ;;  %v1038_v30 = vpack.c.bf16 %v695_v24, %v695_v24  ;;  %v1101_v31 = vadd.f32 %v1100_v27, %v1099_v25  ;;  %v1102_v33 = vpop.f32.mrb[30].mxu0  ;;  %v1150_v34 = vpop.f32.mrb[30].mxu1 }
 0x134   : > { %v1149_v32 = vadd.f32 %v1148_v28, %v1147_v26  ;;  %v1103_v35 = vpop.f32.mrb[31].mxu0  ;;  %v1151_v36 = vpop.f32.mrb[31].mxu1 }
 0x135   : > { %840 = vst.msk [vmem:[%s1378_s4 + $0x34] sm:$0xf] %vm826_vm0, %v1022_v29  ;;  %856 = vst.msk [vmem:[%s1378_s4 + $0x74] sm:$0xf] %vm826_vm0, %v1038_v30  ;;  %v596_v37 = vadd.f32 %v1101_v31, %v1368_v50  ;;  %v1104_v39 = vadd.f32 %v1103_v35, %v1102_v33  ;;  %v1152_v40 = vadd.f32 %v1151_v36, %v1150_v34 }
 0x136   : > { %v660_v38 = vadd.f32 %v1149_v32, %v1368_v50 }
 0x137   : > { %v680_v41 = vmax.f32 %v596_v37, 0.0  ;;  %v599_v43 = vadd.f32 %v1104_v39, %v1368_v50  ;;  %v663_v44 = vadd.f32 %v1152_v40, %v1368_v50 }
 0x138   : > { %v696_v42 = vmax.f32 %v660_v38, 0.0 }
 0x139   : > { %v1023_v45 = vpack.c.bf16 %v680_v41, %v680_v41  ;;  %v681_v47 = vmax.f32 %v599_v43, 0.0  ;;  %v697_v48 = vmax.f32 %v663_v44, 0.0 }
 0x13a   : > { %v1039_v46 = vpack.c.bf16 %v696_v42, %v696_v42 }
 0x13b   : > { %841 = vst.msk [vmem:[%s1378_s4 + $0x38] sm:$0xf] %vm826_vm0, %v1023_v45  ;;  %v1024_v49 = vpack.c.bf16 %v681_v47, %v681_v47  ;;  %v1040_v51 = vpack.c.bf16 %v697_v48, %v697_v48 }
 0x13c   : > { %857 = vst.msk [vmem:[%s1378_s4 + $0x78] sm:$0xf] %vm826_vm0, %v1039_v46 }
 0x13d   : > { %842 = vst.msk [vmem:[%s1378_s4 + $0x3c] sm:$0xf] %vm826_vm0, %v1024_v49  ;;  %858 = vst.msk [vmem:[%s1378_s4 + $0x7c] sm:$0xf] %vm826_vm0, %v1040_v51 }
 0x13e PF: > { %s13_s12 = sadd.s32 1, %s1247_s12  }
 0x13f   : > { %p10_p4 = scmp.ge.s32.totalorder %s13_s12, 10  }
 0x141   :  { %12 = sbr.rel (!%p10_p4) target bundleno = 1 (0x1), region = 62 }

// kernel: resnet_forward.15
= control target key start
LH: loop header
LB: loop body
LE: loop exit
PB: predicated region body
PF: predicated region fallthrough
CT: control target
= control target key end

     0   :  { %s1269_s12 = smov 0   ;;  %s1475_s0 = inlined_call_operand.vmem [shape: bf16[512,256], index: 0, kind: input, shape index: {}]   ;;  %s1476_s1 = inlined_call_operand.vmem [shape: bf16[256,16], index: 1, kind: input, shape index: {}]   ;;  %s1477_s2 = inlined_call_operand.vmem [shape: f32[1,16], index: 2, kind: input, shape index: {}]   ;;  %s1478_s3 = inlined_call_operand.vmem [shape: bf16[512,16], index: 3, kind: output, shape index: {}]  }
   0x1 LB: > { %s915_s13 = sadd.s32 4294967295, %s1247_s12   ;;  %p919_p0 = scmp.ge.s32.totalorder %s1247_s12, 1  ;;  %s1247_s12 = sphi %s1269_s12, %s13_s12  }
   0x2   : > { %p139_p1 = scmp.lt.s32.totalorder %s1247_s12, 3 }
   0x4   : > { %p140_p2 = pnand %p919_p0, %p139_p1 }
   0x5   : > { %v1177_v0 = vld [vmem:[%s1476_s1 + $0x40] sm:$0xff] (!%p140_p2)   ;;  %s920_s16 = sshll.u32 (!%p140_p2), %s915_s13, 5  ;;  %v1179_v2 = vld [vmem:[%s1476_s1 + $0x48] sm:$0xff] (!%p140_p2)   ;;  %v1181_v4 = vld [vmem:[%s1476_s1 + $0x50] sm:$0xff] (!%p140_p2)   ;;  %vm826_vm0 = vcmask (!%p140_p2), 125952  }
   0x6   : > { %143 = sbr.rel (%p140_p2) target bundleno = 318 (0x13e), region = 32  ;;  %v1178_v1 = vld [vmem:[%s1476_s1] sm:$0xff] (!%p140_p2)   ;;  %1041 = vmatprep.subr.bf16.mxu0 (!%p140_p2), %v1177_v0  ;;  %1153 = vmatprep.subr.bf16.mxu1 (!%p140_p2), %v1177_v0  ;;  %v1180_v3 = vld [vmem:[%s1476_s1 + $0x8] sm:$0xff] (!%p140_p2)   ;;  %p165_p3 = scmp.lt.s32.totalorder (!%p140_p2), %s920_s16, 63  ;;  %v1182_v5 = vld [vmem:[%s1476_s1 + $0x10] sm:$0xff] (!%p140_p2)  }
   0x7   : > { %1042 = vmatpush3.bf16.msra.mxu0 (!%p140_p2), %v1178_v1  ;;  %1161 = vmatpush3.bf16.msra.mxu1 (!%p140_p2), %v1178_v1  ;;  %v1183_v6 = vld [vmem:[%s1476_s1 + $0x58] sm:$0xff] (!%p140_p2)   ;;  %v1185_v8 = vld [vmem:[%s1476_s1 + $0x60] sm:$0xff] (!%p140_p2)   ;;  %v1187_v10 = vld [vmem:[%s1476_s1 + $0x68] sm:$0xff] (!%p140_p2)  }
   0x8   : > { %1043 = vmatprep.subr.bf16.mxu0 (!%p140_p2), %v1179_v2  ;;  %1154 = vmatprep.subr.bf16.mxu1 (!%p140_p2), %v1179_v2  ;;  %v1184_v7 = vld [vmem:[%s1476_s1 + $0x18] sm:$0xff] (!%p140_p2)   ;;  %v1186_v9 = vld [vmem:[%s1476_s1 + $0x20] sm:$0xff] (!%p140_p2)   ;;  %v1188_v13 = vld [vmem:[%s1476_s1 + $0x28] sm:$0xff] (!%p140_p2)  }
   0x9   : > { %v1189_v14 = vld [vmem:[%s1476_s1 + $0x70] sm:$0xff] (!%p140_p2)   ;;  %v1191_v16 = vld [vmem:[%s1476_s1 + $0x78] sm:$0xff] (!%p140_p2)   ;;  %v1368_v50 = vld [vmem:[%s1477_s2] ss:$0 sm:$0xff] (!%p140_p2) }
   0xa   : > { %v1190_v15 = vld [vmem:[%s1476_s1 + $0x30] sm:$0xff] (!%p140_p2)   ;;  %v1192_v17 = vld [vmem:[%s1476_s1 + $0x38] sm:$0xff] (!%p140_p2)  }
   0xb   : > { %1044 = vmatpush3.bf16.msra.mxu0 (!%p140_p2), %v1180_v3  ;;  %1162 = vmatpush3.bf16.msra.mxu1 (!%p140_p2), %v1180_v3 }
   0xc   : > { %1045 = vmatprep.subr.bf16.mxu0 (!%p140_p2), %v1181_v4  ;;  %1155 = vmatprep.subr.bf16.mxu1 (!%p140_p2), %v1181_v4 }
   0xd   : > { %s1480_s16 = smov (!%p165_p3, %s920_s16), 63 }
   0xe   : > { %s1008_s4 = sshll.u32 %s1480_s16, 3  ;;  %s924_s28 = sshll.u32 %s1480_s16, 2 }
   0xf   : > { %1046 = vmatpush3.bf16.msra.mxu0 %v1182_v5  ;;  %1163 = vmatpush3.bf16.msra.mxu1 %v1182_v5  ;;  %s1310_s9 = scalar_lea.vmem %s1475_s0, %s1008_s4  ;;  %s1378_s4 = scalar_lea.vmem %s1478_s3, %s924_s28 }
  0x10   : > { %1047 = vmatprep.subr.bf16.mxu0 %v1183_v6  ;;  %1156 = vmatprep.subr.bf16.mxu1 %v1183_v6  ;;  %v1195_v11 = vld [vmem:[%s1310_s9 + $0x4] ss:$8 sps:$4 sm:$0xff]   ;;  %v1193_v18 = vld [vmem:[%s1310_s9] ss:$8 sps:$4 sm:$0xff]   ;;  %v1199_v20 = vld [vmem:[%s1310_s9 + $0x14] ss:$8 sps:$4 sm:$0xff]  }
  0x11   : > { %v1198_v12 = vld [vmem:[%s1310_s9 + $0x84] ss:$8 sps:$4 sm:$0xff]   ;;  %537 = vmatprep.mubr.bf16.mxu0 %v1195_v11  ;;  %v1196_v19 = vld [vmem:[%s1310_s9 + $0x80] ss:$8 sps:$4 sm:$0xff]   ;;  %v1201_v21 = vld [vmem:[%s1310_s9 + $0x94] ss:$8 sps:$4 sm:$0xff]  }
  0x12   : > { %601 = vmatprep.mubr.bf16.mxu1 %v1198_v12  ;;  %v1203_v22 = vld [vmem:[%s1310_s9 + $0x10] ss:$8 sps:$4 sm:$0xff]   ;;  %v1205_v24 = vld [vmem:[%s1310_s9 + $0x24] ss:$8 sps:$4 sm:$0xff]   ;;  %v1209_v26 = vld [vmem:[%s1310_s9 + $0x20] ss:$8 sps:$4 sm:$0xff]  }
  0x13   : > { %1048 = vmatpush3.bf16.msra.mxu0 %v1184_v7  ;;  %1164 = vmatpush3.bf16.msra.mxu1 %v1184_v7  ;;  %v1204_v23 = vld [vmem:[%s1310_s9 + $0x90] ss:$8 sps:$4 sm:$0xff]   ;;  %v1207_v25 = vld [vmem:[%s1310_s9 + $0xa4] ss:$8 sps:$4 sm:$0xff]   ;;  %v1210_v27 = vld [vmem:[%s1310_s9 + $0xa0] ss:$8 sps:$4 sm:$0xff]  }
  0x14   : > { %1049 = vmatprep.subr.bf16.mxu0 %v1185_v8  ;;  %1157 = vmatprep.subr.bf16.mxu1 %v1185_v8  ;;  %v1211_v28 = vld [vmem:[%s1310_s9 + $0x34] ss:$8 sps:$4 sm:$0xff]   ;;  %v1215_v30 = vld [vmem:[%s1310_s9 + $0x30] ss:$8 sps:$4 sm:$0xff]   ;;  %v1217_v32 = vld [vmem:[%s1310_s9 + $0x44] ss:$8 sps:$4 sm:$0xff]  }
  0x15   : > { %v1213_v29 = vld [vmem:[%s1310_s9 + $0xb4] ss:$8 sps:$4 sm:$0xff]   ;;  %v1216_v31 = vld [vmem:[%s1310_s9 + $0xb0] ss:$8 sps:$4 sm:$0xff]   ;;  %v1219_v33 = vld [vmem:[%s1310_s9 + $0xc4] ss:$8 sps:$4 sm:$0xff]  }
  0x16   : > { %v1221_v34 = vld [vmem:[%s1310_s9 + $0x40] ss:$8 sps:$4 sm:$0xff]   ;;  %v1223_v36 = vld [vmem:[%s1310_s9 + $0x54] ss:$8 sps:$4 sm:$0xff]   ;;  %v1227_v38 = vld [vmem:[%s1310_s9 + $0x50] ss:$8 sps:$4 sm:$0xff]  }
  0x17   : > { %1050 = vmatpush3.bf16.msra.mxu0 %v1186_v9  ;;  %1165 = vmatpush3.bf16.msra.mxu1 %v1186_v9  ;;  %v1222_v35 = vld [vmem:[%s1310_s9 + $0xc0] ss:$8 sps:$4 sm:$0xff]   ;;  %v1225_v37 = vld [vmem:[%s1310_s9 + $0xd4] ss:$8 sps:$4 sm:$0xff]   ;;  %v1228_v39 = vld [vmem:[%s1310_s9 + $0xd0] ss:$8 sps:$4 sm:$0xff]  }
  0x18   : > { %1051 = vmatprep.subr.bf16.mxu0 %v1187_v10  ;;  %1158 = vmatprep.subr.bf16.mxu1 %v1187_v10  ;;  %v1229_v40 = vld [vmem:[%s1310_s9 + $0x64] ss:$8 sps:$4 sm:$0xff]   ;;  %v1233_v42 = vld [vmem:[%s1310_s9 + $0x60] ss:$8 sps:$4 sm:$0xff]   ;;  %v1235_v44 = vld [vmem:[%s1310_s9 + $0x74] ss:$8 sps:$4 sm:$0xff]  }
  0x19   : > { %v1231_v41 = vld [vmem:[%s1310_s9 + $0xe4] ss:$8 sps:$4 sm:$0xff]   ;;  %v1234_v43 = vld [vmem:[%s1310_s9 + $0xe0] ss:$8 sps:$4 sm:$0xff]   ;;  %v1237_v45 = vld [vmem:[%s1310_s9 + $0xf4] ss:$8 sps:$4 sm:$0xff]  }
  0x1a   : > { %v1239_v46 = vld [vmem:[%s1310_s9 + $0x70] ss:$8 sps:$4 sm:$0xff]  }
  0x1b   : > { %1052 = vmatpush3.bf16.msra.mxu0 %v1188_v13  ;;  %1166 = vmatpush3.bf16.msra.mxu1 %v1188_v13  ;;  %v1240_v47 = vld [vmem:[%s1310_s9 + $0xf0] ss:$8 sps:$4 sm:$0xff]  }
  0x1c   : > { %1053 = vmatprep.subr.bf16.mxu0 %v1189_v14  ;;  %1159 = vmatprep.subr.bf16.mxu1 %v1189_v14 }
  0x1f   : > { %1054 = vmatpush3.bf16.msra.mxu0 %v1190_v15  ;;  %1167 = vmatpush3.bf16.msra.mxu1 %v1190_v15 }
  0x20   : > { %1055 = vmatprep.subr.bf16.mxu0 %v1191_v16  ;;  %1160 = vmatprep.subr.bf16.mxu1 %v1191_v16 }
  0x23   : > { %1056 = vmatpush3.bf16.msra.mxu0 %v1192_v17  ;;  %1168 = vmatpush3.bf16.msra.mxu1 %v1192_v17 }
  0x26   : > { %538 = vmatmul.mubr.bf16.vlgmr.msra.gmra.mrb[0].mxu0 %v1193_v18  ;;  %602 = vmatmul.mubr.bf16.vlgmr.msra.gmra.mrb[0].mxu1 %v1196_v19 }
  0x27   : > { %545 = vmatprep.mubr.bf16.mxu0 %v1199_v20  ;;  %609 = vmatprep.mubr.bf16.mxu1 %v1201_v21 }
  0x2e   : > { %546 = vmatmul.mubr.bf16.gmra.mrb[4].mxu0 %v1203_v22  ;;  %610 = vmatmul.mubr.bf16.gmra.mrb[4].mxu1 %v1204_v23 }
  0x2f   : > { %553 = vmatprep.mubr.bf16.mxu0 %v1205_v24  ;;  %617 = vmatprep.mubr.bf16.mxu1 %v1207_v25 }
  0x36   : > { %554 = vmatmul.mubr.bf16.gmra.mrb[8].mxu0 %v1209_v26  ;;  %618 = vmatmul.mubr.bf16.gmra.mrb[8].mxu1 %v1210_v27 }
  0x37   : > { %561 = vmatprep.mubr.bf16.mxu0 %v1211_v28  ;;  %625 = vmatprep.mubr.bf16.mxu1 %v1213_v29 }
  0x3e   : > { %562 = vmatmul.mubr.bf16.gmra.mrb[12].mxu0 %v1215_v30  ;;  %626 = vmatmul.mubr.bf16.gmra.mrb[12].mxu1 %v1216_v31 }
  0x3f   : > { %569 = vmatprep.mubr.bf16.mxu0 %v1217_v32  ;;  %633 = vmatprep.mubr.bf16.mxu1 %v1219_v33 }
  0x46   : > { %570 = vmatmul.mubr.bf16.gmra.mrb[16].mxu0 %v1221_v34  ;;  %634 = vmatmul.mubr.bf16.gmra.mrb[16].mxu1 %v1222_v35 }
  0x47   : > { %577 = vmatprep.mubr.bf16.mxu0 %v1223_v36  ;;  %641 = vmatprep.mubr.bf16.mxu1 %v1225_v37 }
  0x4e   : > { %578 = vmatmul.mubr.bf16.gmra.mrb[20].mxu0 %v1227_v38  ;;  %642 = vmatmul.mubr.bf16.gmra.mrb[20].mxu1 %v1228_v39 }
  0x4f   : > { %585 = vmatprep.mubr.bf16.mxu0 %v1229_v40  ;;  %649 = vmatprep.mubr.bf16.mxu1 %v1231_v41 }
  0x56   : > { %586 = vmatmul.mubr.bf16.gmra.mrb[24].mxu0 %v1233_v42  ;;  %650 = vmatmul.mubr.bf16.gmra.mrb[24].mxu1 %v1234_v43 }
  0x57   : > { %593 = vmatprep.mubr.bf16.mxu0 %v1235_v44  ;;  %657 = vmatprep.mubr.bf16.mxu1 %v1237_v45 }
  0x5e   : > { %594 = vmatmul.mubr.bf16.gmra.mrb[28].mxu0 %v1239_v46  ;;  %658 = vmatmul.mubr.bf16.gmra.mrb[28].mxu1 %v1240_v47 }
  0xf9   : > { %v1057_v48 = vpop.f32.mrb[0].mxu0  ;;  %v1105_v49 = vpop.f32.mrb[0].mxu1 }
  0xfa   : > { %v1058_v51 = vpop.f32.mrb[1].mxu0  ;;  %v1106_v52 = vpop.f32.mrb[1].mxu1 }
  0xfb   : > { %v1059_v53 = vadd.f32 %v1058_v51, %v1057_v48  ;;  %v1107_v54 = vadd.f32 %v1106_v52, %v1105_v49  ;;  %v1060_v55 = vpop.f32.mrb[2].mxu0  ;;  %v1108_v56 = vpop.f32.mrb[2].mxu1 }
  0xfc   : > { %v1061_v57 = vpop.f32.mrb[3].mxu0  ;;  %v1109_v58 = vpop.f32.mrb[3].mxu1 }
  0xfd   : > { %v540_v59 = vadd.f32 %v1059_v53, %v1368_v50  ;;  %v604_v60 = vadd.f32 %v1107_v54, %v1368_v50  ;;  %v1062_v61 = vadd.f32 %v1061_v57, %v1060_v55  ;;  %v1110_v62 = vadd.f32 %v1109_v58, %v1108_v56 }
  0xff   : > { %v666_v63 = vmax.f32 %v540_v59, 0.0  ;;  %v682_v0 = vmax.f32 %v604_v60, 0.0  ;;  %v543_v1 = vadd.f32 %v1062_v61, %v1368_v50  ;;  %v607_v2 = vadd.f32 %v1110_v62, %v1368_v50 }
 0x101   : > { %v1009_v3 = vpack.c.bf16 %v666_v63, %v666_v63  ;;  %v1025_v4 = vpack.c.bf16 %v682_v0, %v682_v0  ;;  %v667_v5 = vmax.f32 %v543_v1, 0.0  ;;  %v683_v6 = vmax.f32 %v607_v2, 0.0  ;;  %v1063_v7 = vpop.f32.mrb[4].mxu0  ;;  %v1111_v8 = vpop.f32.mrb[4].mxu1 }
 0x102   : > { %v1064_v9 = vpop.f32.mrb[5].mxu0  ;;  %v1112_v10 = vpop.f32.mrb[5].mxu1 }
 0x103   : > { %827 = vst.msk [vmem:[%s1378_s4] sm:$0xf] %vm826_vm0, %v1009_v3  ;;  %843 = vst.msk [vmem:[%s1378_s4 + $0x40] sm:$0xf] %vm826_vm0, %v1025_v4  ;;  %v1010_v11 = vpack.c.bf16 %v667_v5, %v667_v5  ;;  %v1026_v12 = vpack.c.bf16 %v683_v6, %v683_v6  ;;  %v1065_v13 = vadd.f32 %v1064_v9, %v1063_v7  ;;  %v1066_v15 = vpop.f32.mrb[6].mxu0  ;;  %v1114_v16 = vpop.f32.mrb[6].mxu1 }
 0x104   : > { %v1113_v14 = vadd.f32 %v1112_v10, %v1111_v8  ;;  %v1067_v17 = vpop.f32.mrb[7].mxu0  ;;  %v1115_v18 = vpop.f32.mrb[7].mxu1 }
 0x105   : > { %828 = vst.msk [vmem:[%s1378_s4 + $0x4] sm:$0xf] %vm826_vm0, %v1010_v11  ;;  %844 = vst.msk [vmem:[%s1378_s4 + $0x44] sm:$0xf] %vm826_vm0, %v1026_v12  ;;  %v548_v19 = vadd.f32 %v1065_v13, %v1368_v50  ;;  %v1068_v21 = vadd.f32 %v1067_v17, %v1066_v15  ;;  %v1116_v22 = vadd.f32 %v1115_v18, %v1114_v16 }
 0x106   : > { %v612_v20 = vadd.f32 %v1113_v14, %v1368_v50 }
 0x107   : > { %v668_v23 = vmax.f32 %v548_v19, 0.0  ;;  %v551_v25 = vadd.f32 %v1068_v21, %v1368_v50  ;;  %v615_v26 = vadd.f32 %v1116_v22, %v1368_v50 }
 0x108   : > { %v684_v24 = vmax.f32 %v612_v20, 0.0 }
 0x109   : > { %v1011_v27 = vpack.c.bf16 %v668_v23, %v668_v23  ;;  %v669_v29 = vmax.f32 %v551_v25, 0.0  ;;  %v685_v30 = vmax.f32 %v615_v26, 0.0  ;;  %v1069_v31 = vpop.f32.mrb[8].mxu0  ;;  %v1117_v32 = vpop.f32.mrb[8].mxu1 }
 0x10a   : > { %v1027_v28 = vpack.c.bf16 %v684_v24, %v684_v24  ;;  %v1070_v33 = vpop.f32.mrb[9].mxu0  ;;  %v1118_v34 = vpop.f32.mrb[9].mxu1 }
 0x10b   : > { %829 = vst.msk [vmem:[%s1378_s4 + $0x8] sm:$0xf] %vm826_vm0, %v1011_v27  ;;  %v1012_v35 = vpack.c.bf16 %v669_v29, %v669_v29  ;;  %v1028_v36 = vpack.c.bf16 %v685_v30, %v685_v30  ;;  %v1071_v37 = vadd.f32 %v1070_v33, %v1069_v31  ;;  %v1119_v38 = vadd.f32 %v1118_v34, %v1117_v32  ;;  %v1072_v39 = vpop.f32.mrb[10].mxu0  ;;  %v1120_v40 = vpop.f32.mrb[10].mxu1 }
 0x10c   : > { %845 = vst.msk [vmem:[%s1378_s4 + $0x48] sm:$0xf] %vm826_vm0, %v1027_v28  ;;  %v1073_v41 = vpop.f32.mrb[11].mxu0  ;;  %v1121_v42 = vpop.f32.mrb[11].mxu1 }
 0x10d   : > { %830 = vst.msk [vmem:[%s1378_s4 + $0xc] sm:$0xf] %vm826_vm0, %v1012_v35  ;;  %846 = vst.msk [vmem:[%s1378_s4 + $0x4c] sm:$0xf] %vm826_vm0, %v1028_v36  ;;  %v556_v43 = vadd.f32 %v1071_v37, %v1368_v50  ;;  %v620_v44 = vadd.f32 %v1119_v38, %v1368_v50  ;;  %v1074_v45 = vadd.f32 %v1073_v41, %v1072_v39 }
 0x10e   : > { %v1122_v46 = vadd.f32 %v1121_v42, %v1120_v40 }
 0x10f   : > { %v670_v47 = vmax.f32 %v556_v43, 0.0  ;;  %v686_v48 = vmax.f32 %v620_v44, 0.0  ;;  %v559_v49 = vadd.f32 %v1074_v45, %v1368_v50 }
 0x110   : > { %v623_v51 = vadd.f32 %v1122_v46, %v1368_v50 }
 0x111   : > { %v1013_v52 = vpack.c.bf16 %v670_v47, %v670_v47  ;;  %v1029_v53 = vpack.c.bf16 %v686_v48, %v686_v48  ;;  %v671_v54 = vmax.f32 %v559_v49, 0.0  ;;  %v1075_v56 = vpop.f32.mrb[12].mxu0  ;;  %v1123_v57 = vpop.f32.mrb[12].mxu1 }
 0x112   : > { %v687_v55 = vmax.f32 %v623_v51, 0.0  ;;  %v1076_v58 = vpop.f32.mrb[13].mxu0  ;;  %v1124_v59 = vpop.f32.mrb[13].mxu1 }
 0x113   : > { %831 = vst.msk [vmem:[%s1378_s4 + $0x10] sm:$0xf] %vm826_vm0, %v1013_v52  ;;  %847 = vst.msk [vmem:[%s1378_s4 + $0x50] sm:$0xf] %vm826_vm0, %v1029_v53  ;;  %v1014_v60 = vpack.c.bf16 %v671_v54, %v671_v54  ;;  %v1077_v62 = vadd.f32 %v1076_v58, %v1075_v56  ;;  %v1125_v63 = vadd.f32 %v1124_v59, %v1123_v57  ;;  %v1078_v0 = vpop.f32.mrb[14].mxu0  ;;  %v1126_v1 = vpop.f32.mrb[14].mxu1 }
 0x114   : > { %v1030_v61 = vpack.c.bf16 %v687_v55, %v687_v55  ;;  %v1079_v2 = vpop.f32.mrb[15].mxu0  ;;  %v1127_v3 = vpop.f32.mrb[15].mxu1 }
 0x115   : > { %832 = vst.msk [vmem:[%s1378_s4 + $0x14] sm:$0xf] %vm826_vm0, %v1014_v60  ;;  %v564_v4 = vadd.f32 %v1077_v62, %v1368_v50  ;;  %v628_v5 = vadd.f32 %v1125_v63, %v1368_v50  ;;  %v1080_v6 = vadd.f32 %v1079_v2, %v1078_v0  ;;  %v1128_v7 = vadd.f32 %v1127_v3, %v1126_v1 }
 0x116   : > { %848 = vst.msk [vmem:[%s1378_s4 + $0x54] sm:$0xf] %vm826_vm0, %v1030_v61 }
 0x117   : > { %v672_v8 = vmax.f32 %v564_v4, 0.0  ;;  %v688_v9 = vmax.f32 %v628_v5, 0.0  ;;  %v567_v10 = vadd.f32 %v1080_v6, %v1368_v50  ;;  %v631_v11 = vadd.f32 %v1128_v7, %v1368_v50 }
 0x119   : > { %v1015_v12 = vpack.c.bf16 %v672_v8, %v672_v8  ;;  %v1031_v13 = vpack.c.bf16 %v688_v9, %v688_v9  ;;  %v673_v14 = vmax.f32 %v567_v10, 0.0  ;;  %v689_v15 = vmax.f32 %v631_v11, 0.0  ;;  %v1081_v16 = vpop.f32.mrb[16].mxu0  ;;  %v1129_v17 = vpop.f32.mrb[16].mxu1 }
 0x11a   : > { %v1082_v18 = vpop.f32.mrb[17].mxu0  ;;  %v1130_v19 = vpop.f32.mrb[17].mxu1 }
 0x11b   : > { %833 = vst.msk [vmem:[%s1378_s4 + $0x18] sm:$0xf] %vm826_vm0, %v1015_v12  ;;  %849 = vst.msk [vmem:[%s1378_s4 + $0x58] sm:$0xf] %vm826_vm0, %v1031_v13  ;;  %v1016_v20 = vpack.c.bf16 %v673_v14, %v673_v14  ;;  %v1032_v21 = vpack.c.bf16 %v689_v15, %v689_v15  ;;  %v1083_v22 = vadd.f32 %v1082_v18, %v1081_v16  ;;  %v1084_v24 = vpop.f32.mrb[18].mxu0  ;;  %v1132_v25 = vpop.f32.mrb[18].mxu1 }
 0x11c   : > { %v1131_v23 = vadd.f32 %v1130_v19, %v1129_v17  ;;  %v1085_v26 = vpop.f32.mrb[19].mxu0  ;;  %v1133_v27 = vpop.f32.mrb[19].mxu1 }
 0x11d   : > { %834 = vst.msk [vmem:[%s1378_s4 + $0x1c] sm:$0xf] %vm826_vm0, %v1016_v20  ;;  %850 = vst.msk [vmem:[%s1378_s4 + $0x5c] sm:$0xf] %vm826_vm0, %v1032_v21  ;;  %v572_v28 = vadd.f32 %v1083_v22, %v1368_v50  ;;  %v1086_v30 = vadd.f32 %v1085_v26, %v1084_v24  ;;  %v1134_v31 = vadd.f32 %v1133_v27, %v1132_v25 }
 0x11e   : > { %v636_v29 = vadd.f32 %v1131_v23, %v1368_v50 }
 0x11f   : > { %v674_v32 = vmax.f32 %v572_v28, 0.0  ;;  %v575_v34 = vadd.f32 %v1086_v30, %v1368_v50  ;;  %v639_v35 = vadd.f32 %v1134_v31, %v1368_v50 }
 0x120   : > { %v690_v33 = vmax.f32 %v636_v29, 0.0 }
 0x121   : > { %v1017_v36 = vpack.c.bf16 %v674_v32, %v674_v32  ;;  %v675_v38 = vmax.f32 %v575_v34, 0.0  ;;  %v691_v39 = vmax.f32 %v639_v35, 0.0  ;;  %v1087_v40 = vpop.f32.mrb[20].mxu0  ;;  %v1135_v41 = vpop.f32.mrb[20].mxu1 }
 0x122   : > { %v1033_v37 = vpack.c.bf16 %v690_v33, %v690_v33  ;;  %v1088_v42 = vpop.f32.mrb[21].mxu0  ;;  %v1136_v43 = vpop.f32.mrb[21].mxu1 }
 0x123   : > { %835 = vst.msk [vmem:[%s1378_s4 + $0x20] sm:$0xf] %vm826_vm0, %v1017_v36  ;;  %v1018_v44 = vpack.c.bf16 %v675_v38, %v675_v38  ;;  %v1034_v45 = vpack.c.bf16 %v691_v39, %v691_v39  ;;  %v1089_v46 = vadd.f32 %v1088_v42, %v1087_v40  ;;  %v1137_v47 = vadd.f32 %v1136_v43, %v1135_v41  ;;  %v1090_v48 = vpop.f32.mrb[22].mxu0  ;;  %v1138_v49 = vpop.f32.mrb[22].mxu1 }
 0x124   : > { %851 = vst.msk [vmem:[%s1378_s4 + $0x60] sm:$0xf] %vm826_vm0, %v1033_v37  ;;  %v1091_v51 = vpop.f32.mrb[23].mxu0  ;;  %v1139_v52 = vpop.f32.mrb[23].mxu1 }
 0x125   : > { %836 = vst.msk [vmem:[%s1378_s4 + $0x24] sm:$0xf] %vm826_vm0, %v1018_v44  ;;  %852 = vst.msk [vmem:[%s1378_s4 + $0x64] sm:$0xf] %vm826_vm0, %v1034_v45  ;;  %v580_v53 = vadd.f32 %v1089_v46, %v1368_v50  ;;  %v644_v54 = vadd.f32 %v1137_v47, %v1368_v50  ;;  %v1092_v55 = vadd.f32 %v1091_v51, %v1090_v48 }
 0x126   : > { %v1140_v56 = vadd.f32 %v1139_v52, %v1138_v49 }
 0x127   : > { %v676_v57 = vmax.f32 %v580_v53, 0.0  ;;  %v692_v58 = vmax.f32 %v644_v54, 0.0  ;;  %v583_v59 = vadd.f32 %v1092_v55, %v1368_v50 }
 0x128   : > { %v647_v60 = vadd.f32 %v1140_v56, %v1368_v50 }
 0x129   : > { %v1019_v61 = vpack.c.bf16 %v676_v57, %v676_v57  ;;  %v1035_v62 = vpack.c.bf16 %v692_v58, %v692_v58  ;;  %v677_v63 = vmax.f32 %v583_v59, 0.0  ;;  %v1093_v1 = vpop.f32.mrb[24].mxu0  ;;  %v1141_v2 = vpop.f32.mrb[24].mxu1 }
 0x12a   : > { %v693_v0 = vmax.f32 %v647_v60, 0.0  ;;  %v1094_v3 = vpop.f32.mrb[25].mxu0  ;;  %v1142_v4 = vpop.f32.mrb[25].mxu1 }
 0x12b   : > { %837 = vst.msk [vmem:[%s1378_s4 + $0x28] sm:$0xf] %vm826_vm0, %v1019_v61  ;;  %853 = vst.msk [vmem:[%s1378_s4 + $0x68] sm:$0xf] %vm826_vm0, %v1035_v62  ;;  %v1020_v5 = vpack.c.bf16 %v677_v63, %v677_v63  ;;  %v1095_v7 = vadd.f32 %v1094_v3, %v1093_v1  ;;  %v1143_v8 = vadd.f32 %v1142_v4, %v1141_v2  ;;  %v1096_v9 = vpop.f32.mrb[26].mxu0  ;;  %v1144_v10 = vpop.f32.mrb[26].mxu1 }
 0x12c   : > { %v1036_v6 = vpack.c.bf16 %v693_v0, %v693_v0  ;;  %v1097_v11 = vpop.f32.mrb[27].mxu0  ;;  %v1145_v12 = vpop.f32.mrb[27].mxu1 }
 0x12d   : > { %838 = vst.msk [vmem:[%s1378_s4 + $0x2c] sm:$0xf] %vm826_vm0, %v1020_v5  ;;  %v588_v13 = vadd.f32 %v1095_v7, %v1368_v50  ;;  %v652_v14 = vadd.f32 %v1143_v8, %v1368_v50  ;;  %v1098_v15 = vadd.f32 %v1097_v11, %v1096_v9  ;;  %v1146_v16 = vadd.f32 %v1145_v12, %v1144_v10 }
 0x12e   : > { %854 = vst.msk [vmem:[%s1378_s4 + $0x6c] sm:$0xf] %vm826_vm0, %v1036_v6 }
 0x12f   : > { %v678_v17 = vmax.f32 %v588_v13, 0.0  ;;  %v694_v18 = vmax.f32 %v652_v14, 0.0  ;;  %v591_v19 = vadd.f32 %v1098_v15, %v1368_v50  ;;  %v655_v20 = vadd.f32 %v1146_v16, %v1368_v50 }
 0x131   : > { %v1021_v21 = vpack.c.bf16 %v678_v17, %v678_v17  ;;  %v1037_v22 = vpack.c.bf16 %v694_v18, %v694_v18  ;;  %v679_v23 = vmax.f32 %v591_v19, 0.0  ;;  %v695_v24 = vmax.f32 %v655_v20, 0.0  ;;  %v1099_v25 = vpop.f32.mrb[28].mxu0  ;;  %v1147_v26 = vpop.f32.mrb[28].mxu1 }
 0x132   : > { %v1100_v27 = vpop.f32.mrb[29].mxu0  ;;  %v1148_v28 = vpop.f32.mrb[29].mxu1 }
 0x133   : > { %839 = vst.msk [vmem:[%s1378_s4 + $0x30] sm:$0xf] %vm826_vm0, %v1021_v21  ;;  %855 = vst.msk [vmem:[%s1378_s4 + $0x70] sm:$0xf] %vm826_vm0, %v1037_v22  ;;  %v1022_v29 = vpack.c.bf16 %v679_v23, %v679_v23  ;;  %v1038_v30 = vpack.c.bf16 %v695_v24, %v695_v24  ;;  %v1101_v31 = vadd.f32 %v1100_v27, %v1099_v25  ;;  %v1102_v33 = vpop.f32.mrb[30].mxu0  ;;  %v1150_v34 = vpop.f32.mrb[30].mxu1 }
 0x134   : > { %v1149_v32 = vadd.f32 %v1148_v28, %v1147_v26  ;;  %v1103_v35 = vpop.f32.mrb[31].mxu0  ;;  %v1151_v36 = vpop.f32.mrb[31].mxu1 }
 0x135   : > { %840 = vst.msk [vmem:[%s1378_s4 + $0x34] sm:$0xf] %vm826_vm0, %v1022_v29  ;;  %856 = vst.msk [vmem:[%s1378_s4 + $0x74] sm:$0xf] %vm826_vm0, %v1038_v30  ;;  %v596_v37 = vadd.f32 %v1101_v31, %v1368_v50  ;;  %v1104_v39 = vadd.f32 %v1103_v35, %v1102_v33  ;;  %v1152_v40 = vadd.f32 %v1151_v36, %v1150_v34 }
 0x136   : > { %v660_v38 = vadd.f32 %v1149_v32, %v1368_v50 }
 0x137   : > { %v680_v41 = vmax.f32 %v596_v37, 0.0  ;;  %v599_v43 = vadd.f32 %v1104_v39, %v1368_v50  ;;  %v663_v44 = vadd.f32 %v1152_v40, %v1368_v50 }
 0x138   : > { %v696_v42 = vmax.f32 %v660_v38, 0.0 }
 0x139   : > { %v1023_v45 = vpack.c.bf16 %v680_v41, %v680_v41  ;;  %v681_v47 = vmax.f32 %v599_v43, 0.0  ;;  %v697_v48 = vmax.f32 %v663_v44, 0.0 }
 0x13a   : > { %v1039_v46 = vpack.c.bf16 %v696_v42, %v696_v42 }
 0x13b   : > { %841 = vst.msk [vmem:[%s1378_s4 + $0x38] sm:$0xf] %vm826_vm0, %v1023_v45  ;;  %v1024_v49 = vpack.c.bf16 %v681_v47, %v681_v47  ;;  %v1040_v51 = vpack.c.bf16 %v697_v48, %v697_v48 }
 0x13c   : > { %857 = vst.msk [vmem:[%s1378_s4 + $0x78] sm:$0xf] %vm826_vm0, %v1039_v46 }
 0x13d   : > { %842 = vst.msk [vmem:[%s1378_s4 + $0x3c] sm:$0xf] %vm826_vm0, %v1024_v49  ;;  %858 = vst.msk [vmem:[%s1378_s4 + $0x7c] sm:$0xf] %vm826_vm0, %v1040_v51 }
 0x13e PF: > { %s13_s12 = sadd.s32 1, %s1247_s12  }
 0x13f   : > { %p10_p4 = scmp.ge.s32.totalorder %s13_s12, 4  }
 0x141   :  { %12 = sbr.rel (!%p10_p4) target bundleno = 1 (0x1), region = 62 }

// kernel: resnet_forward.16
= control target key start
LH: loop header
LB: loop body
LE: loop exit
PB: predicated region body
PF: predicated region fallthrough
CT: control target
= control target key end

     0   :  { %s1512_s15 = smov 0   ;;  %s1743_s0 = inlined_call_operand.vmem [shape: bf16[512,256], index: 0, kind: input, shape index: {}]   ;;  %s1744_s1 = inlined_call_operand.vmem [shape: bf16[256,16], index: 1, kind: input, shape index: {}]   ;;  %s1745_s2 = inlined_call_operand.vmem [shape: f32[1,16], index: 2, kind: input, shape index: {}]   ;;  %s1746_s3 = inlined_call_operand.vmem [shape: bf16[512,16], index: 3, kind: input, shape index: {}]   ;;  %s1747_s4 = inlined_call_operand.vmem [shape: bf16[512,16], index: 4, kind: output, shape index: {}]  }
   0x1 LB: > { %s1072_s16 = sadd.s32 4294967295, %s1485_s15   ;;  %p1076_p0 = scmp.ge.s32.totalorder %s1485_s15, 1  ;;  %s1485_s15 = sphi %s1512_s15, %s14_s15  }
   0x2   : > { %p175_p1 = scmp.lt.s32.totalorder %s1485_s15, 3 }
   0x4   : > { %p176_p2 = pnand %p1076_p0, %p175_p1 }
   0x5   : > { %v1415_v0 = vld [vmem:[%s1744_s1 + $0x40] sm:$0xff] (!%p176_p2)   ;;  %s1077_s19 = sshll.u32 (!%p176_p2), %s1072_s16, 5  ;;  %v1417_v2 = vld [vmem:[%s1744_s1 + $0x48] sm:$0xff] (!%p176_p2)   ;;  %v1419_v4 = vld [vmem:[%s1744_s1 + $0x50] sm:$0xff] (!%p176_p2)   ;;  %vm971_vm0 = vcmask (!%p176_p2), 125952  }
   0x6   : > { %179 = sbr.rel (%p176_p2) target bundleno = 320 (0x140), region = 36  ;;  %v1416_v1 = vld [vmem:[%s1744_s1] sm:$0xff] (!%p176_p2)   ;;  %1279 = vmatprep.subr.bf16.mxu0 (!%p176_p2), %v1415_v0  ;;  %1391 = vmatprep.subr.bf16.mxu1 (!%p176_p2), %v1415_v0  ;;  %v1418_v3 = vld [vmem:[%s1744_s1 + $0x8] sm:$0xff] (!%p176_p2)   ;;  %p208_p3 = scmp.lt.s32.totalorder (!%p176_p2), %s1077_s19, 63  ;;  %v1420_v5 = vld [vmem:[%s1744_s1 + $0x10] sm:$0xff] (!%p176_p2)  }
   0x7   : > { %1280 = vmatpush3.bf16.msra.mxu0 (!%p176_p2), %v1416_v1  ;;  %1399 = vmatpush3.bf16.msra.mxu1 (!%p176_p2), %v1416_v1  ;;  %v1421_v6 = vld [vmem:[%s1744_s1 + $0x58] sm:$0xff] (!%p176_p2)   ;;  %v1423_v8 = vld [vmem:[%s1744_s1 + $0x60] sm:$0xff] (!%p176_p2)   ;;  %v1425_v10 = vld [vmem:[%s1744_s1 + $0x68] sm:$0xff] (!%p176_p2)  }
   0x8   : > { %1281 = vmatprep.subr.bf16.mxu0 (!%p176_p2), %v1417_v2  ;;  %1392 = vmatprep.subr.bf16.mxu1 (!%p176_p2), %v1417_v2  ;;  %v1422_v7 = vld [vmem:[%s1744_s1 + $0x18] sm:$0xff] (!%p176_p2)   ;;  %v1424_v9 = vld [vmem:[%s1744_s1 + $0x20] sm:$0xff] (!%p176_p2)   ;;  %v1426_v13 = vld [vmem:[%s1744_s1 + $0x28] sm:$0xff] (!%p176_p2)  }
   0x9   : > { %v1427_v14 = vld [vmem:[%s1744_s1 + $0x70] sm:$0xff] (!%p176_p2)   ;;  %v1429_v16 = vld [vmem:[%s1744_s1 + $0x78] sm:$0xff] (!%p176_p2)   ;;  %v1621_v52 = vld [vmem:[%s1745_s2] ss:$0 sm:$0xff] (!%p176_p2) }
   0xa   : > { %v1428_v15 = vld [vmem:[%s1744_s1 + $0x30] sm:$0xff] (!%p176_p2)   ;;  %v1430_v17 = vld [vmem:[%s1744_s1 + $0x38] sm:$0xff] (!%p176_p2)  }
   0xb   : > { %1282 = vmatpush3.bf16.msra.mxu0 (!%p176_p2), %v1418_v3  ;;  %1400 = vmatpush3.bf16.msra.mxu1 (!%p176_p2), %v1418_v3 }
   0xc   : > { %1283 = vmatprep.subr.bf16.mxu0 (!%p176_p2), %v1419_v4  ;;  %1393 = vmatprep.subr.bf16.mxu1 (!%p176_p2), %v1419_v4 }
   0xd   : > { %s1749_s19 = smov (!%p208_p3, %s1077_s19), 63 }
   0xe   : > { %s1167_s8 = sshll.u32 %s1749_s19, 3  ;;  %s1081_s30 = sshll.u32 %s1749_s19, 2 }
   0xf   : > { %1284 = vmatpush3.bf16.msra.mxu0 %v1420_v5  ;;  %1401 = vmatpush3.bf16.msra.mxu1 %v1420_v5  ;;  %s1553_s13 = scalar_lea.vmem %s1743_s0, %s1167_s8  ;;  %s1614_s7 = scalar_lea.vmem %s1746_s3, %s1081_s30 }
  0x10   : > { %1285 = vmatprep.subr.bf16.mxu0 %v1421_v6  ;;  %1394 = vmatprep.subr.bf16.mxu1 %v1421_v6  ;;  %v1433_v11 = vld [vmem:[%s1553_s13 + $0x4] ss:$8 sps:$4 sm:$0xff]   ;;  %v1431_v18 = vld [vmem:[%s1553_s13] ss:$8 sps:$4 sm:$0xff]   ;;  %v1437_v20 = vld [vmem:[%s1553_s13 + $0x14] ss:$8 sps:$4 sm:$0xff]   ;;  %s1634_s12 = scalar_lea.vmem %s1747_s4, %s1081_s30 }
  0x11   : > { %v1436_v12 = vld [vmem:[%s1553_s13 + $0x84] ss:$8 sps:$4 sm:$0xff]   ;;  %586 = vmatprep.mubr.bf16.mxu0 %v1433_v11  ;;  %v1434_v19 = vld [vmem:[%s1553_s13 + $0x80] ss:$8 sps:$4 sm:$0xff]   ;;  %v1439_v21 = vld [vmem:[%s1553_s13 + $0x94] ss:$8 sps:$4 sm:$0xff]  }
  0x12   : > { %650 = vmatprep.mubr.bf16.mxu1 %v1436_v12  ;;  %v1441_v22 = vld [vmem:[%s1553_s13 + $0x10] ss:$8 sps:$4 sm:$0xff]   ;;  %v1443_v24 = vld [vmem:[%s1553_s13 + $0x24] ss:$8 sps:$4 sm:$0xff]   ;;  %v1447_v26 = vld [vmem:[%s1553_s13 + $0x20] ss:$8 sps:$4 sm:$0xff]  }
  0x13   : > { %1286 = vmatpush3.bf16.msra.mxu0 %v1422_v7  ;;  %1402 = vmatpush3.bf16.msra.mxu1 %v1422_v7  ;;  %v1442_v23 = vld [vmem:[%s1553_s13 + $0x90] ss:$8 sps:$4 sm:$0xff]   ;;  %v1445_v25 = vld [vmem:[%s1553_s13 + $0xa4] ss:$8 sps:$4 sm:$0xff]   ;;  %v1448_v27 = vld [vmem:[%s1553_s13 + $0xa0] ss:$8 sps:$4 sm:$0xff]  }
  0x14   : > { %1287 = vmatprep.subr.bf16.mxu0 %v1423_v8  ;;  %1395 = vmatprep.subr.bf16.mxu1 %v1423_v8  ;;  %v1449_v28 = vld [vmem:[%s1553_s13 + $0x34] ss:$8 sps:$4 sm:$0xff]   ;;  %v1453_v30 = vld [vmem:[%s1553_s13 + $0x30] ss:$8 sps:$4 sm:$0xff]   ;;  %v1455_v32 = vld [vmem:[%s1553_s13 + $0x44] ss:$8 sps:$4 sm:$0xff]  }
  0x15   : > { %v1451_v29 = vld [vmem:[%s1553_s13 + $0xb4] ss:$8 sps:$4 sm:$0xff]   ;;  %v1454_v31 = vld [vmem:[%s1553_s13 + $0xb0] ss:$8 sps:$4 sm:$0xff]   ;;  %v1457_v33 = vld [vmem:[%s1553_s13 + $0xc4] ss:$8 sps:$4 sm:$0xff]  }
  0x16   : > { %v1459_v34 = vld [vmem:[%s1553_s13 + $0x40] ss:$8 sps:$4 sm:$0xff]   ;;  %v1461_v36 = vld [vmem:[%s1553_s13 + $0x54] ss:$8 sps:$4 sm:$0xff]   ;;  %v1465_v38 = vld [vmem:[%s1553_s13 + $0x50] ss:$8 sps:$4 sm:$0xff]  }
  0x17   : > { %1288 = vmatpush3.bf16.msra.mxu0 %v1424_v9  ;;  %1403 = vmatpush3.bf16.msra.mxu1 %v1424_v9  ;;  %v1460_v35 = vld [vmem:[%s1553_s13 + $0xc0] ss:$8 sps:$4 sm:$0xff]   ;;  %v1463_v37 = vld [vmem:[%s1553_s13 + $0xd4] ss:$8 sps:$4 sm:$0xff]   ;;  %v1466_v39 = vld [vmem:[%s1553_s13 + $0xd0] ss:$8 sps:$4 sm:$0xff]  }
  0x18   : > { %1289 = vmatprep.subr.bf16.mxu0 %v1425_v10  ;;  %1396 = vmatprep.subr.bf16.mxu1 %v1425_v10  ;;  %v1467_v40 = vld [vmem:[%s1553_s13 + $0x64] ss:$8 sps:$4 sm:$0xff]   ;;  %v1471_v42 = vld [vmem:[%s1553_s13 + $0x60] ss:$8 sps:$4 sm:$0xff]   ;;  %v1473_v44 = vld [vmem:[%s1553_s13 + $0x74] ss:$8 sps:$4 sm:$0xff]  }
  0x19   : > { %v1469_v41 = vld [vmem:[%s1553_s13 + $0xe4] ss:$8 sps:$4 sm:$0xff]   ;;  %v1472_v43 = vld [vmem:[%s1553_s13 + $0xe0] ss:$8 sps:$4 sm:$0xff]   ;;  %v1475_v45 = vld [vmem:[%s1553_s13 + $0xf4] ss:$8 sps:$4 sm:$0xff]  }
  0x1a   : > { %v1477_v46 = vld [vmem:[%s1553_s13 + $0x70] ss:$8 sps:$4 sm:$0xff]   ;;  %v1201_v48 = vld [vmem:[%s1614_s7] sm:$0xff]   ;;  %v1264_v9 = vld [vmem:[%s1614_s7 + $0x8] sm:$0xff]  }
  0x1b   : > { %1290 = vmatpush3.bf16.msra.mxu0 %v1426_v13  ;;  %1404 = vmatpush3.bf16.msra.mxu1 %v1426_v13  ;;  %v1478_v47 = vld [vmem:[%s1553_s13 + $0xf0] ss:$8 sps:$4 sm:$0xff]   ;;  %v1271_v49 = vld [vmem:[%s1614_s7 + $0x40] sm:$0xff]   ;;  %v1202_v56 = vunpack.c.l.bf16 %v1201_v48  ;;  %v1203_v62 = vunpack.c.h.bf16 %v1201_v48  ;;  %v1272_v10 = vld [vmem:[%s1614_s7 + $0x48] sm:$0xff]  }
  0x1c   : > { %1291 = vmatprep.subr.bf16.mxu0 %v1427_v14  ;;  %1397 = vmatprep.subr.bf16.mxu1 %v1427_v14  ;;  %v1234_v58 = vunpack.c.l.bf16 %v1271_v49  ;;  %v1235_v0 = vunpack.c.h.bf16 %v1271_v49 }
  0x1f   : > { %1292 = vmatpush3.bf16.msra.mxu0 %v1428_v15  ;;  %1405 = vmatpush3.bf16.msra.mxu1 %v1428_v15 }
  0x20   : > { %1293 = vmatprep.subr.bf16.mxu0 %v1429_v16  ;;  %1398 = vmatprep.subr.bf16.mxu1 %v1429_v16 }
  0x23   : > { %1294 = vmatpush3.bf16.msra.mxu0 %v1430_v17  ;;  %1406 = vmatpush3.bf16.msra.mxu1 %v1430_v17 }
  0x26   : > { %587 = vmatmul.mubr.bf16.vlgmr.msra.gmra.mrb[0].mxu0 %v1431_v18  ;;  %651 = vmatmul.mubr.bf16.vlgmr.msra.gmra.mrb[0].mxu1 %v1434_v19  ;;  %v1206_v18 = vunpack.c.l.bf16 %v1264_v9 }
  0x27   : > { %594 = vmatprep.mubr.bf16.mxu0 %v1437_v20  ;;  %658 = vmatprep.mubr.bf16.mxu1 %v1439_v21  ;;  %v1238_v20 = vunpack.c.l.bf16 %v1272_v10 }
  0x2e   : > { %595 = vmatmul.mubr.bf16.gmra.mrb[4].mxu0 %v1441_v22  ;;  %659 = vmatmul.mubr.bf16.gmra.mrb[4].mxu1 %v1442_v23 }
  0x2f   : > { %602 = vmatprep.mubr.bf16.mxu0 %v1443_v24  ;;  %666 = vmatprep.mubr.bf16.mxu1 %v1445_v25 }
  0x36   : > { %603 = vmatmul.mubr.bf16.gmra.mrb[8].mxu0 %v1447_v26  ;;  %667 = vmatmul.mubr.bf16.gmra.mrb[8].mxu1 %v1448_v27 }
  0x37   : > { %610 = vmatprep.mubr.bf16.mxu0 %v1449_v28  ;;  %674 = vmatprep.mubr.bf16.mxu1 %v1451_v29 }
  0x3e   : > { %611 = vmatmul.mubr.bf16.gmra.mrb[12].mxu0 %v1453_v30  ;;  %675 = vmatmul.mubr.bf16.gmra.mrb[12].mxu1 %v1454_v31  ;;  %v1207_v30 = vunpack.c.h.bf16 %v1264_v9 }
  0x3f   : > { %618 = vmatprep.mubr.bf16.mxu0 %v1455_v32  ;;  %682 = vmatprep.mubr.bf16.mxu1 %v1457_v33  ;;  %v1239_v32 = vunpack.c.h.bf16 %v1272_v10 }
  0x46   : > { %619 = vmatmul.mubr.bf16.gmra.mrb[16].mxu0 %v1459_v34  ;;  %683 = vmatmul.mubr.bf16.gmra.mrb[16].mxu1 %v1460_v35 }
  0x47   : > { %626 = vmatprep.mubr.bf16.mxu0 %v1461_v36  ;;  %690 = vmatprep.mubr.bf16.mxu1 %v1463_v37 }
  0x4e   : > { %627 = vmatmul.mubr.bf16.gmra.mrb[20].mxu0 %v1465_v38  ;;  %691 = vmatmul.mubr.bf16.gmra.mrb[20].mxu1 %v1466_v39 }
  0x4f   : > { %634 = vmatprep.mubr.bf16.mxu0 %v1467_v40  ;;  %698 = vmatprep.mubr.bf16.mxu1 %v1469_v41  ;;  %v1265_v41 = vld [vmem:[%s1614_s7 + $0x10] sm:$0xff]  }
  0x56   : > { %635 = vmatmul.mubr.bf16.gmra.mrb[24].mxu0 %v1471_v42  ;;  %699 = vmatmul.mubr.bf16.gmra.mrb[24].mxu1 %v1472_v43  ;;  %v1273_v42 = vld [vmem:[%s1614_s7 + $0x50] sm:$0xff]  }
  0x57   : > { %642 = vmatprep.mubr.bf16.mxu0 %v1473_v44  ;;  %706 = vmatprep.mubr.bf16.mxu1 %v1475_v45  ;;  %v1243_v9 = vunpack.c.h.bf16 %v1273_v42 }
  0x5e   : > { %643 = vmatmul.mubr.bf16.gmra.mrb[28].mxu0 %v1477_v46  ;;  %707 = vmatmul.mubr.bf16.gmra.mrb[28].mxu1 %v1478_v47 }
  0xf9   : > { %v1295_v50 = vpop.f32.mrb[0].mxu0  ;;  %v1343_v51 = vpop.f32.mrb[0].mxu1 }
  0xfa   : > { %v1296_v53 = vpop.f32.mrb[1].mxu0  ;;  %v1344_v54 = vpop.f32.mrb[1].mxu1 }
  0xfb   : > { %v1297_v55 = vadd.f32 %v1296_v53, %v1295_v50  ;;  %v1345_v57 = vadd.f32 %v1344_v54, %v1343_v51  ;;  %v1298_v59 = vpop.f32.mrb[2].mxu0  ;;  %v1346_v60 = vpop.f32.mrb[2].mxu1  ;;  %v1210_v53 = vunpack.c.l.bf16 %v1265_v41 }
  0xfc   : > { %v1299_v61 = vpop.f32.mrb[3].mxu0  ;;  %v1347_v63 = vpop.f32.mrb[3].mxu1 }
  0xfd   : > { %v589_v1 = vadd.f32 %v1297_v55, %v1621_v52  ;;  %v653_v2 = vadd.f32 %v1345_v57, %v1621_v52  ;;  %v1300_v3 = vadd.f32 %v1299_v61, %v1298_v59  ;;  %v1348_v4 = vadd.f32 %v1347_v63, %v1346_v60 }
  0xfe   : > { %v1242_v55 = vunpack.c.l.bf16 %v1273_v42 }
  0xff   : > { %v779_v5 = vadd.f32 %v1202_v56, %v589_v1  ;;  %v795_v6 = vadd.f32 %v1234_v58, %v653_v2  ;;  %v592_v7 = vadd.f32 %v1300_v3, %v1621_v52  ;;  %v656_v8 = vadd.f32 %v1348_v4, %v1621_v52 }
 0x101   : > { %v811_v11 = vmax.f32 %v779_v5, 0.0  ;;  %v827_v12 = vmax.f32 %v795_v6, 0.0  ;;  %v780_v13 = vadd.f32 %v1203_v62, %v592_v7  ;;  %v796_v14 = vadd.f32 %v1235_v0, %v656_v8  ;;  %v1301_v15 = vpop.f32.mrb[4].mxu0  ;;  %v1349_v16 = vpop.f32.mrb[4].mxu1 }
 0x102   : > { %v1302_v17 = vpop.f32.mrb[5].mxu0  ;;  %v1350_v19 = vpop.f32.mrb[5].mxu1  ;;  %v1211_v7 = vunpack.c.h.bf16 %v1265_v41 }
 0x103   : > { %v1168_v21 = vpack.c.bf16 %v811_v11, %v811_v11  ;;  %v1184_v22 = vpack.c.bf16 %v827_v12, %v827_v12  ;;  %v812_v23 = vmax.f32 %v780_v13, 0.0  ;;  %v828_v24 = vmax.f32 %v796_v14, 0.0  ;;  %v1304_v25 = vpop.f32.mrb[6].mxu0  ;;  %v1352_v26 = vpop.f32.mrb[6].mxu1  ;;  %v1266_v12 = vld [vmem:[%s1614_s7 + $0x18] sm:$0xff]  }
 0x104   : > { %v1303_v27 = vadd.f32 %v1302_v17, %v1301_v15  ;;  %v1351_v28 = vadd.f32 %v1350_v19, %v1349_v16  ;;  %v1305_v29 = vpop.f32.mrb[7].mxu0  ;;  %v1353_v31 = vpop.f32.mrb[7].mxu1  ;;  %v1274_v13 = vld [vmem:[%s1614_s7 + $0x58] sm:$0xff]  }
 0x105   : > { %972 = vst.msk [vmem:[%s1634_s12] sm:$0xf] %vm971_vm0, %v1168_v21  ;;  %988 = vst.msk [vmem:[%s1634_s12 + $0x40] sm:$0xf] %vm971_vm0, %v1184_v22  ;;  %v1169_v33 = vpack.c.bf16 %v812_v23, %v812_v23  ;;  %v1185_v34 = vpack.c.bf16 %v828_v24, %v828_v24  ;;  %v1306_v35 = vadd.f32 %v1305_v29, %v1304_v25  ;;  %v1214_v23 = vunpack.c.l.bf16 %v1266_v12 }
 0x106   : > { %v1354_v36 = vadd.f32 %v1353_v31, %v1352_v26  ;;  %v597_v37 = vadd.f32 %v1303_v27, %v1621_v52  ;;  %v661_v38 = vadd.f32 %v1351_v28, %v1621_v52  ;;  %v1246_v25 = vunpack.c.l.bf16 %v1274_v13 }
 0x107   : > { %973 = vst.msk [vmem:[%s1634_s12 + $0x4] sm:$0xf] %vm971_vm0, %v1169_v33  ;;  %989 = vst.msk [vmem:[%s1634_s12 + $0x44] sm:$0xf] %vm971_vm0, %v1185_v34  ;;  %v600_v39 = vadd.f32 %v1306_v35, %v1621_v52  ;;  %v1215_v35 = vunpack.c.h.bf16 %v1266_v12 }
 0x108   : > { %v664_v40 = vadd.f32 %v1354_v36, %v1621_v52  ;;  %v781_v43 = vadd.f32 %v1206_v18, %v597_v37  ;;  %v797_v44 = vadd.f32 %v1238_v20, %v661_v38  ;;  %v1247_v37 = vunpack.c.h.bf16 %v1274_v13 }
 0x109   : > { %v782_v45 = vadd.f32 %v1207_v30, %v600_v39  ;;  %v1307_v47 = vpop.f32.mrb[8].mxu0  ;;  %v1355_v48 = vpop.f32.mrb[8].mxu1 }
 0x10a   : > { %v798_v46 = vadd.f32 %v1239_v32, %v664_v40  ;;  %v813_v49 = vmax.f32 %v781_v43, 0.0  ;;  %v829_v50 = vmax.f32 %v797_v44, 0.0  ;;  %v1308_v51 = vpop.f32.mrb[9].mxu0  ;;  %v1356_v54 = vpop.f32.mrb[9].mxu1 }
 0x10b   : > { %v814_v56 = vmax.f32 %v782_v45, 0.0  ;;  %v1309_v58 = vadd.f32 %v1308_v51, %v1307_v47  ;;  %v1357_v59 = vadd.f32 %v1356_v54, %v1355_v48  ;;  %v1310_v60 = vpop.f32.mrb[10].mxu0  ;;  %v1358_v61 = vpop.f32.mrb[10].mxu1  ;;  %v1267_v48 = vld [vmem:[%s1614_s7 + $0x20] sm:$0xff]  }
 0x10c   : > { %v830_v57 = vmax.f32 %v798_v46, 0.0  ;;  %v1170_v62 = vpack.c.bf16 %v813_v49, %v813_v49  ;;  %v1186_v63 = vpack.c.bf16 %v829_v50, %v829_v50  ;;  %v1311_v0 = vpop.f32.mrb[11].mxu0  ;;  %v1359_v1 = vpop.f32.mrb[11].mxu1  ;;  %v1275_v49 = vld [vmem:[%s1614_s7 + $0x60] sm:$0xff]  }
 0x10d   : > { %v1171_v2 = vpack.c.bf16 %v814_v56, %v814_v56  ;;  %v605_v4 = vadd.f32 %v1309_v58, %v1621_v52  ;;  %v669_v5 = vadd.f32 %v1357_v59, %v1621_v52  ;;  %v1312_v6 = vadd.f32 %v1311_v0, %v1310_v60 }
 0x10e   : > { %v1187_v3 = vpack.c.bf16 %v830_v57, %v830_v57  ;;  %974 = vst.msk [vmem:[%s1634_s12 + $0x8] sm:$0xf] %vm971_vm0, %v1170_v62  ;;  %990 = vst.msk [vmem:[%s1634_s12 + $0x48] sm:$0xf] %vm971_vm0, %v1186_v63  ;;  %v1360_v8 = vadd.f32 %v1359_v1, %v1358_v61  ;;  %v1218_v58 = vunpack.c.l.bf16 %v1267_v48  ;;  %v1250_v60 = vunpack.c.l.bf16 %v1275_v49 }
 0x10f   : > { %975 = vst.msk [vmem:[%s1634_s12 + $0xc] sm:$0xf] %vm971_vm0, %v1171_v2  ;;  %v783_v10 = vadd.f32 %v1210_v53, %v605_v4  ;;  %v799_v11 = vadd.f32 %v1242_v55, %v669_v5  ;;  %v608_v14 = vadd.f32 %v1312_v6, %v1621_v52  ;;  %v1219_v6 = vunpack.c.h.bf16 %v1267_v48 }
 0x110   : > { %991 = vst.msk [vmem:[%s1634_s12 + $0x4c] sm:$0xf] %vm971_vm0, %v1187_v3  ;;  %v672_v15 = vadd.f32 %v1360_v8, %v1621_v52  ;;  %v1251_v8 = vunpack.c.h.bf16 %v1275_v49 }
 0x111   : > { %v815_v16 = vmax.f32 %v783_v10, 0.0  ;;  %v831_v17 = vmax.f32 %v799_v11, 0.0  ;;  %v1313_v18 = vpop.f32.mrb[12].mxu0  ;;  %v1361_v19 = vpop.f32.mrb[12].mxu1  ;;  %v784_v20 = vadd.f32 %v1211_v7, %v608_v14 }
 0x112   : > { %v800_v21 = vadd.f32 %v1243_v9, %v672_v15  ;;  %v1314_v22 = vpop.f32.mrb[13].mxu0  ;;  %v1362_v24 = vpop.f32.mrb[13].mxu1 }
 0x113   : > { %v1172_v26 = vpack.c.bf16 %v815_v16, %v815_v16  ;;  %v1188_v27 = vpack.c.bf16 %v831_v17, %v831_v17  ;;  %v1315_v28 = vadd.f32 %v1314_v22, %v1313_v18  ;;  %v1363_v29 = vadd.f32 %v1362_v24, %v1361_v19  ;;  %v1316_v30 = vpop.f32.mrb[14].mxu0  ;;  %v1364_v31 = vpop.f32.mrb[14].mxu1  ;;  %v1268_v17 = vld [vmem:[%s1614_s7 + $0x28] sm:$0xff]  }
 0x114   : > { %v816_v32 = vmax.f32 %v784_v20, 0.0  ;;  %v832_v33 = vmax.f32 %v800_v21, 0.0  ;;  %v1317_v34 = vpop.f32.mrb[15].mxu0  ;;  %v1365_v36 = vpop.f32.mrb[15].mxu1  ;;  %v1276_v18 = vld [vmem:[%s1614_s7 + $0x68] sm:$0xff]  }
 0x115   : > { %976 = vst.msk [vmem:[%s1634_s12 + $0x10] sm:$0xf] %vm971_vm0, %v1172_v26  ;;  %992 = vst.msk [vmem:[%s1634_s12 + $0x50] sm:$0xf] %vm971_vm0, %v1188_v27  ;;  %v613_v38 = vadd.f32 %v1315_v28, %v1621_v52  ;;  %v677_v39 = vadd.f32 %v1363_v29, %v1621_v52  ;;  %v1318_v40 = vadd.f32 %v1317_v34, %v1316_v30  ;;  %v1222_v28 = vunpack.c.l.bf16 %v1268_v17 }
 0x116   : > { %v1366_v41 = vadd.f32 %v1365_v36, %v1364_v31  ;;  %v1173_v42 = vpack.c.bf16 %v816_v32, %v816_v32  ;;  %v1189_v43 = vpack.c.bf16 %v832_v33, %v832_v33  ;;  %v1254_v30 = vunpack.c.l.bf16 %v1276_v18 }
 0x117   : > { %v785_v44 = vadd.f32 %v1214_v23, %v613_v38  ;;  %v801_v45 = vadd.f32 %v1246_v25, %v677_v39  ;;  %v616_v46 = vadd.f32 %v1318_v40, %v1621_v52  ;;  %v1255_v48 = vunpack.c.h.bf16 %v1276_v18 }
 0x118   : > { %v680_v47 = vadd.f32 %v1366_v41, %v1621_v52  ;;  %977 = vst.msk [vmem:[%s1634_s12 + $0x14] sm:$0xf] %vm971_vm0, %v1173_v42  ;;  %993 = vst.msk [vmem:[%s1634_s12 + $0x54] sm:$0xf] %vm971_vm0, %v1189_v43 }
 0x119   : > { %v817_v50 = vmax.f32 %v785_v44, 0.0  ;;  %v833_v51 = vmax.f32 %v801_v45, 0.0  ;;  %v786_v53 = vadd.f32 %v1215_v35, %v616_v46  ;;  %v1319_v55 = vpop.f32.mrb[16].mxu0  ;;  %v1367_v56 = vpop.f32.mrb[16].mxu1  ;;  %v1223_v46 = vunpack.c.h.bf16 %v1268_v17 }
 0x11a   : > { %v802_v54 = vadd.f32 %v1247_v37, %v680_v47  ;;  %v1320_v57 = vpop.f32.mrb[17].mxu0  ;;  %v1368_v59 = vpop.f32.mrb[17].mxu1 }
 0x11b   : > { %v1174_v61 = vpack.c.bf16 %v817_v50, %v817_v50  ;;  %v1190_v62 = vpack.c.bf16 %v833_v51, %v833_v51  ;;  %v818_v63 = vmax.f32 %v786_v53, 0.0  ;;  %v1322_v1 = vpop.f32.mrb[18].mxu0  ;;  %v1370_v2 = vpop.f32.mrb[18].mxu1  ;;  %v1321_v3 = vadd.f32 %v1320_v57, %v1319_v55  ;;  %v1269_v51 = vld [vmem:[%s1614_s7 + $0x30] sm:$0xff]  }
 0x11c   : > { %v834_v0 = vmax.f32 %v802_v54, 0.0  ;;  %v1369_v4 = vadd.f32 %v1368_v59, %v1367_v56  ;;  %v1323_v5 = vpop.f32.mrb[19].mxu0  ;;  %v1371_v7 = vpop.f32.mrb[19].mxu1  ;;  %v1277_v53 = vld [vmem:[%s1614_s7 + $0x70] sm:$0xff]  }
 0x11d   : > { %978 = vst.msk [vmem:[%s1634_s12 + $0x18] sm:$0xf] %vm971_vm0, %v1174_v61  ;;  %994 = vst.msk [vmem:[%s1634_s12 + $0x58] sm:$0xf] %vm971_vm0, %v1190_v62  ;;  %v1175_v9 = vpack.c.bf16 %v818_v63, %v818_v63  ;;  %v1324_v11 = vadd.f32 %v1323_v5, %v1322_v1  ;;  %v1372_v12 = vadd.f32 %v1371_v7, %v1370_v2  ;;  %v1226_v63 = vunpack.c.l.bf16 %v1269_v51 }
 0x11e   : > { %v1191_v10 = vpack.c.bf16 %v834_v0, %v834_v0  ;;  %v621_v13 = vadd.f32 %v1321_v3, %v1621_v52  ;;  %v685_v14 = vadd.f32 %v1369_v4, %v1621_v52  ;;  %v1258_v1 = vunpack.c.l.bf16 %v1277_v53 }
 0x11f   : > { %979 = vst.msk [vmem:[%s1634_s12 + $0x1c] sm:$0xf] %vm971_vm0, %v1175_v9  ;;  %v624_v15 = vadd.f32 %v1324_v11, %v1621_v52  ;;  %v688_v16 = vadd.f32 %v1372_v12, %v1621_v52  ;;  %v1227_v11 = vunpack.c.h.bf16 %v1269_v51 }
 0x120   : > { %995 = vst.msk [vmem:[%s1634_s12 + $0x5c] sm:$0xf] %vm971_vm0, %v1191_v10  ;;  %v787_v19 = vadd.f32 %v1218_v58, %v621_v13  ;;  %v803_v20 = vadd.f32 %v1250_v60, %v685_v14  ;;  %v1259_v13 = vunpack.c.h.bf16 %v1277_v53 }
 0x121   : > { %v788_v21 = vadd.f32 %v1219_v6, %v624_v15  ;;  %v804_v22 = vadd.f32 %v1251_v8, %v688_v16  ;;  %v1325_v23 = vpop.f32.mrb[20].mxu0  ;;  %v1373_v24 = vpop.f32.mrb[20].mxu1 }
 0x122   : > { %v819_v25 = vmax.f32 %v787_v19, 0.0  ;;  %v835_v26 = vmax.f32 %v803_v20, 0.0  ;;  %v1326_v27 = vpop.f32.mrb[21].mxu0  ;;  %v1374_v29 = vpop.f32.mrb[21].mxu1 }
 0x123   : > { %v820_v31 = vmax.f32 %v788_v21, 0.0  ;;  %v836_v32 = vmax.f32 %v804_v22, 0.0  ;;  %v1327_v33 = vadd.f32 %v1326_v27, %v1325_v23  ;;  %v1375_v34 = vadd.f32 %v1374_v29, %v1373_v24  ;;  %v1328_v35 = vpop.f32.mrb[22].mxu0  ;;  %v1376_v36 = vpop.f32.mrb[22].mxu1  ;;  %v1270_v24 = vld [vmem:[%s1614_s7 + $0x38] sm:$0xff]  }
 0x124   : > { %v1176_v37 = vpack.c.bf16 %v819_v25, %v819_v25  ;;  %v1192_v38 = vpack.c.bf16 %v835_v26, %v835_v26  ;;  %v1329_v39 = vpop.f32.mrb[23].mxu0  ;;  %v1377_v40 = vpop.f32.mrb[23].mxu1  ;;  %v1278_v25 = vld [vmem:[%s1614_s7 + $0x78] sm:$0xff]  }
 0x125   : > { %v1177_v41 = vpack.c.bf16 %v820_v31, %v820_v31  ;;  %v1193_v42 = vpack.c.bf16 %v836_v32, %v836_v32  ;;  %v629_v43 = vadd.f32 %v1327_v33, %v1621_v52  ;;  %v693_v44 = vadd.f32 %v1375_v34, %v1621_v52 }
 0x126   : > { %980 = vst.msk [vmem:[%s1634_s12 + $0x20] sm:$0xf] %vm971_vm0, %v1176_v37  ;;  %996 = vst.msk [vmem:[%s1634_s12 + $0x60] sm:$0xf] %vm971_vm0, %v1192_v38  ;;  %v1330_v45 = vadd.f32 %v1329_v39, %v1328_v35  ;;  %v1378_v47 = vadd.f32 %v1377_v40, %v1376_v36  ;;  %v1230_v33 = vunpack.c.l.bf16 %v1270_v24  ;;  %v1262_v35 = vunpack.c.l.bf16 %v1278_v25 }
 0x127   : > { %981 = vst.msk [vmem:[%s1634_s12 + $0x24] sm:$0xf] %vm971_vm0, %v1177_v41  ;;  %997 = vst.msk [vmem:[%s1634_s12 + $0x64] sm:$0xf] %vm971_vm0, %v1193_v42  ;;  %v789_v49 = vadd.f32 %v1222_v28, %v629_v43  ;;  %v805_v50 = vadd.f32 %v1254_v30, %v693_v44 }
 0x128   : > { %v632_v54 = vadd.f32 %v1330_v45, %v1621_v52  ;;  %v696_v55 = vadd.f32 %v1378_v47, %v1621_v52  ;;  %v1231_v45 = vunpack.c.h.bf16 %v1270_v24  ;;  %v1263_v47 = vunpack.c.h.bf16 %v1278_v25 }
 0x129   : > { %v821_v56 = vmax.f32 %v789_v49, 0.0  ;;  %v837_v57 = vmax.f32 %v805_v50, 0.0  ;;  %v1331_v58 = vpop.f32.mrb[24].mxu0  ;;  %v1379_v59 = vpop.f32.mrb[24].mxu1 }
 0x12a   : > { %v790_v60 = vadd.f32 %v1223_v46, %v632_v54  ;;  %v806_v61 = vadd.f32 %v1255_v48, %v696_v55  ;;  %v1332_v62 = vpop.f32.mrb[25].mxu0  ;;  %v1380_v0 = vpop.f32.mrb[25].mxu1 }
 0x12b   : > { %v1178_v2 = vpack.c.bf16 %v821_v56, %v821_v56  ;;  %v1194_v3 = vpack.c.bf16 %v837_v57, %v837_v57  ;;  %v1333_v4 = vadd.f32 %v1332_v62, %v1331_v58  ;;  %v1381_v5 = vadd.f32 %v1380_v0, %v1379_v59  ;;  %v1334_v6 = vpop.f32.mrb[26].mxu0  ;;  %v1382_v7 = vpop.f32.mrb[26].mxu1 }
 0x12c   : > { %v822_v8 = vmax.f32 %v790_v60, 0.0  ;;  %v838_v9 = vmax.f32 %v806_v61, 0.0  ;;  %v1335_v10 = vpop.f32.mrb[27].mxu0  ;;  %v1383_v12 = vpop.f32.mrb[27].mxu1 }
 0x12d   : > { %982 = vst.msk [vmem:[%s1634_s12 + $0x28] sm:$0xf] %vm971_vm0, %v1178_v2  ;;  %998 = vst.msk [vmem:[%s1634_s12 + $0x68] sm:$0xf] %vm971_vm0, %v1194_v3  ;;  %v637_v14 = vadd.f32 %v1333_v4, %v1621_v52  ;;  %v701_v15 = vadd.f32 %v1381_v5, %v1621_v52  ;;  %v1336_v16 = vadd.f32 %v1335_v10, %v1334_v6 }
 0x12e   : > { %v1384_v17 = vadd.f32 %v1383_v12, %v1382_v7  ;;  %v1179_v18 = vpack.c.bf16 %v822_v8, %v822_v8  ;;  %v1195_v19 = vpack.c.bf16 %v838_v9, %v838_v9 }
 0x12f   : > { %v791_v20 = vadd.f32 %v1226_v63, %v637_v14  ;;  %v807_v21 = vadd.f32 %v1258_v1, %v701_v15  ;;  %v640_v22 = vadd.f32 %v1336_v16, %v1621_v52 }
 0x130   : > { %v704_v23 = vadd.f32 %v1384_v17, %v1621_v52  ;;  %983 = vst.msk [vmem:[%s1634_s12 + $0x2c] sm:$0xf] %vm971_vm0, %v1179_v18  ;;  %999 = vst.msk [vmem:[%s1634_s12 + $0x6c] sm:$0xf] %vm971_vm0, %v1195_v19 }
 0x131   : > { %v823_v26 = vmax.f32 %v791_v20, 0.0  ;;  %v839_v27 = vmax.f32 %v807_v21, 0.0  ;;  %v792_v28 = vadd.f32 %v1227_v11, %v640_v22  ;;  %v1337_v30 = vpop.f32.mrb[28].mxu0  ;;  %v1385_v31 = vpop.f32.mrb[28].mxu1 }
 0x132   : > { %v808_v29 = vadd.f32 %v1259_v13, %v704_v23  ;;  %v1338_v32 = vpop.f32.mrb[29].mxu0  ;;  %v1386_v34 = vpop.f32.mrb[29].mxu1 }
 0x133   : > { %v1180_v36 = vpack.c.bf16 %v823_v26, %v823_v26  ;;  %v1196_v37 = vpack.c.bf16 %v839_v27, %v839_v27  ;;  %v824_v38 = vmax.f32 %v792_v28, 0.0  ;;  %v1340_v40 = vpop.f32.mrb[30].mxu0  ;;  %v1388_v41 = vpop.f32.mrb[30].mxu1  ;;  %v1339_v42 = vadd.f32 %v1338_v32, %v1337_v30 }
 0x134   : > { %v840_v39 = vmax.f32 %v808_v29, 0.0  ;;  %v1387_v43 = vadd.f32 %v1386_v34, %v1385_v31  ;;  %v1341_v44 = vpop.f32.mrb[31].mxu0  ;;  %v1389_v46 = vpop.f32.mrb[31].mxu1 }
 0x135   : > { %984 = vst.msk [vmem:[%s1634_s12 + $0x30] sm:$0xf] %vm971_vm0, %v1180_v36  ;;  %1000 = vst.msk [vmem:[%s1634_s12 + $0x70] sm:$0xf] %vm971_vm0, %v1196_v37  ;;  %v1181_v48 = vpack.c.bf16 %v824_v38, %v824_v38  ;;  %v1342_v50 = vadd.f32 %v1341_v44, %v1340_v40  ;;  %v1390_v51 = vadd.f32 %v1389_v46, %v1388_v41 }
 0x136   : > { %v1197_v49 = vpack.c.bf16 %v840_v39, %v840_v39  ;;  %v645_v53 = vadd.f32 %v1339_v42, %v1621_v52  ;;  %v709_v54 = vadd.f32 %v1387_v43, %v1621_v52 }
 0x137   : > { %985 = vst.msk [vmem:[%s1634_s12 + $0x34] sm:$0xf] %vm971_vm0, %v1181_v48  ;;  %v648_v55 = vadd.f32 %v1342_v50, %v1621_v52  ;;  %v712_v56 = vadd.f32 %v1390_v51, %v1621_v52 }
 0x138   : > { %1001 = vst.msk [vmem:[%s1634_s12 + $0x74] sm:$0xf] %vm971_vm0, %v1197_v49  ;;  %v793_v57 = vadd.f32 %v1230_v33, %v645_v53  ;;  %v809_v58 = vadd.f32 %v1262_v35, %v709_v54 }
 0x139   : > { %v794_v59 = vadd.f32 %v1231_v45, %v648_v55  ;;  %v810_v60 = vadd.f32 %v1263_v47, %v712_v56 }
 0x13a   : > { %v825_v61 = vmax.f32 %v793_v57, 0.0  ;;  %v841_v62 = vmax.f32 %v809_v58, 0.0 }
 0x13b   : > { %v826_v63 = vmax.f32 %v794_v59, 0.0  ;;  %v842_v0 = vmax.f32 %v810_v60, 0.0 }
 0x13c   : > { %v1182_v1 = vpack.c.bf16 %v825_v61, %v825_v61  ;;  %v1198_v2 = vpack.c.bf16 %v841_v62, %v841_v62 }
 0x13d   : > { %v1183_v3 = vpack.c.bf16 %v826_v63, %v826_v63  ;;  %v1199_v4 = vpack.c.bf16 %v842_v0, %v842_v0 }
 0x13e   : > { %986 = vst.msk [vmem:[%s1634_s12 + $0x38] sm:$0xf] %vm971_vm0, %v1182_v1  ;;  %1002 = vst.msk [vmem:[%s1634_s12 + $0x78] sm:$0xf] %vm971_vm0, %v1198_v2 }
 0x13f   : > { %987 = vst.msk [vmem:[%s1634_s12 + $0x3c] sm:$0xf] %vm971_vm0, %v1183_v3  ;;  %1003 = vst.msk [vmem:[%s1634_s12 + $0x7c] sm:$0xf] %vm971_vm0, %v1199_v4 }
 0x140 PF: > { %s14_s15 = sadd.s32 1, %s1485_s15  }
 0x141   : > { %p11_p4 = scmp.ge.s32.totalorder %s14_s15, 4  }
 0x143   :  { %13 = sbr.rel (!%p11_p4) target bundleno = 1 (0x1), region = 69 }

// kernel: resnet_forward.19
= control target key start
LH: loop header
LB: loop body
LE: loop exit
PB: predicated region body
PF: predicated region fallthrough
CT: control target
= control target key end

     0   :  { %v343_v32 = vlaneseq  ;;  %vm442_vm1 = vcmask 519168   ;;  %s884_s1 = inlined_call_operand.vmem [shape: bf16[256,64], index: 1, kind: input, shape index: {}]   ;;  %s885_s0 = inlined_call_operand.vmem [shape: bf16[128,256], index: 0, kind: input, shape index: {}]   ;;  %s886_s2 = inlined_call_operand.vmem [shape: f32[1,64], index: 2, kind: input, shape index: {}]   ;;  %s887_s3 = inlined_call_operand.vmem [shape: bf16[128,64], index: 3, kind: output, shape index: {}]  }
   0x1   :  { %v608_v0 = vld [vmem:[%s884_s1 + $0x40] sm:$0xff]   ;;  %v610_v2 = vld [vmem:[%s884_s1 + $0x48] sm:$0xff]   ;;  %v612_v4 = vld [vmem:[%s884_s1 + $0x50] sm:$0xff]  }
   0x2   :  { %v609_v1 = vld [vmem:[%s884_s1] sm:$0xff]   ;;  %528 = vmatprep.subr.bf16.mxu0 %v608_v0  ;;  %592 = vmatprep.subr.bf16.mxu1 %v608_v0  ;;  %v611_v3 = vld [vmem:[%s884_s1 + $0x8] sm:$0xff]   ;;  %v613_v5 = vld [vmem:[%s884_s1 + $0x10] sm:$0xff]   ;;  %v769_v37 = vand.u32 127, %v343_v32 }
   0x3   :  { %529 = vmatpush3.bf16.msra.mxu0 %v609_v1  ;;  %600 = vmatpush3.bf16.msra.mxu1 %v609_v1  ;;  %v614_v6 = vld [vmem:[%s884_s1 + $0x58] sm:$0xff]   ;;  %v616_v8 = vld [vmem:[%s884_s1 + $0x60] sm:$0xff]   ;;  %v618_v10 = vld [vmem:[%s884_s1 + $0x68] sm:$0xff]  }
   0x4   :  { %530 = vmatprep.subr.bf16.mxu0 %v610_v2  ;;  %593 = vmatprep.subr.bf16.mxu1 %v610_v2  ;;  %v615_v7 = vld [vmem:[%s884_s1 + $0x18] sm:$0xff]   ;;  %v617_v9 = vld [vmem:[%s884_s1 + $0x20] sm:$0xff]   ;;  %v619_v13 = vld [vmem:[%s884_s1 + $0x28] sm:$0xff]   ;;  %vm345_vm0 = vcmp.lt.s32.totalorder %v769_v37, 32 }
   0x5   :  { %v626_v11 = vld [vmem:[%s885_s0 + $0x4] ss:$8 sps:$4 sm:$0xff]   ;;  %v620_v14 = vld [vmem:[%s884_s1 + $0x70] sm:$0xff]   ;;  %v622_v16 = vld [vmem:[%s884_s1 + $0x78] sm:$0xff]  }
   0x6   :  { %v629_v12 = vld [vmem:[%s885_s0 + $0x44] ss:$8 sps:$4 sm:$0xff]   ;;  %278 = vmatprep.mubr.bf16.mxu0 %v626_v11  ;;  %v621_v15 = vld [vmem:[%s884_s1 + $0x30] sm:$0xff]   ;;  %v623_v17 = vld [vmem:[%s884_s1 + $0x38] sm:$0xff]  }
   0x7   :  { %531 = vmatpush3.bf16.msra.mxu0 %v611_v3  ;;  %601 = vmatpush3.bf16.msra.mxu1 %v611_v3  ;;  %v624_v18 = vld [vmem:[%s885_s0] ss:$8 sps:$4 sm:$0xff]   ;;  %v630_v20 = vld [vmem:[%s885_s0 + $0x14] ss:$8 sps:$4 sm:$0xff]   ;;  %v634_v22 = vld [vmem:[%s885_s0 + $0x10] ss:$8 sps:$4 sm:$0xff]  }
   0x8   :  { %532 = vmatprep.subr.bf16.mxu0 %v612_v4  ;;  %594 = vmatprep.subr.bf16.mxu1 %v612_v4  ;;  %v627_v19 = vld [vmem:[%s885_s0 + $0x40] ss:$8 sps:$4 sm:$0xff]   ;;  %v632_v21 = vld [vmem:[%s885_s0 + $0x54] ss:$8 sps:$4 sm:$0xff]   ;;  %v635_v23 = vld [vmem:[%s885_s0 + $0x50] ss:$8 sps:$4 sm:$0xff]  }
   0x9   :  { %310 = vmatprep.mubr.bf16.mxu1 %v629_v12  ;;  %v636_v24 = vld [vmem:[%s885_s0 + $0x24] ss:$8 sps:$4 sm:$0xff]   ;;  %v640_v26 = vld [vmem:[%s885_s0 + $0x20] ss:$8 sps:$4 sm:$0xff]   ;;  %v642_v28 = vld [vmem:[%s885_s0 + $0x34] ss:$8 sps:$4 sm:$0xff]  }
   0xa   :  { %v638_v25 = vld [vmem:[%s885_s0 + $0x64] ss:$8 sps:$4 sm:$0xff]   ;;  %v641_v27 = vld [vmem:[%s885_s0 + $0x60] ss:$8 sps:$4 sm:$0xff]   ;;  %v644_v29 = vld [vmem:[%s885_s0 + $0x74] ss:$8 sps:$4 sm:$0xff]  }
   0xb   :  { %533 = vmatpush3.bf16.msra.mxu0 %v613_v5  ;;  %602 = vmatpush3.bf16.msra.mxu1 %v613_v5  ;;  %v646_v30 = vld [vmem:[%s885_s0 + $0x30] ss:$8 sps:$4 sm:$0xff]   ;;  %v767_v35 = vld [vmem:[%s886_s2] ss:$0 sm:$0xff] }
   0xc   :  { %534 = vmatprep.subr.bf16.mxu0 %v614_v6  ;;  %595 = vmatprep.subr.bf16.mxu1 %v614_v6  ;;  %v647_v31 = vld [vmem:[%s885_s0 + $0x70] ss:$8 sps:$4 sm:$0xff]  }
   0xf   :  { %535 = vmatpush3.bf16.msra.mxu0 %v615_v7  ;;  %603 = vmatpush3.bf16.msra.mxu1 %v615_v7 }
  0x10   :  { %536 = vmatprep.subr.bf16.mxu0 %v616_v8  ;;  %596 = vmatprep.subr.bf16.mxu1 %v616_v8 }
  0x13   :  { %537 = vmatpush3.bf16.msra.mxu0 %v617_v9  ;;  %604 = vmatpush3.bf16.msra.mxu1 %v617_v9 }
  0x14   :  { %538 = vmatprep.subr.bf16.mxu0 %v618_v10  ;;  %597 = vmatprep.subr.bf16.mxu1 %v618_v10 }
  0x17   :  { %539 = vmatpush3.bf16.msra.mxu0 %v619_v13  ;;  %605 = vmatpush3.bf16.msra.mxu1 %v619_v13 }
  0x18   :  { %540 = vmatprep.subr.bf16.mxu0 %v620_v14  ;;  %598 = vmatprep.subr.bf16.mxu1 %v620_v14 }
  0x1b   :  { %541 = vmatpush3.bf16.msra.mxu0 %v621_v15  ;;  %606 = vmatpush3.bf16.msra.mxu1 %v621_v15 }
  0x1c   :  { %542 = vmatprep.subr.bf16.mxu0 %v622_v16  ;;  %599 = vmatprep.subr.bf16.mxu1 %v622_v16 }
  0x1f   :  { %543 = vmatpush3.bf16.msra.mxu0 %v623_v17  ;;  %607 = vmatpush3.bf16.msra.mxu1 %v623_v17 }
  0x22   :  { %279 = vmatmul.mubr.bf16.vlgmr.msra.gmra.mrb[0].mxu0 %v624_v18  ;;  %311 = vmatmul.mubr.bf16.vlgmr.msra.gmra.mrb[0].mxu1 %v627_v19 }
  0x23   :  { %286 = vmatprep.mubr.bf16.mxu0 %v630_v20  ;;  %318 = vmatprep.mubr.bf16.mxu1 %v632_v21 }
  0x2a   :  { %287 = vmatmul.mubr.bf16.gmra.mrb[4].mxu0 %v634_v22  ;;  %319 = vmatmul.mubr.bf16.gmra.mrb[4].mxu1 %v635_v23 }
  0x2b   :  { %294 = vmatprep.mubr.bf16.mxu0 %v636_v24  ;;  %326 = vmatprep.mubr.bf16.mxu1 %v638_v25 }
  0x32   :  { %295 = vmatmul.mubr.bf16.gmra.mrb[8].mxu0 %v640_v26  ;;  %327 = vmatmul.mubr.bf16.gmra.mrb[8].mxu1 %v641_v27 }
  0x33   :  { %302 = vmatprep.mubr.bf16.mxu0 %v642_v28  ;;  %334 = vmatprep.mubr.bf16.mxu1 %v644_v29 }
  0x3a   :  { %303 = vmatmul.mubr.bf16.gmra.mrb[12].mxu0 %v646_v30  ;;  %335 = vmatmul.mubr.bf16.gmra.mrb[12].mxu1 %v647_v31 }
  0xf5   :  { %v544_v33 = vpop.f32.mrb[0].mxu0  ;;  %v568_v34 = vpop.f32.mrb[0].mxu1 }
  0xf6   :  { %v545_v36 = vpop.f32.mrb[1].mxu0  ;;  %v569_v38 = vpop.f32.mrb[1].mxu1 }
  0xf7   :  { %v546_v39 = vadd.f32 %v545_v36, %v544_v33  ;;  %v570_v40 = vadd.f32 %v569_v38, %v568_v34  ;;  %v547_v41 = vpop.f32.mrb[2].mxu0  ;;  %v571_v42 = vpop.f32.mrb[2].mxu1 }
  0xf8   :  { %v548_v43 = vpop.f32.mrb[3].mxu0  ;;  %v572_v44 = vpop.f32.mrb[3].mxu1 }
  0xf9   :  { %v281_v45 = vadd.f32 %v546_v39, %v767_v35  ;;  %v313_v46 = vadd.f32 %v570_v40, %v767_v35  ;;  %v549_v47 = vadd.f32 %v548_v43, %v547_v41  ;;  %v573_v48 = vadd.f32 %v572_v44, %v571_v42 }
  0xfb   :  { %v346_v49 = vmax.f32 %v281_v45, 0.0  ;;  %v354_v50 = vmax.f32 %v313_v46, 0.0  ;;  %v284_v51 = vadd.f32 %v549_v47, %v767_v35  ;;  %v316_v52 = vadd.f32 %v573_v48, %v767_v35 }
  0xfd   :  { %v362_v53 = vsel %vm345_vm0, %v346_v49, %v281_v45  ;;  %v370_v54 = vsel %vm345_vm0, %v354_v50, %v313_v46  ;;  %v347_v55 = vmax.f32 %v284_v51, 0.0  ;;  %v355_v56 = vmax.f32 %v316_v52, 0.0  ;;  %v550_v57 = vpop.f32.mrb[4].mxu0  ;;  %v574_v58 = vpop.f32.mrb[4].mxu1 }
  0xfe   :  { %v512_v59 = vpack.c.bf16 %v362_v53, %v362_v53  ;;  %v520_v60 = vpack.c.bf16 %v370_v54, %v370_v54  ;;  %v551_v61 = vpop.f32.mrb[5].mxu0  ;;  %v575_v62 = vpop.f32.mrb[5].mxu1 }
  0xff   :  { %v363_v63 = vsel %vm345_vm0, %v347_v55, %v284_v51  ;;  %v371_v0 = vsel %vm345_vm0, %v355_v56, %v316_v52  ;;  %v552_v1 = vadd.f32 %v551_v61, %v550_v57  ;;  %v576_v2 = vadd.f32 %v575_v62, %v574_v58  ;;  %v553_v3 = vpop.f32.mrb[6].mxu0  ;;  %v577_v4 = vpop.f32.mrb[6].mxu1 }
 0x100   :  { %443 = vst.msk [vmem:[%s887_s3] sm:$0xf] %vm442_vm1, %v512_v59  ;;  %451 = vst.msk [vmem:[%s887_s3 + $0x20] sm:$0xf] %vm442_vm1, %v520_v60  ;;  %v513_v5 = vpack.c.bf16 %v363_v63, %v363_v63  ;;  %v521_v6 = vpack.c.bf16 %v371_v0, %v371_v0  ;;  %v554_v7 = vpop.f32.mrb[7].mxu0  ;;  %v578_v8 = vpop.f32.mrb[7].mxu1 }
 0x101   :  { %v289_v9 = vadd.f32 %v552_v1, %v767_v35  ;;  %v321_v10 = vadd.f32 %v576_v2, %v767_v35  ;;  %v555_v11 = vadd.f32 %v554_v7, %v553_v3  ;;  %v579_v12 = vadd.f32 %v578_v8, %v577_v4 }
 0x102   :  { %444 = vst.msk [vmem:[%s887_s3 + $0x4] sm:$0xf] %vm442_vm1, %v513_v5  ;;  %452 = vst.msk [vmem:[%s887_s3 + $0x24] sm:$0xf] %vm442_vm1, %v521_v6 }
 0x103   :  { %v348_v13 = vmax.f32 %v289_v9, 0.0  ;;  %v356_v14 = vmax.f32 %v321_v10, 0.0  ;;  %v292_v15 = vadd.f32 %v555_v11, %v767_v35  ;;  %v324_v16 = vadd.f32 %v579_v12, %v767_v35 }
 0x105   :  { %v364_v17 = vsel %vm345_vm0, %v348_v13, %v289_v9  ;;  %v372_v18 = vsel %vm345_vm0, %v356_v14, %v321_v10  ;;  %v349_v19 = vmax.f32 %v292_v15, 0.0  ;;  %v357_v20 = vmax.f32 %v324_v16, 0.0  ;;  %v556_v21 = vpop.f32.mrb[8].mxu0  ;;  %v580_v22 = vpop.f32.mrb[8].mxu1 }
 0x106   :  { %v514_v23 = vpack.c.bf16 %v364_v17, %v364_v17  ;;  %v522_v24 = vpack.c.bf16 %v372_v18, %v372_v18  ;;  %v557_v25 = vpop.f32.mrb[9].mxu0  ;;  %v581_v26 = vpop.f32.mrb[9].mxu1 }
 0x107   :  { %v365_v27 = vsel %vm345_vm0, %v349_v19, %v292_v15  ;;  %v373_v28 = vsel %vm345_vm0, %v357_v20, %v324_v16  ;;  %v558_v29 = vadd.f32 %v557_v25, %v556_v21  ;;  %v582_v30 = vadd.f32 %v581_v26, %v580_v22  ;;  %v559_v31 = vpop.f32.mrb[10].mxu0  ;;  %v583_v32 = vpop.f32.mrb[10].mxu1 }
 0x108   :  { %445 = vst.msk [vmem:[%s887_s3 + $0x8] sm:$0xf] %vm442_vm1, %v514_v23  ;;  %453 = vst.msk [vmem:[%s887_s3 + $0x28] sm:$0xf] %vm442_vm1, %v522_v24  ;;  %v515_v33 = vpack.c.bf16 %v365_v27, %v365_v27  ;;  %v523_v34 = vpack.c.bf16 %v373_v28, %v373_v28  ;;  %v560_v36 = vpop.f32.mrb[11].mxu0  ;;  %v584_v38 = vpop.f32.mrb[11].mxu1 }
 0x109   :  { %v297_v39 = vadd.f32 %v558_v29, %v767_v35  ;;  %v329_v40 = vadd.f32 %v582_v30, %v767_v35  ;;  %v561_v41 = vadd.f32 %v560_v36, %v559_v31  ;;  %v585_v42 = vadd.f32 %v584_v38, %v583_v32 }
 0x10a   :  { %446 = vst.msk [vmem:[%s887_s3 + $0xc] sm:$0xf] %vm442_vm1, %v515_v33  ;;  %454 = vst.msk [vmem:[%s887_s3 + $0x2c] sm:$0xf] %vm442_vm1, %v523_v34 }
 0x10b   :  { %v350_v43 = vmax.f32 %v297_v39, 0.0  ;;  %v358_v44 = vmax.f32 %v329_v40, 0.0  ;;  %v300_v45 = vadd.f32 %v561_v41, %v767_v35  ;;  %v332_v46 = vadd.f32 %v585_v42, %v767_v35 }
 0x10d   :  { %v366_v47 = vsel %vm345_vm0, %v350_v43, %v297_v39  ;;  %v374_v48 = vsel %vm345_vm0, %v358_v44, %v329_v40  ;;  %v351_v49 = vmax.f32 %v300_v45, 0.0  ;;  %v359_v50 = vmax.f32 %v332_v46, 0.0  ;;  %v562_v51 = vpop.f32.mrb[12].mxu0  ;;  %v586_v52 = vpop.f32.mrb[12].mxu1 }
 0x10e   :  { %v516_v53 = vpack.c.bf16 %v366_v47, %v366_v47  ;;  %v524_v54 = vpack.c.bf16 %v374_v48, %v374_v48  ;;  %v563_v55 = vpop.f32.mrb[13].mxu0  ;;  %v587_v56 = vpop.f32.mrb[13].mxu1 }
 0x10f   :  { %v367_v57 = vsel %vm345_vm0, %v351_v49, %v300_v45  ;;  %v375_v58 = vsel %vm345_vm0, %v359_v50, %v332_v46  ;;  %v564_v59 = vadd.f32 %v563_v55, %v562_v51  ;;  %v588_v60 = vadd.f32 %v587_v56, %v586_v52  ;;  %v565_v61 = vpop.f32.mrb[14].mxu0  ;;  %v589_v62 = vpop.f32.mrb[14].mxu1 }
 0x110   :  { %447 = vst.msk [vmem:[%s887_s3 + $0x10] sm:$0xf] %vm442_vm1, %v516_v53  ;;  %455 = vst.msk [vmem:[%s887_s3 + $0x30] sm:$0xf] %vm442_vm1, %v524_v54  ;;  %v517_v63 = vpack.c.bf16 %v367_v57, %v367_v57  ;;  %v525_v0 = vpack.c.bf16 %v375_v58, %v375_v58  ;;  %v566_v1 = vpop.f32.mrb[15].mxu0  ;;  %v590_v2 = vpop.f32.mrb[15].mxu1 }
 0x111   :  { %v305_v3 = vadd.f32 %v564_v59, %v767_v35  ;;  %v337_v4 = vadd.f32 %v588_v60, %v767_v35  ;;  %v567_v5 = vadd.f32 %v566_v1, %v565_v61  ;;  %v591_v6 = vadd.f32 %v590_v2, %v589_v62 }
 0x112   :  { %448 = vst.msk [vmem:[%s887_s3 + $0x14] sm:$0xf] %vm442_vm1, %v517_v63  ;;  %456 = vst.msk [vmem:[%s887_s3 + $0x34] sm:$0xf] %vm442_vm1, %v525_v0 }
 0x113   :  { %v352_v7 = vmax.f32 %v305_v3, 0.0  ;;  %v360_v8 = vmax.f32 %v337_v4, 0.0  ;;  %v308_v9 = vadd.f32 %v567_v5, %v767_v35  ;;  %v340_v10 = vadd.f32 %v591_v6, %v767_v35 }
 0x115   :  { %v368_v11 = vsel %vm345_vm0, %v352_v7, %v305_v3  ;;  %v376_v12 = vsel %vm345_vm0, %v360_v8, %v337_v4  ;;  %v353_v13 = vmax.f32 %v308_v9, 0.0  ;;  %v361_v14 = vmax.f32 %v340_v10, 0.0 }
 0x116   :  { %v518_v15 = vpack.c.bf16 %v368_v11, %v368_v11  ;;  %v526_v16 = vpack.c.bf16 %v376_v12, %v376_v12 }
 0x117   :  { %v369_v17 = vsel %vm345_vm0, %v353_v13, %v308_v9  ;;  %v377_v18 = vsel %vm345_vm0, %v361_v14, %v340_v10 }
 0x118   :  { %449 = vst.msk [vmem:[%s887_s3 + $0x18] sm:$0xf] %vm442_vm1, %v518_v15  ;;  %457 = vst.msk [vmem:[%s887_s3 + $0x38] sm:$0xf] %vm442_vm1, %v526_v16  ;;  %v519_v35 = vpack.c.bf16 %v369_v17, %v369_v17  ;;  %v527_v19 = vpack.c.bf16 %v377_v18, %v377_v18 }
 0x11a   :  { %450 = vst.msk [vmem:[%s887_s3 + $0x1c] sm:$0xf] %vm442_vm1, %v519_v35  ;;  %458 = vst.msk [vmem:[%s887_s3 + $0x3c] sm:$0xf] %vm442_vm1, %v527_v19 }

// kernel: resnet_forward.21
= control target key start
LH: loop header
LB: loop body
LE: loop exit
PB: predicated region body
PF: predicated region fallthrough
CT: control target
= control target key end

     0   :  { %vm648_vm0 = vcmask 257024   ;;  %s1173_s1 = inlined_call_operand.vmem [shape: bf16[384,32], index: 1, kind: input, shape index: {}]   ;;  %s1174_s0 = inlined_call_operand.vmem [shape: bf16[128,384], index: 0, kind: input, shape index: {}]   ;;  %s1175_s2 = inlined_call_operand.vmem [shape: f32[1,32], index: 2, kind: input, shape index: {}]   ;;  %s1176_s3 = inlined_call_operand.vmem [shape: bf16[128,32], index: 3, kind: output, shape index: {}]  }
   0x1   :  { %v862_v0 = vld [vmem:[%s1173_s1 + $0x40] sm:$0xff]   ;;  %v864_v2 = vld [vmem:[%s1173_s1 + $0x48] sm:$0xff]   ;;  %v867_v5 = vld [vmem:[%s1173_s1 + $0x50] sm:$0xff]  }
   0x2   :  { %v863_v1 = vld [vmem:[%s1173_s1] sm:$0xff]   ;;  %750 = vmatprep.subr.bf16.mxu0 %v862_v0  ;;  %v866_v4 = vld [vmem:[%s1173_s1 + $0x8] sm:$0xff]   ;;  %v869_v7 = vld [vmem:[%s1173_s1 + $0x10] sm:$0xff]  }
   0x3   :  { %751 = vmatpush3.bf16.msra.mxu0 %v863_v1  ;;  %v865_v3 = vld [vmem:[%s1173_s1 + $0x80] sm:$0xff]   ;;  %v868_v6 = vld [vmem:[%s1173_s1 + $0x88] sm:$0xff]   ;;  %v870_v8 = vld [vmem:[%s1173_s1 + $0x58] sm:$0xff]  }
   0x4   :  { %752 = vmatprep.subr.bf16.mxu0 %v864_v2  ;;  %830 = vmatprep.subr.bf16.mxu1 %v865_v3  ;;  %v871_v9 = vld [vmem:[%s1173_s1 + $0x90] sm:$0xff]   ;;  %v872_v10 = vld [vmem:[%s1173_s1 + $0x18] sm:$0xff]   ;;  %v873_v11 = vld [vmem:[%s1173_s1 + $0x60] sm:$0xff]  }
   0x5   :  { %831 = vmatpush3.bf16.msra.mxu1 %v865_v3  ;;  %v874_v12 = vld [vmem:[%s1173_s1 + $0x98] sm:$0xff]   ;;  %v875_v13 = vld [vmem:[%s1173_s1 + $0x20] sm:$0xff]   ;;  %v876_v15 = vld [vmem:[%s1173_s1 + $0x68] sm:$0xff]  }
   0x6   :  { %832 = vmatprep.subr.bf16.mxu1 %v868_v6  ;;  %v877_v14 = vld [vmem:[%s1173_s1 + $0xa0] sm:$0xff]   ;;  %v878_v16 = vld [vmem:[%s1173_s1 + $0x28] sm:$0xff]   ;;  %v879_v18 = vld [vmem:[%s1173_s1 + $0x70] sm:$0xff]  }
   0x7   :  { %753 = vmatpush3.bf16.msra.mxu0 %v866_v4  ;;  %v880_v17 = vld [vmem:[%s1173_s1 + $0xa8] sm:$0xff]   ;;  %v881_v19 = vld [vmem:[%s1173_s1 + $0x30] sm:$0xff]   ;;  %v882_v20 = vld [vmem:[%s1173_s1 + $0x78] sm:$0xff]  }
   0x8   :  { %754 = vmatprep.subr.bf16.mxu0 %v867_v5  ;;  %v883_v21 = vld [vmem:[%s1173_s1 + $0xb0] sm:$0xff]   ;;  %v884_v23 = vld [vmem:[%s1173_s1 + $0x38] sm:$0xff]   ;;  %v885_v26 = vld [vmem:[%s1174_s0] ss:$12 sps:$4 sm:$0xff]  }
   0x9   :  { %833 = vmatpush3.bf16.msra.mxu1 %v868_v6  ;;  %v887_v22 = vld [vmem:[%s1174_s0 + $0x4] ss:$12 sps:$4 sm:$0xff]   ;;  %v889_v24 = vld [vmem:[%s1174_s0 + $0x8] ss:$12 sps:$4 sm:$0xff]   ;;  %v888_v25 = vld [vmem:[%s1173_s1 + $0xb8] sm:$0xff]  }
   0xa   :  { %834 = vmatprep.subr.bf16.mxu1 %v871_v9  ;;  %406 = vmatprep.mubr.bf16.mxu0 %v887_v22  ;;  %v891_v27 = vld [vmem:[%s1174_s0 + $0x1c] ss:$12 sps:$4 sm:$0xff]   ;;  %v890_v28 = vld [vmem:[%s1174_s0 + $0x20] ss:$12 sps:$4 sm:$0xff]   ;;  %v897_v29 = vld [vmem:[%s1174_s0 + $0x38] ss:$12 sps:$4 sm:$0xff]  }
   0xb   :  { %755 = vmatpush3.bf16.msra.mxu0 %v869_v7  ;;  %846 = vmatprep.mubr.bf16.mxu1 %v889_v24  ;;  %v893_v30 = vld [vmem:[%s1174_s0 + $0x18] ss:$12 sps:$4 sm:$0xff]   ;;  %v894_v31 = vld [vmem:[%s1174_s0 + $0x34] ss:$12 sps:$4 sm:$0xff]   ;;  %v898_v32 = vld [vmem:[%s1174_s0 + $0x50] ss:$12 sps:$4 sm:$0xff]  }
   0xc   :  { %756 = vmatprep.subr.bf16.mxu0 %v870_v8  ;;  %v905_v33 = vld [vmem:[%s1174_s0 + $0x68] ss:$12 sps:$4 sm:$0xff]   ;;  %v896_v34 = vld [vmem:[%s1174_s0 + $0x30] ss:$12 sps:$4 sm:$0xff]   ;;  %v899_v35 = vld [vmem:[%s1174_s0 + $0x4c] ss:$12 sps:$4 sm:$0xff]  }
   0xd   :  { %835 = vmatpush3.bf16.msra.mxu1 %v871_v9  ;;  %v906_v36 = vld [vmem:[%s1174_s0 + $0x80] ss:$12 sps:$4 sm:$0xff]   ;;  %v913_v37 = vld [vmem:[%s1174_s0 + $0x98] ss:$12 sps:$4 sm:$0xff]   ;;  %v901_v38 = vld [vmem:[%s1174_s0 + $0x48] ss:$12 sps:$4 sm:$0xff]  }
   0xe   :  { %836 = vmatprep.subr.bf16.mxu1 %v874_v12  ;;  %v902_v39 = vld [vmem:[%s1174_s0 + $0x64] ss:$12 sps:$4 sm:$0xff]   ;;  %v904_v41 = vld [vmem:[%s1174_s0 + $0x60] ss:$12 sps:$4 sm:$0xff]   ;;  %v907_v42 = vld [vmem:[%s1174_s0 + $0x7c] ss:$12 sps:$4 sm:$0xff]  }
   0xf   :  { %757 = vmatpush3.bf16.msra.mxu0 %v872_v10  ;;  %v914_v40 = vld [vmem:[%s1174_s0 + $0xb0] ss:$12 sps:$4 sm:$0xff]   ;;  %v909_v43 = vld [vmem:[%s1174_s0 + $0x78] ss:$12 sps:$4 sm:$0xff]   ;;  %v910_v44 = vld [vmem:[%s1174_s0 + $0x94] ss:$12 sps:$4 sm:$0xff]  }
  0x10   :  { %758 = vmatprep.subr.bf16.mxu0 %v873_v11  ;;  %v912_v45 = vld [vmem:[%s1174_s0 + $0x90] ss:$12 sps:$4 sm:$0xff]   ;;  %v915_v46 = vld [vmem:[%s1174_s0 + $0xac] ss:$12 sps:$4 sm:$0xff]   ;;  %v917_v47 = vld [vmem:[%s1174_s0 + $0xa8] ss:$12 sps:$4 sm:$0xff]  }
  0x11   :  { %837 = vmatpush3.bf16.msra.mxu1 %v874_v12  ;;  %v1085_v50 = vld [vmem:[%s1175_s2] ss:$0 sm:$0xff] }
  0x12   :  { %838 = vmatprep.subr.bf16.mxu1 %v877_v14 }
  0x13   :  { %759 = vmatpush3.bf16.msra.mxu0 %v875_v13 }
  0x14   :  { %760 = vmatprep.subr.bf16.mxu0 %v876_v15 }
  0x15   :  { %839 = vmatpush3.bf16.msra.mxu1 %v877_v14 }
  0x16   :  { %840 = vmatprep.subr.bf16.mxu1 %v880_v17 }
  0x17   :  { %761 = vmatpush3.bf16.msra.mxu0 %v878_v16 }
  0x18   :  { %762 = vmatprep.subr.bf16.mxu0 %v879_v18 }
  0x19   :  { %841 = vmatpush3.bf16.msra.mxu1 %v880_v17 }
  0x1a   :  { %842 = vmatprep.subr.bf16.mxu1 %v883_v21 }
  0x1b   :  { %763 = vmatpush3.bf16.msra.mxu0 %v881_v19 }
  0x1c   :  { %764 = vmatprep.subr.bf16.mxu0 %v882_v20 }
  0x1d   :  { %843 = vmatpush3.bf16.msra.mxu1 %v883_v21 }
  0x1e   :  { %844 = vmatprep.subr.bf16.mxu1 %v888_v25 }
  0x1f   :  { %765 = vmatpush3.bf16.msra.mxu0 %v884_v23 }
  0x21   :  { %845 = vmatpush3.bf16.msra.mxu1 %v888_v25 }
  0x22   :  { %407 = vmatmul.mubr.bf16.vlgmr.msra.gmra.mrb[0].mxu0 %v885_v26 }
  0x23   :  { %414 = vmatprep.mubr.bf16.mxu0 %v891_v27 }
  0x24   :  { %847 = vmatmul.mubr.bf16.vlgmr.msra.gmra.mrb[0].mxu1 %v890_v28 }
  0x25   :  { %850 = vmatprep.mubr.bf16.mxu1 %v897_v29 }
  0x2a   :  { %415 = vmatmul.mubr.bf16.gmra.mrb[4].mxu0 %v893_v30 }
  0x2b   :  { %422 = vmatprep.mubr.bf16.mxu0 %v894_v31 }
  0x2c   :  { %851 = vmatmul.mubr.bf16.gmra.mrb[4].mxu1 %v898_v32 }
  0x2d   :  { %854 = vmatprep.mubr.bf16.mxu1 %v905_v33 }
  0x32   :  { %423 = vmatmul.mubr.bf16.gmra.mrb[8].mxu0 %v896_v34 }
  0x33   :  { %430 = vmatprep.mubr.bf16.mxu0 %v899_v35 }
  0x34   :  { %855 = vmatmul.mubr.bf16.gmra.mrb[8].mxu1 %v906_v36 }
  0x35   :  { %858 = vmatprep.mubr.bf16.mxu1 %v913_v37 }
  0x3a   :  { %431 = vmatmul.mubr.bf16.gmra.mrb[12].mxu0 %v901_v38 }
  0x3b   :  { %438 = vmatprep.mubr.bf16.mxu0 %v902_v39 }
  0x3c   :  { %859 = vmatmul.mubr.bf16.gmra.mrb[12].mxu1 %v914_v40 }
  0x42   :  { %439 = vmatmul.mubr.bf16.gmra.mrb[16].mxu0 %v904_v41 }
  0x43   :  { %446 = vmatprep.mubr.bf16.mxu0 %v907_v42 }
  0x4a   :  { %447 = vmatmul.mubr.bf16.gmra.mrb[20].mxu0 %v909_v43 }
  0x4b   :  { %454 = vmatprep.mubr.bf16.mxu0 %v910_v44 }
  0x52   :  { %455 = vmatmul.mubr.bf16.gmra.mrb[24].mxu0 %v912_v45 }
  0x53   :  { %462 = vmatprep.mubr.bf16.mxu0 %v915_v46 }
  0x5a   :  { %463 = vmatmul.mubr.bf16.gmra.mrb[28].mxu0 %v917_v47 }
  0xf5   :  { %v766_v48 = vpop.f32.mrb[0].mxu0 }
  0xf6   :  { %v767_v49 = vpop.f32.mrb[1].mxu0 }
  0xf7   :  { %v768_v51 = vadd.f32 %v767_v49, %v766_v48  ;;  %v769_v52 = vpop.f32.mrb[2].mxu0  ;;  %v848_v54 = vpop.f32.mrb[0].mxu1 }
  0xf8   :  { %v770_v53 = vpop.f32.mrb[3].mxu0  ;;  %v505_v57 = vpop.f32.mrb[1].mxu1 }
  0xf9   :  { %v771_v55 = vadd.f32 %v770_v53, %v769_v52  ;;  %v409_v56 = vadd.f32 %v768_v51, %v1085_v50  ;;  %v849_v58 = vpop.f32.mrb[2].mxu1 }
  0xfa   :  { %v508_v61 = vpop.f32.mrb[3].mxu1 }
  0xfb   :  { %v506_v59 = vadd.f32 %v505_v57, %v409_v56  ;;  %v412_v60 = vadd.f32 %v771_v55, %v1085_v50 }
  0xfd   :  { %v568_v62 = vmax.f32 %v506_v59, 0.0  ;;  %v509_v63 = vadd.f32 %v508_v61, %v412_v60  ;;  %v772_v0 = vpop.f32.mrb[4].mxu0 }
  0xfe   :  { %v773_v1 = vpop.f32.mrb[5].mxu0 }
  0xff   :  { %v734_v2 = vpack.c.bf16 %v568_v62, %v568_v62  ;;  %v569_v3 = vmax.f32 %v509_v63, 0.0  ;;  %v774_v4 = vadd.f32 %v773_v1, %v772_v0  ;;  %v775_v5 = vpop.f32.mrb[6].mxu0  ;;  %v852_v7 = vpop.f32.mrb[4].mxu1 }
 0x100   :  { %v776_v6 = vpop.f32.mrb[7].mxu0  ;;  %v521_v11 = vpop.f32.mrb[5].mxu1 }
 0x101   :  { %649 = vst.msk [vmem:[%s1176_s3] sm:$0xf] %vm648_vm0, %v734_v2  ;;  %v735_v8 = vpack.c.bf16 %v569_v3, %v569_v3  ;;  %v417_v9 = vadd.f32 %v774_v4, %v1085_v50  ;;  %v777_v10 = vadd.f32 %v776_v6, %v775_v5  ;;  %v853_v12 = vpop.f32.mrb[6].mxu1 }
 0x102   :  { %v524_v15 = vpop.f32.mrb[7].mxu1 }
 0x103   :  { %650 = vst.msk [vmem:[%s1176_s3 + $0x4] sm:$0xf] %vm648_vm0, %v735_v8  ;;  %v514_v13 = vadd.f32 %v848_v54, %v417_v9  ;;  %v420_v14 = vadd.f32 %v777_v10, %v1085_v50 }
 0x105   :  { %v570_v16 = vmax.f32 %v514_v13, 0.0  ;;  %v517_v17 = vadd.f32 %v849_v58, %v420_v14  ;;  %v778_v18 = vpop.f32.mrb[8].mxu0 }
 0x106   :  { %v779_v19 = vpop.f32.mrb[9].mxu0 }
 0x107   :  { %v736_v20 = vpack.c.bf16 %v570_v16, %v570_v16  ;;  %v571_v21 = vmax.f32 %v517_v17, 0.0  ;;  %v780_v22 = vadd.f32 %v779_v19, %v778_v18  ;;  %v781_v23 = vpop.f32.mrb[10].mxu0  ;;  %v856_v25 = vpop.f32.mrb[8].mxu1 }
 0x108   :  { %v782_v24 = vpop.f32.mrb[11].mxu0  ;;  %v537_v29 = vpop.f32.mrb[9].mxu1 }
 0x109   :  { %651 = vst.msk [vmem:[%s1176_s3 + $0x8] sm:$0xf] %vm648_vm0, %v736_v20  ;;  %v737_v26 = vpack.c.bf16 %v571_v21, %v571_v21  ;;  %v783_v27 = vadd.f32 %v782_v24, %v781_v23  ;;  %v425_v28 = vadd.f32 %v780_v22, %v1085_v50  ;;  %v857_v30 = vpop.f32.mrb[10].mxu1 }
 0x10a   :  { %v540_v33 = vpop.f32.mrb[11].mxu1 }
 0x10b   :  { %652 = vst.msk [vmem:[%s1176_s3 + $0xc] sm:$0xf] %vm648_vm0, %v737_v26  ;;  %v522_v31 = vadd.f32 %v521_v11, %v425_v28  ;;  %v428_v32 = vadd.f32 %v783_v27, %v1085_v50 }
 0x10d   :  { %v572_v34 = vmax.f32 %v522_v31, 0.0  ;;  %v525_v35 = vadd.f32 %v524_v15, %v428_v32  ;;  %v784_v36 = vpop.f32.mrb[12].mxu0 }
 0x10e   :  { %v785_v37 = vpop.f32.mrb[13].mxu0 }
 0x10f   :  { %v738_v38 = vpack.c.bf16 %v572_v34, %v572_v34  ;;  %v573_v39 = vmax.f32 %v525_v35, 0.0  ;;  %v786_v40 = vadd.f32 %v785_v37, %v784_v36  ;;  %v787_v41 = vpop.f32.mrb[14].mxu0  ;;  %v1109_v43 = vpop.f32.mrb[12].mxu1 }
 0x110   :  { %v788_v42 = vpop.f32.mrb[15].mxu0  ;;  %v553_v47 = vpop.f32.mrb[13].mxu1 }
 0x111   :  { %653 = vst.msk [vmem:[%s1176_s3 + $0x10] sm:$0xf] %vm648_vm0, %v738_v38  ;;  %v739_v44 = vpack.c.bf16 %v573_v39, %v573_v39  ;;  %v433_v45 = vadd.f32 %v786_v40, %v1085_v50  ;;  %v789_v46 = vadd.f32 %v788_v42, %v787_v41  ;;  %v1116_v48 = vpop.f32.mrb[14].mxu1 }
 0x112   :  { %v556_v52 = vpop.f32.mrb[15].mxu1 }
 0x113   :  { %654 = vst.msk [vmem:[%s1176_s3 + $0x14] sm:$0xf] %vm648_vm0, %v739_v44  ;;  %v530_v49 = vadd.f32 %v852_v7, %v433_v45  ;;  %v436_v51 = vadd.f32 %v789_v46, %v1085_v50 }
 0x115   :  { %v574_v53 = vmax.f32 %v530_v49, 0.0  ;;  %v533_v54 = vadd.f32 %v853_v12, %v436_v51  ;;  %v790_v55 = vpop.f32.mrb[16].mxu0 }
 0x116   :  { %v791_v56 = vpop.f32.mrb[17].mxu0 }
 0x117   :  { %v740_v57 = vpack.c.bf16 %v574_v53, %v574_v53  ;;  %v575_v58 = vmax.f32 %v533_v54, 0.0  ;;  %v792_v59 = vadd.f32 %v791_v56, %v790_v55  ;;  %v793_v60 = vpop.f32.mrb[18].mxu0 }
 0x118   :  { %v794_v61 = vpop.f32.mrb[19].mxu0 }
 0x119   :  { %655 = vst.msk [vmem:[%s1176_s3 + $0x18] sm:$0xf] %vm648_vm0, %v740_v57  ;;  %v741_v62 = vpack.c.bf16 %v575_v58, %v575_v58  ;;  %v795_v63 = vadd.f32 %v794_v61, %v793_v60  ;;  %v441_v0 = vadd.f32 %v792_v59, %v1085_v50 }
 0x11b   :  { %656 = vst.msk [vmem:[%s1176_s3 + $0x1c] sm:$0xf] %vm648_vm0, %v741_v62  ;;  %v538_v1 = vadd.f32 %v537_v29, %v441_v0  ;;  %v444_v2 = vadd.f32 %v795_v63, %v1085_v50 }
 0x11d   :  { %v576_v3 = vmax.f32 %v538_v1, 0.0  ;;  %v541_v4 = vadd.f32 %v540_v33, %v444_v2  ;;  %v796_v5 = vpop.f32.mrb[20].mxu0 }
 0x11e   :  { %v797_v6 = vpop.f32.mrb[21].mxu0 }
 0x11f   :  { %v742_v7 = vpack.c.bf16 %v576_v3, %v576_v3  ;;  %v577_v8 = vmax.f32 %v541_v4, 0.0  ;;  %v798_v9 = vadd.f32 %v797_v6, %v796_v5  ;;  %v799_v10 = vpop.f32.mrb[22].mxu0 }
 0x120   :  { %v800_v11 = vpop.f32.mrb[23].mxu0 }
 0x121   :  { %657 = vst.msk [vmem:[%s1176_s3 + $0x20] sm:$0xf] %vm648_vm0, %v742_v7  ;;  %v743_v12 = vpack.c.bf16 %v577_v8, %v577_v8  ;;  %v449_v13 = vadd.f32 %v798_v9, %v1085_v50  ;;  %v801_v14 = vadd.f32 %v800_v11, %v799_v10 }
 0x123   :  { %658 = vst.msk [vmem:[%s1176_s3 + $0x24] sm:$0xf] %vm648_vm0, %v743_v12  ;;  %v546_v15 = vadd.f32 %v856_v25, %v449_v13  ;;  %v452_v16 = vadd.f32 %v801_v14, %v1085_v50 }
 0x125   :  { %v578_v17 = vmax.f32 %v546_v15, 0.0  ;;  %v549_v18 = vadd.f32 %v857_v30, %v452_v16  ;;  %v802_v19 = vpop.f32.mrb[24].mxu0 }
 0x126   :  { %v803_v20 = vpop.f32.mrb[25].mxu0 }
 0x127   :  { %v744_v21 = vpack.c.bf16 %v578_v17, %v578_v17  ;;  %v579_v22 = vmax.f32 %v549_v18, 0.0  ;;  %v804_v23 = vadd.f32 %v803_v20, %v802_v19  ;;  %v805_v24 = vpop.f32.mrb[26].mxu0 }
 0x128   :  { %v806_v26 = vpop.f32.mrb[27].mxu0 }
 0x129   :  { %659 = vst.msk [vmem:[%s1176_s3 + $0x28] sm:$0xf] %vm648_vm0, %v744_v21  ;;  %v745_v27 = vpack.c.bf16 %v579_v22, %v579_v22  ;;  %v807_v28 = vadd.f32 %v806_v26, %v805_v24  ;;  %v457_v25 = vadd.f32 %v804_v23, %v1085_v50 }
 0x12b   :  { %660 = vst.msk [vmem:[%s1176_s3 + $0x2c] sm:$0xf] %vm648_vm0, %v745_v27  ;;  %v554_v29 = vadd.f32 %v553_v47, %v457_v25  ;;  %v460_v30 = vadd.f32 %v807_v28, %v1085_v50 }
 0x12d   :  { %v580_v31 = vmax.f32 %v554_v29, 0.0  ;;  %v557_v32 = vadd.f32 %v556_v52, %v460_v30  ;;  %v808_v33 = vpop.f32.mrb[28].mxu0 }
 0x12e   :  { %v809_v34 = vpop.f32.mrb[29].mxu0 }
 0x12f   :  { %v746_v35 = vpack.c.bf16 %v580_v31, %v580_v31  ;;  %v581_v36 = vmax.f32 %v557_v32, 0.0  ;;  %v810_v37 = vadd.f32 %v809_v34, %v808_v33  ;;  %v811_v38 = vpop.f32.mrb[30].mxu0 }
 0x130   :  { %v812_v39 = vpop.f32.mrb[31].mxu0 }
 0x131   :  { %661 = vst.msk [vmem:[%s1176_s3 + $0x30] sm:$0xf] %vm648_vm0, %v746_v35  ;;  %v747_v40 = vpack.c.bf16 %v581_v36, %v581_v36  ;;  %v465_v41 = vadd.f32 %v810_v37, %v1085_v50  ;;  %v813_v42 = vadd.f32 %v812_v39, %v811_v38 }
 0x133   :  { %662 = vst.msk [vmem:[%s1176_s3 + $0x34] sm:$0xf] %vm648_vm0, %v747_v40  ;;  %v562_v44 = vadd.f32 %v1109_v43, %v465_v41  ;;  %v468_v45 = vadd.f32 %v813_v42, %v1085_v50 }
 0x135   :  { %v582_v46 = vmax.f32 %v562_v44, 0.0  ;;  %v565_v47 = vadd.f32 %v1116_v48, %v468_v45 }
 0x137   :  { %v748_v49 = vpack.c.bf16 %v582_v46, %v582_v46  ;;  %v583_v51 = vmax.f32 %v565_v47, 0.0 }
 0x139   :  { %663 = vst.msk [vmem:[%s1176_s3 + $0x38] sm:$0xf] %vm648_vm0, %v748_v49  ;;  %v749_v52 = vpack.c.bf16 %v583_v51, %v583_v51 }
 0x13b   :  { %664 = vst.msk [vmem:[%s1176_s3 + $0x3c] sm:$0xf] %vm648_vm0, %v749_v52 }

// kernel: resnet_forward.20
= control target key start
LH: loop header
LB: loop body
LE: loop exit
PB: predicated region body
PF: predicated region fallthrough
CT: control target
= control target key end

     0   :  { %vm699_vm0 = vcmask 257024   ;;  %s1304_s1 = inlined_call_operand.vmem [shape: bf16[384,32], index: 1, kind: input, shape index: {}]   ;;  %s1305_s0 = inlined_call_operand.vmem [shape: bf16[128,384], index: 0, kind: input, shape index: {}]   ;;  %s1306_s2 = inlined_call_operand.vmem [shape: f32[1,32], index: 2, kind: input, shape index: {}]   ;;  %s1307_s3 = inlined_call_operand.vmem [shape: bf16[128,32], index: 3, kind: input, shape index: {}]   ;;  %s1308_s4 = inlined_call_operand.vmem [shape: bf16[128,32], index: 4, kind: output, shape index: {}]  }
   0x1   :  { %v952_v0 = vld [vmem:[%s1304_s1 + $0x40] sm:$0xff]   ;;  %v954_v2 = vld [vmem:[%s1304_s1 + $0x48] sm:$0xff]   ;;  %v957_v5 = vld [vmem:[%s1304_s1 + $0x50] sm:$0xff]  }
   0x2   :  { %v953_v1 = vld [vmem:[%s1304_s1] sm:$0xff]   ;;  %840 = vmatprep.subr.bf16.mxu0 %v952_v0  ;;  %v956_v4 = vld [vmem:[%s1304_s1 + $0x8] sm:$0xff]   ;;  %v959_v7 = vld [vmem:[%s1304_s1 + $0x10] sm:$0xff]  }
   0x3   :  { %841 = vmatpush3.bf16.msra.mxu0 %v953_v1  ;;  %v955_v3 = vld [vmem:[%s1304_s1 + $0x80] sm:$0xff]   ;;  %v958_v6 = vld [vmem:[%s1304_s1 + $0x88] sm:$0xff]   ;;  %v960_v8 = vld [vmem:[%s1304_s1 + $0x58] sm:$0xff]  }
   0x4   :  { %842 = vmatprep.subr.bf16.mxu0 %v954_v2  ;;  %920 = vmatprep.subr.bf16.mxu1 %v955_v3  ;;  %v961_v9 = vld [vmem:[%s1304_s1 + $0x90] sm:$0xff]   ;;  %v962_v10 = vld [vmem:[%s1304_s1 + $0x18] sm:$0xff]   ;;  %v963_v11 = vld [vmem:[%s1304_s1 + $0x60] sm:$0xff]  }
   0x5   :  { %921 = vmatpush3.bf16.msra.mxu1 %v955_v3  ;;  %v964_v12 = vld [vmem:[%s1304_s1 + $0x98] sm:$0xff]   ;;  %v965_v13 = vld [vmem:[%s1304_s1 + $0x20] sm:$0xff]   ;;  %v966_v15 = vld [vmem:[%s1304_s1 + $0x68] sm:$0xff]  }
   0x6   :  { %922 = vmatprep.subr.bf16.mxu1 %v958_v6  ;;  %v967_v14 = vld [vmem:[%s1304_s1 + $0xa0] sm:$0xff]   ;;  %v968_v16 = vld [vmem:[%s1304_s1 + $0x28] sm:$0xff]   ;;  %v969_v18 = vld [vmem:[%s1304_s1 + $0x70] sm:$0xff]  }
   0x7   :  { %843 = vmatpush3.bf16.msra.mxu0 %v956_v4  ;;  %v970_v17 = vld [vmem:[%s1304_s1 + $0xa8] sm:$0xff]   ;;  %v971_v19 = vld [vmem:[%s1304_s1 + $0x30] sm:$0xff]   ;;  %v972_v20 = vld [vmem:[%s1304_s1 + $0x78] sm:$0xff]  }
   0x8   :  { %844 = vmatprep.subr.bf16.mxu0 %v957_v5  ;;  %v973_v21 = vld [vmem:[%s1304_s1 + $0xb0] sm:$0xff]   ;;  %v974_v23 = vld [vmem:[%s1304_s1 + $0x38] sm:$0xff]   ;;  %v975_v26 = vld [vmem:[%s1305_s0] ss:$12 sps:$4 sm:$0xff]  }
   0x9   :  { %923 = vmatpush3.bf16.msra.mxu1 %v958_v6  ;;  %v977_v22 = vld [vmem:[%s1305_s0 + $0x4] ss:$12 sps:$4 sm:$0xff]   ;;  %v979_v24 = vld [vmem:[%s1305_s0 + $0x8] ss:$12 sps:$4 sm:$0xff]   ;;  %v978_v25 = vld [vmem:[%s1304_s1 + $0xb8] sm:$0xff]  }
   0xa   :  { %924 = vmatprep.subr.bf16.mxu1 %v961_v9  ;;  %409 = vmatprep.mubr.bf16.mxu0 %v977_v22  ;;  %v981_v27 = vld [vmem:[%s1305_s0 + $0x1c] ss:$12 sps:$4 sm:$0xff]   ;;  %v980_v28 = vld [vmem:[%s1305_s0 + $0x20] ss:$12 sps:$4 sm:$0xff]   ;;  %v987_v29 = vld [vmem:[%s1305_s0 + $0x38] ss:$12 sps:$4 sm:$0xff]  }
   0xb   :  { %845 = vmatpush3.bf16.msra.mxu0 %v959_v7  ;;  %936 = vmatprep.mubr.bf16.mxu1 %v979_v24  ;;  %v983_v30 = vld [vmem:[%s1305_s0 + $0x18] ss:$12 sps:$4 sm:$0xff]   ;;  %v984_v31 = vld [vmem:[%s1305_s0 + $0x34] ss:$12 sps:$4 sm:$0xff]   ;;  %v988_v32 = vld [vmem:[%s1305_s0 + $0x50] ss:$12 sps:$4 sm:$0xff]  }
   0xc   :  { %846 = vmatprep.subr.bf16.mxu0 %v960_v8  ;;  %v995_v33 = vld [vmem:[%s1305_s0 + $0x68] ss:$12 sps:$4 sm:$0xff]   ;;  %v986_v34 = vld [vmem:[%s1305_s0 + $0x30] ss:$12 sps:$4 sm:$0xff]   ;;  %v989_v35 = vld [vmem:[%s1305_s0 + $0x4c] ss:$12 sps:$4 sm:$0xff]  }
   0xd   :  { %925 = vmatpush3.bf16.msra.mxu1 %v961_v9  ;;  %v996_v36 = vld [vmem:[%s1305_s0 + $0x80] ss:$12 sps:$4 sm:$0xff]   ;;  %v1003_v37 = vld [vmem:[%s1305_s0 + $0x98] ss:$12 sps:$4 sm:$0xff]   ;;  %v991_v38 = vld [vmem:[%s1305_s0 + $0x48] ss:$12 sps:$4 sm:$0xff]  }
   0xe   :  { %926 = vmatprep.subr.bf16.mxu1 %v964_v12  ;;  %v992_v39 = vld [vmem:[%s1305_s0 + $0x64] ss:$12 sps:$4 sm:$0xff]   ;;  %v994_v41 = vld [vmem:[%s1305_s0 + $0x60] ss:$12 sps:$4 sm:$0xff]   ;;  %v997_v42 = vld [vmem:[%s1305_s0 + $0x7c] ss:$12 sps:$4 sm:$0xff]  }
   0xf   :  { %847 = vmatpush3.bf16.msra.mxu0 %v962_v10  ;;  %v1004_v40 = vld [vmem:[%s1305_s0 + $0xb0] ss:$12 sps:$4 sm:$0xff]   ;;  %v999_v43 = vld [vmem:[%s1305_s0 + $0x78] ss:$12 sps:$4 sm:$0xff]   ;;  %v1000_v44 = vld [vmem:[%s1305_s0 + $0x94] ss:$12 sps:$4 sm:$0xff]  }
  0x10   :  { %848 = vmatprep.subr.bf16.mxu0 %v963_v11  ;;  %v1002_v45 = vld [vmem:[%s1305_s0 + $0x90] ss:$12 sps:$4 sm:$0xff]   ;;  %v1005_v46 = vld [vmem:[%s1305_s0 + $0xac] ss:$12 sps:$4 sm:$0xff]   ;;  %v1007_v47 = vld [vmem:[%s1305_s0 + $0xa8] ss:$12 sps:$4 sm:$0xff]  }
  0x11   :  { %927 = vmatpush3.bf16.msra.mxu1 %v964_v12  ;;  %v1180_v50 = vld [vmem:[%s1306_s2] ss:$0 sm:$0xff]  ;;  %v833_v4 = vld [vmem:[%s1307_s3 + $0x8] sm:$0xff]  }
  0x12   :  { %928 = vmatprep.subr.bf16.mxu1 %v967_v14  ;;  %v802_v51 = vld [vmem:[%s1307_s3] sm:$0xff]   ;;  %v807_v10 = vunpack.c.l.bf16 %v833_v4  ;;  %v808_v22 = vunpack.c.h.bf16 %v833_v4 }
  0x13   :  { %849 = vmatpush3.bf16.msra.mxu0 %v965_v13  ;;  %v803_v59 = vunpack.c.l.bf16 %v802_v51  ;;  %v804_v0 = vunpack.c.h.bf16 %v802_v51  ;;  %v835_v51 = vld [vmem:[%s1307_s3 + $0x18] sm:$0xff]  }
  0x14   :  { %850 = vmatprep.subr.bf16.mxu0 %v966_v15 }
  0x15   :  { %929 = vmatpush3.bf16.msra.mxu1 %v967_v14 }
  0x16   :  { %930 = vmatprep.subr.bf16.mxu1 %v970_v17 }
  0x17   :  { %851 = vmatpush3.bf16.msra.mxu0 %v968_v16 }
  0x18   :  { %852 = vmatprep.subr.bf16.mxu0 %v969_v18 }
  0x19   :  { %931 = vmatpush3.bf16.msra.mxu1 %v970_v17 }
  0x1a   :  { %932 = vmatprep.subr.bf16.mxu1 %v973_v21 }
  0x1b   :  { %853 = vmatpush3.bf16.msra.mxu0 %v971_v19 }
  0x1c   :  { %854 = vmatprep.subr.bf16.mxu0 %v972_v20 }
  0x1d   :  { %933 = vmatpush3.bf16.msra.mxu1 %v973_v21 }
  0x1e   :  { %934 = vmatprep.subr.bf16.mxu1 %v978_v25 }
  0x1f   :  { %855 = vmatpush3.bf16.msra.mxu0 %v974_v23 }
  0x21   :  { %935 = vmatpush3.bf16.msra.mxu1 %v978_v25 }
  0x22   :  { %410 = vmatmul.mubr.bf16.vlgmr.msra.gmra.mrb[0].mxu0 %v975_v26 }
  0x23   :  { %417 = vmatprep.mubr.bf16.mxu0 %v981_v27  ;;  %v834_v27 = vld [vmem:[%s1307_s3 + $0x10] sm:$0xff]  }
  0x24   :  { %937 = vmatmul.mubr.bf16.vlgmr.msra.gmra.mrb[0].mxu1 %v980_v28 }
  0x25   :  { %940 = vmatprep.mubr.bf16.mxu1 %v987_v29 }
  0x2a   :  { %418 = vmatmul.mubr.bf16.gmra.mrb[4].mxu0 %v983_v30 }
  0x2b   :  { %425 = vmatprep.mubr.bf16.mxu0 %v984_v31 }
  0x2c   :  { %941 = vmatmul.mubr.bf16.gmra.mrb[4].mxu1 %v988_v32 }
  0x2d   :  { %944 = vmatprep.mubr.bf16.mxu1 %v995_v33 }
  0x32   :  { %426 = vmatmul.mubr.bf16.gmra.mrb[8].mxu0 %v986_v34  ;;  %v811_v34 = vunpack.c.l.bf16 %v834_v27 }
  0x33   :  { %433 = vmatprep.mubr.bf16.mxu0 %v989_v35 }
  0x34   :  { %945 = vmatmul.mubr.bf16.gmra.mrb[8].mxu1 %v996_v36 }
  0x35   :  { %948 = vmatprep.mubr.bf16.mxu1 %v1003_v37 }
  0x3a   :  { %434 = vmatmul.mubr.bf16.gmra.mrb[12].mxu0 %v991_v38 }
  0x3b   :  { %441 = vmatprep.mubr.bf16.mxu0 %v992_v39 }
  0x3c   :  { %949 = vmatmul.mubr.bf16.gmra.mrb[12].mxu1 %v1004_v40 }
  0x42   :  { %442 = vmatmul.mubr.bf16.gmra.mrb[16].mxu0 %v994_v41 }
  0x43   :  { %449 = vmatprep.mubr.bf16.mxu0 %v997_v42 }
  0x4a   :  { %450 = vmatmul.mubr.bf16.gmra.mrb[20].mxu0 %v999_v43 }
  0x4b   :  { %457 = vmatprep.mubr.bf16.mxu0 %v1000_v44 }
  0x52   :  { %458 = vmatmul.mubr.bf16.gmra.mrb[24].mxu0 %v1002_v45  ;;  %v812_v45 = vunpack.c.h.bf16 %v834_v27 }
  0x53   :  { %465 = vmatprep.mubr.bf16.mxu0 %v1005_v46 }
  0x5a   :  { %466 = vmatmul.mubr.bf16.gmra.mrb[28].mxu0 %v1007_v47 }
  0xf5   :  { %v856_v48 = vpop.f32.mrb[0].mxu0 }
  0xf6   :  { %v857_v49 = vpop.f32.mrb[1].mxu0 }
  0xf7   :  { %v858_v52 = vadd.f32 %v857_v49, %v856_v48  ;;  %v859_v53 = vpop.f32.mrb[2].mxu0  ;;  %v938_v55 = vpop.f32.mrb[0].mxu1 }
  0xf8   :  { %v860_v54 = vpop.f32.mrb[3].mxu0  ;;  %v508_v58 = vpop.f32.mrb[1].mxu1 }
  0xf9   :  { %v861_v56 = vadd.f32 %v860_v54, %v859_v53  ;;  %v412_v57 = vadd.f32 %v858_v52, %v1180_v50  ;;  %v939_v60 = vpop.f32.mrb[2].mxu1 }
  0xfa   :  { %v511_v63 = vpop.f32.mrb[3].mxu1 }
  0xfb   :  { %v509_v61 = vadd.f32 %v508_v58, %v412_v57  ;;  %v415_v62 = vadd.f32 %v861_v56, %v1180_v50  ;;  %v815_v57 = vunpack.c.l.bf16 %v835_v51 }
  0xfd   :  { %v603_v1 = vadd.f32 %v803_v59, %v509_v61  ;;  %v512_v2 = vadd.f32 %v511_v63, %v415_v62  ;;  %v862_v3 = vpop.f32.mrb[4].mxu0 }
  0xfe   :  { %v863_v5 = vpop.f32.mrb[5].mxu0 }
  0xff   :  { %v619_v6 = vmax.f32 %v603_v1, 0.0  ;;  %v604_v7 = vadd.f32 %v804_v0, %v512_v2  ;;  %v864_v8 = vadd.f32 %v863_v5, %v862_v3  ;;  %v865_v9 = vpop.f32.mrb[6].mxu0  ;;  %v942_v12 = vpop.f32.mrb[4].mxu1  ;;  %v816_v5 = vunpack.c.h.bf16 %v835_v51  ;;  %v838_v51 = vld [vmem:[%s1307_s3 + $0x30] sm:$0xff]  }
 0x100   :  { %v866_v11 = vpop.f32.mrb[7].mxu0  ;;  %v524_v17 = vpop.f32.mrb[5].mxu1 }
 0x101   :  { %v785_v13 = vpack.c.bf16 %v619_v6, %v619_v6  ;;  %v620_v14 = vmax.f32 %v604_v7, 0.0  ;;  %v420_v15 = vadd.f32 %v864_v8, %v1180_v50  ;;  %v867_v16 = vadd.f32 %v866_v11, %v865_v9  ;;  %v943_v18 = vpop.f32.mrb[6].mxu1 }
 0x102   :  { %v527_v23 = vpop.f32.mrb[7].mxu1 }
 0x103   :  { %700 = vst.msk [vmem:[%s1308_s4] sm:$0xf] %vm699_vm0, %v785_v13  ;;  %v786_v19 = vpack.c.bf16 %v620_v14, %v620_v14  ;;  %v517_v20 = vadd.f32 %v938_v55, %v420_v15  ;;  %v423_v21 = vadd.f32 %v867_v16, %v1180_v50 }
 0x105   :  { %701 = vst.msk [vmem:[%s1308_s4 + $0x4] sm:$0xf] %vm699_vm0, %v786_v19  ;;  %v605_v24 = vadd.f32 %v807_v10, %v517_v20  ;;  %v520_v25 = vadd.f32 %v939_v60, %v423_v21  ;;  %v868_v26 = vpop.f32.mrb[8].mxu0  ;;  %v836_v10 = vld [vmem:[%s1307_s3 + $0x20] sm:$0xff]  }
 0x106   :  { %v869_v28 = vpop.f32.mrb[9].mxu0 }
 0x107   :  { %v621_v29 = vmax.f32 %v605_v24, 0.0  ;;  %v606_v30 = vadd.f32 %v808_v22, %v520_v25  ;;  %v870_v31 = vadd.f32 %v869_v28, %v868_v26  ;;  %v871_v32 = vpop.f32.mrb[10].mxu0  ;;  %v1203_v35 = vpop.f32.mrb[8].mxu1  ;;  %v820_v25 = vunpack.c.h.bf16 %v836_v10 }
 0x108   :  { %v872_v33 = vpop.f32.mrb[11].mxu0  ;;  %v540_v40 = vpop.f32.mrb[9].mxu1 }
 0x109   :  { %v787_v36 = vpack.c.bf16 %v621_v29, %v621_v29  ;;  %v622_v37 = vmax.f32 %v606_v30, 0.0  ;;  %v873_v38 = vadd.f32 %v872_v33, %v871_v32  ;;  %v428_v39 = vadd.f32 %v870_v31, %v1180_v50  ;;  %v1206_v41 = vpop.f32.mrb[10].mxu1  ;;  %v837_v29 = vld [vmem:[%s1307_s3 + $0x28] sm:$0xff]  }
 0x10a   :  { %v543_v46 = vpop.f32.mrb[11].mxu1 }
 0x10b   :  { %702 = vst.msk [vmem:[%s1308_s4 + $0x8] sm:$0xf] %vm699_vm0, %v787_v36  ;;  %v788_v42 = vpack.c.bf16 %v622_v37, %v622_v37  ;;  %v525_v43 = vadd.f32 %v524_v17, %v428_v39  ;;  %v431_v44 = vadd.f32 %v873_v38, %v1180_v50  ;;  %v819_v17 = vunpack.c.l.bf16 %v836_v10 }
 0x10c   :  { %v823_v36 = vunpack.c.l.bf16 %v837_v29 }
 0x10d   :  { %703 = vst.msk [vmem:[%s1308_s4 + $0xc] sm:$0xf] %vm699_vm0, %v788_v42  ;;  %v607_v47 = vadd.f32 %v811_v34, %v525_v43  ;;  %v528_v48 = vadd.f32 %v527_v23, %v431_v44  ;;  %v874_v49 = vpop.f32.mrb[12].mxu0 }
 0x10e   :  { %v875_v52 = vpop.f32.mrb[13].mxu0 }
 0x10f   :  { %v623_v53 = vmax.f32 %v607_v47, 0.0  ;;  %v608_v54 = vadd.f32 %v812_v45, %v528_v48  ;;  %v876_v55 = vadd.f32 %v875_v52, %v874_v49  ;;  %v877_v56 = vpop.f32.mrb[14].mxu0  ;;  %v1220_v59 = vpop.f32.mrb[12].mxu1 }
 0x110   :  { %v878_v58 = vpop.f32.mrb[15].mxu0  ;;  %v1223_v0 = vpop.f32.mrb[13].mxu1 }
 0x111   :  { %v789_v60 = vpack.c.bf16 %v623_v53, %v623_v53  ;;  %v624_v61 = vmax.f32 %v608_v54, 0.0  ;;  %v436_v62 = vadd.f32 %v876_v55, %v1180_v50  ;;  %v879_v63 = vadd.f32 %v878_v58, %v877_v56  ;;  %v1225_v1 = vpop.f32.mrb[14].mxu1 }
 0x112   :  { %v1232_v6 = vpop.f32.mrb[15].mxu1 }
 0x113   :  { %704 = vst.msk [vmem:[%s1308_s4 + $0x10] sm:$0xf] %vm699_vm0, %v789_v60  ;;  %v790_v2 = vpack.c.bf16 %v624_v61, %v624_v61  ;;  %v533_v3 = vadd.f32 %v942_v12, %v436_v62  ;;  %v439_v4 = vadd.f32 %v879_v63, %v1180_v50 }
 0x115   :  { %705 = vst.msk [vmem:[%s1308_s4 + $0x14] sm:$0xf] %vm699_vm0, %v790_v2  ;;  %v609_v7 = vadd.f32 %v815_v57, %v533_v3  ;;  %v536_v8 = vadd.f32 %v943_v18, %v439_v4  ;;  %v880_v9 = vpop.f32.mrb[16].mxu0  ;;  %v827_v57 = vunpack.c.l.bf16 %v838_v51  ;;  %v828_v3 = vunpack.c.h.bf16 %v838_v51 }
 0x116   :  { %v881_v11 = vpop.f32.mrb[17].mxu0 }
 0x117   :  { %v625_v13 = vmax.f32 %v609_v7, 0.0  ;;  %v610_v12 = vadd.f32 %v816_v5, %v536_v8  ;;  %v882_v14 = vadd.f32 %v881_v11, %v880_v9  ;;  %v883_v15 = vpop.f32.mrb[18].mxu0  ;;  %v839_v8 = vld [vmem:[%s1307_s3 + $0x38] sm:$0xff]  }
 0x118   :  { %v884_v16 = vpop.f32.mrb[19].mxu0 }
 0x119   :  { %v791_v19 = vpack.c.bf16 %v625_v13, %v625_v13  ;;  %v626_v20 = vmax.f32 %v610_v12, 0.0  ;;  %v885_v21 = vadd.f32 %v884_v16, %v883_v15  ;;  %v444_v22 = vadd.f32 %v882_v14, %v1180_v50 }
 0x11a   :  { %v831_v12 = vunpack.c.l.bf16 %v839_v8 }
 0x11b   :  { %706 = vst.msk [vmem:[%s1308_s4 + $0x18] sm:$0xf] %vm699_vm0, %v791_v19  ;;  %v792_v18 = vpack.c.bf16 %v626_v20, %v626_v20  ;;  %v541_v23 = vadd.f32 %v540_v40, %v444_v22  ;;  %v447_v24 = vadd.f32 %v885_v21, %v1180_v50  ;;  %v832_v22 = vunpack.c.h.bf16 %v839_v8 }
 0x11d   :  { %707 = vst.msk [vmem:[%s1308_s4 + $0x1c] sm:$0xf] %vm699_vm0, %v792_v18  ;;  %v611_v26 = vadd.f32 %v819_v17, %v541_v23  ;;  %v544_v27 = vadd.f32 %v543_v46, %v447_v24  ;;  %v886_v28 = vpop.f32.mrb[20].mxu0  ;;  %v824_v46 = vunpack.c.h.bf16 %v837_v29 }
 0x11e   :  { %v887_v30 = vpop.f32.mrb[21].mxu0 }
 0x11f   :  { %v627_v31 = vmax.f32 %v611_v26, 0.0  ;;  %v612_v32 = vadd.f32 %v820_v25, %v544_v27  ;;  %v888_v33 = vadd.f32 %v887_v30, %v886_v28  ;;  %v889_v34 = vpop.f32.mrb[22].mxu0 }
 0x120   :  { %v890_v37 = vpop.f32.mrb[23].mxu0 }
 0x121   :  { %v793_v38 = vpack.c.bf16 %v627_v31, %v627_v31  ;;  %v628_v39 = vmax.f32 %v612_v32, 0.0  ;;  %v452_v40 = vadd.f32 %v888_v33, %v1180_v50  ;;  %v891_v42 = vadd.f32 %v890_v37, %v889_v34 }
 0x123   :  { %708 = vst.msk [vmem:[%s1308_s4 + $0x20] sm:$0xf] %vm699_vm0, %v793_v38  ;;  %v794_v43 = vpack.c.bf16 %v628_v39, %v628_v39  ;;  %v549_v44 = vadd.f32 %v1203_v35, %v452_v40  ;;  %v455_v45 = vadd.f32 %v891_v42, %v1180_v50 }
 0x125   :  { %709 = vst.msk [vmem:[%s1308_s4 + $0x24] sm:$0xf] %vm699_vm0, %v794_v43  ;;  %v613_v47 = vadd.f32 %v823_v36, %v549_v44  ;;  %v552_v48 = vadd.f32 %v1206_v41, %v455_v45  ;;  %v892_v49 = vpop.f32.mrb[24].mxu0 }
 0x126   :  { %v893_v52 = vpop.f32.mrb[25].mxu0 }
 0x127   :  { %v629_v53 = vmax.f32 %v613_v47, 0.0  ;;  %v614_v54 = vadd.f32 %v824_v46, %v552_v48  ;;  %v894_v35 = vadd.f32 %v893_v52, %v892_v49  ;;  %v895_v55 = vpop.f32.mrb[26].mxu0 }
 0x128   :  { %v896_v56 = vpop.f32.mrb[27].mxu0 }
 0x129   :  { %v795_v58 = vpack.c.bf16 %v629_v53, %v629_v53  ;;  %v630_v60 = vmax.f32 %v614_v54, 0.0  ;;  %v897_v61 = vadd.f32 %v896_v56, %v895_v55  ;;  %v460_v62 = vadd.f32 %v894_v35, %v1180_v50 }
 0x12b   :  { %710 = vst.msk [vmem:[%s1308_s4 + $0x28] sm:$0xf] %vm699_vm0, %v795_v58  ;;  %v796_v41 = vpack.c.bf16 %v630_v60, %v630_v60  ;;  %v557_v63 = vadd.f32 %v1223_v0, %v460_v62  ;;  %v463_v2 = vadd.f32 %v897_v61, %v1180_v50 }
 0x12d   :  { %711 = vst.msk [vmem:[%s1308_s4 + $0x2c] sm:$0xf] %vm699_vm0, %v796_v41  ;;  %v615_v4 = vadd.f32 %v827_v57, %v557_v63  ;;  %v560_v5 = vadd.f32 %v1232_v6, %v463_v2  ;;  %v898_v7 = vpop.f32.mrb[28].mxu0 }
 0x12e   :  { %v899_v9 = vpop.f32.mrb[29].mxu0 }
 0x12f   :  { %v631_v10 = vmax.f32 %v615_v4, 0.0  ;;  %v616_v11 = vadd.f32 %v828_v3, %v560_v5  ;;  %v900_v0 = vadd.f32 %v899_v9, %v898_v7  ;;  %v901_v13 = vpop.f32.mrb[30].mxu0 }
 0x130   :  { %v902_v14 = vpop.f32.mrb[31].mxu0 }
 0x131   :  { %v797_v15 = vpack.c.bf16 %v631_v10, %v631_v10  ;;  %v632_v16 = vmax.f32 %v616_v11, 0.0  ;;  %v468_v17 = vadd.f32 %v900_v0, %v1180_v50  ;;  %v903_v19 = vadd.f32 %v902_v14, %v901_v13 }
 0x133   :  { %712 = vst.msk [vmem:[%s1308_s4 + $0x30] sm:$0xf] %vm699_vm0, %v797_v15  ;;  %v798_v6 = vpack.c.bf16 %v632_v16, %v632_v16  ;;  %v565_v20 = vadd.f32 %v1220_v59, %v468_v17  ;;  %v471_v21 = vadd.f32 %v903_v19, %v1180_v50 }
 0x135   :  { %713 = vst.msk [vmem:[%s1308_s4 + $0x34] sm:$0xf] %vm699_vm0, %v798_v6  ;;  %v617_v18 = vadd.f32 %v831_v12, %v565_v20  ;;  %v568_v23 = vadd.f32 %v1225_v1, %v471_v21 }
 0x137   :  { %v633_v24 = vmax.f32 %v617_v18, 0.0  ;;  %v618_v25 = vadd.f32 %v832_v22, %v568_v23 }
 0x139   :  { %v799_v26 = vpack.c.bf16 %v633_v24, %v633_v24  ;;  %v634_v27 = vmax.f32 %v618_v25, 0.0 }
 0x13b   :  { %714 = vst.msk [vmem:[%s1308_s4 + $0x38] sm:$0xf] %vm699_vm0, %v799_v26  ;;  %v800_v59 = vpack.c.bf16 %v634_v27, %v634_v27 }
 0x13d   :  { %715 = vst.msk [vmem:[%s1308_s4 + $0x3c] sm:$0xf] %vm699_vm0, %v800_v59 }

// kernel: resnet_forward.23
= control target key start
LH: loop header
LB: loop body
LE: loop exit
PB: predicated region body
PF: predicated region fallthrough
CT: control target
= control target key end

     0   :  { %vm252_vm0 = vcmask 261120   ;;  %vm1648_vm1 = vcmask 523264   ;;  %vm2959_vm2 = vcmask 519168   ;;  %s4777_s0 = inlined_call_operand.vmem [shape: bf16[128,32], index: 0, kind: input, shape index: {}]   ;;  %s4778_s1 = inlined_call_operand.vmem [shape: bf16[9,32,128], index: 1, kind: input, shape index: {}]   ;;  %s4779_s2 = inlined_call_operand.vmem [shape: bf16[288,64], index: 2, kind: input, shape index: {}]   ;;  %s4780_s4 = inlined_call_operand.vmem [shape: bf16[32,64], index: 4, kind: input, shape index: {}]   ;;  %s4781_s6 = inlined_call_operand.vmem [shape: bf16[9,32,32], index: 6, kind: input, shape index: {}]   ;;  %s4782_s7 = inlined_call_operand.vmem [shape: bf16[576,64], index: 7, kind: input, shape index: {}]   ;;  %s4783_s3 = inlined_call_operand.vmem [shape: f32[1,64], index: 3, kind: input, shape index: {}]   ;;  %s4784_s5 = inlined_call_operand.vmem [shape: f32[1,64], index: 5, kind: input, shape index: {}]   ;;  %s4785_s8 = inlined_call_operand.vmem [shape: f32[1,64], index: 8, kind: input, shape index: {}]   ;;  %s4786_s9 = inlined_call_operand.vmem [shape: bf16[32,64], index: 9, kind: output, shape index: {}]  }
   0x1   :  { %v4088_v0 = vld [vmem:[%s4777_s0] sm:$0xff]   ;;  %v4093_v1 = vld [vmem:[%s4777_s0 + $0x8] sm:$0xff]   ;;  %v4103_v2 = vld [vmem:[%s4777_s0 + $0x10] sm:$0xff]  }
   0x2   :  { %3419 = vmatprep.subr.bf16.mxu0 %v4088_v0  ;;  %3475 = vmatprep.subr.bf16.mxu1 %v4088_v0  ;;  %v4110_v3 = vld [vmem:[%s4777_s0 + $0x18] sm:$0xff]   ;;  %v3943_v4 = vld [vmem:[%s4778_s1] sm:$0xff]   ;;  %v4133_v7 = vld [vmem:[%s4777_s0 + $0x28] sm:$0xff]  }
   0x3   :  { %3420 = vmatpush3.bf16.msra.mxu0 %v4088_v0  ;;  %3476 = vmatpush3.bf16.msra.mxu1 %v4088_v0  ;;  %v4122_v5 = vld [vmem:[%s4777_s0 + $0x20] sm:$0xff]   ;;  %v4142_v8 = vld [vmem:[%s4777_s0 + $0x30] sm:$0xff]   ;;  %v4154_v9 = vld [vmem:[%s4777_s0 + $0x38] sm:$0xff]  }
   0x4   :  { %3421 = vmatprep.subr.bf16.mxu0 %v4093_v1  ;;  %3477 = vmatprep.subr.bf16.mxu1 %v4093_v1  ;;  %v3947_v6 = vld [vmem:[%s4778_s1 + $0x20] sm:$0xff]   ;;  %v3944_v10 = vld [vmem:[%s4778_s1 + $0x8] sm:$0xff]   ;;  %v3945_v12 = vld [vmem:[%s4778_s1 + $0x10] sm:$0xff]  }
   0x5   :  { %3435 = vmatprep.mubr.bf16.mxu0 %v3943_v4  ;;  %3491 = vmatprep.mubr.bf16.mxu1 %v3947_v6  ;;  %v3948_v11 = vld [vmem:[%s4778_s1 + $0x28] sm:$0xff]   ;;  %v3946_v13 = vld [vmem:[%s4778_s1 + $0x18] sm:$0xff]   ;;  %v3949_v14 = vld [vmem:[%s4779_s2 + $0x10] sm:$0xff]  }
   0x6   :  { %v3950_v15 = vld [vmem:[%s4779_s2 + $0x18] sm:$0xff]   ;;  %v4217_v16 = vld [vmem:[%s4779_s2] sm:$0xff]   ;;  %v3956_v18 = vld [vmem:[%s4778_s1 + $0x48] sm:$0xff]  }
   0x7   :  { %3422 = vmatpush3.bf16.msra.mxu0 %v4093_v1  ;;  %3478 = vmatpush3.bf16.msra.mxu1 %v4093_v1  ;;  %v3955_v17 = vld [vmem:[%s4778_s1 + $0x40] sm:$0xff]   ;;  %v3959_v19 = vld [vmem:[%s4778_s1 + $0x50] sm:$0xff]   ;;  %v3960_v20 = vld [vmem:[%s4778_s1 + $0x58] sm:$0xff]  }
   0x8   :  { %3423 = vmatprep.subr.bf16.mxu0 %v4103_v2  ;;  %3479 = vmatprep.subr.bf16.mxu1 %v4103_v2  ;;  %v3961_v21 = vld [vmem:[%s4778_s1 + $0x70] sm:$0xff]   ;;  %v3963_v34 = vld [vmem:[%s4780_s4] sm:$0xff]   ;;  %v3962_v35 = vld [vmem:[%s4778_s1 + $0x78] sm:$0xff]  }
   0x9   :  { %v3952_v42 = vld [vmem:[%s4779_s2 + $0x8] sm:$0xff]   ;;  %v3953_v43 = vld [vmem:[%s4779_s2 + $0x20] sm:$0xff]   ;;  %v3957_v46 = vld [vmem:[%s4778_s1 + $0x30] sm:$0xff]  }
   0xa   :  { %v3964_v44 = vld [vmem:[%s4780_s4 + $0x8] sm:$0xff]   ;;  %v3965_v47 = vld [vmem:[%s4779_s2 + $0x30] sm:$0xff]   ;;  %v3958_v48 = vld [vmem:[%s4778_s1 + $0x38] sm:$0xff]  }
   0xb   :  { %3424 = vmatpush3.bf16.msra.mxu0 %v4103_v2  ;;  %3480 = vmatpush3.bf16.msra.mxu1 %v4103_v2  ;;  %v3954_v45 = vld [vmem:[%s4779_s2 + $0x28] sm:$0xff]   ;;  %v3966_v55 = vld [vmem:[%s4779_s2 + $0x38] sm:$0xff]   ;;  %v3967_v56 = vld [vmem:[%s4779_s2 + $0x40] sm:$0xff]  }
   0xc   :  { %3425 = vmatprep.subr.bf16.mxu0 %v4110_v3  ;;  %3481 = vmatprep.subr.bf16.mxu1 %v4110_v3 }
   0xf   :  { %3426 = vmatpush3.bf16.msra.mxu0 %v4110_v3  ;;  %3482 = vmatpush3.bf16.msra.mxu1 %v4110_v3 }
  0x10   :  { %3427 = vmatprep.subr.bf16.mxu0 %v4122_v5  ;;  %3483 = vmatprep.subr.bf16.mxu1 %v4122_v5 }
  0x13   :  { %3428 = vmatpush3.bf16.msra.mxu0 %v4122_v5  ;;  %3484 = vmatpush3.bf16.msra.mxu1 %v4122_v5 }
  0x14   :  { %3429 = vmatprep.subr.bf16.mxu0 %v4133_v7  ;;  %3485 = vmatprep.subr.bf16.mxu1 %v4133_v7 }
  0x17   :  { %3430 = vmatpush3.bf16.msra.mxu0 %v4133_v7  ;;  %3486 = vmatpush3.bf16.msra.mxu1 %v4133_v7 }
  0x18   :  { %3431 = vmatprep.subr.bf16.mxu0 %v4142_v8  ;;  %3487 = vmatprep.subr.bf16.mxu1 %v4142_v8 }
  0x1b   :  { %3432 = vmatpush3.bf16.msra.mxu0 %v4142_v8  ;;  %3488 = vmatpush3.bf16.msra.mxu1 %v4142_v8 }
  0x1c   :  { %3433 = vmatprep.subr.bf16.mxu0 %v4154_v9  ;;  %3489 = vmatprep.subr.bf16.mxu1 %v4154_v9 }
  0x1f   :  { %3434 = vmatpush3.bf16.msra.mxu0 %v4154_v9  ;;  %3490 = vmatpush3.bf16.msra.mxu1 %v4154_v9 }
  0x20   :  { %3439 = vmatprep.subr.bf16.mxu0 %v4088_v0  ;;  %3531 = vmatprep.subr.bf16.mxu1 %v4088_v0 }
  0x22   :  { %3436 = vmatmul.mubr.bf16.vlgmr.msra.gmra.mrb[0].mxu0 %v3944_v10  ;;  %3492 = vmatmul.mubr.bf16.vlgmr.msra.gmra.mrb[0].mxu1 %v3948_v11 }
  0x23   :  { %3440 = vmatpush3.bf16.msra.mxu0 %v4088_v0  ;;  %3455 = vmatprep.mubr.bf16.mxu0 %v3945_v12 }
  0x24   :  { %3441 = vmatprep.subr.bf16.mxu0 %v4093_v1  ;;  %3532 = vmatpush3.bf16.msra.mxu1 %v4088_v0 }
  0x25   :  { %3533 = vmatprep.subr.bf16.mxu1 %v4093_v1  ;;  %3547 = vmatprep.mubr.bf16.mxu1 %v3955_v17  ;;  %v3973_v17 = vld [vmem:[%s4779_s2 + $0x60] sm:$0xff]  }
  0x27   :  { %3442 = vmatpush3.bf16.msra.mxu0 %v4093_v1 }
  0x28   :  { %3443 = vmatprep.subr.bf16.mxu0 %v4103_v2  ;;  %3534 = vmatpush3.bf16.msra.mxu1 %v4093_v1 }
  0x29   :  { %3535 = vmatprep.subr.bf16.mxu1 %v4103_v2 }
  0x2b   :  { %3444 = vmatpush3.bf16.msra.mxu0 %v4103_v2 }
  0x2c   :  { %3445 = vmatprep.subr.bf16.mxu0 %v4110_v3  ;;  %3536 = vmatpush3.bf16.msra.mxu1 %v4103_v2 }
  0x2d   :  { %3537 = vmatprep.subr.bf16.mxu1 %v4110_v3 }
  0x2f   :  { %3446 = vmatpush3.bf16.msra.mxu0 %v4110_v3 }
  0x30   :  { %3447 = vmatprep.subr.bf16.mxu0 %v4122_v5  ;;  %3538 = vmatpush3.bf16.msra.mxu1 %v4110_v3 }
  0x31   :  { %3539 = vmatprep.subr.bf16.mxu1 %v4122_v5 }
  0x33   :  { %3448 = vmatpush3.bf16.msra.mxu0 %v4122_v5 }
  0x34   :  { %3449 = vmatprep.subr.bf16.mxu0 %v4133_v7  ;;  %3540 = vmatpush3.bf16.msra.mxu1 %v4122_v5 }
  0x35   :  { %3541 = vmatprep.subr.bf16.mxu1 %v4133_v7 }
  0x37   :  { %3450 = vmatpush3.bf16.msra.mxu0 %v4133_v7 }
  0x38   :  { %3451 = vmatprep.subr.bf16.mxu0 %v4142_v8  ;;  %3542 = vmatpush3.bf16.msra.mxu1 %v4133_v7 }
  0x39   :  { %3543 = vmatprep.subr.bf16.mxu1 %v4142_v8 }
  0x3b   :  { %3452 = vmatpush3.bf16.msra.mxu0 %v4142_v8 }
  0x3c   :  { %3453 = vmatprep.subr.bf16.mxu0 %v4154_v9  ;;  %3544 = vmatpush3.bf16.msra.mxu1 %v4142_v8 }
  0x3d   :  { %3545 = vmatprep.subr.bf16.mxu1 %v4154_v9 }
  0x3f   :  { %3454 = vmatpush3.bf16.msra.mxu0 %v4154_v9 }
  0x40   :  { %3546 = vmatpush3.bf16.msra.mxu1 %v4154_v9  ;;  %3459 = vmatprep.subr.bf16.mxu0 %v3949_v14 }
  0x41   :  { %3559 = vmatprep.subr.bf16.mxu1 %v4088_v0 }
  0x42   :  { %3456 = vmatmul.mubr.bf16.vlgmr.msra.gmra.mrb[4].mxu0 %v3946_v13  ;;  %v3968_v13 = vld [vmem:[%s4779_s2 + $0x48] sm:$0xff]  }
  0x43   :  { %3460 = vmatpush3.bf16.msra.mxu0 %v3949_v14  ;;  %3548 = vmatmul.mubr.bf16.vlgmr.msra.gmra.mrb[4].mxu1 %v3956_v18  ;;  %v3969_v14 = vld [vmem:[%s4779_s2 + $0x50] sm:$0xff]   ;;  %v3972_v18 = vld [vmem:[%s4778_s1 + $0x68] sm:$0xff]  }
  0x44   :  { %3461 = vmatprep.subr.bf16.mxu0 %v3950_v15  ;;  %3560 = vmatpush3.bf16.msra.mxu1 %v4088_v0 }
  0x45   :  { %3561 = vmatprep.subr.bf16.mxu1 %v4093_v1  ;;  %3575 = vmatprep.mubr.bf16.mxu1 %v3959_v19  ;;  %v3974_v19 = vld [vmem:[%s4779_s2 + $0x68] sm:$0xff]  }
  0x47   :  { %3462 = vmatpush3.bf16.msra.mxu0 %v3950_v15  ;;  %v3970_v15 = vld [vmem:[%s4779_s2 + $0x58] sm:$0xff]  }
  0x48   :  { %3467 = vmatprep.subr.bf16.mxu0 %v4217_v16  ;;  %3562 = vmatpush3.bf16.msra.mxu1 %v4093_v1 }
  0x49   :  { %3563 = vmatprep.subr.bf16.mxu1 %v4103_v2 }
  0x4c   :  { %3564 = vmatpush3.bf16.msra.mxu1 %v4103_v2 }
  0x4d   :  { %3565 = vmatprep.subr.bf16.mxu1 %v4110_v3 }
  0x50   :  { %3566 = vmatpush3.bf16.msra.mxu1 %v4110_v3 }
  0x51   :  { %3567 = vmatprep.subr.bf16.mxu1 %v4122_v5 }
  0x54   :  { %3568 = vmatpush3.bf16.msra.mxu1 %v4122_v5 }
  0x55   :  { %3569 = vmatprep.subr.bf16.mxu1 %v4133_v7 }
  0x58   :  { %3570 = vmatpush3.bf16.msra.mxu1 %v4133_v7 }
  0x59   :  { %3571 = vmatprep.subr.bf16.mxu1 %v4142_v8 }
  0x5c   :  { %3572 = vmatpush3.bf16.msra.mxu1 %v4142_v8 }
  0x5d   :  { %3573 = vmatprep.subr.bf16.mxu1 %v4154_v9 }
  0x60   :  { %3574 = vmatpush3.bf16.msra.mxu1 %v4154_v9 }
  0x61   :  { %3615 = vmatprep.subr.bf16.mxu1 %v4088_v0 }
  0x63   :  { %3576 = vmatmul.mubr.bf16.vlgmr.msra.gmra.mrb[8].mxu1 %v3960_v20  ;;  %v3975_v20 = vld [vmem:[%s4779_s2 + $0x70] sm:$0xff]  }
  0x64   :  { %3616 = vmatpush3.bf16.msra.mxu1 %v4088_v0  ;;  %3631 = vmatprep.mubr.bf16.mxu1 %v3961_v21 }
  0x65   :  { %3617 = vmatprep.subr.bf16.mxu1 %v4093_v1 }
  0x68   :  { %3618 = vmatpush3.bf16.msra.mxu1 %v4093_v1 }
  0x69   :  { %3619 = vmatprep.subr.bf16.mxu1 %v4103_v2 }
  0x6c   :  { %3620 = vmatpush3.bf16.msra.mxu1 %v4103_v2 }
  0x6d   :  { %3621 = vmatprep.subr.bf16.mxu1 %v4110_v3 }
  0x70   :  { %3622 = vmatpush3.bf16.msra.mxu1 %v4110_v3 }
  0x71   :  { %3623 = vmatprep.subr.bf16.mxu1 %v4122_v5 }
  0x74   :  { %3624 = vmatpush3.bf16.msra.mxu1 %v4122_v5 }
  0x75   :  { %3625 = vmatprep.subr.bf16.mxu1 %v4133_v7 }
  0x78   :  { %3626 = vmatpush3.bf16.msra.mxu1 %v4133_v7 }
  0x79   :  { %3627 = vmatprep.subr.bf16.mxu1 %v4142_v8 }
  0x7c   :  { %3628 = vmatpush3.bf16.msra.mxu1 %v4142_v8 }
  0x7d   :  { %3629 = vmatprep.subr.bf16.mxu1 %v4154_v9 }
  0x80   :  { %3630 = vmatpush3.bf16.msra.mxu1 %v4154_v9 }
  0x81   :  { %3671 = vmatprep.subr.bf16.mxu1 %v3963_v34 }
  0x83   :  { %3632 = vmatmul.mubr.bf16.vlgmr.msra.gmra.mrb[12].mxu1 %v3962_v35 }
  0x84   :  { %3672 = vmatpush3.bf16.msra.mxu1 %v3963_v34  ;;  %v3977_v34 = vld [vmem:[%s4778_s1 + $0x80] sm:$0xff]  }
  0x85   :  { %3673 = vmatprep.subr.bf16.mxu1 %v3964_v44 }
  0x88   :  { %3674 = vmatpush3.bf16.msra.mxu1 %v3964_v44 }
  0xf5   :  { %v3437_v22 = vpop.f32.mrb[0].mxu0  ;;  %v3493_v23 = vpop.f32.mrb[0].mxu1 }
  0xf6   :  { %v147_v24 = vpop.f32.mrb[1].mxu0  ;;  %v426_v25 = vpop.f32.mrb[1].mxu1 }
  0xf7   :  { %v3438_v26 = vpop.f32.mrb[2].mxu0  ;;  %v3494_v27 = vpop.f32.mrb[2].mxu1 }
  0xf8   :  { %v163_v28 = vpack.c.bf16 %v3438_v26, %v3437_v22  ;;  %v150_v29 = vpop.f32.mrb[3].mxu0  ;;  %v442_v30 = vpack.c.bf16 %v3494_v27, %v3493_v23  ;;  %v429_v31 = vpop.f32.mrb[3].mxu1 }
  0xf9   :  { %v162_v32 = vpack.c.bf16 %v150_v29, %v147_v24  ;;  %v441_v33 = vpack.c.bf16 %v429_v31, %v426_v25 }
 0x115   :  { %v3457_v36 = vpop.f32.mrb[4].mxu0 }
 0x116   :  { %v219_v37 = vpop.f32.mrb[5].mxu0  ;;  %v3549_v49 = vpop.f32.mrb[4].mxu1 }
 0x117   :  { %v3458_v38 = vpop.f32.mrb[6].mxu0  ;;  %v712_v50 = vpop.f32.mrb[5].mxu1 }
 0x118   :  { %v235_v39 = vpack.c.bf16 %v3458_v38, %v3457_v36  ;;  %v222_v40 = vpop.f32.mrb[7].mxu0  ;;  %v3550_v51 = vpop.f32.mrb[6].mxu1  ;;  %v3062_v38 = vld [vmem:[%s4783_s3] ss:$0 sm:$0xff] }
 0x119   :  { %v234_v41 = vpack.c.bf16 %v222_v40, %v219_v37  ;;  %v728_v52 = vpack.c.bf16 %v3550_v51, %v3549_v49  ;;  %v715_v53 = vpop.f32.mrb[7].mxu1  ;;  %v3983_v37 = vld [vmem:[%s4781_s6 + $0x20] sm:$0xff]  }
 0x11a   :  { %v727_v54 = vpack.c.bf16 %v715_v53, %v712_v50  ;;  %v3982_v53 = vld [vmem:[%s4781_s6 + $0x8] sm:$0xff]  }
 0x11b   :  { %3463 = vmatprep.mubr.msk.bf16.mxu0 %vm252_vm0, %v234_v41 }
 0x11c   :  { %3464 = vmatmul.mubr.msk.bf16.vlgmr.msra.gmra.mrb[8].mxu0 %vm252_vm0, %v235_v39  ;;  %3675 = vmatprep.mubr.msk.bf16.mxu1 %vm252_vm0, %v727_v54 }
 0x11d   :  { %3468 = vmatpush3.bf16.msra.mxu0 %v4217_v16  ;;  %3471 = vmatprep.mubr.msk.bf16.mxu0 %vm252_vm0, %v162_v32  ;;  %v3971_v16 = vld [vmem:[%s4778_s1 + $0x60] sm:$0xff]  }
 0x11e   :  { %3469 = vmatprep.subr.bf16.mxu0 %v3952_v42  ;;  %3676 = vmatmul.mubr.msk.bf16.vlgmr.msra.gmra.mrb[16].mxu1 %vm252_vm0, %v728_v52 }
 0x121   :  { %3470 = vmatpush3.bf16.msra.mxu0 %v3952_v42 }
 0x122   :  { %3495 = vmatprep.subr.bf16.mxu0 %v3953_v43 }
 0x128   :  { %3472 = vmatmul.mubr.msk.bf16.vlgmr.msra.gmra.mrb[8].mxu0 %vm252_vm0, %v163_v28 }
 0x129   :  { %3496 = vmatpush3.bf16.msra.mxu0 %v3953_v43  ;;  %3499 = vmatprep.mubr.msk.bf16.mxu0 %vm252_vm0, %v441_v33  ;;  %v3976_v33 = vld [vmem:[%s4779_s2 + $0x78] sm:$0xff]  }
 0x12a   :  { %3497 = vmatprep.subr.bf16.mxu0 %v3954_v45 }
 0x12d   :  { %3498 = vmatpush3.bf16.msra.mxu0 %v3954_v45 }
 0x12e   :  { %3503 = vmatprep.subr.bf16.mxu0 %v4088_v0 }
 0x134   :  { %3500 = vmatmul.mubr.msk.bf16.vlgmr.msra.gmra.mrb[8].mxu0 %vm252_vm0, %v442_v30 }
 0x135   :  { %3504 = vmatpush3.bf16.msra.mxu0 %v4088_v0  ;;  %3519 = vmatprep.mubr.bf16.mxu0 %v3957_v46 }
 0x136   :  { %3505 = vmatprep.subr.bf16.mxu0 %v4093_v1  ;;  %v3577_v57 = vpop.f32.mrb[8].mxu1 }
 0x137   :  { %v855_v58 = vpop.f32.mrb[9].mxu1 }
 0x138   :  { %v3578_v59 = vpop.f32.mrb[10].mxu1 }
 0x139   :  { %3506 = vmatpush3.bf16.msra.mxu0 %v4093_v1  ;;  %v871_v60 = vpack.c.bf16 %v3578_v59, %v3577_v57  ;;  %v858_v61 = vpop.f32.mrb[11].mxu1  ;;  %v3999_v57 = vld [vmem:[%s4782_s7 + $0x20] sm:$0xff]   ;;  %v3988_v59 = vld [vmem:[%s4781_s6 + $0x38] sm:$0xff]  }
 0x13a   :  { %3507 = vmatprep.subr.bf16.mxu0 %v4103_v2  ;;  %v870_v62 = vpack.c.bf16 %v858_v61, %v855_v58  ;;  %v3986_v58 = vld [vmem:[%s4781_s6 + $0x18] sm:$0xff]   ;;  %v3990_v61 = vld [vmem:[%s4781_s6 + $0x48] sm:$0xff]  }
 0x13d   :  { %3508 = vmatpush3.bf16.msra.mxu0 %v4103_v2 }
 0x13e   :  { %3509 = vmatprep.subr.bf16.mxu0 %v4110_v3 }
 0x141   :  { %3510 = vmatpush3.bf16.msra.mxu0 %v4110_v3 }
 0x142   :  { %3511 = vmatprep.subr.bf16.mxu0 %v4122_v5 }
 0x145   :  { %3512 = vmatpush3.bf16.msra.mxu0 %v4122_v5 }
 0x146   :  { %3513 = vmatprep.subr.bf16.mxu0 %v4133_v7 }
 0x149   :  { %3514 = vmatpush3.bf16.msra.mxu0 %v4133_v7 }
 0x14a   :  { %3515 = vmatprep.subr.bf16.mxu0 %v4142_v8 }
 0x14d   :  { %3516 = vmatpush3.bf16.msra.mxu0 %v4142_v8 }
 0x14e   :  { %3517 = vmatprep.subr.bf16.mxu0 %v4154_v9 }
 0x151   :  { %3518 = vmatpush3.bf16.msra.mxu0 %v4154_v9 }
 0x152   :  { %3523 = vmatprep.subr.bf16.mxu0 %v3965_v47 }
 0x154   :  { %3520 = vmatmul.mubr.bf16.vlgmr.msra.gmra.mrb[12].mxu0 %v3958_v48 }
 0x155   :  { %3524 = vmatpush3.bf16.msra.mxu0 %v3965_v47 }
 0x156   :  { %3525 = vmatprep.subr.bf16.mxu0 %v3966_v55  ;;  %v3633_v21 = vpop.f32.mrb[12].mxu1 }
 0x157   :  { %v1141_v22 = vpop.f32.mrb[13].mxu1 }
 0x158   :  { %v3634_v23 = vpop.f32.mrb[14].mxu1 }
 0x159   :  { %3526 = vmatpush3.bf16.msra.mxu0 %v3966_v55  ;;  %v1157_v24 = vpack.c.bf16 %v3634_v23, %v3633_v21  ;;  %v1144_v25 = vpop.f32.mrb[15].mxu1  ;;  %v3985_v55 = vld [vmem:[%s4781_s6 + $0x10] sm:$0xff]  }
 0x15a   :  { %3551 = vmatprep.subr.bf16.mxu0 %v3967_v56  ;;  %v1156_v26 = vpack.c.bf16 %v1144_v25, %v1141_v22 }
 0x227   :  { %v3521_v63 = vpop.f32.mrb[12].mxu0 }
 0x228   :  { %v569_v4 = vpop.f32.mrb[13].mxu0 }
 0x229   :  { %v3522_v6 = vpop.f32.mrb[14].mxu0 }
 0x22a   :  { %v585_v10 = vpack.c.bf16 %v3522_v6, %v3521_v63  ;;  %v572_v11 = vpop.f32.mrb[15].mxu0  ;;  %v3992_v63 = vld [vmem:[%s4781_s6 + $0x58] sm:$0xff]   ;;  %v3994_v6 = vld [vmem:[%s4781_s6 + $0x68] sm:$0xff]  }
 0x22b   :  { %v584_v12 = vpack.c.bf16 %v572_v11, %v569_v4  ;;  %v3993_v4 = vld [vmem:[%s4781_s6 + $0x60] sm:$0xff]   ;;  %v3996_v11 = vld [vmem:[%s4781_s6 + $0x78] sm:$0xff]  }
 0x22d   :  { %3527 = vmatprep.mubr.msk.bf16.mxu0 %vm252_vm0, %v584_v12  ;;  %v3997_v12 = vld [vmem:[%s4781_s6 + $0x80] sm:$0xff]  }
 0x22e   :  { %3528 = vmatmul.mubr.msk.bf16.vlgmr.msra.gmra.mrb[8].mxu0 %vm252_vm0, %v585_v10  ;;  %v3995_v10 = vld [vmem:[%s4781_s6 + $0x70] sm:$0xff]  }
 0x22f   :  { %3552 = vmatpush3.bf16.msra.mxu0 %v3967_v56  ;;  %3555 = vmatprep.mubr.msk.bf16.mxu0 %vm252_vm0, %v727_v54  ;;  %v3984_v54 = vld [vmem:[%s4781_s6 + $0x28] sm:$0xff]   ;;  %v3987_v56 = vld [vmem:[%s4781_s6 + $0x30] sm:$0xff]  }
 0x230   :  { %3553 = vmatprep.subr.bf16.mxu0 %v3968_v13 }
 0x233   :  { %3554 = vmatpush3.bf16.msra.mxu0 %v3968_v13  ;;  %v3998_v13 = vld [vmem:[%s4781_s6 + $0x88] sm:$0xff]  }
 0x234   :  { %3579 = vmatprep.subr.bf16.mxu0 %v3969_v14 }
 0x23a   :  { %3556 = vmatmul.mubr.msk.bf16.vlgmr.msra.gmra.mrb[8].mxu0 %vm252_vm0, %v728_v52 }
 0x23b   :  { %3580 = vmatpush3.bf16.msra.mxu0 %v3969_v14  ;;  %3583 = vmatprep.mubr.msk.bf16.mxu0 %vm252_vm0, %v870_v62  ;;  %v3991_v62 = vld [vmem:[%s4781_s6 + $0x50] sm:$0xff]   ;;  %v4000_v14 = vld [vmem:[%s4782_s7 + $0x28] sm:$0xff]  }
 0x23c   :  { %3581 = vmatprep.subr.bf16.mxu0 %v3970_v15 }
 0x23f   :  { %3582 = vmatpush3.bf16.msra.mxu0 %v3970_v15  ;;  %v4001_v15 = vld [vmem:[%s4782_s7 + $0x30] sm:$0xff]  }
 0x240   :  { %3587 = vmatprep.subr.bf16.mxu0 %v4088_v0 }
 0x246   :  { %3584 = vmatmul.mubr.msk.bf16.vlgmr.msra.gmra.mrb[8].mxu0 %vm252_vm0, %v871_v60  ;;  %v3989_v60 = vld [vmem:[%s4781_s6 + $0x40] sm:$0xff]  }
 0x247   :  { %3588 = vmatpush3.bf16.msra.mxu0 %v4088_v0  ;;  %3603 = vmatprep.mubr.bf16.mxu0 %v3971_v16  ;;  %v4002_v16 = vld [vmem:[%s4782_s7 + $0x38] sm:$0xff]  }
 0x248   :  { %3589 = vmatprep.subr.bf16.mxu0 %v4093_v1 }
 0x24b   :  { %3590 = vmatpush3.bf16.msra.mxu0 %v4093_v1 }
 0x24c   :  { %3591 = vmatprep.subr.bf16.mxu0 %v4103_v2 }
 0x24f   :  { %3592 = vmatpush3.bf16.msra.mxu0 %v4103_v2 }
 0x250   :  { %3593 = vmatprep.subr.bf16.mxu0 %v4110_v3 }
 0x253   :  { %3594 = vmatpush3.bf16.msra.mxu0 %v4110_v3 }
 0x254   :  { %3595 = vmatprep.subr.bf16.mxu0 %v4122_v5 }
 0x257   :  { %3596 = vmatpush3.bf16.msra.mxu0 %v4122_v5 }
 0x258   :  { %3597 = vmatprep.subr.bf16.mxu0 %v4133_v7 }
 0x25b   :  { %3598 = vmatpush3.bf16.msra.mxu0 %v4133_v7 }
 0x25c   :  { %3599 = vmatprep.subr.bf16.mxu0 %v4142_v8 }
 0x25f   :  { %3600 = vmatpush3.bf16.msra.mxu0 %v4142_v8 }
 0x260   :  { %3601 = vmatprep.subr.bf16.mxu0 %v4154_v9 }
 0x263   :  { %3602 = vmatpush3.bf16.msra.mxu0 %v4154_v9 }
 0x264   :  { %3607 = vmatprep.subr.bf16.mxu0 %v3973_v17 }
 0x266   :  { %3604 = vmatmul.mubr.bf16.vlgmr.msra.gmra.mrb[16].mxu0 %v3972_v18 }
 0x267   :  { %3608 = vmatpush3.bf16.msra.mxu0 %v3973_v17  ;;  %v4003_v17 = vld [vmem:[%s4782_s7] sm:$0xff]  }
 0x268   :  { %3609 = vmatprep.subr.bf16.mxu0 %v3974_v19 }
 0x26b   :  { %3610 = vmatpush3.bf16.msra.mxu0 %v3974_v19 }
 0x26c   :  { %3635 = vmatprep.subr.bf16.mxu0 %v3975_v20 }
 0x339   :  { %v3605_v27 = vpop.f32.mrb[16].mxu0 }
 0x33a   :  { %v998_v28 = vpop.f32.mrb[17].mxu0 }
 0x33b   :  { %v3606_v29 = vpop.f32.mrb[18].mxu0 }
 0x33c   :  { %v1014_v30 = vpack.c.bf16 %v3606_v29, %v3605_v27  ;;  %v1001_v31 = vpop.f32.mrb[19].mxu0 }
 0x33d   :  { %v1013_v32 = vpack.c.bf16 %v1001_v31, %v998_v28 }
 0x33f   :  { %3611 = vmatprep.mubr.msk.bf16.mxu0 %vm252_vm0, %v1013_v32 }
 0x340   :  { %3612 = vmatmul.mubr.msk.bf16.vlgmr.msra.gmra.mrb[8].mxu0 %vm252_vm0, %v1014_v30 }
 0x341   :  { %3636 = vmatpush3.bf16.msra.mxu0 %v3975_v20  ;;  %3639 = vmatprep.mubr.msk.bf16.mxu0 %vm252_vm0, %v1156_v26 }
 0x342   :  { %3637 = vmatprep.subr.bf16.mxu0 %v3976_v33 }
 0x345   :  { %3638 = vmatpush3.bf16.msra.mxu0 %v3976_v33 }
 0x346   :  { %3643 = vmatprep.subr.bf16.mxu0 %v4088_v0 }
 0x34c   :  { %3640 = vmatmul.mubr.msk.bf16.vlgmr.msra.gmra.mrb[8].mxu0 %vm252_vm0, %v1157_v24 }
 0x34d   :  { %3644 = vmatpush3.bf16.msra.mxu0 %v4088_v0  ;;  %3659 = vmatprep.mubr.bf16.mxu0 %v3977_v34  ;;  %v3979_v0 = vld [vmem:[%s4779_s2 + $0x80] sm:$0xff]  }
 0x34e   :  { %3645 = vmatprep.subr.bf16.mxu0 %v4093_v1 }
 0x351   :  { %3646 = vmatpush3.bf16.msra.mxu0 %v4093_v1  ;;  %v3978_v1 = vld [vmem:[%s4778_s1 + $0x88] sm:$0xff]  }
 0x352   :  { %3647 = vmatprep.subr.bf16.mxu0 %v4103_v2 }
 0x355   :  { %3648 = vmatpush3.bf16.msra.mxu0 %v4103_v2  ;;  %v3980_v2 = vld [vmem:[%s4779_s2 + $0x88] sm:$0xff]  }
 0x356   :  { %3649 = vmatprep.subr.bf16.mxu0 %v4110_v3 }
 0x359   :  { %3650 = vmatpush3.bf16.msra.mxu0 %v4110_v3 }
 0x35a   :  { %3651 = vmatprep.subr.bf16.mxu0 %v4122_v5 }
 0x35d   :  { %3652 = vmatpush3.bf16.msra.mxu0 %v4122_v5 }
 0x35e   :  { %3653 = vmatprep.subr.bf16.mxu0 %v4133_v7 }
 0x361   :  { %3654 = vmatpush3.bf16.msra.mxu0 %v4133_v7 }
 0x362   :  { %3655 = vmatprep.subr.bf16.mxu0 %v4142_v8 }
 0x365   :  { %3656 = vmatpush3.bf16.msra.mxu0 %v4142_v8 }
 0x366   :  { %3657 = vmatprep.subr.bf16.mxu0 %v4154_v9 }
 0x369   :  { %3658 = vmatpush3.bf16.msra.mxu0 %v4154_v9  ;;  %v3981_v9 = vld [vmem:[%s4781_s6] sm:$0xff]  }
 0x36a   :  { %3663 = vmatprep.subr.bf16.mxu0 %v3979_v0  ;;  %3683 = vmatprep.mubr.msk.bf16.mxu1 %vm252_vm0, %v3981_v9  ;;  %v4005_v9 = vld [vmem:[%s4782_s7 + $0x10] sm:$0xff]  }
 0x36c   :  { %3660 = vmatmul.mubr.bf16.vlgmr.msra.gmra.mrb[20].mxu0 %v3978_v1 }
 0x36d   :  { %3664 = vmatpush3.bf16.msra.mxu0 %v3979_v0 }
 0x36e   :  { %3665 = vmatprep.subr.bf16.mxu0 %v3980_v2 }
 0x371   :  { %3666 = vmatpush3.bf16.msra.mxu0 %v3980_v2 }
 0x43f   :  { %v3661_v3 = vpop.f32.mrb[20].mxu0 }
 0x440   :  { %v1284_v5 = vpop.f32.mrb[21].mxu0 }
 0x441   :  { %v3662_v7 = vpop.f32.mrb[22].mxu0 }
 0x442   :  { %v1300_v8 = vpack.c.bf16 %v3662_v7, %v3661_v3  ;;  %v1287_v35 = vpop.f32.mrb[23].mxu0 }
 0x443   :  { %v1299_v36 = vpack.c.bf16 %v1287_v35, %v1284_v5  ;;  %v4004_v35 = vld [vmem:[%s4782_s7 + $0x8] sm:$0xff]  }
 0x445   :  { %3667 = vmatprep.mubr.msk.bf16.mxu0 %vm252_vm0, %v1299_v36 }
 0x446   :  { %3668 = vmatmul.mubr.msk.bf16.vlgmr.msra.gmra.mrb[8].mxu0 %vm252_vm0, %v1300_v8 }
 0x447   :  { %3723 = vmatprep.mubr.msk.bf16.mxu0 %vm252_vm0, %v3983_v37 }
 0x519   :  { %v3669_v39 = vpop.f32.mrb[8].mxu0 }
 0x51a   :  { %v1385_v40 = vadd.f32 %v3669_v39, %v3062_v38  ;;  %v1357_v41 = vpop.f32.mrb[9].mxu0 }
 0x51b   :  { %v1383_v42 = vadd.f32 %v3062_v38, %v1357_v41  ;;  %v3670_v43 = vpop.f32.mrb[10].mxu0 }
 0x51c   :  { %v1386_v44 = vadd.f32 %v3670_v43, %v3062_v38  ;;  %v1360_v45 = vpop.f32.mrb[11].mxu0  ;;  %v1389_v47 = vmax.f32 %v1385_v40, 0.0 }
 0x51d   :  { %v1384_v46 = vadd.f32 %v3062_v38, %v1360_v45  ;;  %v1387_v49 = vmax.f32 %v1383_v42, 0.0  ;;  %v4006_v42 = vld [vmem:[%s4782_s7 + $0x18] sm:$0xff]  }
 0x51e   :  { %v1390_v48 = vmax.f32 %v1386_v44, 0.0  ;;  %v4007_v44 = vld [vmem:[%s4782_s7 + $0x40] sm:$0xff]  }
 0x51f   :  { %v1388_v50 = vmax.f32 %v1384_v46, 0.0 }
 0x520   :  { %v4418_v51 = vpack.c.bf16 %v1390_v48, %v1389_v47 }
 0x521   :  { %v4420_v52 = vpack.c.bf16 %v1388_v50, %v1387_v49  ;;  %v4008_v50 = vld [vmem:[%s4782_s7 + $0x48] sm:$0xff]  }
 0x523   :  { %3679 = vmatprep.subr.bf16.mxu1 %v4420_v52  ;;  %3719 = vmatprep.subr.bf16.mxu0 %v4420_v52 }
 0x524   :  { %3680 = vmatpush3.bf16.msra.mxu1 %v4420_v52  ;;  %3720 = vmatpush3.bf16.msra.mxu0 %v4420_v52 }
 0x525   :  { %3681 = vmatprep.subr.bf16.mxu1 %v4418_v51  ;;  %3721 = vmatprep.subr.bf16.mxu0 %v4418_v51 }
 0x528   :  { %3682 = vmatpush3.bf16.msra.mxu1 %v4418_v51  ;;  %3722 = vmatpush3.bf16.msra.mxu0 %v4418_v51 }
 0x529   :  { %3687 = vmatprep.subr.bf16.mxu1 %v4420_v52  ;;  %3739 = vmatprep.subr.bf16.mxu0 %v4420_v52 }
 0x52b   :  { %3684 = vmatmul.mubr.msk.bf16.vlgmr.msra.gmra.mrb[20].mxu1 %vm252_vm0, %v3982_v53  ;;  %3724 = vmatmul.mubr.msk.bf16.vlgmr.msra.gmra.mrb[24].mxu0 %vm252_vm0, %v3984_v54 }
 0x52c   :  { %3688 = vmatpush3.bf16.msra.mxu1 %v4420_v52  ;;  %3740 = vmatpush3.bf16.msra.mxu0 %v4420_v52 }
 0x52d   :  { %3689 = vmatprep.subr.bf16.mxu1 %v4418_v51  ;;  %3741 = vmatprep.subr.bf16.mxu0 %v4418_v51 }
 0x52e   :  { %3691 = vmatprep.mubr.msk.bf16.mxu1 %vm252_vm0, %v3985_v55  ;;  %3743 = vmatprep.mubr.msk.bf16.mxu0 %vm252_vm0, %v3987_v56 }
 0x530   :  { %3690 = vmatpush3.bf16.msra.mxu1 %v4418_v51  ;;  %3742 = vmatpush3.bf16.msra.mxu0 %v4418_v51 }
 0x531   :  { %3759 = vmatprep.subr.bf16.mxu0 %v4420_v52  ;;  %3695 = vmatprep.subr.bf16.mxu1 %v3999_v57 }
 0x533   :  { %3692 = vmatmul.mubr.msk.bf16.vlgmr.msra.gmra.mrb[24].mxu1 %vm252_vm0, %v3986_v58  ;;  %3744 = vmatmul.mubr.msk.bf16.vlgmr.msra.gmra.mrb[28].mxu0 %vm252_vm0, %v3988_v59  ;;  %v4010_v58 = vld [vmem:[%s4782_s7 + $0x58] sm:$0xff]  }
 0x534   :  { %3760 = vmatpush3.bf16.msra.mxu0 %v4420_v52  ;;  %3763 = vmatprep.mubr.msk.bf16.mxu0 %vm252_vm0, %v3989_v60  ;;  %v4011_v60 = vld [vmem:[%s4782_s7 + $0x60] sm:$0xff]  }
 0x535   :  { %3761 = vmatprep.subr.bf16.mxu0 %v4418_v51  ;;  %3696 = vmatpush3.bf16.msra.mxu1 %v3999_v57 }
 0x536   :  { %3697 = vmatprep.subr.bf16.mxu1 %v4000_v14 }
 0x538   :  { %3762 = vmatpush3.bf16.msra.mxu0 %v4418_v51 }
 0x539   :  { %3779 = vmatprep.subr.bf16.mxu0 %v4420_v52  ;;  %3698 = vmatpush3.bf16.msra.mxu1 %v4000_v14 }
 0x53a   :  { %3699 = vmatprep.subr.bf16.mxu1 %v4001_v15 }
 0x53b   :  { %3764 = vmatmul.mubr.msk.bf16.vlgmr.msra.gmra.mrb[32].mxu0 %vm252_vm0, %v3990_v61 }
 0x53c   :  { %3780 = vmatpush3.bf16.msra.mxu0 %v4420_v52  ;;  %3783 = vmatprep.mubr.msk.bf16.mxu0 %vm252_vm0, %v3991_v62 }
 0x53d   :  { %3781 = vmatprep.subr.bf16.mxu0 %v4418_v51  ;;  %3700 = vmatpush3.bf16.msra.mxu1 %v4001_v15 }
 0x53e   :  { %3701 = vmatprep.subr.bf16.mxu1 %v4002_v16 }
 0x540   :  { %3782 = vmatpush3.bf16.msra.mxu0 %v4418_v51 }
 0x541   :  { %3799 = vmatprep.subr.bf16.mxu0 %v4420_v52  ;;  %3702 = vmatpush3.bf16.msra.mxu1 %v4002_v16 }
 0x542   :  { %3707 = vmatprep.subr.bf16.mxu1 %v4003_v17 }
 0x543   :  { %3784 = vmatmul.mubr.msk.bf16.vlgmr.msra.gmra.mrb[36].mxu0 %vm252_vm0, %v3992_v63 }
 0x544   :  { %3800 = vmatpush3.bf16.msra.mxu0 %v4420_v52  ;;  %3803 = vmatprep.mubr.msk.bf16.mxu0 %vm252_vm0, %v3993_v4 }
 0x545   :  { %3801 = vmatprep.subr.bf16.mxu0 %v4418_v51 }
 0x548   :  { %3802 = vmatpush3.bf16.msra.mxu0 %v4418_v51 }
 0x549   :  { %3819 = vmatprep.subr.bf16.mxu0 %v4420_v52 }
 0x54b   :  { %3804 = vmatmul.mubr.msk.bf16.vlgmr.msra.gmra.mrb[40].mxu0 %vm252_vm0, %v3994_v6 }
 0x54c   :  { %3820 = vmatpush3.bf16.msra.mxu0 %v4420_v52  ;;  %3823 = vmatprep.mubr.msk.bf16.mxu0 %vm252_vm0, %v3995_v10  ;;  %v4012_v10 = vld [vmem:[%s4782_s7 + $0x68] sm:$0xff]  }
 0x54d   :  { %3821 = vmatprep.subr.bf16.mxu0 %v4418_v51 }
 0x550   :  { %3822 = vmatpush3.bf16.msra.mxu0 %v4418_v51 }
 0x551   :  { %3839 = vmatprep.subr.bf16.mxu0 %v4420_v52 }
 0x553   :  { %3824 = vmatmul.mubr.msk.bf16.vlgmr.msra.gmra.mrb[44].mxu0 %vm252_vm0, %v3996_v11 }
 0x554   :  { %3840 = vmatpush3.bf16.msra.mxu0 %v4420_v52  ;;  %3843 = vmatprep.mubr.msk.bf16.mxu0 %vm252_vm0, %v3997_v12  ;;  %v4009_v52 = vld [vmem:[%s4782_s7 + $0x50] sm:$0xff]  }
 0x555   :  { %3841 = vmatprep.subr.bf16.mxu0 %v4418_v51  ;;  %v4013_v12 = vld [vmem:[%s4782_s7 + $0x70] sm:$0xff]  }
 0x558   :  { %3842 = vmatpush3.bf16.msra.mxu0 %v4418_v51 }
 0x55b   :  { %3844 = vmatmul.mubr.msk.bf16.vlgmr.msra.gmra.mrb[48].mxu0 %vm252_vm0, %v3998_v13 }
 0x5fe   :  { %v3685_v18 = vpop.f32.mrb[20].mxu1  ;;  %v4537_v19 = vpop.f32.mrb[24].mxu0 }
 0x5ff   :  { %v1519_v20 = vpop.f32.mrb[21].mxu1  ;;  %v1838_v21 = vpop.f32.mrb[25].mxu0 }
 0x600   :  { %v3686_v22 = vpop.f32.mrb[22].mxu1  ;;  %v4539_v23 = vpop.f32.mrb[26].mxu0 }
 0x601   :  { %v1535_v24 = vpack.c.bf16 %v3686_v22, %v3685_v18  ;;  %v1522_v25 = vpop.f32.mrb[23].mxu1  ;;  %v1854_v26 = vpack.c.bf16 %v4539_v23, %v4537_v19  ;;  %v1841_v27 = vpop.f32.mrb[27].mxu0  ;;  %v4014_v18 = vld [vmem:[%s4782_s7 + $0x78] sm:$0xff]   ;;  %v4015_v19 = vld [vmem:[%s4782_s7 + $0x80] sm:$0xff]  }
 0x602   :  { %v1534_v28 = vpack.c.bf16 %v1522_v25, %v1519_v20  ;;  %v1853_v29 = vpack.c.bf16 %v1841_v27, %v1838_v21  ;;  %v4016_v20 = vld [vmem:[%s4782_s7 + $0x88] sm:$0xff]   ;;  %v4017_v21 = vld [vmem:[%s4782_s7 + $0x90] sm:$0xff]   ;;  %v4018_v22 = vld [vmem:[%s4782_s7 + $0x98] sm:$0xff]  }
 0x603   :  { %v4019_v23 = vld [vmem:[%s4782_s7 + $0xa0] sm:$0xff]   ;;  %v4021_v25 = vld [vmem:[%s4782_s7 + $0xb0] sm:$0xff]  }
 0x604   :  { %v4023_v27 = vld [vmem:[%s4782_s7 + $0xc0] sm:$0xff]  }
 0x606   :  { %v3693_v30 = vpop.f32.mrb[24].mxu1  ;;  %v4543_v31 = vpop.f32.mrb[28].mxu0 }
 0x607   :  { %v1599_v32 = vpop.f32.mrb[25].mxu1  ;;  %v4545_v33 = vpop.f32.mrb[29].mxu0 }
 0x608   :  { %v3694_v34 = vpop.f32.mrb[26].mxu1  ;;  %v4547_v0 = vpop.f32.mrb[30].mxu0 }
 0x609   :  { %v1615_v1 = vpack.c.bf16 %v3694_v34, %v3693_v30  ;;  %v1602_v2 = vpop.f32.mrb[27].mxu1  ;;  %v2017_v3 = vpack.c.bf16 %v4547_v0, %v4543_v31  ;;  %v2004_v5 = vpop.f32.mrb[31].mxu0  ;;  %v4026_v30 = vld [vmem:[%s4782_s7 + $0xd8] sm:$0xff]   ;;  %v4027_v31 = vld [vmem:[%s4782_s7 + $0xe0] sm:$0xff]  }
 0x60a   :  { %v1614_v7 = vpack.c.bf16 %v1602_v2, %v1599_v32  ;;  %v2016_v8 = vpack.c.bf16 %v2004_v5, %v4545_v33  ;;  %v4028_v32 = vld [vmem:[%s4782_s7 + $0xe8] sm:$0xff]   ;;  %v4029_v33 = vld [vmem:[%s4782_s7 + $0xf0] sm:$0xff]   ;;  %v4030_v34 = vld [vmem:[%s4782_s7 + $0xf8] sm:$0xff]  }
 0x60b   :  { %v4031_v0 = vld [vmem:[%s4782_s7 + $0x100] sm:$0xff]   ;;  %v4033_v2 = vld [vmem:[%s4782_s7 + $0x110] sm:$0xff]  }
 0x60c   :  { %3703 = vmatprep.mubr.msk.bf16.mxu1 %vm1648_vm1, %v1614_v7  ;;  %v3063_v5 = vld [vmem:[%s4784_s5] ss:$0 sm:$0xff] }
 0x60d   :  { %3704 = vmatmul.mubr.msk.bf16.vlgmr.msra.gmra.mrb[16].mxu1 %vm1648_vm1, %v1615_v1  ;;  %v4032_v1 = vld [vmem:[%s4782_s7 + $0x108] sm:$0xff]  }
 0x60e   :  { %3708 = vmatpush3.bf16.msra.mxu1 %v4003_v17  ;;  %3715 = vmatprep.mubr.msk.bf16.mxu1 %vm1648_vm1, %v1534_v28  ;;  %v4558_v36 = vpop.f32.mrb[32].mxu0  ;;  %v4024_v28 = vld [vmem:[%s4782_s7 + $0xc8] sm:$0xff]  }
 0x60f   :  { %3709 = vmatprep.subr.bf16.mxu1 %v4004_v35  ;;  %v4563_v37 = vpop.f32.mrb[33].mxu0 }
 0x610   :  { %v4565_v38 = vpop.f32.mrb[34].mxu0 }
 0x611   :  { %v2180_v39 = vpack.c.bf16 %v4565_v38, %v4558_v36  ;;  %v4569_v40 = vpop.f32.mrb[35].mxu0 }
 0x612   :  { %3710 = vmatpush3.bf16.msra.mxu1 %v4004_v35  ;;  %v2179_v41 = vpack.c.bf16 %v4569_v40, %v4563_v37 }
 0x613   :  { %3711 = vmatprep.subr.bf16.mxu1 %v4005_v9 }
 0x616   :  { %3712 = vmatpush3.bf16.msra.mxu1 %v4005_v9  ;;  %v4576_v43 = vpop.f32.mrb[36].mxu0 }
 0x617   :  { %3713 = vmatprep.subr.bf16.mxu1 %v4006_v42  ;;  %v4581_v45 = vpop.f32.mrb[37].mxu0 }
 0x618   :  { %v4583_v46 = vpop.f32.mrb[38].mxu0 }
 0x619   :  { %v2343_v47 = vpack.c.bf16 %v4583_v46, %v4576_v43  ;;  %v4587_v48 = vpop.f32.mrb[39].mxu0 }
 0x61a   :  { %3714 = vmatpush3.bf16.msra.mxu1 %v4006_v42  ;;  %v2342_v49 = vpack.c.bf16 %v4587_v48, %v4581_v45 }
 0x61b   :  { %3727 = vmatprep.subr.bf16.mxu1 %v4007_v44 }
 0x61d   :  { %3716 = vmatmul.mubr.msk.bf16.vlgmr.msra.gmra.mrb[16].mxu1 %vm1648_vm1, %v1535_v24  ;;  %v4020_v24 = vld [vmem:[%s4782_s7 + $0xa8] sm:$0xff]  }
 0x61e   :  { %3728 = vmatpush3.bf16.msra.mxu1 %v4007_v44  ;;  %3735 = vmatprep.mubr.msk.bf16.mxu1 %vm1648_vm1, %v1853_v29  ;;  %v4596_v51 = vpop.f32.mrb[40].mxu0  ;;  %v4025_v29 = vld [vmem:[%s4782_s7 + $0xd0] sm:$0xff]  }
 0x61f   :  { %3729 = vmatprep.subr.bf16.mxu1 %v4008_v50  ;;  %v4601_v53 = vpop.f32.mrb[41].mxu0 }
 0x620   :  { %v4603_v54 = vpop.f32.mrb[42].mxu0 }
 0x621   :  { %v2506_v55 = vpack.c.bf16 %v4603_v54, %v4596_v51  ;;  %v4607_v56 = vpop.f32.mrb[43].mxu0 }
 0x622   :  { %3730 = vmatpush3.bf16.msra.mxu1 %v4008_v50  ;;  %v2505_v57 = vpack.c.bf16 %v4607_v56, %v4601_v53 }
 0x623   :  { %3731 = vmatprep.subr.bf16.mxu1 %v4009_v52 }
 0x626   :  { %3732 = vmatpush3.bf16.msra.mxu1 %v4009_v52  ;;  %v4614_v59 = vpop.f32.mrb[44].mxu0 }
 0x627   :  { %3733 = vmatprep.subr.bf16.mxu1 %v4010_v58  ;;  %v4619_v61 = vpop.f32.mrb[45].mxu0 }
 0x628   :  { %v4621_v62 = vpop.f32.mrb[46].mxu0 }
 0x629   :  { %v2669_v63 = vpack.c.bf16 %v4621_v62, %v4614_v59  ;;  %v4625_v4 = vpop.f32.mrb[47].mxu0 }
 0x62a   :  { %3734 = vmatpush3.bf16.msra.mxu1 %v4010_v58  ;;  %v2668_v6 = vpack.c.bf16 %v4625_v4, %v4619_v61 }
 0x62b   :  { %3747 = vmatprep.subr.bf16.mxu1 %v4011_v60 }
 0x62d   :  { %3736 = vmatmul.mubr.msk.bf16.vlgmr.msra.gmra.mrb[16].mxu1 %vm1648_vm1, %v1854_v26  ;;  %v4022_v26 = vld [vmem:[%s4782_s7 + $0xb8] sm:$0xff]  }
 0x62e   :  { %3748 = vmatpush3.bf16.msra.mxu1 %v4011_v60  ;;  %3755 = vmatprep.mubr.msk.bf16.mxu1 %vm1648_vm1, %v2016_v8  ;;  %v4637_v11 = vpop.f32.mrb[48].mxu0  ;;  %v3190_v8 = vld [vmem:[%s4785_s8] ss:$0 sm:$0xff] }
 0x62f   :  { %3749 = vmatprep.subr.bf16.mxu1 %v4012_v10  ;;  %v4642_v13 = vpop.f32.mrb[49].mxu0 }
 0x630   :  { %v4644_v14 = vpop.f32.mrb[50].mxu0 }
 0x631   :  { %v2832_v15 = vpack.c.bf16 %v4644_v14, %v4637_v11  ;;  %v4648_v16 = vpop.f32.mrb[51].mxu0 }
 0x632   :  { %3750 = vmatpush3.bf16.msra.mxu1 %v4012_v10  ;;  %v2831_v17 = vpack.c.bf16 %v4648_v16, %v4642_v13 }
 0x633   :  { %3751 = vmatprep.subr.bf16.mxu1 %v4013_v12 }
 0x636   :  { %3752 = vmatpush3.bf16.msra.mxu1 %v4013_v12 }
 0x637   :  { %3753 = vmatprep.subr.bf16.mxu1 %v4014_v18 }
 0x63a   :  { %3754 = vmatpush3.bf16.msra.mxu1 %v4014_v18 }
 0x63b   :  { %3767 = vmatprep.subr.bf16.mxu1 %v4015_v19 }
 0x63d   :  { %3756 = vmatmul.mubr.msk.bf16.vlgmr.msra.gmra.mrb[16].mxu1 %vm1648_vm1, %v2017_v3  ;;  %v4034_v3 = vld [vmem:[%s4782_s7 + $0x118] sm:$0xff]  }
 0x63e   :  { %3768 = vmatpush3.bf16.msra.mxu1 %v4015_v19  ;;  %3775 = vmatprep.mubr.msk.bf16.mxu1 %vm1648_vm1, %v2179_v41 }
 0x63f   :  { %3769 = vmatprep.subr.bf16.mxu1 %v4016_v20 }
 0x642   :  { %3770 = vmatpush3.bf16.msra.mxu1 %v4016_v20 }
 0x643   :  { %3771 = vmatprep.subr.bf16.mxu1 %v4017_v21 }
 0x646   :  { %3772 = vmatpush3.bf16.msra.mxu1 %v4017_v21 }
 0x647   :  { %3773 = vmatprep.subr.bf16.mxu1 %v4018_v22 }
 0x64a   :  { %3774 = vmatpush3.bf16.msra.mxu1 %v4018_v22 }
 0x64b   :  { %3787 = vmatprep.subr.bf16.mxu1 %v4019_v23 }
 0x64d   :  { %3776 = vmatmul.mubr.msk.bf16.vlgmr.msra.gmra.mrb[16].mxu1 %vm1648_vm1, %v2180_v39 }
 0x64e   :  { %3788 = vmatpush3.bf16.msra.mxu1 %v4019_v23  ;;  %3795 = vmatprep.mubr.msk.bf16.mxu1 %vm1648_vm1, %v2342_v49 }
 0x64f   :  { %3789 = vmatprep.subr.bf16.mxu1 %v4020_v24 }
 0x652   :  { %3790 = vmatpush3.bf16.msra.mxu1 %v4020_v24 }
 0x653   :  { %3791 = vmatprep.subr.bf16.mxu1 %v4021_v25 }
 0x656   :  { %3792 = vmatpush3.bf16.msra.mxu1 %v4021_v25 }
 0x657   :  { %3793 = vmatprep.subr.bf16.mxu1 %v4022_v26 }
 0x65a   :  { %3794 = vmatpush3.bf16.msra.mxu1 %v4022_v26 }
 0x65b   :  { %3807 = vmatprep.subr.bf16.mxu1 %v4023_v27 }
 0x65d   :  { %3796 = vmatmul.mubr.msk.bf16.vlgmr.msra.gmra.mrb[16].mxu1 %vm1648_vm1, %v2343_v47 }
 0x65e   :  { %3808 = vmatpush3.bf16.msra.mxu1 %v4023_v27  ;;  %3815 = vmatprep.mubr.msk.bf16.mxu1 %vm1648_vm1, %v2505_v57 }
 0x65f   :  { %3809 = vmatprep.subr.bf16.mxu1 %v4024_v28 }
 0x662   :  { %3810 = vmatpush3.bf16.msra.mxu1 %v4024_v28 }
 0x663   :  { %3811 = vmatprep.subr.bf16.mxu1 %v4025_v29 }
 0x666   :  { %3812 = vmatpush3.bf16.msra.mxu1 %v4025_v29 }
 0x667   :  { %3813 = vmatprep.subr.bf16.mxu1 %v4026_v30 }
 0x66a   :  { %3814 = vmatpush3.bf16.msra.mxu1 %v4026_v30 }
 0x66b   :  { %3827 = vmatprep.subr.bf16.mxu1 %v4027_v31 }
 0x66d   :  { %3816 = vmatmul.mubr.msk.bf16.vlgmr.msra.gmra.mrb[16].mxu1 %vm1648_vm1, %v2506_v55 }
 0x66e   :  { %3828 = vmatpush3.bf16.msra.mxu1 %v4027_v31  ;;  %3835 = vmatprep.mubr.msk.bf16.mxu1 %vm1648_vm1, %v2668_v6 }
 0x66f   :  { %3829 = vmatprep.subr.bf16.mxu1 %v4028_v32 }
 0x672   :  { %3830 = vmatpush3.bf16.msra.mxu1 %v4028_v32 }
 0x673   :  { %3831 = vmatprep.subr.bf16.mxu1 %v4029_v33 }
 0x676   :  { %3832 = vmatpush3.bf16.msra.mxu1 %v4029_v33 }
 0x677   :  { %3833 = vmatprep.subr.bf16.mxu1 %v4030_v34 }
 0x67a   :  { %3834 = vmatpush3.bf16.msra.mxu1 %v4030_v34 }
 0x67b   :  { %3847 = vmatprep.subr.bf16.mxu1 %v4031_v0 }
 0x67d   :  { %3836 = vmatmul.mubr.msk.bf16.vlgmr.msra.gmra.mrb[16].mxu1 %vm1648_vm1, %v2669_v63 }
 0x67e   :  { %3848 = vmatpush3.bf16.msra.mxu1 %v4031_v0  ;;  %3855 = vmatprep.mubr.msk.bf16.mxu1 %vm1648_vm1, %v2831_v17 }
 0x67f   :  { %3849 = vmatprep.subr.bf16.mxu1 %v4032_v1 }
 0x682   :  { %3850 = vmatpush3.bf16.msra.mxu1 %v4032_v1 }
 0x683   :  { %3851 = vmatprep.subr.bf16.mxu1 %v4033_v2 }
 0x686   :  { %3852 = vmatpush3.bf16.msra.mxu1 %v4033_v2 }
 0x687   :  { %3853 = vmatprep.subr.bf16.mxu1 %v4034_v3 }
 0x68a   :  { %3854 = vmatpush3.bf16.msra.mxu1 %v4034_v3 }
 0x68d   :  { %3856 = vmatmul.mubr.msk.bf16.vlgmr.msra.gmra.mrb[16].mxu1 %vm1648_vm1, %v2832_v15 }
 0x760   :  { %v3857_v7 = vpop.f32.mrb[16].mxu1 }
 0x761   :  { %v3859_v35 = vadd.f32 %v3857_v7, %v3063_v5  ;;  %v2905_v36 = vpop.f32.mrb[17].mxu1 }
 0x762   :  { %v3861_v9 = vadd.f32 %v3063_v5, %v2905_v36  ;;  %v3858_v37 = vpop.f32.mrb[18].mxu1 }
 0x763   :  { %v3860_v38 = vadd.f32 %v3859_v35, %v3190_v8  ;;  %v3863_v39 = vadd.f32 %v3858_v37, %v3063_v5  ;;  %v2908_v40 = vpop.f32.mrb[19].mxu1 }
 0x764   :  { %v3862_v41 = vadd.f32 %v3861_v9, %v3190_v8  ;;  %v3865_v42 = vadd.f32 %v3063_v5, %v2908_v40 }
 0x765   :  { %v2941_v43 = vmax.f32 %v3860_v38, 0.0  ;;  %v3864_v44 = vadd.f32 %v3863_v39, %v3190_v8 }
 0x766   :  { %v2939_v45 = vmax.f32 %v3862_v41, 0.0  ;;  %v3866_v46 = vadd.f32 %v3865_v42, %v3190_v8 }
 0x767   :  { %v3197_v47 = vpack.c.bf16 %v2941_v43, %v2941_v43  ;;  %v2942_v48 = vmax.f32 %v3864_v44, 0.0 }
 0x768   :  { %v3195_v49 = vpack.c.bf16 %v2939_v45, %v2939_v45  ;;  %v2940_v50 = vmax.f32 %v3866_v46, 0.0 }
 0x769   :  { %2962 = vst.msk [vmem:[%s4786_s9 + $0x8] sm:$0xf] %vm2959_vm2, %v3197_v47  ;;  %v3198_v51 = vpack.c.bf16 %v2942_v48, %v2942_v48 }
 0x76a   :  { %2960 = vst.msk [vmem:[%s4786_s9] sm:$0xf] %vm2959_vm2, %v3195_v49  ;;  %v3196_v52 = vpack.c.bf16 %v2940_v50, %v2940_v50 }
 0x76b   :  { %2963 = vst.msk [vmem:[%s4786_s9 + $0xc] sm:$0xf] %vm2959_vm2, %v3198_v51 }
 0x76c   :  { %2961 = vst.msk [vmem:[%s4786_s9 + $0x4] sm:$0xf] %vm2959_vm2, %v3196_v52 }

// kernel: resnet_forward.25
= control target key start
LH: loop header
LB: loop body
LE: loop exit
PB: predicated region body
PF: predicated region fallthrough
CT: control target
= control target key end

     0   :  { %v3523_v0 = vmov 0.0   ;;  %vm3524_vm0 = vmmov 0   ;;  %vm50_vm1 = vcmask 261120   ;;  %vm181_vm2 = vcmask 523264   ;;  %s4275_s0 = inlined_call_operand.vmem [shape: bf16[32,64], index: 0, kind: input, shape index: {}]   ;;  %s4276_s1 = inlined_call_operand.vmem [shape: bf16[9,8,32], index: 1, kind: input, shape index: {}]   ;;  %s4277_s2 = inlined_call_operand.vmem [shape: bf16[576,128], index: 2, kind: input, shape index: {}]   ;;  %s4278_s4 = inlined_call_operand.vmem [shape: bf16[64,128], index: 4, kind: input, shape index: {}]   ;;  %s4279_s7 = inlined_call_operand.vmem [shape: bf16[1152,128], index: 7, kind: input, shape index: {}]   ;;  %s4280_s3 = inlined_call_operand.vmem [shape: f32[1,128], index: 3, kind: input, shape index: {}]   ;;  %s4281_s6 = inlined_call_operand.vmem [shape: bf16[9,8,8], index: 6, kind: input, shape index: {}]   ;;  %s4282_s5 = inlined_call_operand.vmem [shape: f32[1,128], index: 5, kind: input, shape index: {}]   ;;  %s4283_s8 = inlined_call_operand.vmem [shape: f32[1,128], index: 8, kind: input, shape index: {}]   ;;  %s4284_s9 = inlined_call_operand.vmem [shape: bf16[8,128], index: 9, kind: output, shape index: {}]  }
   0x1   :  { %2949 = vmatprep.subr.bf16.mxu1 %v3523_v0  ;;  %2989 = vmatprep.subr.bf16.mxu0 %v3523_v0  ;;  %v3580_v1 = vld [vmem:[%s4275_s0] sm:$0xff]   ;;  %v3591_v2 = vld [vmem:[%s4275_s0 + $0x8] sm:$0xff]   ;;  %v3415_v11 = vld [vmem:[%s4277_s2 + $0x30] sm:$0xff]   ;;  %vm1240_vm3 = vcmask 1043456   ;;  %vm1236_vm4 = vcmask 64512  }
   0x2   :  { %2953 = vmatprep.mubr.msk.bf16.mxu1 %vm3524_vm0, %v3523_v0  ;;  %2993 = vmatprep.mubr.msk.bf16.mxu0 %vm3524_vm0, %v3523_v0  ;;  %v37_v3 = vld [vmem:[%s4276_s1] sm:$0xf]  ;;  %v2627_v4 = vld [vmem:[%s4276_s1 + $0x8] sm:$0xf]  ;;  %v2615_v5 = vld [vmem:[%s4276_s1 + $0x4] sm:$0xf] }
   0x3   :  { %2950 = vmatpush3.bf16.msra.mxu1 %v3580_v1  ;;  %2990 = vmatpush3.bf16.msra.mxu0 %v3580_v1  ;;  %v2634_v6 = vld [vmem:[%s4276_s1 + $0xc] sm:$0xf]  ;;  %v3411_v7 = vld [vmem:[%s4277_s2 + $0x20] sm:$0xff]   ;;  %v3416_v12 = vld [vmem:[%s4277_s2 + $0x70] sm:$0xff]  }
   0x4   :  { %2951 = vmatprep.subr.bf16.mxu1 %v3523_v0  ;;  %2991 = vmatprep.subr.bf16.mxu0 %v3523_v0  ;;  %v3412_v8 = vld [vmem:[%s4277_s2 + $0x60] sm:$0xff]   ;;  %v3413_v9 = vld [vmem:[%s4277_s2 + $0x28] sm:$0xff]   ;;  %v3417_v13 = vld [vmem:[%s4277_s2 + $0x38] sm:$0xff]  }
   0x5   :  { %v3414_v10 = vld [vmem:[%s4277_s2 + $0x68] sm:$0xff]   ;;  %v3418_v14 = vld [vmem:[%s4277_s2 + $0x78] sm:$0xff]   ;;  %v3419_v25 = vld [vmem:[%s4277_s2] sm:$0xff]  }
   0x6   :  { %v3420_v34 = vld [vmem:[%s4277_s2 + $0x8] sm:$0xff]   ;;  %v3421_v35 = vld [vmem:[%s4277_s2 + $0x10] sm:$0xff]   ;;  %v3427_v37 = vld [vmem:[%s4277_s2 + $0xa0] sm:$0xff]  }
   0x7   :  { %2952 = vmatpush3.bf16.msra.mxu1 %v3591_v2  ;;  %2992 = vmatpush3.bf16.msra.mxu0 %v3591_v2  ;;  %v2648_v36 = vld [vmem:[%s4276_s1 + $0x14] sm:$0xf]  ;;  %v3422_v38 = vld [vmem:[%s4277_s2 + $0x18] sm:$0xff]   ;;  %v3423_v39 = vld [vmem:[%s4277_s2 + $0x40] sm:$0xff]  }
   0x8   :  { %2957 = vmatprep.subr.bf16.mxu1 %v3523_v0  ;;  %3009 = vmatprep.subr.bf16.mxu0 %v3523_v0  ;;  %v3424_v41 = vld [vmem:[%s4277_s2 + $0x48] sm:$0xff]   ;;  %v3425_v42 = vld [vmem:[%s4277_s2 + $0x50] sm:$0xff]   ;;  %v3426_v43 = vld [vmem:[%s4277_s2 + $0x58] sm:$0xff]  }
   0x9   :  { %v2641_v45 = vld [vmem:[%s4276_s1 + $0x10] sm:$0xf]  ;;  %v3428_v46 = vld [vmem:[%s4277_s2 + $0xa8] sm:$0xff]   ;;  %v3430_v48 = vld [vmem:[%s4277_s2 + $0xb8] sm:$0xff]  }
   0xa   :  { %2954 = vmatmul.mubr.msk.bf16.vlgmr.msra.gmra.mrb[0].mxu1 %vm50_vm1, %v37_v3  ;;  %2994 = vmatmul.mubr.msk.bf16.vlgmr.msra.gmra.mrb[0].mxu0 %vm50_vm1, %v2627_v4  ;;  %v3429_v47 = vld [vmem:[%s4277_s2 + $0xb0] sm:$0xff]   ;;  %v3431_v49 = vld [vmem:[%s4277_s2 + $0x80] sm:$0xff]   ;;  %v3432_v50 = vld [vmem:[%s4277_s2 + $0x88] sm:$0xff]  }
   0xb   :  { %2958 = vmatpush3.bf16.msra.mxu1 %v3580_v1  ;;  %3010 = vmatpush3.bf16.msra.mxu0 %v3580_v1  ;;  %v3433_v51 = vld [vmem:[%s4277_s2 + $0x90] sm:$0xff]   ;;  %v3434_v52 = vld [vmem:[%s4277_s2 + $0x98] sm:$0xff]  }
   0xc   :  { %2959 = vmatprep.subr.bf16.mxu1 %v3523_v0  ;;  %3011 = vmatprep.subr.bf16.mxu0 %v3523_v0 }
   0xd   :  { %2961 = vmatprep.mubr.msk.bf16.mxu1 %vm3524_vm0, %v3523_v0  ;;  %3013 = vmatprep.mubr.msk.bf16.mxu0 %vm3524_vm0, %v3523_v0 }
   0xf   :  { %2960 = vmatpush3.bf16.msra.mxu1 %v3591_v2  ;;  %3012 = vmatpush3.bf16.msra.mxu0 %v3591_v2 }
  0x10   :  { %2965 = vmatprep.subr.bf16.mxu1 %v3523_v0  ;;  %3017 = vmatprep.subr.bf16.mxu0 %v3523_v0 }
  0x12   :  { %2962 = vmatmul.mubr.msk.bf16.vlgmr.msra.gmra.mrb[4].mxu1 %vm50_vm1, %v2615_v5  ;;  %3014 = vmatmul.mubr.msk.bf16.vlgmr.msra.gmra.mrb[4].mxu0 %vm50_vm1, %v2634_v6  ;;  %v2662_v6 = vld [vmem:[%s4276_s1 + $0x1c] sm:$0xf] }
  0x13   :  { %2966 = vmatpush3.bf16.msra.mxu1 %v3411_v7  ;;  %3018 = vmatpush3.bf16.msra.mxu0 %v3412_v8  ;;  %v3435_v7 = vld [vmem:[%s4277_s2 + $0xe0] sm:$0xff]  }
  0x14   :  { %2967 = vmatprep.subr.bf16.mxu1 %v3523_v0  ;;  %3019 = vmatprep.subr.bf16.mxu0 %v3523_v0 }
  0x15   :  { %2973 = vmatprep.mubr.msk.bf16.mxu1 %vm3524_vm0, %v3523_v0  ;;  %3025 = vmatprep.mubr.msk.bf16.mxu0 %vm3524_vm0, %v3523_v0 }
  0x17   :  { %2968 = vmatpush3.bf16.msra.mxu1 %v3413_v9  ;;  %3020 = vmatpush3.bf16.msra.mxu0 %v3414_v10 }
  0x18   :  { %2969 = vmatprep.subr.bf16.mxu1 %v3523_v0  ;;  %3021 = vmatprep.subr.bf16.mxu0 %v3523_v0 }
  0x1b   :  { %2970 = vmatpush3.bf16.msra.mxu1 %v3415_v11  ;;  %3022 = vmatpush3.bf16.msra.mxu0 %v3416_v12  ;;  %v3436_v12 = vld [vmem:[%s4277_s2 + $0xe8] sm:$0xff]  }
  0x1c   :  { %2971 = vmatprep.subr.bf16.mxu1 %v3523_v0  ;;  %3023 = vmatprep.subr.bf16.mxu0 %v3523_v0 }
  0x1f   :  { %2972 = vmatpush3.bf16.msra.mxu1 %v3417_v13  ;;  %3024 = vmatpush3.bf16.msra.mxu0 %v3418_v14  ;;  %v3437_v13 = vld [vmem:[%s4277_s2 + $0xf0] sm:$0xff]  }
  0x20   :  { %2977 = vmatprep.subr.bf16.mxu1 %v3523_v0  ;;  %3049 = vmatprep.subr.bf16.mxu0 %v3523_v0 }
  0xdd   :  { %v88_v15 = vpop.f32.mrb[0].mxu1  ;;  %v331_v16 = vpop.f32.mrb[0].mxu0 }
  0xde   :  { %v2955_v17 = vpop.f32.mrb[1].mxu1  ;;  %v2995_v18 = vpop.f32.mrb[1].mxu0  ;;  %v94_v40 = vpack.c.bf16 %v88_v15, %v88_v15  ;;  %v337_v44 = vpack.c.bf16 %v331_v16, %v331_v16 }
  0xdf   :  { %v91_v19 = vpop.f32.mrb[2].mxu1  ;;  %v334_v20 = vpop.f32.mrb[2].mxu0 }
  0xe0   :  { %v2956_v21 = vpop.f32.mrb[3].mxu1  ;;  %v2996_v22 = vpop.f32.mrb[3].mxu0 }
  0xe5   :  { %v142_v23 = vpop.f32.mrb[4].mxu1  ;;  %v453_v24 = vpop.f32.mrb[4].mxu0 }
  0xe6   :  { %v148_v26 = vpack.c.bf16 %v142_v23, %v142_v23  ;;  %v459_v27 = vpack.c.bf16 %v453_v24, %v453_v24  ;;  %v2963_v28 = vpop.f32.mrb[5].mxu1  ;;  %v3015_v29 = vpop.f32.mrb[5].mxu0 }
  0xe7   :  { %v145_v30 = vpop.f32.mrb[6].mxu1  ;;  %v456_v31 = vpop.f32.mrb[6].mxu0  ;;  %v3444_v28 = vld [vmem:[%s4277_s2 + $0xc8] sm:$0xff]   ;;  %v3445_v29 = vld [vmem:[%s4277_s2 + $0xd0] sm:$0xff]  }
  0xe8   :  { %v2964_v32 = vpop.f32.mrb[7].mxu1  ;;  %2974 = vmatmul.mubr.msk.bf16.vlgmr.msra.gmra.mrb[8].mxu1 %vm181_vm2, %v148_v26  ;;  %3026 = vmatmul.mubr.msk.bf16.vlgmr.msra.gmra.mrb[8].mxu0 %vm181_vm2, %v459_v27  ;;  %v3016_v33 = vpop.f32.mrb[7].mxu0  ;;  %v3438_v26 = vld [vmem:[%s4277_s2 + $0xf8] sm:$0xff]   ;;  %v3443_v27 = vld [vmem:[%s4277_s2 + $0xc0] sm:$0xff]  }
  0xe9   :  { %2978 = vmatpush3.bf16.msra.mxu1 %v3419_v25  ;;  %3050 = vmatpush3.bf16.msra.mxu0 %v3580_v1  ;;  %v2655_v25 = vld [vmem:[%s4276_s1 + $0x18] sm:$0xf] }
  0xea   :  { %2979 = vmatprep.subr.bf16.mxu1 %v3523_v0  ;;  %3051 = vmatprep.subr.bf16.mxu0 %v3523_v0  ;;  %v3446_v30 = vld [vmem:[%s4277_s2 + $0xd8] sm:$0xff]  }
  0xeb   :  { %3053 = vmatprep.mubr.msk.bf16.mxu0 %vm3524_vm0, %v3523_v0  ;;  %2985 = vmatprep.mubr.msk.bf16.mxu1 %vm3524_vm0, %v3523_v0 }
  0xed   :  { %2980 = vmatpush3.bf16.msra.mxu1 %v3420_v34  ;;  %3052 = vmatpush3.bf16.msra.mxu0 %v3591_v2 }
  0xee   :  { %2981 = vmatprep.subr.bf16.mxu1 %v3523_v0  ;;  %3057 = vmatprep.subr.bf16.mxu0 %v3523_v0 }
  0xf0   :  { %3054 = vmatmul.mubr.msk.bf16.vlgmr.msra.gmra.mrb[12].mxu0 %vm50_vm1, %v2648_v36  ;;  %v3439_v36 = vld [vmem:[%s4278_s4] sm:$0xff]  }
  0xf1   :  { %2982 = vmatpush3.bf16.msra.mxu1 %v3421_v35  ;;  %3058 = vmatpush3.bf16.msra.mxu0 %v3427_v37 }
  0xf2   :  { %2983 = vmatprep.subr.bf16.mxu1 %v3523_v0  ;;  %3059 = vmatprep.subr.bf16.mxu0 %v3523_v0 }
  0xf3   :  { %3065 = vmatprep.mubr.msk.bf16.mxu0 %vm3524_vm0, %v3523_v0 }
  0xf5   :  { %2984 = vmatpush3.bf16.msra.mxu1 %v3422_v38  ;;  %3060 = vmatpush3.bf16.msra.mxu0 %v3428_v46 }
  0xf6   :  { %2997 = vmatprep.subr.bf16.mxu1 %v3523_v0  ;;  %3061 = vmatprep.subr.bf16.mxu0 %v3523_v0 }
  0xf8   :  { %2986 = vmatmul.mubr.msk.bf16.vlgmr.msra.gmra.mrb[12].mxu1 %vm181_vm2, %v94_v40 }
  0xf9   :  { %2998 = vmatpush3.bf16.msra.mxu1 %v3423_v39  ;;  %3005 = vmatprep.mubr.msk.bf16.mxu1 %vm3524_vm0, %v3523_v0 }
  0xfa   :  { %2999 = vmatprep.subr.bf16.mxu1 %v3523_v0  ;;  %3062 = vmatpush3.bf16.msra.mxu0 %v3429_v47 }
  0xfb   :  { %3063 = vmatprep.subr.bf16.mxu0 %v3523_v0 }
  0xfd   :  { %3000 = vmatpush3.bf16.msra.mxu1 %v3424_v41  ;;  %v3440_v41 = vld [vmem:[%s4278_s4 + $0x8] sm:$0xff]  }
  0xfe   :  { %3001 = vmatprep.subr.bf16.mxu1 %v3523_v0  ;;  %3064 = vmatpush3.bf16.msra.mxu0 %v3430_v48 }
  0xff   :  { %3089 = vmatprep.subr.bf16.mxu0 %v3523_v0 }
 0x101   :  { %3002 = vmatpush3.bf16.msra.mxu1 %v3425_v42  ;;  %v3441_v42 = vld [vmem:[%s4278_s4 + $0x10] sm:$0xff]  }
 0x102   :  { %3003 = vmatprep.subr.bf16.mxu1 %v3523_v0 }
 0x105   :  { %3004 = vmatpush3.bf16.msra.mxu1 %v3426_v43  ;;  %v3442_v43 = vld [vmem:[%s4278_s4 + $0x18] sm:$0xff]  }
 0x106   :  { %3029 = vmatprep.subr.bf16.mxu1 %v3523_v0 }
 0x108   :  { %3006 = vmatmul.mubr.msk.bf16.vlgmr.msra.gmra.mrb[16].mxu1 %vm181_vm2, %v337_v44 }
 0x109   :  { %3030 = vmatpush3.bf16.msra.mxu1 %v3580_v1  ;;  %3033 = vmatprep.mubr.msk.bf16.mxu1 %vm3524_vm0, %v3523_v0 }
 0x10a   :  { %3031 = vmatprep.subr.bf16.mxu1 %v3523_v0 }
 0x10d   :  { %3032 = vmatpush3.bf16.msra.mxu1 %v3591_v2 }
 0x10e   :  { %3037 = vmatprep.subr.bf16.mxu1 %v3523_v0 }
 0x110   :  { %3034 = vmatmul.mubr.msk.bf16.vlgmr.msra.gmra.mrb[20].mxu1 %vm50_vm1, %v2641_v45 }
 0x111   :  { %3045 = vmatprep.mubr.msk.bf16.mxu1 %vm3524_vm0, %v3523_v0  ;;  %3038 = vmatpush3.bf16.msra.mxu1 %v3431_v49 }
 0x112   :  { %3039 = vmatprep.subr.bf16.mxu1 %v3523_v0 }
 0x115   :  { %3040 = vmatpush3.bf16.msra.mxu1 %v3432_v50 }
 0x116   :  { %3041 = vmatprep.subr.bf16.mxu1 %v3523_v0 }
 0x119   :  { %3042 = vmatpush3.bf16.msra.mxu1 %v3433_v51 }
 0x11a   :  { %3043 = vmatprep.subr.bf16.mxu1 %v3523_v0 }
 0x11d   :  { %3044 = vmatpush3.bf16.msra.mxu1 %v3434_v52 }
 0x11e   :  { %3069 = vmatprep.subr.bf16.mxu1 %v3523_v0 }
 0x1bb   :  { %v219_v53 = vpop.f32.mrb[8].mxu1  ;;  %v529_v54 = vpop.f32.mrb[8].mxu0 }
 0x1bc   :  { %v2975_v55 = vpop.f32.mrb[9].mxu1  ;;  %v3027_v56 = vpop.f32.mrb[9].mxu0 }
 0x1bd   :  { %v222_v57 = vpop.f32.mrb[10].mxu1  ;;  %v532_v58 = vpop.f32.mrb[10].mxu0  ;;  %v2669_v55 = vld [vmem:[%s4276_s1 + $0x20] sm:$0xf]  ;;  %v3449_v56 = vld [vmem:[%s4277_s2 + $0x110] sm:$0xff]  }
 0x1be   :  { %v2976_v59 = vpop.f32.mrb[11].mxu1  ;;  %v3028_v60 = vpop.f32.mrb[11].mxu0  ;;  %v3450_v57 = vld [vmem:[%s4277_s2 + $0x118] sm:$0xff]  }
 0x1c3   :  { %v697_v61 = vpop.f32.mrb[12].mxu0 }
 0x1c4   :  { %v703_v62 = vpack.c.bf16 %v697_v61, %v697_v61  ;;  %v3055_v63 = vpop.f32.mrb[13].mxu0 }
 0x1c5   :  { %v700_v3 = vpop.f32.mrb[14].mxu0 }
 0x1c6   :  { %3066 = vmatmul.mubr.msk.bf16.vlgmr.msra.gmra.mrb[16].mxu0 %vm181_vm2, %v703_v62  ;;  %v3056_v4 = vpop.f32.mrb[15].mxu0 }
 0x1c7   :  { %3090 = vmatpush3.bf16.msra.mxu0 %v3580_v1  ;;  %3093 = vmatprep.mubr.msk.bf16.mxu0 %vm3524_vm0, %v3523_v0 }
 0x1c8   :  { %3091 = vmatprep.subr.bf16.mxu0 %v3523_v0 }
 0x1cb   :  { %v286_v5 = vpop.f32.mrb[12].mxu1  ;;  %3092 = vmatpush3.bf16.msra.mxu0 %v3591_v2 }
 0x1cc   :  { %v287_v8 = vadd.f32 %v286_v5, %v219_v53  ;;  %v2987_v9 = vpop.f32.mrb[13].mxu1  ;;  %3097 = vmatprep.subr.bf16.mxu0 %v3523_v0 }
 0x1cd   :  { %v289_v10 = vpop.f32.mrb[14].mxu1 }
 0x1ce   :  { %v2988_v11 = vpop.f32.mrb[15].mxu1  ;;  %3094 = vmatmul.mubr.msk.bf16.vlgmr.msra.gmra.mrb[20].mxu0 %vm50_vm1, %v2662_v6 }
 0x1cf   :  { %3098 = vmatpush3.bf16.msra.mxu0 %v3435_v7  ;;  %3105 = vmatprep.mubr.msk.bf16.mxu0 %vm3524_vm0, %v3523_v0 }
 0x1d0   :  { %3099 = vmatprep.subr.bf16.mxu0 %v3523_v0 }
 0x1d3   :  { %3100 = vmatpush3.bf16.msra.mxu0 %v3436_v12 }
 0x1d4   :  { %3101 = vmatprep.subr.bf16.mxu0 %v3523_v0 }
 0x1d7   :  { %3102 = vmatpush3.bf16.msra.mxu0 %v3437_v13 }
 0x1d8   :  { %3103 = vmatprep.subr.bf16.mxu0 %v3523_v0 }
 0x1db   :  { %v407_v14 = vpop.f32.mrb[16].mxu1  ;;  %3104 = vmatpush3.bf16.msra.mxu0 %v3438_v26  ;;  %v2684_v26 = vld [vmem:[%s4281_s6 + $0x4] sm:$0xf] }
 0x1dc   :  { %v413_v15 = vadd.f32 %v407_v14, %v287_v8  ;;  %v3007_v16 = vpop.f32.mrb[17].mxu1  ;;  %3129 = vmatprep.subr.bf16.mxu0 %v3523_v0 }
 0x1dd   :  { %v410_v17 = vpop.f32.mrb[18].mxu1 }
 0x1de   :  { %v3008_v18 = vpop.f32.mrb[19].mxu1  ;;  %v535_v19 = vadd.f32 %v529_v54, %v413_v15  ;;  %v2676_v17 = vld [vmem:[%s4280_s3] ss:$0 sm:$0xff] }
 0x1e3   :  { %v575_v20 = vpop.f32.mrb[20].mxu1 }
 0x1e4   :  { %v581_v21 = vpack.c.bf16 %v575_v20, %v575_v20  ;;  %v3035_v22 = vpop.f32.mrb[21].mxu1 }
 0x1e5   :  { %v578_v23 = vpop.f32.mrb[22].mxu1 }
 0x1e6   :  { %v3036_v24 = vpop.f32.mrb[23].mxu1  ;;  %3046 = vmatmul.mubr.msk.bf16.vlgmr.msra.gmra.mrb[24].mxu1 %vm181_vm2, %v581_v21 }
 0x1e7   :  { %3070 = vmatpush3.bf16.msra.mxu1 %v3580_v1  ;;  %3073 = vmatprep.mubr.msk.bf16.mxu1 %vm3524_vm0, %v3523_v0 }
 0x1e8   :  { %3071 = vmatprep.subr.bf16.mxu1 %v3523_v0 }
 0x1eb   :  { %3072 = vmatpush3.bf16.msra.mxu1 %v3591_v2 }
 0x1ec   :  { %3077 = vmatprep.subr.bf16.mxu1 %v3523_v0 }
 0x1ee   :  { %3074 = vmatmul.mubr.msk.bf16.vlgmr.msra.gmra.mrb[28].mxu1 %vm50_vm1, %v2655_v25 }
 0x1ef   :  { %3085 = vmatprep.mubr.msk.bf16.mxu1 %vm3524_vm0, %v3523_v0  ;;  %3078 = vmatpush3.bf16.msra.mxu1 %v3443_v27  ;;  %v1235_v27 = vld [vmem:[%s4281_s6] sm:$0xf] }
 0x1f0   :  { %3079 = vmatprep.subr.bf16.mxu1 %v3523_v0 }
 0x1f3   :  { %3080 = vmatpush3.bf16.msra.mxu1 %v3444_v28  ;;  %v3451_v28 = vld [vmem:[%s4279_s7 + $0x40] sm:$0xff]  }
 0x1f4   :  { %3081 = vmatprep.subr.bf16.mxu1 %v3523_v0 }
 0x1f7   :  { %3082 = vmatpush3.bf16.msra.mxu1 %v3445_v29  ;;  %v3452_v29 = vld [vmem:[%s4279_s7 + $0x48] sm:$0xff]  }
 0x1f8   :  { %3083 = vmatprep.subr.bf16.mxu1 %v3523_v0 }
 0x1fb   :  { %3084 = vmatpush3.bf16.msra.mxu1 %v3446_v30  ;;  %v3453_v30 = vld [vmem:[%s4279_s7 + $0x50] sm:$0xff]  }
 0x1fc   :  { %3109 = vmatprep.subr.bf16.mxu1 %v3523_v0 }
 0x299   :  { %v773_v31 = vpop.f32.mrb[16].mxu0 }
 0x29a   :  { %v3067_v32 = vpop.f32.mrb[17].mxu0 }
 0x29b   :  { %v776_v33 = vpop.f32.mrb[18].mxu0  ;;  %v3455_v32 = vld [vmem:[%s4279_s7 + $0x60] sm:$0xff]  }
 0x29c   :  { %v3068_v34 = vpop.f32.mrb[19].mxu0  ;;  %v3456_v33 = vld [vmem:[%s4279_s7 + $0x68] sm:$0xff]  }
 0x29d   :  { %v3457_v34 = vld [vmem:[%s4279_s7 + $0x70] sm:$0xff]  }
 0x2a1   :  { %v941_v35 = vpop.f32.mrb[20].mxu0 }
 0x2a2   :  { %v947_v37 = vpack.c.bf16 %v941_v35, %v941_v35  ;;  %v3095_v38 = vpop.f32.mrb[21].mxu0  ;;  %v3458_v35 = vld [vmem:[%s4279_s7 + $0x78] sm:$0xff]  }
 0x2a3   :  { %v944_v39 = vpop.f32.mrb[22].mxu0 }
 0x2a4   :  { %3106 = vmatmul.mubr.msk.bf16.vlgmr.msra.gmra.mrb[24].mxu0 %vm181_vm2, %v947_v37  ;;  %v3096_v40 = vpop.f32.mrb[23].mxu0  ;;  %v3459_v37 = vld [vmem:[%s4279_s7] sm:$0xff]  }
 0x2a5   :  { %3130 = vmatpush3.bf16.msra.mxu0 %v3439_v36  ;;  %3137 = vmatprep.mubr.msk.bf16.mxu0 %vm3524_vm0, %v3523_v0 }
 0x2a6   :  { %3131 = vmatprep.subr.bf16.mxu0 %v3523_v0 }
 0x2a9   :  { %3132 = vmatpush3.bf16.msra.mxu0 %v3440_v41 }
 0x2aa   :  { %3133 = vmatprep.subr.bf16.mxu0 %v3523_v0 }
 0x2ad   :  { %3134 = vmatpush3.bf16.msra.mxu0 %v3441_v42 }
 0x2ae   :  { %3135 = vmatprep.subr.bf16.mxu0 %v3523_v0 }
 0x2b1   :  { %3136 = vmatpush3.bf16.msra.mxu0 %v3442_v43 }
 0x2b2   :  { %3147 = vmatprep.subr.bf16.mxu0 %v3523_v0 }
 0x2b4   :  { %3138 = vmatmul.mubr.msk.bf16.vlgmr.msra.gmra.mrb[28].mxu0 %vm181_vm2, %v581_v21 }
 0x2b5   :  { %3149 = vmatprep.mubr.msk.bf16.mxu0 %vm3524_vm0, %v3523_v0 }
 0x2b9   :  { %v651_v44 = vpop.f32.mrb[24].mxu1 }
 0x2ba   :  { %v657_v45 = vadd.f32 %v651_v44, %v535_v19  ;;  %v3047_v46 = vpop.f32.mrb[25].mxu1 }
 0x2bb   :  { %v654_v47 = vpop.f32.mrb[26].mxu1  ;;  %v3460_v46 = vld [vmem:[%s4279_s7 + $0x8] sm:$0xff]  }
 0x2bc   :  { %v3048_v48 = vpop.f32.mrb[27].mxu1  ;;  %v779_v49 = vadd.f32 %v773_v31, %v657_v45  ;;  %v3454_v31 = vld [vmem:[%s4279_s7 + $0x58] sm:$0xff]   ;;  %v3461_v47 = vld [vmem:[%s4279_s7 + $0x10] sm:$0xff]  }
 0x2bd   :  { %v3462_v48 = vld [vmem:[%s4279_s7 + $0x18] sm:$0xff]  }
 0x2c1   :  { %v819_v50 = vpop.f32.mrb[28].mxu1 }
 0x2c2   :  { %v825_v51 = vpack.c.bf16 %v819_v50, %v819_v50  ;;  %v3075_v52 = vpop.f32.mrb[29].mxu1  ;;  %v3464_v50 = vld [vmem:[%s4279_s7 + $0x28] sm:$0xff]  }
 0x2c3   :  { %v822_v53 = vpop.f32.mrb[30].mxu1  ;;  %v3466_v52 = vld [vmem:[%s4279_s7 + $0x38] sm:$0xff]  }
 0x2c4   :  { %v3076_v54 = vpop.f32.mrb[31].mxu1  ;;  %3086 = vmatmul.mubr.msk.bf16.vlgmr.msra.gmra.mrb[32].mxu1 %vm181_vm2, %v825_v51  ;;  %v3465_v51 = vld [vmem:[%s4279_s7 + $0x30] sm:$0xff]  }
 0x2c5   :  { %3110 = vmatpush3.bf16.msra.mxu1 %v3580_v1  ;;  %3113 = vmatprep.mubr.msk.bf16.mxu1 %vm3524_vm0, %v3523_v0  ;;  %v3447_v1 = vld [vmem:[%s4277_s2 + $0x100] sm:$0xff]   ;;  %v2702_v54 = vld [vmem:[%s4281_s6 + $0x8] sm:$0xf] }
 0x2c6   :  { %3111 = vmatprep.subr.bf16.mxu1 %v3523_v0 }
 0x2c9   :  { %3112 = vmatpush3.bf16.msra.mxu1 %v3591_v2  ;;  %v3448_v2 = vld [vmem:[%s4277_s2 + $0x108] sm:$0xff]  }
 0x2ca   :  { %3117 = vmatprep.subr.bf16.mxu1 %v3523_v0 }
 0x2cc   :  { %3114 = vmatmul.mubr.msk.bf16.vlgmr.msra.gmra.mrb[36].mxu1 %vm50_vm1, %v2669_v55  ;;  %v3467_v55 = vld [vmem:[%s4279_s7 + $0x80] sm:$0xff]  }
 0x2cd   :  { %3125 = vmatprep.mubr.msk.bf16.mxu1 %vm3524_vm0, %v3523_v0  ;;  %3118 = vmatpush3.bf16.msra.mxu1 %v3447_v1  ;;  %v3468_v1 = vld [vmem:[%s4279_s7 + $0x88] sm:$0xff]  }
 0x2ce   :  { %3119 = vmatprep.subr.bf16.mxu1 %v3523_v0 }
 0x2d1   :  { %3120 = vmatpush3.bf16.msra.mxu1 %v3448_v2  ;;  %v3469_v2 = vld [vmem:[%s4279_s7 + $0x90] sm:$0xff]  }
 0x2d2   :  { %3121 = vmatprep.subr.bf16.mxu1 %v3523_v0 }
 0x2d5   :  { %3122 = vmatpush3.bf16.msra.mxu1 %v3449_v56  ;;  %v3470_v56 = vld [vmem:[%s4279_s7 + $0x98] sm:$0xff]  }
 0x2d6   :  { %3123 = vmatprep.subr.bf16.mxu1 %v3523_v0 }
 0x2d9   :  { %3124 = vmatpush3.bf16.msra.mxu1 %v3450_v57  ;;  %v3471_v57 = vld [vmem:[%s4279_s7 + $0xa0] sm:$0xff]  }
 0x2da   :  { %3141 = vmatprep.subr.bf16.mxu1 %v3523_v0 }
 0x377   :  { %v1017_v58 = vpop.f32.mrb[24].mxu0 }
 0x378   :  { %v3107_v59 = vpop.f32.mrb[25].mxu0 }
 0x379   :  { %v1020_v60 = vpop.f32.mrb[26].mxu0  ;;  %v3473_v59 = vld [vmem:[%s4279_s7 + $0xb0] sm:$0xff]  }
 0x37a   :  { %v3108_v61 = vpop.f32.mrb[27].mxu0  ;;  %v3474_v60 = vld [vmem:[%s4279_s7 + $0xb8] sm:$0xff]  }
 0x37b   :  { %v3475_v61 = vld [vmem:[%s4279_s7 + $0xc0] sm:$0xff]  }
 0x387   :  { %v3868_v62 = vpop.f32.mrb[28].mxu0 }
 0x388   :  { %v3139_v63 = vpop.f32.mrb[29].mxu0 }
 0x389   :  { %v1232_v3 = vpop.f32.mrb[30].mxu0  ;;  %v3476_v63 = vld [vmem:[%s4279_s7 + $0xc8] sm:$0xff]  }
 0x38a   :  { %v3140_v4 = vpop.f32.mrb[31].mxu0  ;;  %v3477_v3 = vld [vmem:[%s4279_s7 + $0xd0] sm:$0xff]  }
 0x38b   :  { %v3478_v4 = vld [vmem:[%s4279_s7 + $0xd8] sm:$0xff]  }
 0x397   :  { %v895_v5 = vpop.f32.mrb[32].mxu1 }
 0x398   :  { %v901_v6 = vadd.f32 %v895_v5, %v779_v49  ;;  %v3087_v7 = vpop.f32.mrb[33].mxu1  ;;  %v3463_v49 = vld [vmem:[%s4279_s7 + $0x20] sm:$0xff]  }
 0x399   :  { %v898_v8 = vpop.f32.mrb[34].mxu1  ;;  %v3479_v5 = vld [vmem:[%s4279_s7 + $0xe0] sm:$0xff]  }
 0x39a   :  { %v3088_v9 = vpop.f32.mrb[35].mxu1  ;;  %v1023_v10 = vadd.f32 %v1017_v58, %v901_v6  ;;  %v3472_v58 = vld [vmem:[%s4279_s7 + $0xa8] sm:$0xff]  }
 0x39b   :  { %v3480_v6 = vld [vmem:[%s4279_s7 + $0xe8] sm:$0xff]  }
 0x39f   :  { %v1063_v11 = vpop.f32.mrb[36].mxu1 }
 0x3a0   :  { %v1069_v12 = vpack.c.bf16 %v1063_v11, %v1063_v11  ;;  %v3115_v13 = vpop.f32.mrb[37].mxu1 }
 0x3a1   :  { %v1066_v14 = vpop.f32.mrb[38].mxu1  ;;  %v2722_v13 = vld [vmem:[%s4281_s6 + $0x10] sm:$0xf] }
 0x3a2   :  { %v3116_v15 = vpop.f32.mrb[39].mxu1  ;;  %3126 = vmatmul.mubr.msk.bf16.vlgmr.msra.gmra.mrb[40].mxu1 %vm181_vm2, %v1069_v12  ;;  %v2712_v12 = vld [vmem:[%s4281_s6 + $0xc] sm:$0xf]  ;;  %v2732_v14 = vld [vmem:[%s4281_s6 + $0x14] sm:$0xf] }
 0x3a3   :  { %3143 = vmatprep.mubr.msk.bf16.mxu1 %vm3524_vm0, %v3523_v0  ;;  %v2742_v15 = vld [vmem:[%s4281_s6 + $0x18] sm:$0xf] }
 0x475   :  { %v1139_v16 = vpop.f32.mrb[40].mxu1 }
 0x476   :  { %v1145_v18 = vadd.f32 %v1139_v16, %v1023_v10  ;;  %v3127_v19 = vpop.f32.mrb[41].mxu1  ;;  %v2752_v16 = vld [vmem:[%s4281_s6 + $0x1c] sm:$0xf] }
 0x477   :  { %v1142_v20 = vpop.f32.mrb[42].mxu1  ;;  %v3482_v19 = vld [vmem:[%s4279_s7 + $0xf8] sm:$0xff]  }
 0x478   :  { %v1153_v21 = vadd.f32 %v2676_v17, %v1145_v18  ;;  %v3128_v22 = vpop.f32.mrb[43].mxu1  ;;  %v2762_v17 = vld [vmem:[%s4281_s6 + $0x20] sm:$0xf]  ;;  %v3481_v18 = vld [vmem:[%s4279_s7 + $0xf0] sm:$0xff]  }
 0x479   :  { %v2677_v20 = vld [vmem:[%s4282_s5] ss:$0 sm:$0xff] }
 0x47a   :  { %v1154_v23 = vmax.f32 %v1153_v21, 0.0  ;;  %v1230_v21 = vadd.f32 %v2677_v20, %v3868_v62  ;;  %v3484_v62 = vld [vmem:[%s4279_s7 + $0x108] sm:$0xff]   ;;  %v3511_v20 = vld [vmem:[%s4279_s7 + $0x1e0] sm:$0xff]  }
 0x47c   :  { %v1155_v24 = vpack.c.bf16 %v1154_v23, %v1154_v23 }
 0x47e   :  { %v3876_v25 = vsel %vm1240_vm3, %v1155_v24, 0 }
 0x47f   :  { %3142 = vmatpush3.bf16.msra.mxu1 %v3876_v25  ;;  %3148 = vmatpush3.bf16.msra.mxu0 %v3876_v25 }
 0x480   :  { %3153 = vmatprep.subr.bf16.mxu1 %v3523_v0  ;;  %3225 = vmatprep.subr.bf16.mxu0 %v3523_v0 }
 0x482   :  { %3150 = vmatmul.mubr.msk.bf16.vlgmr.msra.gmra.mrb[32].mxu0 %vm1236_vm4, %v2684_v26  ;;  %3144 = vmatmul.mubr.msk.bf16.vlgmr.msra.gmra.mrb[44].mxu1 %vm1236_vm4, %v1235_v27 }
 0x483   :  { %3154 = vmatpush3.bf16.msra.mxu1 %v3451_v28  ;;  %3169 = vmatprep.mubr.msk.bf16.mxu1 %vm3524_vm0, %v3523_v0  ;;  %v3483_v28 = vld [vmem:[%s4279_s7 + $0x100] sm:$0xff]  }
 0x484   :  { %3155 = vmatprep.subr.bf16.mxu1 %v3523_v0  ;;  %3241 = vmatprep.mubr.msk.bf16.mxu0 %vm3524_vm0, %v3523_v0 }
 0x485   :  { %3226 = vmatpush3.bf16.msra.mxu0 %v3475_v61  ;;  %v3494_v61 = vld [vmem:[%s4279_s7 + $0x158] sm:$0xff]  }
 0x486   :  { %3227 = vmatprep.subr.bf16.mxu0 %v3523_v0 }
 0x487   :  { %3156 = vmatpush3.bf16.msra.mxu1 %v3452_v29 }
 0x488   :  { %3157 = vmatprep.subr.bf16.mxu1 %v3523_v0 }
 0x489   :  { %3228 = vmatpush3.bf16.msra.mxu0 %v3476_v63  ;;  %v3495_v63 = vld [vmem:[%s4279_s7 + $0x160] sm:$0xff]  }
 0x48a   :  { %3229 = vmatprep.subr.bf16.mxu0 %v3523_v0 }
 0x48b   :  { %3158 = vmatpush3.bf16.msra.mxu1 %v3453_v30 }
 0x48c   :  { %3159 = vmatprep.subr.bf16.mxu1 %v3523_v0 }
 0x48d   :  { %3230 = vmatpush3.bf16.msra.mxu0 %v3477_v3  ;;  %v3496_v3 = vld [vmem:[%s4279_s7 + $0x168] sm:$0xff]  }
 0x48e   :  { %3231 = vmatprep.subr.bf16.mxu0 %v3523_v0 }
 0x48f   :  { %3160 = vmatpush3.bf16.msra.mxu1 %v3454_v31 }
 0x490   :  { %3161 = vmatprep.subr.bf16.mxu1 %v3523_v0 }
 0x491   :  { %3232 = vmatpush3.bf16.msra.mxu0 %v3478_v4  ;;  %v3497_v4 = vld [vmem:[%s4279_s7 + $0x170] sm:$0xff]  }
 0x492   :  { %3233 = vmatprep.subr.bf16.mxu0 %v3523_v0 }
 0x493   :  { %3162 = vmatpush3.bf16.msra.mxu1 %v3455_v32 }
 0x494   :  { %3163 = vmatprep.subr.bf16.mxu1 %v3523_v0 }
 0x495   :  { %3234 = vmatpush3.bf16.msra.mxu0 %v3479_v5  ;;  %v3498_v5 = vld [vmem:[%s4279_s7 + $0x178] sm:$0xff]  }
 0x496   :  { %3235 = vmatprep.subr.bf16.mxu0 %v3523_v0 }
 0x497   :  { %3164 = vmatpush3.bf16.msra.mxu1 %v3456_v33  ;;  %v3485_v33 = vld [vmem:[%s4279_s7 + $0x110] sm:$0xff]  }
 0x498   :  { %3165 = vmatprep.subr.bf16.mxu1 %v3523_v0 }
 0x499   :  { %3236 = vmatpush3.bf16.msra.mxu0 %v3480_v6 }
 0x49a   :  { %3237 = vmatprep.subr.bf16.mxu0 %v3523_v0 }
 0x49b   :  { %3166 = vmatpush3.bf16.msra.mxu1 %v3457_v34 }
 0x49c   :  { %3167 = vmatprep.subr.bf16.mxu1 %v3523_v0 }
 0x49d   :  { %3238 = vmatpush3.bf16.msra.mxu0 %v3481_v18  ;;  %v3509_v18 = vld [vmem:[%s4279_s7 + $0x1d0] sm:$0xff]  }
 0x49e   :  { %3239 = vmatprep.subr.bf16.mxu0 %v3523_v0 }
 0x49f   :  { %3168 = vmatpush3.bf16.msra.mxu1 %v3458_v35 }
 0x4a0   :  { %3173 = vmatprep.subr.bf16.mxu1 %v3523_v0 }
 0x4a1   :  { %3240 = vmatpush3.bf16.msra.mxu0 %v3482_v19  ;;  %v3510_v19 = vld [vmem:[%s4279_s7 + $0x1d8] sm:$0xff]  }
 0x4a2   :  { %3251 = vmatprep.subr.bf16.mxu0 %v3523_v0 }
 0x555   :  { %v1340_v36 = vpop.f32.mrb[32].mxu0  ;;  %v1278_v38 = vpop.f32.mrb[44].mxu1 }
 0x556   :  { %v1346_v39 = vpack.c.bf16 %v1340_v36, %v1340_v36  ;;  %v3151_v40 = vpop.f32.mrb[33].mxu0  ;;  %v3145_v41 = vpop.f32.mrb[45].mxu1  ;;  %v1284_v53 = vpack.c.bf16 %v1278_v38, %v1278_v38  ;;  %v3486_v38 = vld [vmem:[%s4279_s7 + $0x118] sm:$0xff]  }
 0x557   :  { %v1343_v42 = vpop.f32.mrb[34].mxu0  ;;  %v1281_v43 = vpop.f32.mrb[46].mxu1 }
 0x558   :  { %3170 = vmatmul.mubr.bf16.vlgmr.msra.gmra.mrb[48].mxu1 %v1346_v39  ;;  %v3152_v44 = vpop.f32.mrb[35].mxu0  ;;  %v3146_v45 = vpop.f32.mrb[47].mxu1  ;;  %v3487_v39 = vld [vmem:[%s4279_s7 + $0x120] sm:$0xff]  }
 0x559   :  { %3174 = vmatpush3.bf16.msra.mxu1 %v3459_v37  ;;  %3189 = vmatprep.mubr.msk.bf16.mxu1 %vm3524_vm0, %v3523_v0  ;;  %v3488_v44 = vld [vmem:[%s4279_s7 + $0x128] sm:$0xff]   ;;  %v3489_v45 = vld [vmem:[%s4279_s7 + $0x130] sm:$0xff]  }
 0x55a   :  { %3175 = vmatprep.subr.bf16.mxu1 %v3523_v0 }
 0x55d   :  { %3176 = vmatpush3.bf16.msra.mxu1 %v3460_v46 }
 0x55e   :  { %3177 = vmatprep.subr.bf16.mxu1 %v3523_v0 }
 0x561   :  { %3178 = vmatpush3.bf16.msra.mxu1 %v3461_v47 }
 0x562   :  { %3179 = vmatprep.subr.bf16.mxu1 %v3523_v0 }
 0x565   :  { %3180 = vmatpush3.bf16.msra.mxu1 %v3462_v48 }
 0x566   :  { %3181 = vmatprep.subr.bf16.mxu1 %v3523_v0 }
 0x569   :  { %3182 = vmatpush3.bf16.msra.mxu1 %v3463_v49 }
 0x56a   :  { %3183 = vmatprep.subr.bf16.mxu1 %v3523_v0 }
 0x56d   :  { %3184 = vmatpush3.bf16.msra.mxu1 %v3464_v50  ;;  %v3490_v50 = vld [vmem:[%s4279_s7 + $0x138] sm:$0xff]  }
 0x56e   :  { %3185 = vmatprep.subr.bf16.mxu1 %v3523_v0 }
 0x571   :  { %3186 = vmatpush3.bf16.msra.mxu1 %v3465_v51 }
 0x572   :  { %3187 = vmatprep.subr.bf16.mxu1 %v3523_v0 }
 0x575   :  { %3188 = vmatpush3.bf16.msra.mxu1 %v3466_v52  ;;  %v3491_v52 = vld [vmem:[%s4279_s7 + $0x140] sm:$0xff]  }
 0x576   :  { %3193 = vmatprep.subr.bf16.mxu1 %v3523_v0 }
 0x578   :  { %3190 = vmatmul.mubr.bf16.vlgmr.msra.gmra.mrb[48].mxu1 %v1284_v53 }
 0x579   :  { %3194 = vmatpush3.bf16.msra.mxu1 %v3876_v25  ;;  %3195 = vmatprep.mubr.msk.bf16.mxu1 %vm3524_vm0, %v3523_v0 }
 0x57a   :  { %3199 = vmatprep.subr.bf16.mxu1 %v3523_v0 }
 0x580   :  { %3196 = vmatmul.mubr.msk.bf16.vlgmr.msra.gmra.mrb[52].mxu1 %vm1236_vm4, %v2702_v54 }
 0x581   :  { %3200 = vmatpush3.bf16.msra.mxu1 %v3467_v55  ;;  %3215 = vmatprep.mubr.msk.bf16.mxu1 %vm3524_vm0, %v3523_v0 }
 0x582   :  { %3201 = vmatprep.subr.bf16.mxu1 %v3523_v0 }
 0x585   :  { %3202 = vmatpush3.bf16.msra.mxu1 %v3468_v1 }
 0x586   :  { %3203 = vmatprep.subr.bf16.mxu1 %v3523_v0 }
 0x589   :  { %3204 = vmatpush3.bf16.msra.mxu1 %v3469_v2  ;;  %v3492_v2 = vld [vmem:[%s4279_s7 + $0x148] sm:$0xff]  }
 0x58a   :  { %3205 = vmatprep.subr.bf16.mxu1 %v3523_v0 }
 0x58d   :  { %3206 = vmatpush3.bf16.msra.mxu1 %v3470_v56  ;;  %v3493_v56 = vld [vmem:[%s4279_s7 + $0x150] sm:$0xff]  }
 0x58e   :  { %3207 = vmatprep.subr.bf16.mxu1 %v3523_v0 }
 0x591   :  { %3208 = vmatpush3.bf16.msra.mxu1 %v3471_v57 }
 0x592   :  { %3209 = vmatprep.subr.bf16.mxu1 %v3523_v0 }
 0x595   :  { %3210 = vmatpush3.bf16.msra.mxu1 %v3472_v58 }
 0x596   :  { %3211 = vmatprep.subr.bf16.mxu1 %v3523_v0 }
 0x599   :  { %3212 = vmatpush3.bf16.msra.mxu1 %v3473_v59 }
 0x59a   :  { %3213 = vmatprep.subr.bf16.mxu1 %v3523_v0 }
 0x59d   :  { %3214 = vmatpush3.bf16.msra.mxu1 %v3474_v60 }
 0x59e   :  { %3219 = vmatprep.subr.bf16.mxu1 %v3523_v0 }
 0x653   :  { %v1578_v7 = vpop.f32.mrb[52].mxu1 }
 0x654   :  { %v1584_v8 = vpack.c.bf16 %v1578_v7, %v1578_v7  ;;  %v3197_v9 = vpop.f32.mrb[53].mxu1  ;;  %v3499_v7 = vld [vmem:[%s4279_s7 + $0x180] sm:$0xff]  }
 0x655   :  { %v1581_v10 = vpop.f32.mrb[54].mxu1  ;;  %v3501_v9 = vld [vmem:[%s4279_s7 + $0x190] sm:$0xff]  }
 0x656   :  { %3216 = vmatmul.mubr.bf16.vlgmr.msra.gmra.mrb[48].mxu1 %v1584_v8  ;;  %v3198_v11 = vpop.f32.mrb[55].mxu1  ;;  %v3500_v8 = vld [vmem:[%s4279_s7 + $0x188] sm:$0xff]   ;;  %v3502_v10 = vld [vmem:[%s4279_s7 + $0x198] sm:$0xff]  }
 0x657   :  { %3220 = vmatpush3.bf16.msra.mxu1 %v3876_v25  ;;  %3221 = vmatprep.mubr.msk.bf16.mxu1 %vm3524_vm0, %v3523_v0  ;;  %v3503_v11 = vld [vmem:[%s4279_s7 + $0x1a0] sm:$0xff]  }
 0x658   :  { %3245 = vmatprep.subr.bf16.mxu1 %v3523_v0 }
 0x65e   :  { %3222 = vmatmul.mubr.msk.bf16.vlgmr.msra.gmra.mrb[56].mxu1 %vm1236_vm4, %v2712_v12  ;;  %v3504_v12 = vld [vmem:[%s4279_s7 + $0x1a8] sm:$0xff]  }
 0x65f   :  { %3246 = vmatpush3.bf16.msra.mxu1 %v3876_v25  ;;  %3247 = vmatprep.mubr.msk.bf16.mxu1 %vm3524_vm0, %v3523_v0 }
 0x660   :  { %3271 = vmatprep.subr.bf16.mxu1 %v3523_v0 }
 0x666   :  { %3248 = vmatmul.mubr.msk.bf16.vlgmr.msra.gmra.mrb[60].mxu1 %vm1236_vm4, %v2722_v13  ;;  %v3505_v13 = vld [vmem:[%s4279_s7 + $0x1b0] sm:$0xff]  }
 0x667   :  { %3272 = vmatpush3.bf16.msra.mxu1 %v3876_v25  ;;  %3273 = vmatprep.mubr.msk.bf16.mxu1 %vm3524_vm0, %v3523_v0 }
 0x668   :  { %3297 = vmatprep.subr.bf16.mxu1 %v3523_v0 }
 0x66e   :  { %3274 = vmatmul.mubr.msk.bf16.vlgmr.msra.gmra.mrb[64].mxu1 %vm1236_vm4, %v2732_v14  ;;  %v3506_v14 = vld [vmem:[%s4279_s7 + $0x1b8] sm:$0xff]  }
 0x66f   :  { %3298 = vmatpush3.bf16.msra.mxu1 %v3876_v25  ;;  %3299 = vmatprep.mubr.msk.bf16.mxu1 %vm3524_vm0, %v3523_v0 }
 0x670   :  { %3323 = vmatprep.subr.bf16.mxu1 %v3523_v0 }
 0x676   :  { %3300 = vmatmul.mubr.msk.bf16.vlgmr.msra.gmra.mrb[68].mxu1 %vm1236_vm4, %v2742_v15 }
 0x677   :  { %3324 = vmatpush3.bf16.msra.mxu1 %v3876_v25  ;;  %3325 = vmatprep.mubr.msk.bf16.mxu1 %vm3524_vm0, %v3523_v0 }
 0x678   :  { %3349 = vmatprep.subr.bf16.mxu1 %v3523_v0 }
 0x67e   :  { %3326 = vmatmul.mubr.msk.bf16.vlgmr.msra.gmra.mrb[72].mxu1 %vm1236_vm4, %v2752_v16  ;;  %v3507_v16 = vld [vmem:[%s4279_s7 + $0x1c0] sm:$0xff]  }
 0x67f   :  { %3350 = vmatpush3.bf16.msra.mxu1 %v3876_v25  ;;  %3351 = vmatprep.mubr.msk.bf16.mxu1 %vm3524_vm0, %v3523_v0 }
 0x686   :  { %3352 = vmatmul.mubr.msk.bf16.vlgmr.msra.gmra.mrb[76].mxu1 %vm1236_vm4, %v2762_v17  ;;  %v3508_v17 = vld [vmem:[%s4279_s7 + $0x1c8] sm:$0xff]  }
 0x729   :  { %v1683_v22 = vpop.f32.mrb[48].mxu1 }
 0x72a   :  { %v4085_v23 = vadd.f32 %v1683_v22, %v1230_v21  ;;  %v3217_v24 = vpop.f32.mrb[49].mxu1  ;;  %v3512_v21 = vld [vmem:[%s4279_s7 + $0x1e8] sm:$0xff]   ;;  %v3513_v22 = vld [vmem:[%s4279_s7 + $0x1f0] sm:$0xff]  }
 0x72b   :  { %v1686_v25 = vpop.f32.mrb[50].mxu1  ;;  %v3514_v24 = vld [vmem:[%s4279_s7 + $0x1f8] sm:$0xff]  }
 0x72c   :  { %v3218_v26 = vpop.f32.mrb[51].mxu1 }
 0x72d   :  { %v3515_v26 = vld [vmem:[%s4279_s7 + $0x200] sm:$0xff]  }
 0x731   :  { %v1729_v27 = vpop.f32.mrb[56].mxu1 }
 0x732   :  { %v1735_v29 = vpack.c.bf16 %v1729_v27, %v1729_v27  ;;  %v3223_v30 = vpop.f32.mrb[57].mxu1  ;;  %v3516_v27 = vld [vmem:[%s4279_s7 + $0x208] sm:$0xff]  }
 0x733   :  { %v1732_v31 = vpop.f32.mrb[58].mxu1  ;;  %v3519_v30 = vld [vmem:[%s4279_s7 + $0x220] sm:$0xff]  }
 0x734   :  { %3242 = vmatmul.mubr.bf16.vlgmr.msra.gmra.mrb[36].mxu0 %v1735_v29  ;;  %v3224_v32 = vpop.f32.mrb[59].mxu1  ;;  %v3518_v29 = vld [vmem:[%s4279_s7 + $0x218] sm:$0xff]   ;;  %v3520_v31 = vld [vmem:[%s4279_s7 + $0x228] sm:$0xff]  }
 0x735   :  { %3252 = vmatpush3.bf16.msra.mxu0 %v3483_v28  ;;  %3267 = vmatprep.mubr.msk.bf16.mxu0 %vm3524_vm0, %v3523_v0  ;;  %v3517_v28 = vld [vmem:[%s4279_s7 + $0x210] sm:$0xff]  }
 0x736   :  { %3253 = vmatprep.subr.bf16.mxu0 %v3523_v0  ;;  %v3521_v32 = vld [vmem:[%s4279_s7 + $0x230] sm:$0xff]  }
 0x739   :  { %3254 = vmatpush3.bf16.msra.mxu0 %v3484_v62  ;;  %v1880_v34 = vpop.f32.mrb[60].mxu1  ;;  %v3522_v62 = vld [vmem:[%s4279_s7 + $0x238] sm:$0xff]  }
 0x73a   :  { %3255 = vmatprep.subr.bf16.mxu0 %v3523_v0  ;;  %v3249_v35 = vpop.f32.mrb[61].mxu1  ;;  %v1886_v51 = vpack.c.bf16 %v1880_v34, %v1880_v34 }
 0x73b   :  { %v1883_v36 = vpop.f32.mrb[62].mxu1  ;;  %v2772_v35 = vld [vmem:[%s4283_s8] ss:$0 sm:$0xff] }
 0x73c   :  { %v3250_v37 = vpop.f32.mrb[63].mxu1 }
 0x73d   :  { %3256 = vmatpush3.bf16.msra.mxu0 %v3485_v33 }
 0x73e   :  { %3257 = vmatprep.subr.bf16.mxu0 %v3523_v0 }
 0x741   :  { %3258 = vmatpush3.bf16.msra.mxu0 %v3486_v38  ;;  %v2031_v40 = vpop.f32.mrb[64].mxu1 }
 0x742   :  { %3259 = vmatprep.subr.bf16.mxu0 %v3523_v0  ;;  %v3275_v41 = vpop.f32.mrb[65].mxu1  ;;  %v2037_v6 = vpack.c.bf16 %v2031_v40, %v2031_v40 }
 0x743   :  { %v2034_v42 = vpop.f32.mrb[66].mxu1 }
 0x744   :  { %v3276_v43 = vpop.f32.mrb[67].mxu1 }
 0x745   :  { %3260 = vmatpush3.bf16.msra.mxu0 %v3487_v39 }
 0x746   :  { %3261 = vmatprep.subr.bf16.mxu0 %v3523_v0 }
 0x749   :  { %3262 = vmatpush3.bf16.msra.mxu0 %v3488_v44  ;;  %v4115_v46 = vpop.f32.mrb[68].mxu1 }
 0x74a   :  { %3263 = vmatprep.subr.bf16.mxu0 %v3523_v0  ;;  %v3301_v47 = vpop.f32.mrb[69].mxu1  ;;  %v2188_v15 = vpack.c.bf16 %v4115_v46, %v4115_v46 }
 0x74b   :  { %v2185_v48 = vpop.f32.mrb[70].mxu1 }
 0x74c   :  { %v3302_v49 = vpop.f32.mrb[71].mxu1 }
 0x74d   :  { %3264 = vmatpush3.bf16.msra.mxu0 %v3489_v45 }
 0x74e   :  { %3265 = vmatprep.subr.bf16.mxu0 %v3523_v0 }
 0x751   :  { %3266 = vmatpush3.bf16.msra.mxu0 %v3490_v50  ;;  %v4125_v53 = vpop.f32.mrb[72].mxu1 }
 0x752   :  { %3277 = vmatprep.subr.bf16.mxu0 %v3523_v0  ;;  %v3327_v54 = vpop.f32.mrb[73].mxu1  ;;  %v2339_v25 = vpack.c.bf16 %v4125_v53, %v4125_v53 }
 0x753   :  { %v2336_v55 = vpop.f32.mrb[74].mxu1 }
 0x754   :  { %3268 = vmatmul.mubr.bf16.vlgmr.msra.gmra.mrb[36].mxu0 %v1886_v51  ;;  %v3328_v1 = vpop.f32.mrb[75].mxu1 }
 0x755   :  { %3278 = vmatpush3.bf16.msra.mxu0 %v3491_v52  ;;  %3293 = vmatprep.mubr.msk.bf16.mxu0 %vm3524_vm0, %v3523_v0 }
 0x756   :  { %3279 = vmatprep.subr.bf16.mxu0 %v3523_v0 }
 0x759   :  { %3280 = vmatpush3.bf16.msra.mxu0 %v3492_v2  ;;  %v4137_v57 = vpop.f32.mrb[76].mxu1 }
 0x75a   :  { %3281 = vmatprep.subr.bf16.mxu0 %v3523_v0  ;;  %v3353_v58 = vpop.f32.mrb[77].mxu1  ;;  %v2490_v33 = vpack.c.bf16 %v4137_v57, %v4137_v57 }
 0x75b   :  { %v2487_v59 = vpop.f32.mrb[78].mxu1 }
 0x75c   :  { %v3354_v60 = vpop.f32.mrb[79].mxu1 }
 0x75d   :  { %3282 = vmatpush3.bf16.msra.mxu0 %v3493_v56 }
 0x75e   :  { %3283 = vmatprep.subr.bf16.mxu0 %v3523_v0 }
 0x761   :  { %3284 = vmatpush3.bf16.msra.mxu0 %v3494_v61 }
 0x762   :  { %3285 = vmatprep.subr.bf16.mxu0 %v3523_v0 }
 0x765   :  { %3286 = vmatpush3.bf16.msra.mxu0 %v3495_v63 }
 0x766   :  { %3287 = vmatprep.subr.bf16.mxu0 %v3523_v0 }
 0x769   :  { %3288 = vmatpush3.bf16.msra.mxu0 %v3496_v3 }
 0x76a   :  { %3289 = vmatprep.subr.bf16.mxu0 %v3523_v0 }
 0x76d   :  { %3290 = vmatpush3.bf16.msra.mxu0 %v3497_v4 }
 0x76e   :  { %3291 = vmatprep.subr.bf16.mxu0 %v3523_v0 }
 0x771   :  { %3292 = vmatpush3.bf16.msra.mxu0 %v3498_v5 }
 0x772   :  { %3303 = vmatprep.subr.bf16.mxu0 %v3523_v0 }
 0x774   :  { %3294 = vmatmul.mubr.bf16.vlgmr.msra.gmra.mrb[36].mxu0 %v2037_v6 }
 0x775   :  { %3304 = vmatpush3.bf16.msra.mxu0 %v3499_v7  ;;  %3319 = vmatprep.mubr.msk.bf16.mxu0 %vm3524_vm0, %v3523_v0 }
 0x776   :  { %3305 = vmatprep.subr.bf16.mxu0 %v3523_v0 }
 0x779   :  { %3306 = vmatpush3.bf16.msra.mxu0 %v3500_v8 }
 0x77a   :  { %3307 = vmatprep.subr.bf16.mxu0 %v3523_v0 }
 0x77d   :  { %3308 = vmatpush3.bf16.msra.mxu0 %v3501_v9 }
 0x77e   :  { %3309 = vmatprep.subr.bf16.mxu0 %v3523_v0 }
 0x781   :  { %3310 = vmatpush3.bf16.msra.mxu0 %v3502_v10 }
 0x782   :  { %3311 = vmatprep.subr.bf16.mxu0 %v3523_v0 }
 0x785   :  { %3312 = vmatpush3.bf16.msra.mxu0 %v3503_v11 }
 0x786   :  { %3313 = vmatprep.subr.bf16.mxu0 %v3523_v0 }
 0x789   :  { %3314 = vmatpush3.bf16.msra.mxu0 %v3504_v12 }
 0x78a   :  { %3315 = vmatprep.subr.bf16.mxu0 %v3523_v0 }
 0x78d   :  { %3316 = vmatpush3.bf16.msra.mxu0 %v3505_v13 }
 0x78e   :  { %3317 = vmatprep.subr.bf16.mxu0 %v3523_v0 }
 0x791   :  { %3318 = vmatpush3.bf16.msra.mxu0 %v3506_v14 }
 0x792   :  { %3329 = vmatprep.subr.bf16.mxu0 %v3523_v0 }
 0x794   :  { %3320 = vmatmul.mubr.bf16.vlgmr.msra.gmra.mrb[36].mxu0 %v2188_v15 }
 0x795   :  { %3330 = vmatpush3.bf16.msra.mxu0 %v3507_v16  ;;  %3345 = vmatprep.mubr.msk.bf16.mxu0 %vm3524_vm0, %v3523_v0 }
 0x796   :  { %3331 = vmatprep.subr.bf16.mxu0 %v3523_v0 }
 0x799   :  { %3332 = vmatpush3.bf16.msra.mxu0 %v3508_v17 }
 0x79a   :  { %3333 = vmatprep.subr.bf16.mxu0 %v3523_v0 }
 0x79d   :  { %3334 = vmatpush3.bf16.msra.mxu0 %v3509_v18 }
 0x79e   :  { %3335 = vmatprep.subr.bf16.mxu0 %v3523_v0 }
 0x7a1   :  { %3336 = vmatpush3.bf16.msra.mxu0 %v3510_v19 }
 0x7a2   :  { %3337 = vmatprep.subr.bf16.mxu0 %v3523_v0 }
 0x7a5   :  { %3338 = vmatpush3.bf16.msra.mxu0 %v3511_v20 }
 0x7a6   :  { %3339 = vmatprep.subr.bf16.mxu0 %v3523_v0 }
 0x7a9   :  { %3340 = vmatpush3.bf16.msra.mxu0 %v3512_v21 }
 0x7aa   :  { %3341 = vmatprep.subr.bf16.mxu0 %v3523_v0 }
 0x7ad   :  { %3342 = vmatpush3.bf16.msra.mxu0 %v3513_v22 }
 0x7ae   :  { %3343 = vmatprep.subr.bf16.mxu0 %v3523_v0 }
 0x7b1   :  { %3344 = vmatpush3.bf16.msra.mxu0 %v3514_v24 }
 0x7b2   :  { %3355 = vmatprep.subr.bf16.mxu0 %v3523_v0 }
 0x7b4   :  { %3346 = vmatmul.mubr.bf16.vlgmr.msra.gmra.mrb[36].mxu0 %v2339_v25 }
 0x7b5   :  { %3356 = vmatpush3.bf16.msra.mxu0 %v3515_v26  ;;  %3371 = vmatprep.mubr.msk.bf16.mxu0 %vm3524_vm0, %v3523_v0 }
 0x7b6   :  { %3357 = vmatprep.subr.bf16.mxu0 %v3523_v0 }
 0x7b9   :  { %3358 = vmatpush3.bf16.msra.mxu0 %v3516_v27 }
 0x7ba   :  { %3359 = vmatprep.subr.bf16.mxu0 %v3523_v0 }
 0x7bd   :  { %3360 = vmatpush3.bf16.msra.mxu0 %v3517_v28 }
 0x7be   :  { %3361 = vmatprep.subr.bf16.mxu0 %v3523_v0 }
 0x7c1   :  { %3362 = vmatpush3.bf16.msra.mxu0 %v3518_v29 }
 0x7c2   :  { %3363 = vmatprep.subr.bf16.mxu0 %v3523_v0 }
 0x7c5   :  { %3364 = vmatpush3.bf16.msra.mxu0 %v3519_v30 }
 0x7c6   :  { %3365 = vmatprep.subr.bf16.mxu0 %v3523_v0 }
 0x7c9   :  { %3366 = vmatpush3.bf16.msra.mxu0 %v3520_v31 }
 0x7ca   :  { %3367 = vmatprep.subr.bf16.mxu0 %v3523_v0 }
 0x7cd   :  { %3368 = vmatpush3.bf16.msra.mxu0 %v3521_v32 }
 0x7ce   :  { %3369 = vmatprep.subr.bf16.mxu0 %v3523_v0 }
 0x7d1   :  { %3370 = vmatpush3.bf16.msra.mxu0 %v3522_v62 }
 0x7d4   :  { %3372 = vmatmul.mubr.bf16.vlgmr.msra.gmra.mrb[36].mxu0 %v2490_v33 }
 0x8a7   :  { %v2589_v34 = vpop.f32.mrb[36].mxu0 }
 0x8a8   :  { %v3377_v36 = vadd.f32 %v4085_v23, %v2589_v34  ;;  %v3373_v37 = vpop.f32.mrb[37].mxu0 }
 0x8a9   :  { %v2592_v38 = vpop.f32.mrb[38].mxu0 }
 0x8aa   :  { %v3378_v39 = vadd.f32 %v3377_v36, %v2772_v35  ;;  %v3374_v40 = vpop.f32.mrb[39].mxu0 }
 0x8ac   :  { %v2605_v41 = vmax.f32 %v3378_v39, 0.0 }
 0x8ae   :  { %v2606_v42 = vpack.c.bf16 %v2605_v41, %v2605_v41 }
 0x8b0   :  { %2607 = vst [vmem:[%s4284_s9] sm:$0xf] %v2606_v42 }

// kernel: resnet_forward.24
= control target key start
LH: loop header
LB: loop body
LE: loop exit
PB: predicated region body
PF: predicated region fallthrough
CT: control target
= control target key end

     0   :  { %vm57_vm0 = vcmask 261120   ;;  %vm227_vm1 = vcmask 523264   ;;  %vm3017_vm2 = vcmask 519168   ;;  %s4705_s0 = inlined_call_operand.vmem [shape: bf16[32,64], index: 0, kind: input, shape index: {}]   ;;  %s4706_s1 = inlined_call_operand.vmem [shape: bf16[9,32,32], index: 1, kind: input, shape index: {}, may-alias: {1,4}]   ;;  %s4707_s2 = inlined_call_operand.vmem [shape: bf16[576,64], index: 2, kind: input, shape index: {}]   ;;  %s4708_s5 = inlined_call_operand.vmem [shape: bf16[576,64], index: 5, kind: input, shape index: {}]   ;;  %s4709_s4 = inlined_call_operand.vmem [shape: bf16[9,32,32], index: 4, kind: input, shape index: {}, may-alias: {1,4}]   ;;  %s4710_s3 = inlined_call_operand.vmem [shape: f32[1,64], index: 3, kind: input, shape index: {}]   ;;  %s4711_s6 = inlined_call_operand.vmem [shape: f32[1,64], index: 6, kind: input, shape index: {}]   ;;  %s4712_s7 = inlined_call_operand.vmem [shape: bf16[32,64], index: 7, kind: output, shape index: {}]  }
   0x1   :  { %v4043_v0 = vld [vmem:[%s4705_s0] sm:$0xff]   ;;  %v4048_v1 = vld [vmem:[%s4705_s0 + $0x8] sm:$0xff]   ;;  %v3890_v5 = vld [vmem:[%s4706_s1 + $0x10] sm:$0xff]  }
   0x2   :  { %v3888_v2 = vld [vmem:[%s4706_s1] sm:$0xff]   ;;  %3462 = vmatprep.subr.bf16.mxu0 %v4043_v0  ;;  %3502 = vmatprep.subr.bf16.mxu1 %v4043_v0  ;;  %v3889_v4 = vld [vmem:[%s4706_s1 + $0x8] sm:$0xff]   ;;  %v3894_v7 = vld [vmem:[%s4706_s1 + $0x30] sm:$0xff]  }
   0x3   :  { %3466 = vmatprep.mubr.msk.bf16.mxu0 %vm57_vm0, %v3888_v2  ;;  %3463 = vmatpush3.bf16.msra.mxu0 %v4043_v0  ;;  %v3892_v3 = vld [vmem:[%s4706_s1 + $0x20] sm:$0xff]   ;;  %v3893_v6 = vld [vmem:[%s4706_s1 + $0x28] sm:$0xff]   ;;  %v3891_v8 = vld [vmem:[%s4706_s1 + $0x18] sm:$0xff]  }
   0x4   :  { %3464 = vmatprep.subr.bf16.mxu0 %v4048_v1  ;;  %3503 = vmatpush3.bf16.msra.mxu1 %v4043_v0  ;;  %v3895_v9 = vld [vmem:[%s4706_s1 + $0x38] sm:$0xff]   ;;  %v3896_v10 = vld [vmem:[%s4706_s1 + $0x40] sm:$0xff]   ;;  %v3897_v12 = vld [vmem:[%s4706_s1 + $0x48] sm:$0xff]  }
   0x5   :  { %3504 = vmatprep.subr.bf16.mxu1 %v4048_v1  ;;  %3506 = vmatprep.mubr.msk.bf16.mxu1 %vm57_vm0, %v3892_v3  ;;  %v3906_v11 = vld [vmem:[%s4707_s2 + $0x20] sm:$0xff]   ;;  %v3898_v13 = vld [vmem:[%s4706_s1 + $0x50] sm:$0xff]   ;;  %v3899_v14 = vld [vmem:[%s4706_s1 + $0x58] sm:$0xff]  }
   0x6   :  { %v3900_v15 = vld [vmem:[%s4706_s1 + $0x60] sm:$0xff]   ;;  %v3901_v16 = vld [vmem:[%s4706_s1 + $0x68] sm:$0xff]   ;;  %v3902_v17 = vld [vmem:[%s4706_s1 + $0x70] sm:$0xff]  }
   0x7   :  { %3465 = vmatpush3.bf16.msra.mxu0 %v4048_v1  ;;  %v3903_v18 = vld [vmem:[%s4706_s1 + $0x78] sm:$0xff]   ;;  %v3904_v19 = vld [vmem:[%s4706_s1 + $0x80] sm:$0xff]   ;;  %v3905_v20 = vld [vmem:[%s4706_s1 + $0x88] sm:$0xff]  }
   0x8   :  { %3470 = vmatprep.subr.bf16.mxu0 %v4043_v0  ;;  %3505 = vmatpush3.bf16.msra.mxu1 %v4048_v1  ;;  %v3907_v21 = vld [vmem:[%s4707_s2 + $0x28] sm:$0xff]   ;;  %v3908_v22 = vld [vmem:[%s4707_s2 + $0x30] sm:$0xff]   ;;  %v3909_v23 = vld [vmem:[%s4707_s2 + $0x38] sm:$0xff]  }
   0x9   :  { %3522 = vmatprep.subr.bf16.mxu1 %v4043_v0  ;;  %v3910_v24 = vld [vmem:[%s4707_s2] sm:$0xff]   ;;  %v3911_v46 = vld [vmem:[%s4707_s2 + $0x8] sm:$0xff]   ;;  %v3912_v50 = vld [vmem:[%s4707_s2 + $0x10] sm:$0xff]  }
   0xa   :  { %3467 = vmatmul.mubr.msk.bf16.vlgmr.msra.gmra.mrb[0].mxu0 %vm57_vm0, %v3889_v4  ;;  %v3913_v54 = vld [vmem:[%s4707_s2 + $0x18] sm:$0xff]   ;;  %v3914_v58 = vld [vmem:[%s4707_s2 + $0x40] sm:$0xff]   ;;  %v3915_v62 = vld [vmem:[%s4707_s2 + $0x48] sm:$0xff]  }
   0xb   :  { %3471 = vmatpush3.bf16.msra.mxu0 %v4043_v0  ;;  %3474 = vmatprep.mubr.msk.bf16.mxu0 %vm57_vm0, %v3890_v5  ;;  %v3916_v2 = vld [vmem:[%s4707_s2 + $0x50] sm:$0xff]  }
   0xc   :  { %3472 = vmatprep.subr.bf16.mxu0 %v4048_v1  ;;  %3507 = vmatmul.mubr.msk.bf16.vlgmr.msra.gmra.mrb[0].mxu1 %vm57_vm0, %v3893_v6  ;;  %v3917_v6 = vld [vmem:[%s4707_s2 + $0x58] sm:$0xff]  }
   0xd   :  { %3523 = vmatpush3.bf16.msra.mxu1 %v4043_v0  ;;  %3526 = vmatprep.mubr.msk.bf16.mxu1 %vm57_vm0, %v3894_v7 }
   0xe   :  { %3524 = vmatprep.subr.bf16.mxu1 %v4048_v1 }
   0xf   :  { %3473 = vmatpush3.bf16.msra.mxu0 %v4048_v1 }
  0x10   :  { %3478 = vmatprep.subr.bf16.mxu0 %v3906_v11 }
  0x11   :  { %3525 = vmatpush3.bf16.msra.mxu1 %v4048_v1 }
  0x12   :  { %3475 = vmatmul.mubr.msk.bf16.vlgmr.msra.gmra.mrb[4].mxu0 %vm57_vm0, %v3891_v8  ;;  %3542 = vmatprep.subr.bf16.mxu1 %v4043_v0 }
  0x13   :  { %3479 = vmatpush3.bf16.msra.mxu0 %v3906_v11 }
  0x14   :  { %3527 = vmatmul.mubr.msk.bf16.vlgmr.msra.gmra.mrb[4].mxu1 %vm57_vm0, %v3895_v9  ;;  %3480 = vmatprep.subr.bf16.mxu0 %v3907_v21 }
  0x15   :  { %3543 = vmatpush3.bf16.msra.mxu1 %v4043_v0  ;;  %3546 = vmatprep.mubr.msk.bf16.mxu1 %vm57_vm0, %v3896_v10  ;;  %v3918_v10 = vld [vmem:[%s4707_s2 + $0x60] sm:$0xff]  }
  0x16   :  { %3544 = vmatprep.subr.bf16.mxu1 %v4048_v1 }
  0x17   :  { %3481 = vmatpush3.bf16.msra.mxu0 %v3907_v21 }
  0x18   :  { %3482 = vmatprep.subr.bf16.mxu0 %v3908_v22 }
  0x19   :  { %3545 = vmatpush3.bf16.msra.mxu1 %v4048_v1 }
  0x1a   :  { %3562 = vmatprep.subr.bf16.mxu1 %v4043_v0 }
  0x1b   :  { %3483 = vmatpush3.bf16.msra.mxu0 %v3908_v22  ;;  %v3921_v22 = vld [vmem:[%s4707_s2 + $0x78] sm:$0xff]  }
  0x1c   :  { %3547 = vmatmul.mubr.msk.bf16.vlgmr.msra.gmra.mrb[8].mxu1 %vm57_vm0, %v3897_v12  ;;  %3484 = vmatprep.subr.bf16.mxu0 %v3909_v23 }
  0x1d   :  { %3563 = vmatpush3.bf16.msra.mxu1 %v4043_v0  ;;  %3566 = vmatprep.mubr.msk.bf16.mxu1 %vm57_vm0, %v3898_v13 }
  0x1e   :  { %3564 = vmatprep.subr.bf16.mxu1 %v4048_v1 }
  0x1f   :  { %3485 = vmatpush3.bf16.msra.mxu0 %v3909_v23 }
  0x20   :  { %3490 = vmatprep.subr.bf16.mxu0 %v3910_v24 }
  0x21   :  { %3565 = vmatpush3.bf16.msra.mxu1 %v4048_v1 }
  0x22   :  { %3582 = vmatprep.subr.bf16.mxu1 %v4043_v0 }
  0x24   :  { %3567 = vmatmul.mubr.msk.bf16.vlgmr.msra.gmra.mrb[12].mxu1 %vm57_vm0, %v3899_v14  ;;  %v3919_v14 = vld [vmem:[%s4707_s2 + $0x68] sm:$0xff]  }
  0x25   :  { %3583 = vmatpush3.bf16.msra.mxu1 %v4043_v0  ;;  %3586 = vmatprep.mubr.msk.bf16.mxu1 %vm57_vm0, %v3900_v15 }
  0x26   :  { %3584 = vmatprep.subr.bf16.mxu1 %v4048_v1 }
  0x29   :  { %3585 = vmatpush3.bf16.msra.mxu1 %v4048_v1 }
  0x2a   :  { %3602 = vmatprep.subr.bf16.mxu1 %v4043_v0 }
  0x2c   :  { %3587 = vmatmul.mubr.msk.bf16.vlgmr.msra.gmra.mrb[16].mxu1 %vm57_vm0, %v3901_v16 }
  0x2d   :  { %3603 = vmatpush3.bf16.msra.mxu1 %v4043_v0  ;;  %3606 = vmatprep.mubr.msk.bf16.mxu1 %vm57_vm0, %v3902_v17 }
  0x2e   :  { %3604 = vmatprep.subr.bf16.mxu1 %v4048_v1 }
  0x31   :  { %3605 = vmatpush3.bf16.msra.mxu1 %v4048_v1 }
  0x32   :  { %3622 = vmatprep.subr.bf16.mxu1 %v4043_v0 }
  0x34   :  { %3607 = vmatmul.mubr.msk.bf16.vlgmr.msra.gmra.mrb[20].mxu1 %vm57_vm0, %v3903_v18  ;;  %v3920_v18 = vld [vmem:[%s4707_s2 + $0x70] sm:$0xff]  }
  0x35   :  { %3623 = vmatpush3.bf16.msra.mxu1 %v4043_v0  ;;  %3626 = vmatprep.mubr.msk.bf16.mxu1 %vm57_vm0, %v3904_v19 }
  0x36   :  { %3624 = vmatprep.subr.bf16.mxu1 %v4048_v1 }
  0x39   :  { %3625 = vmatpush3.bf16.msra.mxu1 %v4048_v1 }
  0x3c   :  { %3627 = vmatmul.mubr.msk.bf16.vlgmr.msra.gmra.mrb[24].mxu1 %vm57_vm0, %v3905_v20 }
  0xdd   :  { %v3468_v25 = vpop.f32.mrb[0].mxu0 }
  0xde   :  { %v98_v26 = vpop.f32.mrb[1].mxu0 }
  0xdf   :  { %v3469_v27 = vpop.f32.mrb[2].mxu0  ;;  %v4173_v28 = vpop.f32.mrb[0].mxu1 }
  0xe0   :  { %v114_v29 = vpack.c.bf16 %v3469_v27, %v3468_v25  ;;  %v101_v30 = vpop.f32.mrb[3].mxu0  ;;  %v417_v31 = vpop.f32.mrb[1].mxu1  ;;  %v3923_v27 = vld [vmem:[%s4707_s2 + $0x88] sm:$0xff]  }
  0xe1   :  { %v113_v32 = vpack.c.bf16 %v101_v30, %v98_v26  ;;  %v4175_v33 = vpop.f32.mrb[2].mxu1  ;;  %v3922_v26 = vld [vmem:[%s4707_s2 + $0x80] sm:$0xff]  }
  0xe2   :  { %v433_v34 = vpack.c.bf16 %v4175_v33, %v4173_v28  ;;  %v420_v35 = vpop.f32.mrb[3].mxu1  ;;  %v3924_v28 = vld [vmem:[%s4707_s2 + $0x90] sm:$0xff]   ;;  %v3926_v30 = vld [vmem:[%s4707_s2 + $0xa0] sm:$0xff]   ;;  %v3929_v33 = vld [vmem:[%s4707_s2 + $0xb8] sm:$0xff]  }
  0xe3   :  { %v432_v36 = vpack.c.bf16 %v420_v35, %v417_v31  ;;  %v3927_v31 = vld [vmem:[%s4707_s2 + $0xa8] sm:$0xff]  }
  0xe4   :  { %v3931_v35 = vld [vmem:[%s4707_s2 + $0xc8] sm:$0xff]  }
  0xe5   :  { %v3476_v37 = vpop.f32.mrb[4].mxu0 }
  0xe6   :  { %v178_v38 = vpop.f32.mrb[5].mxu0 }
  0xe7   :  { %v3477_v39 = vpop.f32.mrb[6].mxu0  ;;  %v4179_v40 = vpop.f32.mrb[4].mxu1 }
  0xe8   :  { %v194_v41 = vpack.c.bf16 %v3477_v39, %v3476_v37  ;;  %v181_v42 = vpop.f32.mrb[7].mxu0  ;;  %v4181_v43 = vpop.f32.mrb[5].mxu1  ;;  %v3933_v37 = vld [vmem:[%s4707_s2 + $0xd8] sm:$0xff]   ;;  %v3935_v39 = vld [vmem:[%s4707_s2 + $0xe8] sm:$0xff]  }
  0xe9   :  { %v193_v44 = vpack.c.bf16 %v181_v42, %v178_v38  ;;  %v4183_v45 = vpop.f32.mrb[6].mxu1  ;;  %v3934_v38 = vld [vmem:[%s4707_s2 + $0xe0] sm:$0xff]  }
  0xea   :  { %v596_v47 = vpack.c.bf16 %v4183_v45, %v4179_v40  ;;  %v583_v48 = vpop.f32.mrb[7].mxu1  ;;  %v3936_v40 = vld [vmem:[%s4707_s2 + $0xf0] sm:$0xff]   ;;  %v3938_v42 = vld [vmem:[%s4707_s2 + $0x100] sm:$0xff]   ;;  %v3941_v45 = vld [vmem:[%s4707_s2 + $0x118] sm:$0xff]  }
  0xeb   :  { %3486 = vmatprep.mubr.msk.bf16.mxu0 %vm227_vm1, %v193_v44  ;;  %v595_v49 = vpack.c.bf16 %v583_v48, %v4181_v43  ;;  %v3939_v43 = vld [vmem:[%s4707_s2 + $0x108] sm:$0xff]   ;;  %v3940_v44 = vld [vmem:[%s4707_s2 + $0x110] sm:$0xff]  }
  0xec   :  { %3487 = vmatmul.mubr.msk.bf16.vlgmr.msra.gmra.mrb[8].mxu0 %vm227_vm1, %v194_v41  ;;  %v3937_v41 = vld [vmem:[%s4707_s2 + $0xf8] sm:$0xff]   ;;  %v3944_v48 = vld [vmem:[%s4708_s5 + $0x30] sm:$0xff]  }
  0xed   :  { %3491 = vmatpush3.bf16.msra.mxu0 %v3910_v24  ;;  %3498 = vmatprep.mubr.msk.bf16.mxu0 %vm227_vm1, %v113_v32  ;;  %v3928_v32 = vld [vmem:[%s4707_s2 + $0xb0] sm:$0xff]  }
  0xee   :  { %3492 = vmatprep.subr.bf16.mxu0 %v3911_v46 }
  0xef   :  { %v4197_v51 = vpop.f32.mrb[8].mxu1 }
  0xf0   :  { %v4199_v52 = vpop.f32.mrb[9].mxu1 }
  0xf1   :  { %3493 = vmatpush3.bf16.msra.mxu0 %v3911_v46  ;;  %v4201_v53 = vpop.f32.mrb[10].mxu1  ;;  %v3942_v46 = vld [vmem:[%s4708_s5 + $0x20] sm:$0xff]  }
  0xf2   :  { %3494 = vmatprep.subr.bf16.mxu0 %v3912_v50  ;;  %v759_v55 = vpack.c.bf16 %v4201_v53, %v4197_v51  ;;  %v4208_v56 = vpop.f32.mrb[11].mxu1  ;;  %v3150_v51 = vld [vmem:[%s4710_s3] ss:$0 sm:$0xff] }
  0xf3   :  { %v758_v57 = vpack.c.bf16 %v4208_v56, %v4199_v52 }
  0xf5   :  { %3495 = vmatpush3.bf16.msra.mxu0 %v3912_v50  ;;  %v3946_v50 = vld [vmem:[%s4709_s4] sm:$0xff]  }
  0xf6   :  { %3496 = vmatprep.subr.bf16.mxu0 %v3913_v54  ;;  %3646 = vmatprep.mubr.msk.bf16.mxu1 %vm57_vm0, %v3946_v50  ;;  %v3973_v50 = vld [vmem:[%s4708_s5 + $0x68] sm:$0xff]  }
  0xf7   :  { %v4215_v59 = vpop.f32.mrb[12].mxu1 }
  0xf8   :  { %v4217_v60 = vpop.f32.mrb[13].mxu1 }
  0xf9   :  { %3497 = vmatpush3.bf16.msra.mxu0 %v3913_v54  ;;  %v4219_v61 = vpop.f32.mrb[14].mxu1 }
  0xfa   :  { %3510 = vmatprep.subr.bf16.mxu0 %v3914_v58  ;;  %v922_v63 = vpack.c.bf16 %v4219_v61, %v4215_v59  ;;  %v4226_v0 = vpop.f32.mrb[15].mxu1 }
  0xfb   :  { %v921_v1 = vpack.c.bf16 %v4226_v0, %v4217_v60 }
  0xfc   :  { %3499 = vmatmul.mubr.msk.bf16.vlgmr.msra.gmra.mrb[8].mxu0 %vm227_vm1, %v114_v29  ;;  %v3925_v29 = vld [vmem:[%s4707_s2 + $0x98] sm:$0xff]  }
  0xfd   :  { %3511 = vmatpush3.bf16.msra.mxu0 %v3914_v58  ;;  %3518 = vmatprep.mubr.msk.bf16.mxu0 %vm227_vm1, %v432_v36  ;;  %v3932_v36 = vld [vmem:[%s4707_s2 + $0xd0] sm:$0xff]  }
  0xfe   :  { %3512 = vmatprep.subr.bf16.mxu0 %v3915_v62 }
  0xff   :  { %v4235_v3 = vpop.f32.mrb[16].mxu1 }
 0x100   :  { %v4237_v4 = vpop.f32.mrb[17].mxu1 }
 0x101   :  { %3513 = vmatpush3.bf16.msra.mxu0 %v3915_v62  ;;  %v4239_v5 = vpop.f32.mrb[18].mxu1 }
 0x102   :  { %3514 = vmatprep.subr.bf16.mxu0 %v3916_v2  ;;  %v1085_v7 = vpack.c.bf16 %v4239_v5, %v4235_v3  ;;  %v4246_v8 = vpop.f32.mrb[19].mxu1  ;;  %v3948_v3 = vld [vmem:[%s4709_s4 + $0x10] sm:$0xff]   ;;  %v3949_v5 = vld [vmem:[%s4709_s4 + $0x18] sm:$0xff]  }
 0x103   :  { %v1084_v9 = vpack.c.bf16 %v4246_v8, %v4237_v4  ;;  %v3950_v4 = vld [vmem:[%s4708_s5] sm:$0xff]   ;;  %v3953_v8 = vld [vmem:[%s4708_s5 + $0x18] sm:$0xff]  }
 0x105   :  { %3515 = vmatpush3.bf16.msra.mxu0 %v3916_v2  ;;  %v3947_v2 = vld [vmem:[%s4709_s4 + $0x8] sm:$0xff]  }
 0x106   :  { %3516 = vmatprep.subr.bf16.mxu0 %v3917_v6 }
 0x107   :  { %v4253_v11 = vpop.f32.mrb[20].mxu1 }
 0x108   :  { %v4255_v12 = vpop.f32.mrb[21].mxu1 }
 0x109   :  { %3517 = vmatpush3.bf16.msra.mxu0 %v3917_v6  ;;  %v4257_v13 = vpop.f32.mrb[22].mxu1  ;;  %v3951_v6 = vld [vmem:[%s4708_s5 + $0x8] sm:$0xff]  }
 0x10a   :  { %3530 = vmatprep.subr.bf16.mxu0 %v3918_v10  ;;  %v1248_v15 = vpack.c.bf16 %v4257_v13, %v4253_v11  ;;  %v4264_v16 = vpop.f32.mrb[23].mxu1 }
 0x10b   :  { %v1247_v17 = vpack.c.bf16 %v4264_v16, %v4255_v12 }
 0x10c   :  { %3519 = vmatmul.mubr.msk.bf16.vlgmr.msra.gmra.mrb[8].mxu0 %vm227_vm1, %v433_v34  ;;  %v3930_v34 = vld [vmem:[%s4707_s2 + $0xc0] sm:$0xff]  }
 0x10d   :  { %3531 = vmatpush3.bf16.msra.mxu0 %v3918_v10  ;;  %3538 = vmatprep.mubr.msk.bf16.mxu0 %vm227_vm1, %v595_v49  ;;  %v3945_v49 = vld [vmem:[%s4708_s5 + $0x38] sm:$0xff]  }
 0x10e   :  { %3532 = vmatprep.subr.bf16.mxu0 %v3919_v14 }
 0x10f   :  { %v4276_v19 = vpop.f32.mrb[24].mxu1 }
 0x110   :  { %v4278_v20 = vpop.f32.mrb[25].mxu1 }
 0x111   :  { %3533 = vmatpush3.bf16.msra.mxu0 %v3919_v14  ;;  %v4280_v21 = vpop.f32.mrb[26].mxu1 }
 0x112   :  { %3534 = vmatprep.subr.bf16.mxu0 %v3920_v18  ;;  %v1411_v23 = vpack.c.bf16 %v4280_v21, %v4276_v19  ;;  %v4287_v24 = vpop.f32.mrb[27].mxu1 }
 0x113   :  { %v1410_v25 = vpack.c.bf16 %v4287_v24, %v4278_v20  ;;  %v3957_v24 = vld [vmem:[%s4708_s5 + $0x48] sm:$0xff]  }
 0x115   :  { %3535 = vmatpush3.bf16.msra.mxu0 %v3920_v18  ;;  %v3955_v18 = vld [vmem:[%s4708_s5 + $0x40] sm:$0xff]  }
 0x116   :  { %3536 = vmatprep.subr.bf16.mxu0 %v3921_v22 }
 0x119   :  { %3537 = vmatpush3.bf16.msra.mxu0 %v3921_v22  ;;  %v3956_v22 = vld [vmem:[%s4709_s4 + $0x28] sm:$0xff]  }
 0x11a   :  { %3550 = vmatprep.subr.bf16.mxu0 %v3922_v26 }
 0x11c   :  { %3539 = vmatmul.mubr.msk.bf16.vlgmr.msra.gmra.mrb[8].mxu0 %vm227_vm1, %v596_v47  ;;  %v3943_v47 = vld [vmem:[%s4708_s5 + $0x28] sm:$0xff]  }
 0x11d   :  { %3551 = vmatpush3.bf16.msra.mxu0 %v3922_v26  ;;  %3558 = vmatprep.mubr.msk.bf16.mxu0 %vm227_vm1, %v758_v57  ;;  %v3958_v26 = vld [vmem:[%s4708_s5 + $0x50] sm:$0xff]  }
 0x11e   :  { %3552 = vmatprep.subr.bf16.mxu0 %v3923_v27 }
 0x121   :  { %3553 = vmatpush3.bf16.msra.mxu0 %v3923_v27  ;;  %v3960_v27 = vld [vmem:[%s4709_s4 + $0x48] sm:$0xff]  }
 0x122   :  { %3554 = vmatprep.subr.bf16.mxu0 %v3924_v28 }
 0x125   :  { %3555 = vmatpush3.bf16.msra.mxu0 %v3924_v28  ;;  %v3961_v28 = vld [vmem:[%s4708_s5 + $0x58] sm:$0xff]  }
 0x126   :  { %3556 = vmatprep.subr.bf16.mxu0 %v3925_v29 }
 0x129   :  { %3557 = vmatpush3.bf16.msra.mxu0 %v3925_v29  ;;  %v3962_v29 = vld [vmem:[%s4709_s4 + $0x50] sm:$0xff]  }
 0x12a   :  { %3570 = vmatprep.subr.bf16.mxu0 %v3926_v30 }
 0x12c   :  { %3559 = vmatmul.mubr.msk.bf16.vlgmr.msra.gmra.mrb[8].mxu0 %vm227_vm1, %v759_v55 }
 0x12d   :  { %3571 = vmatpush3.bf16.msra.mxu0 %v3926_v30  ;;  %3578 = vmatprep.mubr.msk.bf16.mxu0 %vm227_vm1, %v921_v1  ;;  %v3963_v30 = vld [vmem:[%s4709_s4 + $0x58] sm:$0xff]  }
 0x12e   :  { %3572 = vmatprep.subr.bf16.mxu0 %v3927_v31 }
 0x131   :  { %3573 = vmatpush3.bf16.msra.mxu0 %v3927_v31  ;;  %v3964_v31 = vld [vmem:[%s4709_s4 + $0x60] sm:$0xff]  }
 0x132   :  { %3574 = vmatprep.subr.bf16.mxu0 %v3928_v32 }
 0x135   :  { %3575 = vmatpush3.bf16.msra.mxu0 %v3928_v32  ;;  %v3965_v32 = vld [vmem:[%s4709_s4 + $0x68] sm:$0xff]  }
 0x136   :  { %3576 = vmatprep.subr.bf16.mxu0 %v3929_v33 }
 0x139   :  { %3577 = vmatpush3.bf16.msra.mxu0 %v3929_v33  ;;  %v3966_v33 = vld [vmem:[%s4709_s4 + $0x70] sm:$0xff]  }
 0x13a   :  { %3590 = vmatprep.subr.bf16.mxu0 %v3930_v34 }
 0x13c   :  { %3579 = vmatmul.mubr.msk.bf16.vlgmr.msra.gmra.mrb[8].mxu0 %vm227_vm1, %v922_v63 }
 0x13d   :  { %3591 = vmatpush3.bf16.msra.mxu0 %v3930_v34  ;;  %3598 = vmatprep.mubr.msk.bf16.mxu0 %vm227_vm1, %v1084_v9  ;;  %v3967_v34 = vld [vmem:[%s4709_s4 + $0x78] sm:$0xff]  }
 0x13e   :  { %3592 = vmatprep.subr.bf16.mxu0 %v3931_v35 }
 0x141   :  { %3593 = vmatpush3.bf16.msra.mxu0 %v3931_v35  ;;  %v3970_v35 = vld [vmem:[%s4709_s4 + $0x80] sm:$0xff]  }
 0x142   :  { %3594 = vmatprep.subr.bf16.mxu0 %v3932_v36 }
 0x145   :  { %3595 = vmatpush3.bf16.msra.mxu0 %v3932_v36  ;;  %v3971_v36 = vld [vmem:[%s4709_s4 + $0x88] sm:$0xff]  }
 0x146   :  { %3596 = vmatprep.subr.bf16.mxu0 %v3933_v37 }
 0x149   :  { %3597 = vmatpush3.bf16.msra.mxu0 %v3933_v37 }
 0x14a   :  { %3610 = vmatprep.subr.bf16.mxu0 %v3934_v38 }
 0x14c   :  { %3599 = vmatmul.mubr.msk.bf16.vlgmr.msra.gmra.mrb[8].mxu0 %vm227_vm1, %v1085_v7  ;;  %v3952_v7 = vld [vmem:[%s4708_s5 + $0x10] sm:$0xff]  }
 0x14d   :  { %3611 = vmatpush3.bf16.msra.mxu0 %v3934_v38  ;;  %3618 = vmatprep.mubr.msk.bf16.mxu0 %vm227_vm1, %v1247_v17 }
 0x14e   :  { %3612 = vmatprep.subr.bf16.mxu0 %v3935_v39 }
 0x151   :  { %3613 = vmatpush3.bf16.msra.mxu0 %v3935_v39 }
 0x152   :  { %3614 = vmatprep.subr.bf16.mxu0 %v3936_v40 }
 0x155   :  { %3615 = vmatpush3.bf16.msra.mxu0 %v3936_v40 }
 0x156   :  { %3616 = vmatprep.subr.bf16.mxu0 %v3937_v41 }
 0x159   :  { %3617 = vmatpush3.bf16.msra.mxu0 %v3937_v41 }
 0x15a   :  { %3630 = vmatprep.subr.bf16.mxu0 %v3938_v42 }
 0x15c   :  { %3619 = vmatmul.mubr.msk.bf16.vlgmr.msra.gmra.mrb[8].mxu0 %vm227_vm1, %v1248_v15  ;;  %v3954_v15 = vld [vmem:[%s4709_s4 + $0x20] sm:$0xff]  }
 0x15d   :  { %3631 = vmatpush3.bf16.msra.mxu0 %v3938_v42  ;;  %3638 = vmatprep.mubr.msk.bf16.mxu0 %vm227_vm1, %v1410_v25  ;;  %v3959_v25 = vld [vmem:[%s4709_s4 + $0x40] sm:$0xff]  }
 0x15e   :  { %3632 = vmatprep.subr.bf16.mxu0 %v3939_v43 }
 0x161   :  { %3633 = vmatpush3.bf16.msra.mxu0 %v3939_v43 }
 0x162   :  { %3634 = vmatprep.subr.bf16.mxu0 %v3940_v44 }
 0x165   :  { %3635 = vmatpush3.bf16.msra.mxu0 %v3940_v44 }
 0x166   :  { %3636 = vmatprep.subr.bf16.mxu0 %v3941_v45 }
 0x169   :  { %3637 = vmatpush3.bf16.msra.mxu0 %v3941_v45 }
 0x16a   :  { %3658 = vmatprep.subr.bf16.mxu0 %v3942_v46 }
 0x16c   :  { %3639 = vmatmul.mubr.msk.bf16.vlgmr.msra.gmra.mrb[8].mxu0 %vm227_vm1, %v1411_v23 }
 0x16d   :  { %3659 = vmatpush3.bf16.msra.mxu0 %v3942_v46 }
 0x16e   :  { %3660 = vmatprep.subr.bf16.mxu0 %v3943_v47 }
 0x171   :  { %3661 = vmatpush3.bf16.msra.mxu0 %v3943_v47  ;;  %v3968_v47 = vld [vmem:[%s4709_s4 + $0x30] sm:$0xff]  }
 0x172   :  { %3662 = vmatprep.subr.bf16.mxu0 %v3944_v48 }
 0x175   :  { %3663 = vmatpush3.bf16.msra.mxu0 %v3944_v48  ;;  %v3972_v48 = vld [vmem:[%s4708_s5 + $0x60] sm:$0xff]  }
 0x176   :  { %3664 = vmatprep.subr.bf16.mxu0 %v3945_v49 }
 0x179   :  { %3665 = vmatpush3.bf16.msra.mxu0 %v3945_v49  ;;  %v3969_v49 = vld [vmem:[%s4709_s4 + $0x38] sm:$0xff]  }
 0x23f   :  { %v3640_v52 = vpop.f32.mrb[8].mxu0 }
 0x240   :  { %v1512_v53 = vadd.f32 %v3640_v52, %v3150_v51  ;;  %v1484_v54 = vpop.f32.mrb[9].mxu0  ;;  %v3975_v52 = vld [vmem:[%s4708_s5 + $0x78] sm:$0xff]  }
 0x241   :  { %v1510_v55 = vadd.f32 %v3150_v51, %v1484_v54  ;;  %v3641_v56 = vpop.f32.mrb[10].mxu0 }
 0x242   :  { %v1513_v57 = vadd.f32 %v3641_v56, %v3150_v51  ;;  %v1487_v58 = vpop.f32.mrb[11].mxu0  ;;  %v1516_v60 = vmax.f32 %v1512_v53, 0.0  ;;  %v3976_v53 = vld [vmem:[%s4708_s5 + $0x80] sm:$0xff]  }
 0x243   :  { %v1511_v59 = vadd.f32 %v3150_v51, %v1487_v58  ;;  %v1514_v62 = vmax.f32 %v1510_v55, 0.0  ;;  %v3974_v51 = vld [vmem:[%s4708_s5 + $0x70] sm:$0xff]  }
 0x244   :  { %v1517_v61 = vmax.f32 %v1513_v57, 0.0 }
 0x245   :  { %v1515_v63 = vmax.f32 %v1511_v59, 0.0 }
 0x246   :  { %v4411_v0 = vpack.c.bf16 %v1517_v61, %v1516_v60 }
 0x247   :  { %v4413_v1 = vpack.c.bf16 %v1515_v63, %v1514_v62 }
 0x249   :  { %3642 = vmatprep.subr.bf16.mxu1 %v4413_v1  ;;  %3722 = vmatprep.subr.bf16.mxu0 %v4413_v1 }
 0x24a   :  { %3643 = vmatpush3.bf16.msra.mxu1 %v4413_v1 }
 0x24b   :  { %3644 = vmatprep.subr.bf16.mxu1 %v4411_v0 }
 0x24e   :  { %3645 = vmatpush3.bf16.msra.mxu1 %v4411_v0 }
 0x24f   :  { %3650 = vmatprep.subr.bf16.mxu1 %v4413_v1 }
 0x251   :  { %3647 = vmatmul.mubr.msk.bf16.vlgmr.msra.gmra.mrb[28].mxu1 %vm57_vm0, %v3947_v2 }
 0x252   :  { %3651 = vmatpush3.bf16.msra.mxu1 %v4413_v1  ;;  %3654 = vmatprep.mubr.msk.bf16.mxu1 %vm57_vm0, %v3948_v3 }
 0x253   :  { %3652 = vmatprep.subr.bf16.mxu1 %v4411_v0 }
 0x256   :  { %3653 = vmatpush3.bf16.msra.mxu1 %v4411_v0 }
 0x257   :  { %3670 = vmatprep.subr.bf16.mxu1 %v3950_v4 }
 0x259   :  { %3655 = vmatmul.mubr.msk.bf16.vlgmr.msra.gmra.mrb[32].mxu1 %vm57_vm0, %v3949_v5 }
 0x25a   :  { %3671 = vmatpush3.bf16.msra.mxu1 %v3950_v4 }
 0x25b   :  { %3672 = vmatprep.subr.bf16.mxu1 %v3951_v6 }
 0x25e   :  { %3673 = vmatpush3.bf16.msra.mxu1 %v3951_v6 }
 0x25f   :  { %3674 = vmatprep.subr.bf16.mxu1 %v3952_v7 }
 0x262   :  { %3675 = vmatpush3.bf16.msra.mxu1 %v3952_v7 }
 0x263   :  { %3676 = vmatprep.subr.bf16.mxu1 %v3953_v8 }
 0x266   :  { %3677 = vmatpush3.bf16.msra.mxu1 %v3953_v8 }
 0x267   :  { %3682 = vmatprep.subr.bf16.mxu1 %v4413_v1 }
 0x324   :  { %v3648_v9 = vpop.f32.mrb[28].mxu1 }
 0x325   :  { %v1578_v10 = vpop.f32.mrb[29].mxu1 }
 0x326   :  { %v3649_v11 = vpop.f32.mrb[30].mxu1 }
 0x327   :  { %v1594_v12 = vpack.c.bf16 %v3649_v11, %v3648_v9  ;;  %v1581_v13 = vpop.f32.mrb[31].mxu1 }
 0x328   :  { %v1593_v14 = vpack.c.bf16 %v1581_v13, %v1578_v10 }
 0x32a   :  { %3678 = vmatprep.mubr.msk.bf16.mxu1 %vm227_vm1, %v1593_v14 }
 0x32b   :  { %3679 = vmatmul.mubr.msk.bf16.vlgmr.msra.gmra.mrb[36].mxu1 %vm227_vm1, %v1594_v12 }
 0x32c   :  { %3683 = vmatpush3.bf16.msra.mxu1 %v4413_v1  ;;  %v3656_v16 = vpop.f32.mrb[32].mxu1  ;;  %3686 = vmatprep.mubr.msk.bf16.mxu1 %vm57_vm0, %v3954_v15 }
 0x32d   :  { %3684 = vmatprep.subr.bf16.mxu1 %v4411_v0  ;;  %v1658_v17 = vpop.f32.mrb[33].mxu1 }
 0x32e   :  { %v3657_v19 = vpop.f32.mrb[34].mxu1 }
 0x32f   :  { %v1674_v20 = vpack.c.bf16 %v3657_v19, %v3656_v16  ;;  %v1661_v21 = vpop.f32.mrb[35].mxu1 }
 0x330   :  { %v1673_v23 = vpack.c.bf16 %v1661_v21, %v1658_v17  ;;  %3685 = vmatpush3.bf16.msra.mxu1 %v4411_v0 }
 0x331   :  { %3690 = vmatprep.subr.bf16.mxu1 %v3955_v18 }
 0x332   :  { %3666 = vmatprep.mubr.msk.bf16.mxu0 %vm227_vm1, %v1673_v23 }
 0x333   :  { %3667 = vmatmul.mubr.msk.bf16.vlgmr.msra.gmra.mrb[12].mxu0 %vm227_vm1, %v1674_v20  ;;  %3687 = vmatmul.mubr.msk.bf16.vlgmr.msra.gmra.mrb[40].mxu1 %vm57_vm0, %v3956_v22 }
 0x334   :  { %3691 = vmatpush3.bf16.msra.mxu1 %v3955_v18  ;;  %3723 = vmatpush3.bf16.msra.mxu0 %v4413_v1 }
 0x335   :  { %3724 = vmatprep.subr.bf16.mxu0 %v4411_v0  ;;  %3692 = vmatprep.subr.bf16.mxu1 %v3957_v24 }
 0x336   :  { %3726 = vmatprep.mubr.msk.bf16.mxu0 %vm57_vm0, %v3959_v25 }
 0x338   :  { %3693 = vmatpush3.bf16.msra.mxu1 %v3957_v24  ;;  %3725 = vmatpush3.bf16.msra.mxu0 %v4411_v0 }
 0x339   :  { %3742 = vmatprep.subr.bf16.mxu0 %v4413_v1  ;;  %3694 = vmatprep.subr.bf16.mxu1 %v3958_v26 }
 0x33b   :  { %3727 = vmatmul.mubr.msk.bf16.vlgmr.msra.gmra.mrb[16].mxu0 %vm57_vm0, %v3960_v27  ;;  %v3978_v27 = vld [vmem:[%s4708_s5 + $0x90] sm:$0xff]  }
 0x33c   :  { %3695 = vmatpush3.bf16.msra.mxu1 %v3958_v26  ;;  %3743 = vmatpush3.bf16.msra.mxu0 %v4413_v1  ;;  %v3977_v26 = vld [vmem:[%s4708_s5 + $0x88] sm:$0xff]  }
 0x33d   :  { %3744 = vmatprep.subr.bf16.mxu0 %v4411_v0  ;;  %3696 = vmatprep.subr.bf16.mxu1 %v3961_v28 }
 0x33e   :  { %3746 = vmatprep.mubr.msk.bf16.mxu0 %vm57_vm0, %v3962_v29  ;;  %v3980_v29 = vld [vmem:[%s4708_s5 + $0xa0] sm:$0xff]  }
 0x340   :  { %3697 = vmatpush3.bf16.msra.mxu1 %v3961_v28  ;;  %3745 = vmatpush3.bf16.msra.mxu0 %v4411_v0  ;;  %v3979_v28 = vld [vmem:[%s4708_s5 + $0x98] sm:$0xff]  }
 0x341   :  { %3702 = vmatprep.subr.bf16.mxu1 %v4413_v1  ;;  %3762 = vmatprep.subr.bf16.mxu0 %v4413_v1 }
 0x343   :  { %3747 = vmatmul.mubr.msk.bf16.vlgmr.msra.gmra.mrb[20].mxu0 %vm57_vm0, %v3963_v30  ;;  %v3981_v30 = vld [vmem:[%s4708_s5 + $0xa8] sm:$0xff]  }
 0x344   :  { %3763 = vmatpush3.bf16.msra.mxu0 %v4413_v1  ;;  %3766 = vmatprep.mubr.msk.bf16.mxu0 %vm57_vm0, %v3964_v31  ;;  %v3982_v31 = vld [vmem:[%s4708_s5 + $0xb0] sm:$0xff]  }
 0x345   :  { %3764 = vmatprep.subr.bf16.mxu0 %v4411_v0 }
 0x348   :  { %3765 = vmatpush3.bf16.msra.mxu0 %v4411_v0 }
 0x349   :  { %3782 = vmatprep.subr.bf16.mxu0 %v4413_v1 }
 0x34b   :  { %3767 = vmatmul.mubr.msk.bf16.vlgmr.msra.gmra.mrb[24].mxu0 %vm57_vm0, %v3965_v32  ;;  %v3983_v32 = vld [vmem:[%s4708_s5 + $0xb8] sm:$0xff]  }
 0x34c   :  { %3783 = vmatpush3.bf16.msra.mxu0 %v4413_v1  ;;  %3786 = vmatprep.mubr.msk.bf16.mxu0 %vm57_vm0, %v3966_v33  ;;  %v3984_v33 = vld [vmem:[%s4708_s5 + $0xc0] sm:$0xff]  }
 0x34d   :  { %3784 = vmatprep.subr.bf16.mxu0 %v4411_v0 }
 0x350   :  { %3785 = vmatpush3.bf16.msra.mxu0 %v4411_v0 }
 0x351   :  { %3802 = vmatprep.subr.bf16.mxu0 %v4413_v1 }
 0x353   :  { %3787 = vmatmul.mubr.msk.bf16.vlgmr.msra.gmra.mrb[28].mxu0 %vm57_vm0, %v3967_v34  ;;  %v3985_v34 = vld [vmem:[%s4708_s5 + $0xc8] sm:$0xff]  }
 0x354   :  { %3803 = vmatpush3.bf16.msra.mxu0 %v4413_v1  ;;  %3806 = vmatprep.mubr.msk.bf16.mxu0 %vm57_vm0, %v3970_v35  ;;  %v3986_v35 = vld [vmem:[%s4708_s5 + $0xd0] sm:$0xff]  }
 0x355   :  { %3804 = vmatprep.subr.bf16.mxu0 %v4411_v0 }
 0x358   :  { %3805 = vmatpush3.bf16.msra.mxu0 %v4411_v0 }
 0x35b   :  { %3807 = vmatmul.mubr.msk.bf16.vlgmr.msra.gmra.mrb[32].mxu0 %vm57_vm0, %v3971_v36  ;;  %v3987_v36 = vld [vmem:[%s4708_s5 + $0xd8] sm:$0xff]  }
 0x406   :  { %v3688_v37 = vpop.f32.mrb[40].mxu1  ;;  %v4536_v38 = vpop.f32.mrb[12].mxu0 }
 0x407   :  { %v1896_v39 = vpop.f32.mrb[41].mxu1  ;;  %v4538_v40 = vpop.f32.mrb[13].mxu0 }
 0x408   :  { %v3689_v41 = vpop.f32.mrb[42].mxu1  ;;  %v4540_v42 = vpop.f32.mrb[14].mxu0 }
 0x409   :  { %v1912_v43 = vpack.c.bf16 %v3689_v41, %v3688_v37  ;;  %v1899_v44 = vpop.f32.mrb[43].mxu1  ;;  %v4542_v45 = vpop.f32.mrb[15].mxu0  ;;  %v3988_v37 = vld [vmem:[%s4708_s5 + $0xe0] sm:$0xff]   ;;  %v3990_v41 = vld [vmem:[%s4708_s5 + $0xf0] sm:$0xff]  }
 0x40a   :  { %v1911_v46 = vpack.c.bf16 %v1899_v44, %v1896_v39  ;;  %v3989_v39 = vld [vmem:[%s4708_s5 + $0xe8] sm:$0xff]   ;;  %v3992_v44 = vld [vmem:[%s4708_s5 + $0x100] sm:$0xff]  }
 0x40c   :  { %3698 = vmatprep.mubr.msk.bf16.mxu1 %vm227_vm1, %v1911_v46  ;;  %v3993_v46 = vld [vmem:[%s4708_s5 + $0x108] sm:$0xff]  }
 0x40d   :  { %3699 = vmatmul.mubr.msk.bf16.vlgmr.msra.gmra.mrb[36].mxu1 %vm227_vm1, %v1912_v43  ;;  %v3991_v43 = vld [vmem:[%s4708_s5 + $0xf8] sm:$0xff]  }
 0x40e   :  { %3703 = vmatpush3.bf16.msra.mxu1 %v4413_v1  ;;  %3706 = vmatprep.mubr.msk.bf16.mxu1 %vm57_vm0, %v3968_v47  ;;  %v3728_v54 = vpop.f32.mrb[16].mxu0  ;;  %v3994_v47 = vld [vmem:[%s4708_s5 + $0x110] sm:$0xff]  }
 0x40f   :  { %3704 = vmatprep.subr.bf16.mxu1 %v4411_v0  ;;  %v2222_v55 = vpop.f32.mrb[17].mxu0 }
 0x410   :  { %v3729_v56 = vpop.f32.mrb[18].mxu0 }
 0x411   :  { %v2238_v57 = vpack.c.bf16 %v3729_v56, %v3728_v54  ;;  %v2225_v58 = vpop.f32.mrb[19].mxu0 }
 0x412   :  { %3705 = vmatpush3.bf16.msra.mxu1 %v4411_v0  ;;  %v2237_v59 = vpack.c.bf16 %v2225_v58, %v2222_v55  ;;  %v3999_v55 = vld [vmem:[%s4705_s0] sm:$0xff]  }
 0x413   :  { %3710 = vmatprep.subr.bf16.mxu1 %v3972_v48  ;;  %v1520_v56 = vunpack.c.l.bf16 %v3999_v55 }
 0x415   :  { %3707 = vmatmul.mubr.msk.bf16.vlgmr.msra.gmra.mrb[44].mxu1 %vm57_vm0, %v3969_v49 }
 0x416   :  { %3711 = vmatpush3.bf16.msra.mxu1 %v3972_v48  ;;  %v3748_v60 = vpop.f32.mrb[20].mxu0  ;;  %v3995_v48 = vld [vmem:[%s4708_s5 + $0x118] sm:$0xff]  }
 0x417   :  { %3712 = vmatprep.subr.bf16.mxu1 %v3973_v50  ;;  %v2385_v61 = vpop.f32.mrb[21].mxu0 }
 0x418   :  { %v3749_v62 = vpop.f32.mrb[22].mxu0 }
 0x419   :  { %v2401_v63 = vpack.c.bf16 %v3749_v62, %v3748_v60  ;;  %v2388_v0 = vpop.f32.mrb[23].mxu0 }
 0x41a   :  { %3713 = vmatpush3.bf16.msra.mxu1 %v3973_v50  ;;  %v2400_v1 = vpack.c.bf16 %v2388_v0, %v2385_v61  ;;  %v3273_v50 = vld [vmem:[%s4711_s6] ss:$0 sm:$0xff]  ;;  %v1521_v0 = vunpack.c.h.bf16 %v3999_v55 }
 0x41b   :  { %3714 = vmatprep.subr.bf16.mxu1 %v3974_v51 }
 0x41e   :  { %3715 = vmatpush3.bf16.msra.mxu1 %v3974_v51  ;;  %v4572_v2 = vpop.f32.mrb[24].mxu0  ;;  %v3998_v51 = vld [vmem:[%s4705_s0 + $0x8] sm:$0xff]  }
 0x41f   :  { %3716 = vmatprep.subr.bf16.mxu1 %v3975_v52  ;;  %v2548_v3 = vpop.f32.mrb[25].mxu0  ;;  %v1523_v60 = vunpack.c.h.bf16 %v3998_v51 }
 0x420   :  { %v4574_v4 = vpop.f32.mrb[26].mxu0 }
 0x421   :  { %v2564_v5 = vpack.c.bf16 %v4574_v4, %v4572_v2  ;;  %v2551_v6 = vpop.f32.mrb[27].mxu0 }
 0x422   :  { %3717 = vmatpush3.bf16.msra.mxu1 %v3975_v52  ;;  %v2563_v7 = vpack.c.bf16 %v2551_v6, %v2548_v3  ;;  %v1522_v52 = vunpack.c.l.bf16 %v3998_v51 }
 0x423   :  { %3730 = vmatprep.subr.bf16.mxu1 %v3976_v53 }
 0x426   :  { %v4578_v8 = vpop.f32.mrb[28].mxu0 }
 0x427   :  { %v4580_v9 = vpop.f32.mrb[29].mxu0 }
 0x428   :  { %v4582_v10 = vpop.f32.mrb[30].mxu0 }
 0x429   :  { %v2727_v11 = vpack.c.bf16 %v4582_v10, %v4578_v8  ;;  %v2714_v12 = vpop.f32.mrb[31].mxu0 }
 0x42a   :  { %v2726_v13 = vpack.c.bf16 %v2714_v12, %v4580_v9 }
 0x42e   :  { %v4587_v14 = vpop.f32.mrb[32].mxu0 }
 0x42f   :  { %v4589_v15 = vpop.f32.mrb[33].mxu0 }
 0x430   :  { %v4591_v16 = vpop.f32.mrb[34].mxu0 }
 0x431   :  { %v2890_v17 = vpack.c.bf16 %v4591_v16, %v4587_v14  ;;  %v4595_v18 = vpop.f32.mrb[35].mxu0 }
 0x432   :  { %v2889_v19 = vpack.c.bf16 %v4595_v18, %v4589_v15 }
 0x4e8   :  { %v3708_v20 = vpop.f32.mrb[44].mxu1 }
 0x4e9   :  { %v2059_v21 = vpop.f32.mrb[45].mxu1 }
 0x4ea   :  { %v3709_v22 = vpop.f32.mrb[46].mxu1 }
 0x4eb   :  { %v2075_v23 = vpack.c.bf16 %v3709_v22, %v3708_v20  ;;  %v2062_v24 = vpop.f32.mrb[47].mxu1 }
 0x4ec   :  { %v2074_v25 = vpack.c.bf16 %v2062_v24, %v2059_v21 }
 0x4ee   :  { %3718 = vmatprep.mubr.msk.bf16.mxu1 %vm227_vm1, %v2074_v25 }
 0x4ef   :  { %3719 = vmatmul.mubr.msk.bf16.vlgmr.msra.gmra.mrb[36].mxu1 %vm227_vm1, %v2075_v23 }
 0x4f0   :  { %3731 = vmatpush3.bf16.msra.mxu1 %v3976_v53  ;;  %3738 = vmatprep.mubr.msk.bf16.mxu1 %vm227_vm1, %v2237_v59 }
 0x4f1   :  { %3732 = vmatprep.subr.bf16.mxu1 %v3977_v26 }
 0x4f4   :  { %3733 = vmatpush3.bf16.msra.mxu1 %v3977_v26 }
 0x4f5   :  { %3734 = vmatprep.subr.bf16.mxu1 %v3978_v27 }
 0x4f8   :  { %3735 = vmatpush3.bf16.msra.mxu1 %v3978_v27 }
 0x4f9   :  { %3736 = vmatprep.subr.bf16.mxu1 %v3979_v28 }
 0x4fc   :  { %3737 = vmatpush3.bf16.msra.mxu1 %v3979_v28 }
 0x4fd   :  { %3750 = vmatprep.subr.bf16.mxu1 %v3980_v29 }
 0x4ff   :  { %3739 = vmatmul.mubr.msk.bf16.vlgmr.msra.gmra.mrb[36].mxu1 %vm227_vm1, %v2238_v57 }
 0x500   :  { %3751 = vmatpush3.bf16.msra.mxu1 %v3980_v29  ;;  %3758 = vmatprep.mubr.msk.bf16.mxu1 %vm227_vm1, %v2400_v1 }
 0x501   :  { %3752 = vmatprep.subr.bf16.mxu1 %v3981_v30 }
 0x504   :  { %3753 = vmatpush3.bf16.msra.mxu1 %v3981_v30 }
 0x505   :  { %3754 = vmatprep.subr.bf16.mxu1 %v3982_v31 }
 0x508   :  { %3755 = vmatpush3.bf16.msra.mxu1 %v3982_v31 }
 0x509   :  { %3756 = vmatprep.subr.bf16.mxu1 %v3983_v32 }
 0x50c   :  { %3757 = vmatpush3.bf16.msra.mxu1 %v3983_v32 }
 0x50d   :  { %3770 = vmatprep.subr.bf16.mxu1 %v3984_v33 }
 0x50f   :  { %3759 = vmatmul.mubr.msk.bf16.vlgmr.msra.gmra.mrb[36].mxu1 %vm227_vm1, %v2401_v63 }
 0x510   :  { %3771 = vmatpush3.bf16.msra.mxu1 %v3984_v33  ;;  %3778 = vmatprep.mubr.msk.bf16.mxu1 %vm227_vm1, %v2563_v7 }
 0x511   :  { %3772 = vmatprep.subr.bf16.mxu1 %v3985_v34 }
 0x514   :  { %3773 = vmatpush3.bf16.msra.mxu1 %v3985_v34 }
 0x515   :  { %3774 = vmatprep.subr.bf16.mxu1 %v3986_v35 }
 0x518   :  { %3775 = vmatpush3.bf16.msra.mxu1 %v3986_v35 }
 0x519   :  { %3776 = vmatprep.subr.bf16.mxu1 %v3987_v36 }
 0x51c   :  { %3777 = vmatpush3.bf16.msra.mxu1 %v3987_v36 }
 0x51d   :  { %3790 = vmatprep.subr.bf16.mxu1 %v3988_v37 }
 0x51f   :  { %3779 = vmatmul.mubr.msk.bf16.vlgmr.msra.gmra.mrb[36].mxu1 %vm227_vm1, %v2564_v5 }
 0x520   :  { %3791 = vmatpush3.bf16.msra.mxu1 %v3988_v37  ;;  %3798 = vmatprep.mubr.msk.bf16.mxu1 %vm227_vm1, %v2726_v13 }
 0x521   :  { %3792 = vmatprep.subr.bf16.mxu1 %v3989_v39 }
 0x524   :  { %3793 = vmatpush3.bf16.msra.mxu1 %v3989_v39 }
 0x525   :  { %3794 = vmatprep.subr.bf16.mxu1 %v3990_v41 }
 0x528   :  { %3795 = vmatpush3.bf16.msra.mxu1 %v3990_v41 }
 0x529   :  { %3796 = vmatprep.subr.bf16.mxu1 %v3991_v43 }
 0x52c   :  { %3797 = vmatpush3.bf16.msra.mxu1 %v3991_v43 }
 0x52d   :  { %3810 = vmatprep.subr.bf16.mxu1 %v3992_v44 }
 0x52f   :  { %3799 = vmatmul.mubr.msk.bf16.vlgmr.msra.gmra.mrb[36].mxu1 %vm227_vm1, %v2727_v11 }
 0x530   :  { %3811 = vmatpush3.bf16.msra.mxu1 %v3992_v44  ;;  %3818 = vmatprep.mubr.msk.bf16.mxu1 %vm227_vm1, %v2889_v19 }
 0x531   :  { %3812 = vmatprep.subr.bf16.mxu1 %v3993_v46 }
 0x534   :  { %3813 = vmatpush3.bf16.msra.mxu1 %v3993_v46 }
 0x535   :  { %3814 = vmatprep.subr.bf16.mxu1 %v3994_v47 }
 0x538   :  { %3815 = vmatpush3.bf16.msra.mxu1 %v3994_v47 }
 0x539   :  { %3816 = vmatprep.subr.bf16.mxu1 %v3995_v48 }
 0x53c   :  { %3817 = vmatpush3.bf16.msra.mxu1 %v3995_v48 }
 0x53f   :  { %3819 = vmatmul.mubr.msk.bf16.vlgmr.msra.gmra.mrb[36].mxu1 %vm227_vm1, %v2890_v17 }
 0x612   :  { %v3820_v49 = vpop.f32.mrb[36].mxu1 }
 0x613   :  { %v3822_v53 = vadd.f32 %v3820_v49, %v4536_v38  ;;  %v2963_v54 = vpop.f32.mrb[37].mxu1 }
 0x614   :  { %v3823_v57 = vadd.f32 %v2963_v54, %v4538_v40  ;;  %v3821_v58 = vpop.f32.mrb[38].mxu1 }
 0x615   :  { %v2991_v59 = vadd.f32 %v3822_v53, %v3273_v50  ;;  %v3824_v61 = vadd.f32 %v3821_v58, %v4540_v42  ;;  %v2966_v62 = vpop.f32.mrb[39].mxu1 }
 0x616   :  { %v2989_v63 = vadd.f32 %v3823_v57, %v3273_v50  ;;  %v3825_v1 = vadd.f32 %v2966_v62, %v4542_v45 }
 0x617   :  { %v2995_v2 = vadd.f32 %v2991_v59, %v1522_v52  ;;  %v2992_v38 = vadd.f32 %v3824_v61, %v3273_v50 }
 0x618   :  { %v2993_v3 = vadd.f32 %v2989_v63, %v1520_v56  ;;  %v2990_v4 = vadd.f32 %v3825_v1, %v3273_v50 }
 0x619   :  { %v2999_v5 = vmax.f32 %v2995_v2, 0.0  ;;  %v2996_v6 = vadd.f32 %v2992_v38, %v1523_v60 }
 0x61a   :  { %v2997_v7 = vmax.f32 %v2993_v3, 0.0  ;;  %v2994_v8 = vadd.f32 %v2990_v4, %v1521_v0 }
 0x61b   :  { %v3280_v40 = vpack.c.bf16 %v2999_v5, %v2999_v5  ;;  %v3000_v9 = vmax.f32 %v2996_v6, 0.0 }
 0x61c   :  { %v3278_v10 = vpack.c.bf16 %v2997_v7, %v2997_v7  ;;  %v2998_v11 = vmax.f32 %v2994_v8, 0.0 }
 0x61d   :  { %3020 = vst.msk [vmem:[%s4712_s7 + $0x8] sm:$0xf] %vm3017_vm2, %v3280_v40  ;;  %v3281_v42 = vpack.c.bf16 %v3000_v9, %v3000_v9 }
 0x61e   :  { %3018 = vst.msk [vmem:[%s4712_s7] sm:$0xf] %vm3017_vm2, %v3278_v10  ;;  %v3279_v45 = vpack.c.bf16 %v2998_v11, %v2998_v11 }
 0x61f   :  { %3021 = vst.msk [vmem:[%s4712_s7 + $0xc] sm:$0xf] %vm3017_vm2, %v3281_v42 }
 0x620   :  { %3019 = vst.msk [vmem:[%s4712_s7 + $0x4] sm:$0xf] %vm3017_vm2, %v3279_v45 }

// kernel: resnet_forward.27
= control target key start
LH: loop header
LB: loop body
LE: loop exit
PB: predicated region body
PF: predicated region fallthrough
CT: control target
= control target key end

     0   :  { %v708_v3 = vmov 0   ;;  %s985_s1 = inlined_call_operand.vmem [shape: bf16[128,1024], index: 1, kind: input, shape index: {}]   ;;  %s986_s0 = inlined_call_operand.vmem [shape: bf16[16,128], index: 0, kind: input, shape index: {}]   ;;  %s987_s2 = inlined_call_operand.vmem [shape: f32[1,1024], index: 2, kind: input, shape index: {}]   ;;  %s988_s3 = inlined_call_operand.vmem [shape: f32[16,1024], index: 3, kind: output, shape index: {}]  }
   0x1   :  { %v17_v0 = vld [vmem:[%s985_s1] sm:$0xff]  ;;  %v18_v2 = vld [vmem:[%s985_s1 + $0x8] sm:$0xff]  ;;  %481 = vmatprep.mubr.bf16.mxu0 %v708_v3  ;;  %524 = vmatprep.mubr.bf16.mxu1 %v708_v3  ;;  %v19_v63 = vld [vmem:[%s985_s1 + $0x10] sm:$0xff] }
   0x2   :  { %v21_v1 = vld [vmem:[%s985_s1 + $0x20] sm:$0xff]  ;;  %v22_v5 = vld [vmem:[%s985_s1 + $0x28] sm:$0xff] }
   0x3   :  { %v643_v4 = vcombine.high %v17_v0, %v21_v1  ;;  %v642_v6 = vcombine.low %v17_v0, %v21_v1  ;;  %v25_v7 = vld [vmem:[%s985_s1 + $0x40] sm:$0xff]  ;;  %v645_v9 = vcombine.high %v18_v2, %v22_v5  ;;  %v644_v10 = vcombine.low %v18_v2, %v22_v5  ;;  %v26_v12 = vld [vmem:[%s985_s1 + $0x48] sm:$0xff]  ;;  %v23_v0 = vld [vmem:[%s985_s1 + $0x30] sm:$0xff] }
   0x4   :  { %v29_v8 = vld [vmem:[%s985_s1 + $0x60] sm:$0xff]  ;;  %v30_v13 = vld [vmem:[%s985_s1 + $0x68] sm:$0xff]  ;;  %v20_v1 = vld [vmem:[%s985_s1 + $0x18] sm:$0xff] }
   0x5   :  { %v651_v11 = vcombine.high %v25_v7, %v29_v8  ;;  %v33_v14 = vld [vmem:[%s985_s1 + $0x80] sm:$0xff]  ;;  %449 = vmatprep.subr.bf16.mxu0 %v643_v4  ;;  %v653_v15 = vcombine.high %v26_v12, %v30_v13  ;;  %v34_v17 = vld [vmem:[%s985_s1 + $0x88] sm:$0xff]  ;;  %492 = vmatprep.subr.bf16.mxu1 %v645_v9  ;;  %v650_v19 = vcombine.low %v25_v7, %v29_v8  ;;  %v24_v2 = vld [vmem:[%s985_s1 + $0x38] sm:$0xff] }
   0x6   :  { %v37_v16 = vld [vmem:[%s985_s1 + $0xa0] sm:$0xff]  ;;  %v38_v18 = vld [vmem:[%s985_s1 + $0xa8] sm:$0xff]  ;;  %450 = vmatpush1.bf16.msra.mxu0 %v642_v6  ;;  %493 = vmatpush1.bf16.msra.mxu1 %v644_v10  ;;  %v652_v20 = vcombine.low %v26_v12, %v30_v13  ;;  %v647_v6 = vcombine.high %v19_v63, %v23_v0  ;;  %v649_v7 = vcombine.high %v20_v1, %v24_v2  ;;  %v27_v8 = vld [vmem:[%s985_s1 + $0x50] sm:$0xff] }
   0x7   :  { %451 = vmatprep.subr.bf16.mxu0 %v651_v11  ;;  %v659_v21 = vcombine.high %v33_v14, %v37_v16  ;;  %494 = vmatprep.subr.bf16.mxu1 %v653_v15  ;;  %v661_v22 = vcombine.high %v34_v17, %v38_v18  ;;  %v41_v23 = vld [vmem:[%s985_s1 + $0xc0] sm:$0xff]  ;;  %v42_v25 = vld [vmem:[%s985_s1 + $0xc8] sm:$0xff]  ;;  %v658_v27 = vcombine.low %v33_v14, %v37_v16  ;;  %v31_v9 = vld [vmem:[%s985_s1 + $0x70] sm:$0xff] }
   0x8   :  { %v45_v24 = vld [vmem:[%s985_s1 + $0xe0] sm:$0xff]  ;;  %v46_v26 = vld [vmem:[%s985_s1 + $0xe8] sm:$0xff]  ;;  %v660_v28 = vcombine.low %v34_v17, %v38_v18  ;;  %v28_v11 = vld [vmem:[%s985_s1 + $0x58] sm:$0xff]  ;;  %v646_v13 = vcombine.low %v19_v63, %v23_v0  ;;  %v648_v14 = vcombine.low %v20_v1, %v24_v2  ;;  %v655_v15 = vcombine.high %v27_v8, %v31_v9 }
   0x9   :  { %v667_v29 = vcombine.high %v41_v23, %v45_v24  ;;  %v669_v30 = vcombine.high %v42_v25, %v46_v26  ;;  %v49_v31 = vld [vmem:[%s985_s1 + $0x100] sm:$0xff]  ;;  %v50_v33 = vld [vmem:[%s985_s1 + $0x108] sm:$0xff]  ;;  %v666_v35 = vcombine.low %v41_v23, %v45_v24  ;;  %v668_v36 = vcombine.low %v42_v25, %v46_v26  ;;  %v32_v12 = vld [vmem:[%s985_s1 + $0x78] sm:$0xff] }
   0xa   :  { %452 = vmatpush1.bf16.msra.mxu0 %v650_v19  ;;  %495 = vmatpush1.bf16.msra.mxu1 %v652_v20  ;;  %v53_v32 = vld [vmem:[%s985_s1 + $0x120] sm:$0xff]  ;;  %v54_v34 = vld [vmem:[%s985_s1 + $0x128] sm:$0xff]  ;;  %v657_v16 = vcombine.high %v28_v11, %v32_v12  ;;  %v35_v17 = vld [vmem:[%s985_s1 + $0x90] sm:$0xff]  ;;  %v83_v2 = vlaneseq }
   0xb   :  { %453 = vmatprep.subr.bf16.mxu0 %v659_v21  ;;  %496 = vmatprep.subr.bf16.mxu1 %v661_v22  ;;  %v675_v37 = vcombine.high %v49_v31, %v53_v32  ;;  %v677_v38 = vcombine.high %v50_v33, %v54_v34  ;;  %v57_v39 = vld [vmem:[%s985_s1 + $0x140] sm:$0xff]  ;;  %v58_v41 = vld [vmem:[%s985_s1 + $0x148] sm:$0xff]  ;;  %v674_v43 = vcombine.low %v49_v31, %v53_v32  ;;  %v39_v18 = vld [vmem:[%s985_s1 + $0xb0] sm:$0xff] }
   0xc   :  { %v61_v40 = vld [vmem:[%s985_s1 + $0x160] sm:$0xff]  ;;  %v62_v42 = vld [vmem:[%s985_s1 + $0x168] sm:$0xff]  ;;  %v676_v44 = vcombine.low %v50_v33, %v54_v34  ;;  %v36_v19 = vld [vmem:[%s985_s1 + $0x98] sm:$0xff]  ;;  %v654_v21 = vcombine.low %v27_v8, %v31_v9  ;;  %v656_v22 = vcombine.low %v28_v11, %v32_v12  ;;  %v663_v23 = vcombine.high %v35_v17, %v39_v18 }
   0xd   :  { %v683_v45 = vcombine.high %v57_v39, %v61_v40  ;;  %v685_v46 = vcombine.high %v58_v41, %v62_v42  ;;  %v65_v47 = vld [vmem:[%s985_s1 + $0x180] sm:$0xff]  ;;  %v66_v49 = vld [vmem:[%s985_s1 + $0x188] sm:$0xff]  ;;  %v682_v51 = vcombine.low %v57_v39, %v61_v40  ;;  %v684_v52 = vcombine.low %v58_v41, %v62_v42  ;;  %v40_v20 = vld [vmem:[%s985_s1 + $0xb8] sm:$0xff] }
   0xe   :  { %454 = vmatpush1.bf16.msra.mxu0 %v658_v27  ;;  %497 = vmatpush1.bf16.msra.mxu1 %v660_v28  ;;  %v69_v48 = vld [vmem:[%s985_s1 + $0x1a0] sm:$0xff]  ;;  %v70_v50 = vld [vmem:[%s985_s1 + $0x1a8] sm:$0xff]  ;;  %v665_v24 = vcombine.high %v36_v19, %v40_v20  ;;  %v43_v25 = vld [vmem:[%s985_s1 + $0xd0] sm:$0xff] }
   0xf   :  { %455 = vmatprep.subr.bf16.mxu0 %v667_v29  ;;  %498 = vmatprep.subr.bf16.mxu1 %v669_v30  ;;  %v691_v53 = vcombine.high %v65_v47, %v69_v48  ;;  %v693_v54 = vcombine.high %v66_v49, %v70_v50  ;;  %v73_v55 = vld [vmem:[%s985_s1 + $0x1c0] sm:$0xff]  ;;  %v74_v57 = vld [vmem:[%s985_s1 + $0x1c8] sm:$0xff]  ;;  %v690_v59 = vcombine.low %v65_v47, %v69_v48  ;;  %v47_v26 = vld [vmem:[%s985_s1 + $0xf0] sm:$0xff] }
  0x10   :  { %v77_v56 = vld [vmem:[%s985_s1 + $0x1e0] sm:$0xff]  ;;  %v78_v58 = vld [vmem:[%s985_s1 + $0x1e8] sm:$0xff]  ;;  %v692_v60 = vcombine.low %v66_v49, %v70_v50  ;;  %v44_v27 = vld [vmem:[%s985_s1 + $0xd8] sm:$0xff]  ;;  %v662_v29 = vcombine.low %v35_v17, %v39_v18  ;;  %v664_v30 = vcombine.low %v36_v19, %v40_v20  ;;  %v671_v31 = vcombine.high %v43_v25, %v47_v26 }
  0x11   :  { %v699_v61 = vcombine.high %v73_v55, %v77_v56  ;;  %v701_v62 = vcombine.high %v74_v57, %v78_v58  ;;  %v698_v4 = vcombine.low %v73_v55, %v77_v56  ;;  %v700_v5 = vcombine.low %v74_v57, %v78_v58  ;;  %v848_v10 = vld [vmem:[%s986_s0] sm:$0xff]   ;;  %v48_v28 = vld [vmem:[%s985_s1 + $0xf8] sm:$0xff]  ;;  %v51_v33 = vld [vmem:[%s985_s1 + $0x110] sm:$0xff] }
  0x12   :  { %456 = vmatpush1.bf16.msra.mxu0 %v666_v35  ;;  %499 = vmatpush1.bf16.msra.mxu1 %v668_v36  ;;  %v673_v32 = vcombine.high %v44_v27, %v48_v28  ;;  %v55_v34 = vld [vmem:[%s985_s1 + $0x130] sm:$0xff]  ;;  %v56_v35 = vld [vmem:[%s985_s1 + $0x138] sm:$0xff]  ;;  %v670_v36 = vcombine.low %v43_v25, %v47_v26 }
  0x13   :  { %457 = vmatprep.subr.bf16.mxu0 %v675_v37  ;;  %500 = vmatprep.subr.bf16.mxu1 %v677_v38  ;;  %v672_v37 = vcombine.low %v44_v27, %v48_v28  ;;  %v679_v38 = vcombine.high %v51_v33, %v55_v34  ;;  %v59_v40 = vld [vmem:[%s985_s1 + $0x150] sm:$0xff]  ;;  %v60_v42 = vld [vmem:[%s985_s1 + $0x158] sm:$0xff] }
  0x14   :  { %v63_v41 = vld [vmem:[%s985_s1 + $0x170] sm:$0xff]  ;;  %v68_v50 = vld [vmem:[%s985_s1 + $0x198] sm:$0xff] }
  0x15   :  { %v67_v48 = vld [vmem:[%s985_s1 + $0x190] sm:$0xff]  ;;  %v76_v58 = vld [vmem:[%s985_s1 + $0x1d8] sm:$0xff] }
  0x16   :  { %458 = vmatpush1.bf16.msra.mxu0 %v674_v43  ;;  %501 = vmatpush1.bf16.msra.mxu1 %v676_v44  ;;  %v64_v43 = vld [vmem:[%s985_s1 + $0x178] sm:$0xff]  ;;  %v678_v44 = vcombine.low %v51_v33, %v55_v34  ;;  %v71_v49 = vld [vmem:[%s985_s1 + $0x1b0] sm:$0xff] }
  0x17   :  { %459 = vmatprep.subr.bf16.mxu0 %v683_v45  ;;  %502 = vmatprep.subr.bf16.mxu1 %v685_v46  ;;  %v687_v46 = vcombine.high %v59_v40, %v63_v41  ;;  %v689_v47 = vcombine.high %v60_v42, %v64_v43  ;;  %v75_v56 = vld [vmem:[%s985_s1 + $0x1d0] sm:$0xff] }
  0x18   :  { %v79_v57 = vld [vmem:[%s985_s1 + $0x1f0] sm:$0xff] }
  0x19   :  { %v702_v0 = vcombine.low %v75_v56, %v79_v57 }
  0x1a   :  { %460 = vmatpush1.bf16.msra.mxu0 %v682_v51  ;;  %503 = vmatpush1.bf16.msra.mxu1 %v684_v52  ;;  %v72_v51 = vld [vmem:[%s985_s1 + $0x1b8] sm:$0xff]  ;;  %v686_v52 = vcombine.low %v59_v40, %v63_v41 }
  0x1b   :  { %461 = vmatprep.subr.bf16.mxu0 %v691_v53  ;;  %504 = vmatprep.subr.bf16.mxu1 %v693_v54  ;;  %v688_v53 = vcombine.low %v60_v42, %v64_v43  ;;  %v695_v54 = vcombine.high %v67_v48, %v71_v49  ;;  %v697_v55 = vcombine.high %v68_v50, %v72_v51 }
  0x1e   :  { %462 = vmatpush1.bf16.msra.mxu0 %v690_v59  ;;  %505 = vmatpush1.bf16.msra.mxu1 %v692_v60  ;;  %v80_v59 = vld [vmem:[%s985_s1 + $0x1f8] sm:$0xff]  ;;  %v694_v60 = vcombine.low %v67_v48, %v71_v49 }
  0x1f   :  { %463 = vmatprep.subr.bf16.mxu0 %v699_v61  ;;  %506 = vmatprep.subr.bf16.mxu1 %v701_v62  ;;  %v696_v61 = vcombine.low %v68_v50, %v72_v51  ;;  %v703_v62 = vcombine.high %v75_v56, %v79_v57  ;;  %v705_v63 = vcombine.high %v76_v58, %v80_v59 }
  0x20   :  { %v704_v1 = vcombine.low %v76_v58, %v80_v59 }
  0x22   :  { %464 = vmatpush1.bf16.msra.mxu0 %v698_v4  ;;  %507 = vmatpush1.bf16.msra.mxu1 %v700_v5  ;;  %v84_v4 = vshrl.u32 %v83_v2, 7 }
  0x23   :  { %535 = vmatprep.subr.bf16.mxu0 %v647_v6  ;;  %578 = vmatprep.subr.bf16.mxu1 %v649_v7  ;;  %v81_v6 = vld [vmem:[%s987_s2] sm:$0xff] }
  0x24   :  { %v85_v5 = vsub.s32 0, %v84_v4  ;;  %v93_v7 = vsub.s32 2, %v84_v4  ;;  %v89_v8 = vsub.s32 1, %v84_v4  ;;  %v97_v9 = vsub.s32 3, %v84_v4 }
  0x25   :  { %482 = vmatmul.mubr.bf16.vlgmr.msra.gmra.mrb[0].mxu0 %v848_v10  ;;  %525 = vmatmul.mubr.bf16.vlgmr.msra.gmra.mrb[0].mxu1 %v848_v10  ;;  %v113_v33 = vsub.s32 7, %v84_v4 }
  0x26   :  { %536 = vmatpush1.bf16.msra.mxu0 %v646_v13  ;;  %579 = vmatpush1.bf16.msra.mxu1 %v648_v14  ;;  %v86_v11 = vrot.slane %v81_v6, %v85_v5  ;;  %v94_v12 = vrot.slane %v81_v6, %v93_v7  ;;  %v90_v13 = vrot.slane %v81_v6, %v89_v8 }
  0x27   :  { %537 = vmatprep.subr.bf16.mxu0 %v655_v15  ;;  %580 = vmatprep.subr.bf16.mxu1 %v657_v16  ;;  %v98_v14 = vrot.slane %v81_v6, %v97_v9 }
  0x28   :  { %567 = vmatprep.mubr.bf16.mxu0 %v708_v3  ;;  %610 = vmatprep.mubr.bf16.mxu1 %v708_v3  ;;  %v52_v3 = vld [vmem:[%s985_s1 + $0x118] sm:$0xff] }
  0x29   :  { %v681_v39 = vcombine.high %v52_v3, %v56_v35  ;;  %v680_v45 = vcombine.low %v52_v3, %v56_v35 }
  0x2a   :  { %538 = vmatpush1.bf16.msra.mxu0 %v654_v21  ;;  %581 = vmatpush1.bf16.msra.mxu1 %v656_v22 }
  0x2b   :  { %539 = vmatprep.subr.bf16.mxu0 %v663_v23  ;;  %582 = vmatprep.subr.bf16.mxu1 %v665_v24 }
  0x2e   :  { %540 = vmatpush1.bf16.msra.mxu0 %v662_v29  ;;  %583 = vmatpush1.bf16.msra.mxu1 %v664_v30  ;;  %v101_v30 = vsub.s32 4, %v84_v4 }
  0x2f   :  { %541 = vmatprep.subr.bf16.mxu0 %v671_v31  ;;  %584 = vmatprep.subr.bf16.mxu1 %v673_v32  ;;  %v109_v31 = vsub.s32 6, %v84_v4  ;;  %v105_v32 = vsub.s32 5, %v84_v4 }
  0x30   :  { %v102_v34 = vrot.slane %v81_v6, %v101_v30 }
  0x31   :  { %v110_v3 = vrot.slane %v81_v6, %v109_v31  ;;  %v106_v35 = vrot.slane %v81_v6, %v105_v32 }
  0x32   :  { %542 = vmatpush1.bf16.msra.mxu0 %v670_v36  ;;  %585 = vmatpush1.bf16.msra.mxu1 %v672_v37  ;;  %v114_v36 = vrot.slane %v81_v6, %v113_v33 }
  0x33   :  { %543 = vmatprep.subr.bf16.mxu0 %v679_v38  ;;  %586 = vmatprep.subr.bf16.mxu1 %v681_v39 }
  0x36   :  { %544 = vmatpush1.bf16.msra.mxu0 %v678_v44  ;;  %587 = vmatpush1.bf16.msra.mxu1 %v680_v45 }
  0x37   :  { %545 = vmatprep.subr.bf16.mxu0 %v687_v46  ;;  %588 = vmatprep.subr.bf16.mxu1 %v689_v47 }
  0x3a   :  { %546 = vmatpush1.bf16.msra.mxu0 %v686_v52  ;;  %589 = vmatpush1.bf16.msra.mxu1 %v688_v53 }
  0x3b   :  { %547 = vmatprep.subr.bf16.mxu0 %v695_v54  ;;  %590 = vmatprep.subr.bf16.mxu1 %v697_v55 }
  0x3e   :  { %548 = vmatpush1.bf16.msra.mxu0 %v694_v60  ;;  %591 = vmatpush1.bf16.msra.mxu1 %v696_v61 }
  0x3f   :  { %549 = vmatprep.subr.bf16.mxu0 %v703_v62  ;;  %592 = vmatprep.subr.bf16.mxu1 %v705_v63 }
  0x42   :  { %550 = vmatpush1.bf16.msra.mxu0 %v702_v0  ;;  %593 = vmatpush1.bf16.msra.mxu1 %v704_v1 }
  0x45   :  { %568 = vmatmul.mubr.bf16.vlgmr.msra.gmra.mrb[4].mxu0 %v848_v10  ;;  %611 = vmatmul.mubr.bf16.vlgmr.msra.gmra.mrb[4].mxu1 %v848_v10 }
  0xf8   :  { %v483_v15 = vpop.f32.mrb[0].mxu0  ;;  %v526_v17 = vpop.f32.mrb[0].mxu1 }
  0xf9   :  { %v484_v16 = vadd.f32 %v483_v15, %v86_v11  ;;  %v485_v18 = vpop.f32.mrb[1].mxu0  ;;  %v527_v19 = vadd.f32 %v526_v17, %v94_v12  ;;  %v528_v20 = vpop.f32.mrb[1].mxu1 }
  0xfa   :  { %v486_v10 = vadd.f32 %v485_v18, %v90_v13  ;;  %v487_v21 = vpop.f32.mrb[2].mxu0  ;;  %v529_v22 = vadd.f32 %v528_v20, %v98_v14  ;;  %v530_v24 = vpop.f32.mrb[2].mxu1 }
  0xfb   :  { %621 = vst [vmem:[%s988_s3] sm:$0xff] %v484_v16  ;;  %v488_v23 = vadd.f32 %v487_v21, %v86_v11  ;;  %v489_v25 = vpop.f32.mrb[3].mxu0  ;;  %623 = vst [vmem:[%s988_s3 + $0x10] sm:$0xff] %v527_v19  ;;  %v531_v26 = vadd.f32 %v530_v24, %v94_v12  ;;  %v532_v28 = vpop.f32.mrb[3].mxu1 }
  0xfc   :  { %622 = vst [vmem:[%s988_s3 + $0x8] sm:$0xff] %v486_v10  ;;  %v490_v27 = vadd.f32 %v489_v25, %v90_v13  ;;  %624 = vst [vmem:[%s988_s3 + $0x18] sm:$0xff] %v529_v22  ;;  %v533_v29 = vadd.f32 %v532_v28, %v98_v14 }
  0xfd   :  { %629 = vst [vmem:[%s988_s3 + $0x40] sm:$0xff] %v488_v23  ;;  %631 = vst [vmem:[%s988_s3 + $0x50] sm:$0xff] %v531_v26 }
  0xfe   :  { %630 = vst [vmem:[%s988_s3 + $0x48] sm:$0xff] %v490_v27  ;;  %632 = vst [vmem:[%s988_s3 + $0x58] sm:$0xff] %v533_v29 }
 0x118   :  { %v569_v37 = vpop.f32.mrb[4].mxu0  ;;  %v612_v39 = vpop.f32.mrb[4].mxu1 }
 0x119   :  { %v570_v38 = vadd.f32 %v569_v37, %v102_v34  ;;  %v571_v40 = vpop.f32.mrb[5].mxu0  ;;  %v613_v41 = vadd.f32 %v612_v39, %v110_v3  ;;  %v614_v43 = vpop.f32.mrb[5].mxu1 }
 0x11a   :  { %v572_v42 = vadd.f32 %v571_v40, %v106_v35  ;;  %v573_v44 = vpop.f32.mrb[6].mxu0  ;;  %v615_v45 = vadd.f32 %v614_v43, %v114_v36  ;;  %v616_v47 = vpop.f32.mrb[6].mxu1 }
 0x11b   :  { %625 = vst [vmem:[%s988_s3 + $0x20] sm:$0xff] %v570_v38  ;;  %v574_v46 = vadd.f32 %v573_v44, %v102_v34  ;;  %v575_v48 = vpop.f32.mrb[7].mxu0  ;;  %627 = vst [vmem:[%s988_s3 + $0x30] sm:$0xff] %v613_v41  ;;  %v617_v49 = vadd.f32 %v616_v47, %v110_v3  ;;  %v618_v51 = vpop.f32.mrb[7].mxu1 }
 0x11c   :  { %626 = vst [vmem:[%s988_s3 + $0x28] sm:$0xff] %v572_v42  ;;  %v576_v50 = vadd.f32 %v575_v48, %v106_v35  ;;  %628 = vst [vmem:[%s988_s3 + $0x38] sm:$0xff] %v615_v45  ;;  %v619_v52 = vadd.f32 %v618_v51, %v114_v36 }
 0x11d   :  { %633 = vst [vmem:[%s988_s3 + $0x60] sm:$0xff] %v574_v46  ;;  %635 = vst [vmem:[%s988_s3 + $0x70] sm:$0xff] %v617_v49 }
 0x11e   :  { %634 = vst [vmem:[%s988_s3 + $0x68] sm:$0xff] %v576_v50  ;;  %636 = vst [vmem:[%s988_s3 + $0x78] sm:$0xff] %v619_v52 }

// kernel: resnet_forward.26
= control target key start
LH: loop header
LB: loop body
LE: loop exit
PB: predicated region body
PF: predicated region fallthrough
CT: control target
= control target key end

     0   :  { %vm33_vm0 = vcmask 1043456   ;;  %v3768_v0 = vmov 0.0   ;;  %vm3769_vm1 = vmmov 0   ;;  %vm29_vm2 = vcmask 64512   ;;  %s4599_s0 = inlined_call_operand.vmem [shape: bf16[8,128], index: 0, kind: input, shape index: {}]   ;;  %s4600_s1 = inlined_call_operand.vmem [shape: bf16[9,8,8], index: 1, kind: input, shape index: {}, may-alias: {1,4}]   ;;  %s4601_s2 = inlined_call_operand.vmem [shape: bf16[1152,128], index: 2, kind: input, shape index: {}]   ;;  %s4602_s5 = inlined_call_operand.vmem [shape: bf16[1152,128], index: 5, kind: input, shape index: {}]   ;;  %s4603_s3 = inlined_call_operand.vmem [shape: f32[1,128], index: 3, kind: input, shape index: {}]   ;;  %s4604_s4 = inlined_call_operand.vmem [shape: bf16[9,8,8], index: 4, kind: input, shape index: {}, may-alias: {1,4}]   ;;  %s4605_s6 = inlined_call_operand.vmem [shape: f32[1,128], index: 6, kind: input, shape index: {}]   ;;  %s4606_s7 = inlined_call_operand.vmem [shape: bf16[8,128], index: 7, kind: output, shape index: {}]  }
   0x1   :  { %3153 = vmatprep.subr.bf16.mxu0 %v3768_v0  ;;  %3159 = vmatprep.subr.bf16.mxu1 %v3768_v0  ;;  %v27_v1 = vld [vmem:[%s4599_s0] sm:$0xf]  ;;  %v2776_v3 = vld [vmem:[%s4600_s1 + $0x4] sm:$0xf]  ;;  %v3625_v7 = vld [vmem:[%s4601_s2 + $0x48] sm:$0xff]  }
   0x2   :  { %v28_v2 = vld [vmem:[%s4600_s1] sm:$0xf]  ;;  %v3822_v4 = vsel %vm33_vm0, %v27_v1, 0  ;;  %3155 = vmatprep.mubr.msk.bf16.mxu0 %vm3769_vm1, %v3768_v0  ;;  %3161 = vmatprep.mubr.msk.bf16.mxu1 %vm3769_vm1, %v3768_v0  ;;  %v3626_v8 = vld [vmem:[%s4601_s2 + $0x8] sm:$0xff]   ;;  %v3627_v9 = vld [vmem:[%s4601_s2 + $0x50] sm:$0xff]  }
   0x3   :  { %v3623_v5 = vld [vmem:[%s4601_s2 + $0x40] sm:$0xff]   ;;  %3154 = vmatpush3.bf16.msra.mxu0 %v3822_v4  ;;  %3160 = vmatpush3.bf16.msra.mxu1 %v3822_v4  ;;  %v3628_v10 = vld [vmem:[%s4601_s2 + $0x10] sm:$0xff]   ;;  %v3629_v11 = vld [vmem:[%s4601_s2 + $0x58] sm:$0xff]  }
   0x4   :  { %v3624_v6 = vld [vmem:[%s4601_s2] sm:$0xff]   ;;  %3165 = vmatprep.subr.bf16.mxu0 %v3768_v0  ;;  %3185 = vmatprep.subr.bf16.mxu1 %v3768_v0  ;;  %v3630_v12 = vld [vmem:[%s4601_s2 + $0x18] sm:$0xff]   ;;  %v3633_v15 = vld [vmem:[%s4601_s2 + $0x68] sm:$0xff]  }
   0x5   :  { %v3631_v13 = vld [vmem:[%s4601_s2 + $0x60] sm:$0xff]   ;;  %v3634_v16 = vld [vmem:[%s4601_s2 + $0x28] sm:$0xff]   ;;  %v3635_v17 = vld [vmem:[%s4601_s2 + $0x70] sm:$0xff]  }
   0x6   :  { %3156 = vmatmul.mubr.msk.bf16.vlgmr.msra.gmra.mrb[0].mxu0 %vm29_vm2, %v28_v2  ;;  %3162 = vmatmul.mubr.msk.bf16.vlgmr.msra.gmra.mrb[0].mxu1 %vm29_vm2, %v2776_v3  ;;  %v3632_v14 = vld [vmem:[%s4601_s2 + $0x20] sm:$0xff]   ;;  %v3636_v18 = vld [vmem:[%s4601_s2 + $0x30] sm:$0xff]   ;;  %v3637_v19 = vld [vmem:[%s4601_s2 + $0x78] sm:$0xff]  }
   0x7   :  { %3166 = vmatpush3.bf16.msra.mxu0 %v3623_v5  ;;  %3186 = vmatpush3.bf16.msra.mxu1 %v3624_v6  ;;  %v3638_v20 = vld [vmem:[%s4601_s2 + $0x38] sm:$0xff]   ;;  %v2794_v31 = vld [vmem:[%s4600_s1 + $0x8] sm:$0xf]  ;;  %v3639_v32 = vld [vmem:[%s4601_s2 + $0x80] sm:$0xff]  }
   0x8   :  { %3167 = vmatprep.subr.bf16.mxu0 %v3768_v0  ;;  %3187 = vmatprep.subr.bf16.mxu1 %v3768_v0  ;;  %v3640_v33 = vld [vmem:[%s4601_s2 + $0x88] sm:$0xff]   ;;  %v3641_v34 = vld [vmem:[%s4601_s2 + $0x90] sm:$0xff]   ;;  %v3642_v35 = vld [vmem:[%s4601_s2 + $0x98] sm:$0xff]  }
   0x9   :  { %3181 = vmatprep.mubr.msk.bf16.mxu0 %vm3769_vm1, %v3768_v0  ;;  %3201 = vmatprep.mubr.msk.bf16.mxu1 %vm3769_vm1, %v3768_v0  ;;  %v3643_v36 = vld [vmem:[%s4601_s2 + $0xa0] sm:$0xff]   ;;  %v3644_v37 = vld [vmem:[%s4601_s2 + $0xa8] sm:$0xff]   ;;  %v3645_v38 = vld [vmem:[%s4601_s2 + $0xb0] sm:$0xff]  }
   0xa   :  { %v3646_v39 = vld [vmem:[%s4601_s2 + $0xb8] sm:$0xff]   ;;  %v3647_v40 = vld [vmem:[%s4601_s2 + $0xc0] sm:$0xff]   ;;  %v3648_v41 = vld [vmem:[%s4601_s2 + $0xc8] sm:$0xff]  }
   0xb   :  { %3168 = vmatpush3.bf16.msra.mxu0 %v3625_v7  ;;  %3188 = vmatpush3.bf16.msra.mxu1 %v3626_v8  ;;  %v3649_v42 = vld [vmem:[%s4601_s2 + $0xd0] sm:$0xff]   ;;  %v3651_v43 = vld [vmem:[%s4601_s2 + $0xd8] sm:$0xff]   ;;  %v3653_v44 = vld [vmem:[%s4601_s2 + $0xe0] sm:$0xff]  }
   0xc   :  { %3169 = vmatprep.subr.bf16.mxu0 %v3768_v0  ;;  %3189 = vmatprep.subr.bf16.mxu1 %v3768_v0  ;;  %v2804_v59 = vld [vmem:[%s4600_s1 + $0xc] sm:$0xf]  ;;  %v2814_v60 = vld [vmem:[%s4600_s1 + $0x10] sm:$0xf]  ;;  %v3650_v61 = vld [vmem:[%s4601_s2 + $0x100] sm:$0xff]  }
   0xd   :  { %v3652_v62 = vld [vmem:[%s4601_s2 + $0x108] sm:$0xff]   ;;  %v3654_v63 = vld [vmem:[%s4601_s2 + $0x110] sm:$0xff]   ;;  %v3656_v2 = vld [vmem:[%s4601_s2 + $0x118] sm:$0xff]  }
   0xe   :  { %v3655_v1 = vld [vmem:[%s4601_s2 + $0xe8] sm:$0xff]   ;;  %v3657_v3 = vld [vmem:[%s4601_s2 + $0xf0] sm:$0xff]   ;;  %v3658_v5 = vld [vmem:[%s4601_s2 + $0x120] sm:$0xff]  }
   0xf   :  { %3170 = vmatpush3.bf16.msra.mxu0 %v3627_v9  ;;  %3190 = vmatpush3.bf16.msra.mxu1 %v3628_v10  ;;  %v3659_v6 = vld [vmem:[%s4601_s2 + $0xf8] sm:$0xff]   ;;  %v3660_v7 = vld [vmem:[%s4601_s2 + $0x128] sm:$0xff]   ;;  %v3661_v8 = vld [vmem:[%s4601_s2 + $0x130] sm:$0xff]  }
  0x10   :  { %3171 = vmatprep.subr.bf16.mxu0 %v3768_v0  ;;  %3191 = vmatprep.subr.bf16.mxu1 %v3768_v0  ;;  %v3662_v9 = vld [vmem:[%s4601_s2 + $0x138] sm:$0xff]  }
  0x13   :  { %3172 = vmatpush3.bf16.msra.mxu0 %v3629_v11  ;;  %3192 = vmatpush3.bf16.msra.mxu1 %v3630_v12 }
  0x14   :  { %3173 = vmatprep.subr.bf16.mxu0 %v3768_v0  ;;  %3193 = vmatprep.subr.bf16.mxu1 %v3768_v0 }
  0x17   :  { %3174 = vmatpush3.bf16.msra.mxu0 %v3631_v13  ;;  %3194 = vmatpush3.bf16.msra.mxu1 %v3632_v14 }
  0x18   :  { %3175 = vmatprep.subr.bf16.mxu0 %v3768_v0  ;;  %3195 = vmatprep.subr.bf16.mxu1 %v3768_v0 }
  0x1b   :  { %3176 = vmatpush3.bf16.msra.mxu0 %v3633_v15  ;;  %3196 = vmatpush3.bf16.msra.mxu1 %v3634_v16 }
  0x1c   :  { %3177 = vmatprep.subr.bf16.mxu0 %v3768_v0  ;;  %3197 = vmatprep.subr.bf16.mxu1 %v3768_v0 }
  0x1f   :  { %3178 = vmatpush3.bf16.msra.mxu0 %v3635_v17  ;;  %3198 = vmatpush3.bf16.msra.mxu1 %v3636_v18 }
  0x20   :  { %3179 = vmatprep.subr.bf16.mxu0 %v3768_v0  ;;  %3199 = vmatprep.subr.bf16.mxu1 %v3768_v0 }
  0x23   :  { %3180 = vmatpush3.bf16.msra.mxu0 %v3637_v19  ;;  %3200 = vmatpush3.bf16.msra.mxu1 %v3638_v20 }
  0x24   :  { %3205 = vmatprep.subr.bf16.mxu1 %v3768_v0  ;;  %3237 = vmatprep.subr.bf16.mxu0 %v3768_v0 }
  0xd9   :  { %v71_v21 = vpop.f32.mrb[0].mxu0  ;;  %v133_v22 = vpop.f32.mrb[0].mxu1 }
  0xda   :  { %v77_v23 = vpack.c.bf16 %v71_v21, %v71_v21  ;;  %v139_v24 = vpack.c.bf16 %v133_v22, %v133_v22  ;;  %v3157_v25 = vpop.f32.mrb[1].mxu0  ;;  %v3163_v26 = vpop.f32.mrb[1].mxu1  ;;  %v2824_v21 = vld [vmem:[%s4600_s1 + $0x14] sm:$0xf] }
  0xdb   :  { %v74_v27 = vpop.f32.mrb[2].mxu0  ;;  %v136_v28 = vpop.f32.mrb[2].mxu1 }
  0xdc   :  { %v3158_v29 = vpop.f32.mrb[3].mxu0  ;;  %3182 = vmatmul.mubr.bf16.vlgmr.msra.gmra.mrb[4].mxu0 %v139_v24  ;;  %3202 = vmatmul.mubr.bf16.vlgmr.msra.gmra.mrb[4].mxu1 %v77_v23  ;;  %v3164_v30 = vpop.f32.mrb[3].mxu1  ;;  %v3663_v24 = vld [vmem:[%s4601_s2 + $0x140] sm:$0xff]   ;;  %v3664_v27 = vld [vmem:[%s4601_s2 + $0x148] sm:$0xff]   ;;  %v2834_v28 = vld [vmem:[%s4600_s1 + $0x18] sm:$0xf] }
  0xdd   :  { %3206 = vmatpush3.bf16.msra.mxu1 %v3822_v4  ;;  %3207 = vmatprep.mubr.msk.bf16.mxu1 %vm3769_vm1, %v3768_v0  ;;  %v3666_v29 = vld [vmem:[%s4601_s2 + $0x180] sm:$0xff]   ;;  %v3665_v30 = vld [vmem:[%s4601_s2 + $0x150] sm:$0xff]  }
  0xde   :  { %3211 = vmatprep.subr.bf16.mxu1 %v3768_v0  ;;  %3253 = vmatprep.mubr.msk.bf16.mxu0 %vm3769_vm1, %v3768_v0 }
  0xdf   :  { %3238 = vmatpush3.bf16.msra.mxu0 %v3647_v40  ;;  %v3676_v40 = vld [vmem:[%s4601_s2 + $0x1a8] sm:$0xff]  }
  0xe0   :  { %3239 = vmatprep.subr.bf16.mxu0 %v3768_v0 }
  0xe3   :  { %3240 = vmatpush3.bf16.msra.mxu0 %v3648_v41  ;;  %v3677_v41 = vld [vmem:[%s4601_s2 + $0x1b0] sm:$0xff]  }
  0xe4   :  { %3208 = vmatmul.mubr.msk.bf16.vlgmr.msra.gmra.mrb[8].mxu1 %vm29_vm2, %v2794_v31  ;;  %3241 = vmatprep.subr.bf16.mxu0 %v3768_v0  ;;  %v3668_v31 = vld [vmem:[%s4601_s2 + $0x188] sm:$0xff]  }
  0xe5   :  { %3212 = vmatpush3.bf16.msra.mxu1 %v3639_v32  ;;  %3227 = vmatprep.mubr.msk.bf16.mxu1 %vm3769_vm1, %v3768_v0  ;;  %v3667_v32 = vld [vmem:[%s4601_s2 + $0x158] sm:$0xff]  }
  0xe6   :  { %3213 = vmatprep.subr.bf16.mxu1 %v3768_v0 }
  0xe7   :  { %3242 = vmatpush3.bf16.msra.mxu0 %v3649_v42  ;;  %v3678_v42 = vld [vmem:[%s4601_s2 + $0x1b8] sm:$0xff]  }
  0xe8   :  { %3243 = vmatprep.subr.bf16.mxu0 %v3768_v0 }
  0xe9   :  { %3214 = vmatpush3.bf16.msra.mxu1 %v3640_v33  ;;  %v3670_v33 = vld [vmem:[%s4601_s2 + $0x190] sm:$0xff]  }
  0xea   :  { %3215 = vmatprep.subr.bf16.mxu1 %v3768_v0 }
  0xeb   :  { %3244 = vmatpush3.bf16.msra.mxu0 %v3651_v43 }
  0xec   :  { %3245 = vmatprep.subr.bf16.mxu0 %v3768_v0 }
  0xed   :  { %3216 = vmatpush3.bf16.msra.mxu1 %v3641_v34  ;;  %v3669_v34 = vld [vmem:[%s4601_s2 + $0x160] sm:$0xff]  }
  0xee   :  { %3217 = vmatprep.subr.bf16.mxu1 %v3768_v0 }
  0xef   :  { %3246 = vmatpush3.bf16.msra.mxu0 %v3653_v44 }
  0xf0   :  { %3247 = vmatprep.subr.bf16.mxu0 %v3768_v0 }
  0xf1   :  { %3218 = vmatpush3.bf16.msra.mxu1 %v3642_v35  ;;  %v3671_v35 = vld [vmem:[%s4601_s2 + $0x168] sm:$0xff]  }
  0xf2   :  { %3219 = vmatprep.subr.bf16.mxu1 %v3768_v0 }
  0xf3   :  { %3248 = vmatpush3.bf16.msra.mxu0 %v3655_v1 }
  0xf4   :  { %3249 = vmatprep.subr.bf16.mxu0 %v3768_v0 }
  0xf5   :  { %3220 = vmatpush3.bf16.msra.mxu1 %v3643_v36  ;;  %v3672_v36 = vld [vmem:[%s4601_s2 + $0x198] sm:$0xff]  }
  0xf6   :  { %3221 = vmatprep.subr.bf16.mxu1 %v3768_v0 }
  0xf7   :  { %3250 = vmatpush3.bf16.msra.mxu0 %v3657_v3  ;;  %v2854_v3 = vld [vmem:[%s4600_s1 + $0x20] sm:$0xf] }
  0xf8   :  { %3251 = vmatprep.subr.bf16.mxu0 %v3768_v0 }
  0xf9   :  { %3222 = vmatpush3.bf16.msra.mxu1 %v3644_v37  ;;  %v3673_v37 = vld [vmem:[%s4601_s2 + $0x170] sm:$0xff]  }
  0xfa   :  { %3223 = vmatprep.subr.bf16.mxu1 %v3768_v0 }
  0xfb   :  { %3252 = vmatpush3.bf16.msra.mxu0 %v3659_v6  ;;  %v3684_v6 = vld [vmem:[%s4601_s2 + $0x208] sm:$0xff]  }
  0xfc   :  { %3283 = vmatprep.subr.bf16.mxu0 %v3768_v0 }
  0xfd   :  { %3224 = vmatpush3.bf16.msra.mxu1 %v3645_v38  ;;  %v3674_v38 = vld [vmem:[%s4601_s2 + $0x1a0] sm:$0xff]  }
  0xfe   :  { %3225 = vmatprep.subr.bf16.mxu1 %v3768_v0 }
 0x101   :  { %3226 = vmatpush3.bf16.msra.mxu1 %v3646_v39  ;;  %v3675_v39 = vld [vmem:[%s4601_s2 + $0x178] sm:$0xff]  }
 0x102   :  { %3231 = vmatprep.subr.bf16.mxu1 %v3768_v0 }
 0x1af   :  { %v238_v45 = vpop.f32.mrb[4].mxu0  ;;  %v326_v46 = vpop.f32.mrb[4].mxu1 }
 0x1b0   :  { %v327_v47 = vadd.f32 %v326_v46, %v238_v45  ;;  %v3203_v48 = vpop.f32.mrb[5].mxu1  ;;  %v3183_v49 = vpop.f32.mrb[5].mxu0 }
 0x1b1   :  { %v329_v50 = vpop.f32.mrb[6].mxu1  ;;  %v241_v51 = vpop.f32.mrb[6].mxu0 }
 0x1b2   :  { %v3204_v52 = vpop.f32.mrb[7].mxu1  ;;  %v3184_v53 = vpop.f32.mrb[7].mxu0 }
 0x1b7   :  { %v371_v54 = vpop.f32.mrb[8].mxu1 }
 0x1b8   :  { %v377_v55 = vpack.c.bf16 %v371_v54, %v371_v54  ;;  %v3209_v56 = vpop.f32.mrb[9].mxu1 }
 0x1b9   :  { %v374_v57 = vpop.f32.mrb[10].mxu1 }
 0x1ba   :  { %v3210_v58 = vpop.f32.mrb[11].mxu1  ;;  %3228 = vmatmul.mubr.bf16.vlgmr.msra.gmra.mrb[12].mxu1 %v377_v55 }
 0x1bb   :  { %3232 = vmatpush3.bf16.msra.mxu1 %v3822_v4  ;;  %3233 = vmatprep.mubr.msk.bf16.mxu1 %vm3769_vm1, %v3768_v0 }
 0x1bc   :  { %3257 = vmatprep.subr.bf16.mxu1 %v3768_v0 }
 0x1c2   :  { %3234 = vmatmul.mubr.msk.bf16.vlgmr.msra.gmra.mrb[16].mxu1 %vm29_vm2, %v2804_v59  ;;  %v2844_v59 = vld [vmem:[%s4600_s1 + $0x1c] sm:$0xf] }
 0x1c3   :  { %3258 = vmatpush3.bf16.msra.mxu1 %v3822_v4  ;;  %3259 = vmatprep.mubr.msk.bf16.mxu1 %vm3769_vm1, %v3768_v0 }
 0x1c4   :  { %3263 = vmatprep.subr.bf16.mxu1 %v3768_v0 }
 0x1ca   :  { %3260 = vmatmul.mubr.msk.bf16.vlgmr.msra.gmra.mrb[20].mxu1 %vm29_vm2, %v2814_v60 }
 0x1cb   :  { %3264 = vmatpush3.bf16.msra.mxu1 %v3650_v61  ;;  %3279 = vmatprep.mubr.msk.bf16.mxu1 %vm3769_vm1, %v3768_v0 }
 0x1cc   :  { %3265 = vmatprep.subr.bf16.mxu1 %v3768_v0 }
 0x1cf   :  { %3266 = vmatpush3.bf16.msra.mxu1 %v3652_v62  ;;  %v3679_v62 = vld [vmem:[%s4601_s2 + $0x1c0] sm:$0xff]  }
 0x1d0   :  { %3267 = vmatprep.subr.bf16.mxu1 %v3768_v0 }
 0x1d3   :  { %3268 = vmatpush3.bf16.msra.mxu1 %v3654_v63 }
 0x1d4   :  { %3269 = vmatprep.subr.bf16.mxu1 %v3768_v0 }
 0x1d7   :  { %3270 = vmatpush3.bf16.msra.mxu1 %v3656_v2  ;;  %v3680_v2 = vld [vmem:[%s4601_s2 + $0x1c8] sm:$0xff]  }
 0x1d8   :  { %3271 = vmatprep.subr.bf16.mxu1 %v3768_v0 }
 0x1db   :  { %3272 = vmatpush3.bf16.msra.mxu1 %v3658_v5  ;;  %v3681_v5 = vld [vmem:[%s4601_s2 + $0x1d0] sm:$0xff]  }
 0x1dc   :  { %3273 = vmatprep.subr.bf16.mxu1 %v3768_v0 }
 0x1df   :  { %3274 = vmatpush3.bf16.msra.mxu1 %v3660_v7  ;;  %v3683_v7 = vld [vmem:[%s4601_s2 + $0x1d8] sm:$0xff]  }
 0x1e0   :  { %3275 = vmatprep.subr.bf16.mxu1 %v3768_v0 }
 0x1e3   :  { %3276 = vmatpush3.bf16.msra.mxu1 %v3661_v8  ;;  %v3686_v8 = vld [vmem:[%s4601_s2 + $0x210] sm:$0xff]  }
 0x1e4   :  { %3277 = vmatprep.subr.bf16.mxu1 %v3768_v0 }
 0x1e7   :  { %3278 = vmatpush3.bf16.msra.mxu1 %v3662_v9  ;;  %v3685_v9 = vld [vmem:[%s4601_s2 + $0x1e0] sm:$0xff]  }
 0x1e8   :  { %3309 = vmatprep.subr.bf16.mxu1 %v3768_v0 }
 0x28d   :  { %v476_v10 = vpop.f32.mrb[12].mxu1 }
 0x28e   :  { %v4028_v11 = vadd.f32 %v476_v10, %v327_v47  ;;  %v3229_v12 = vpop.f32.mrb[13].mxu1  ;;  %v3687_v10 = vld [vmem:[%s4601_s2 + $0x1e8] sm:$0xff]  }
 0x28f   :  { %v479_v13 = vpop.f32.mrb[14].mxu1  ;;  %v3689_v12 = vld [vmem:[%s4601_s2 + $0x1f0] sm:$0xff]  }
 0x290   :  { %v3230_v14 = vpop.f32.mrb[15].mxu1  ;;  %v3690_v13 = vld [vmem:[%s4601_s2 + $0x220] sm:$0xff]  }
 0x291   :  { %v3691_v14 = vld [vmem:[%s4601_s2 + $0x1f8] sm:$0xff]  }
 0x295   :  { %v522_v15 = vpop.f32.mrb[16].mxu1 }
 0x296   :  { %v528_v16 = vpack.c.bf16 %v522_v15, %v522_v15  ;;  %v3235_v17 = vpop.f32.mrb[17].mxu1  ;;  %v3692_v15 = vld [vmem:[%s4601_s2 + $0x228] sm:$0xff]  }
 0x297   :  { %v525_v18 = vpop.f32.mrb[18].mxu1  ;;  %v3694_v17 = vld [vmem:[%s4601_s2 + $0x238] sm:$0xff]  }
 0x298   :  { %v3236_v19 = vpop.f32.mrb[19].mxu1  ;;  %3254 = vmatmul.mubr.bf16.vlgmr.msra.gmra.mrb[8].mxu0 %v528_v16  ;;  %v3693_v16 = vld [vmem:[%s4601_s2 + $0x230] sm:$0xff]  }
 0x299   :  { %3284 = vmatpush3.bf16.msra.mxu0 %v3822_v4  ;;  %3285 = vmatprep.mubr.msk.bf16.mxu0 %vm3769_vm1, %v3768_v0 }
 0x29a   :  { %3289 = vmatprep.subr.bf16.mxu0 %v3768_v0 }
 0x29d   :  { %v673_v20 = vpop.f32.mrb[20].mxu1 }
 0x29e   :  { %v679_v22 = vpack.c.bf16 %v673_v20, %v673_v20  ;;  %v3261_v23 = vpop.f32.mrb[21].mxu1 }
 0x29f   :  { %v676_v25 = vpop.f32.mrb[22].mxu1 }
 0x2a0   :  { %v3262_v26 = vpop.f32.mrb[23].mxu1  ;;  %3280 = vmatmul.mubr.bf16.vlgmr.msra.gmra.mrb[24].mxu1 %v679_v22  ;;  %3286 = vmatmul.mubr.msk.bf16.vlgmr.msra.gmra.mrb[12].mxu0 %vm29_vm2, %v2824_v21 }
 0x2a1   :  { %3310 = vmatpush3.bf16.msra.mxu1 %v3822_v4  ;;  %3311 = vmatprep.mubr.msk.bf16.mxu1 %vm3769_vm1, %v3768_v0 }
 0x2a2   :  { %3290 = vmatpush3.bf16.msra.mxu0 %v3663_v24  ;;  %3315 = vmatprep.subr.bf16.mxu1 %v3768_v0 }
 0x2a3   :  { %3291 = vmatprep.subr.bf16.mxu0 %v3768_v0  ;;  %3305 = vmatprep.mubr.msk.bf16.mxu0 %vm3769_vm1, %v3768_v0 }
 0x2a6   :  { %3292 = vmatpush3.bf16.msra.mxu0 %v3664_v27 }
 0x2a7   :  { %3293 = vmatprep.subr.bf16.mxu0 %v3768_v0 }
 0x2a8   :  { %3312 = vmatmul.mubr.msk.bf16.vlgmr.msra.gmra.mrb[28].mxu1 %vm29_vm2, %v2834_v28 }
 0x2a9   :  { %3316 = vmatpush3.bf16.msra.mxu1 %v3666_v29  ;;  %3331 = vmatprep.mubr.msk.bf16.mxu1 %vm3769_vm1, %v3768_v0 }
 0x2aa   :  { %3294 = vmatpush3.bf16.msra.mxu0 %v3665_v30  ;;  %3317 = vmatprep.subr.bf16.mxu1 %v3768_v0 }
 0x2ab   :  { %3295 = vmatprep.subr.bf16.mxu0 %v3768_v0 }
 0x2ad   :  { %3318 = vmatpush3.bf16.msra.mxu1 %v3668_v31 }
 0x2ae   :  { %3296 = vmatpush3.bf16.msra.mxu0 %v3667_v32  ;;  %3319 = vmatprep.subr.bf16.mxu1 %v3768_v0 }
 0x2af   :  { %3297 = vmatprep.subr.bf16.mxu0 %v3768_v0 }
 0x2b1   :  { %3320 = vmatpush3.bf16.msra.mxu1 %v3670_v33 }
 0x2b2   :  { %3298 = vmatpush3.bf16.msra.mxu0 %v3669_v34  ;;  %3321 = vmatprep.subr.bf16.mxu1 %v3768_v0 }
 0x2b3   :  { %3299 = vmatprep.subr.bf16.mxu0 %v3768_v0 }
 0x2b5   :  { %3322 = vmatpush3.bf16.msra.mxu1 %v3672_v36 }
 0x2b6   :  { %3300 = vmatpush3.bf16.msra.mxu0 %v3671_v35  ;;  %3323 = vmatprep.subr.bf16.mxu1 %v3768_v0 }
 0x2b7   :  { %3301 = vmatprep.subr.bf16.mxu0 %v3768_v0 }
 0x2b9   :  { %3324 = vmatpush3.bf16.msra.mxu1 %v3674_v38  ;;  %v3695_v38 = vld [vmem:[%s4602_s5] sm:$0xff]  }
 0x2ba   :  { %3302 = vmatpush3.bf16.msra.mxu0 %v3673_v37  ;;  %3325 = vmatprep.subr.bf16.mxu1 %v3768_v0 }
 0x2bb   :  { %3303 = vmatprep.subr.bf16.mxu0 %v3768_v0 }
 0x2bd   :  { %3326 = vmatpush3.bf16.msra.mxu1 %v3676_v40  ;;  %v3698_v40 = vld [vmem:[%s4602_s5 + $0x10] sm:$0xff]  }
 0x2be   :  { %3304 = vmatpush3.bf16.msra.mxu0 %v3675_v39  ;;  %3327 = vmatprep.subr.bf16.mxu1 %v3768_v0  ;;  %v3696_v39 = vld [vmem:[%s4602_s5 + $0x8] sm:$0xff]  }
 0x2bf   :  { %3335 = vmatprep.subr.bf16.mxu0 %v3768_v0 }
 0x2c1   :  { %3328 = vmatpush3.bf16.msra.mxu1 %v3677_v41  ;;  %v3700_v41 = vld [vmem:[%s4602_s5 + $0x18] sm:$0xff]  }
 0x2c2   :  { %3329 = vmatprep.subr.bf16.mxu1 %v3768_v0 }
 0x2c5   :  { %3330 = vmatpush3.bf16.msra.mxu1 %v3678_v42  ;;  %v3702_v42 = vld [vmem:[%s4602_s5 + $0x20] sm:$0xff]  }
 0x2c6   :  { %3361 = vmatprep.subr.bf16.mxu1 %v3768_v0 }
 0x36b   :  { %v627_v43 = vpop.f32.mrb[8].mxu0 }
 0x36c   :  { %v633_v44 = vadd.f32 %v627_v43, %v4028_v11  ;;  %v3255_v45 = vpop.f32.mrb[9].mxu0  ;;  %v3688_v11 = vld [vmem:[%s4601_s2 + $0x218] sm:$0xff]   ;;  %v3704_v43 = vld [vmem:[%s4602_s5 + $0x28] sm:$0xff]  }
 0x36d   :  { %v630_v46 = vpop.f32.mrb[10].mxu0  ;;  %v3708_v45 = vld [vmem:[%s4602_s5 + $0x38] sm:$0xff]  }
 0x36e   :  { %v3256_v47 = vpop.f32.mrb[11].mxu0 }
 0x373   :  { %v778_v48 = vpop.f32.mrb[24].mxu1  ;;  %v824_v49 = vpop.f32.mrb[12].mxu0 }
 0x374   :  { %v4115_v50 = vadd.f32 %v778_v48, %v633_v44  ;;  %v830_v51 = vpack.c.bf16 %v824_v49, %v824_v49  ;;  %v3281_v52 = vpop.f32.mrb[25].mxu1  ;;  %v3287_v53 = vpop.f32.mrb[13].mxu0  ;;  %v3706_v44 = vld [vmem:[%s4602_s5 + $0x30] sm:$0xff]  }
 0x375   :  { %v781_v54 = vpop.f32.mrb[26].mxu1  ;;  %v827_v55 = vpop.f32.mrb[14].mxu0  ;;  %v2864_v52 = vld [vmem:[%s4603_s3] ss:$0 sm:$0xff] }
 0x376   :  { %v3282_v56 = vpop.f32.mrb[27].mxu1  ;;  %3306 = vmatmul.mubr.bf16.vlgmr.msra.gmra.mrb[16].mxu0 %v830_v51  ;;  %v3288_v57 = vpop.f32.mrb[15].mxu0 }
 0x377   :  { %3336 = vmatpush3.bf16.msra.mxu0 %v3822_v4  ;;  %3337 = vmatprep.mubr.msk.bf16.mxu0 %vm3769_vm1, %v3768_v0 }
 0x378   :  { %3341 = vmatprep.subr.bf16.mxu0 %v3768_v0 }
 0x37b   :  { %v975_v58 = vpop.f32.mrb[28].mxu1 }
 0x37c   :  { %v981_v60 = vpack.c.bf16 %v975_v58, %v975_v58  ;;  %v3313_v61 = vpop.f32.mrb[29].mxu1 }
 0x37d   :  { %v978_v63 = vpop.f32.mrb[30].mxu1  ;;  %v1400_v61 = vld [vmem:[%s4604_s4] sm:$0xf] }
 0x37e   :  { %v3314_v1 = vpop.f32.mrb[31].mxu1  ;;  %3332 = vmatmul.mubr.bf16.vlgmr.msra.gmra.mrb[32].mxu1 %v981_v60  ;;  %3338 = vmatmul.mubr.msk.bf16.vlgmr.msra.gmra.mrb[20].mxu0 %vm29_vm2, %v2844_v59  ;;  %v3697_v63 = vld [vmem:[%s4602_s5 + $0x40] sm:$0xff]  }
 0x37f   :  { %3362 = vmatpush3.bf16.msra.mxu1 %v3822_v4  ;;  %3363 = vmatprep.mubr.msk.bf16.mxu1 %vm3769_vm1, %v3768_v0  ;;  %v3682_v4 = vld [vmem:[%s4601_s2 + $0x200] sm:$0xff]   ;;  %v3699_v1 = vld [vmem:[%s4602_s5 + $0x48] sm:$0xff]  }
 0x380   :  { %3342 = vmatpush3.bf16.msra.mxu0 %v3679_v62  ;;  %3367 = vmatprep.subr.bf16.mxu1 %v3768_v0  ;;  %v2866_v62 = vld [vmem:[%s4604_s4 + $0x4] sm:$0xf] }
 0x381   :  { %3343 = vmatprep.subr.bf16.mxu0 %v3768_v0  ;;  %3357 = vmatprep.mubr.msk.bf16.mxu0 %vm3769_vm1, %v3768_v0 }
 0x384   :  { %3344 = vmatpush3.bf16.msra.mxu0 %v3680_v2  ;;  %v3701_v2 = vld [vmem:[%s4602_s5 + $0x50] sm:$0xff]  }
 0x385   :  { %3345 = vmatprep.subr.bf16.mxu0 %v3768_v0 }
 0x386   :  { %3364 = vmatmul.mubr.msk.bf16.vlgmr.msra.gmra.mrb[36].mxu1 %vm29_vm2, %v2854_v3  ;;  %v3703_v3 = vld [vmem:[%s4602_s5 + $0x58] sm:$0xff]  }
 0x387   :  { %3368 = vmatpush3.bf16.msra.mxu1 %v3682_v4  ;;  %3383 = vmatprep.mubr.msk.bf16.mxu1 %vm3769_vm1, %v3768_v0  ;;  %v3705_v4 = vld [vmem:[%s4602_s5 + $0x60] sm:$0xff]  }
 0x388   :  { %3346 = vmatpush3.bf16.msra.mxu0 %v3681_v5  ;;  %3369 = vmatprep.subr.bf16.mxu1 %v3768_v0  ;;  %v3707_v5 = vld [vmem:[%s4602_s5 + $0x68] sm:$0xff]  }
 0x389   :  { %3347 = vmatprep.subr.bf16.mxu0 %v3768_v0 }
 0x38b   :  { %3370 = vmatpush3.bf16.msra.mxu1 %v3684_v6  ;;  %v3709_v6 = vld [vmem:[%s4602_s5 + $0x70] sm:$0xff]  }
 0x38c   :  { %3348 = vmatpush3.bf16.msra.mxu0 %v3683_v7  ;;  %3371 = vmatprep.subr.bf16.mxu1 %v3768_v0  ;;  %v3710_v7 = vld [vmem:[%s4602_s5 + $0x78] sm:$0xff]  }
 0x38d   :  { %3349 = vmatprep.subr.bf16.mxu0 %v3768_v0 }
 0x38f   :  { %3372 = vmatpush3.bf16.msra.mxu1 %v3686_v8 }
 0x390   :  { %3350 = vmatpush3.bf16.msra.mxu0 %v3685_v9  ;;  %3373 = vmatprep.subr.bf16.mxu1 %v3768_v0 }
 0x391   :  { %3351 = vmatprep.subr.bf16.mxu0 %v3768_v0 }
 0x393   :  { %3374 = vmatpush3.bf16.msra.mxu1 %v3688_v11 }
 0x394   :  { %3352 = vmatpush3.bf16.msra.mxu0 %v3687_v10  ;;  %3375 = vmatprep.subr.bf16.mxu1 %v3768_v0 }
 0x395   :  { %3353 = vmatprep.subr.bf16.mxu0 %v3768_v0 }
 0x397   :  { %3376 = vmatpush3.bf16.msra.mxu1 %v3690_v13 }
 0x398   :  { %3354 = vmatpush3.bf16.msra.mxu0 %v3689_v12  ;;  %3377 = vmatprep.subr.bf16.mxu1 %v3768_v0 }
 0x399   :  { %3355 = vmatprep.subr.bf16.mxu0 %v3768_v0 }
 0x39b   :  { %3378 = vmatpush3.bf16.msra.mxu1 %v3692_v15 }
 0x39c   :  { %3356 = vmatpush3.bf16.msra.mxu0 %v3691_v14  ;;  %3379 = vmatprep.subr.bf16.mxu1 %v3768_v0  ;;  %v2894_v14 = vld [vmem:[%s4604_s4 + $0xc] sm:$0xf] }
 0x39d   :  { %3387 = vmatprep.subr.bf16.mxu0 %v3768_v0 }
 0x39f   :  { %3380 = vmatpush3.bf16.msra.mxu1 %v3693_v16 }
 0x3a0   :  { %3381 = vmatprep.subr.bf16.mxu1 %v3768_v0 }
 0x3a3   :  { %3382 = vmatpush3.bf16.msra.mxu1 %v3694_v17  ;;  %v3711_v17 = vld [vmem:[%s4602_s5 + $0xc0] sm:$0xff]  }
 0x3a4   :  { %3419 = vmatprep.subr.bf16.mxu1 %v3768_v0 }
 0x449   :  { %v929_v18 = vpop.f32.mrb[16].mxu0 }
 0x44a   :  { %v935_v19 = vadd.f32 %v929_v18, %v4115_v50  ;;  %v3307_v20 = vpop.f32.mrb[17].mxu0 }
 0x44b   :  { %v932_v21 = vpop.f32.mrb[18].mxu0  ;;  %v3712_v20 = vld [vmem:[%s4602_s5 + $0xc8] sm:$0xff]  }
 0x44c   :  { %v3308_v22 = vpop.f32.mrb[19].mxu0  ;;  %v2884_v21 = vld [vmem:[%s4604_s4 + $0x8] sm:$0xf] }
 0x44d   :  { %v3713_v22 = vld [vmem:[%s4602_s5 + $0x80] sm:$0xff]  }
 0x451   :  { %v1080_v23 = vpop.f32.mrb[32].mxu1  ;;  %v1126_v24 = vpop.f32.mrb[20].mxu0 }
 0x452   :  { %v1086_v25 = vadd.f32 %v1080_v23, %v935_v19  ;;  %v1132_v26 = vpack.c.bf16 %v1126_v24, %v1126_v24  ;;  %v3333_v27 = vpop.f32.mrb[33].mxu1  ;;  %v3339_v28 = vpop.f32.mrb[21].mxu0  ;;  %v3714_v23 = vld [vmem:[%s4602_s5 + $0xd0] sm:$0xff]   ;;  %v3715_v24 = vld [vmem:[%s4602_s5 + $0x88] sm:$0xff]  }
 0x453   :  { %v1083_v29 = vpop.f32.mrb[34].mxu1  ;;  %v1129_v30 = vpop.f32.mrb[22].mxu0  ;;  %v3718_v27 = vld [vmem:[%s4602_s5 + $0xe0] sm:$0xff]   ;;  %v3719_v28 = vld [vmem:[%s4602_s5 + $0x98] sm:$0xff]  }
 0x454   :  { %v3334_v31 = vpop.f32.mrb[35].mxu1  ;;  %3358 = vmatmul.mubr.bf16.vlgmr.msra.gmra.mrb[24].mxu0 %v1132_v26  ;;  %v3340_v32 = vpop.f32.mrb[23].mxu0  ;;  %v3717_v26 = vld [vmem:[%s4602_s5 + $0x90] sm:$0xff]   ;;  %v3720_v29 = vld [vmem:[%s4602_s5 + $0xe8] sm:$0xff]   ;;  %v3721_v30 = vld [vmem:[%s4602_s5 + $0xa0] sm:$0xff]  }
 0x455   :  { %3389 = vmatprep.mubr.msk.bf16.mxu0 %vm3769_vm1, %v3768_v0  ;;  %v3722_v31 = vld [vmem:[%s4602_s5 + $0xf0] sm:$0xff]   ;;  %v3723_v32 = vld [vmem:[%s4602_s5 + $0xa8] sm:$0xff]  }
 0x459   :  { %v1277_v33 = vpop.f32.mrb[36].mxu1 }
 0x45a   :  { %v1283_v34 = vpack.c.bf16 %v1277_v33, %v1277_v33  ;;  %v3365_v35 = vpop.f32.mrb[37].mxu1  ;;  %v3724_v33 = vld [vmem:[%s4602_s5 + $0xf8] sm:$0xff]  }
 0x45b   :  { %v1280_v36 = vpop.f32.mrb[38].mxu1  ;;  %v3726_v35 = vld [vmem:[%s4602_s5 + $0xb8] sm:$0xff]  }
 0x45c   :  { %v3366_v37 = vpop.f32.mrb[39].mxu1  ;;  %3384 = vmatmul.mubr.bf16.vlgmr.msra.gmra.mrb[40].mxu1 %v1283_v34  ;;  %v3725_v34 = vld [vmem:[%s4602_s5 + $0xb0] sm:$0xff]  }
 0x45d   :  { %3435 = vmatprep.mubr.msk.bf16.mxu1 %vm3769_vm1, %v3768_v0  ;;  %3420 = vmatpush3.bf16.msra.mxu1 %v3695_v38 }
 0x45e   :  { %3421 = vmatprep.subr.bf16.mxu1 %v3768_v0 }
 0x461   :  { %3422 = vmatpush3.bf16.msra.mxu1 %v3696_v39 }
 0x462   :  { %3423 = vmatprep.subr.bf16.mxu1 %v3768_v0 }
 0x465   :  { %3424 = vmatpush3.bf16.msra.mxu1 %v3698_v40 }
 0x466   :  { %3425 = vmatprep.subr.bf16.mxu1 %v3768_v0 }
 0x469   :  { %3426 = vmatpush3.bf16.msra.mxu1 %v3700_v41 }
 0x46a   :  { %3427 = vmatprep.subr.bf16.mxu1 %v3768_v0 }
 0x46d   :  { %3428 = vmatpush3.bf16.msra.mxu1 %v3702_v42 }
 0x46e   :  { %3429 = vmatprep.subr.bf16.mxu1 %v3768_v0 }
 0x471   :  { %3430 = vmatpush3.bf16.msra.mxu1 %v3704_v43 }
 0x472   :  { %3431 = vmatprep.subr.bf16.mxu1 %v3768_v0 }
 0x475   :  { %3432 = vmatpush3.bf16.msra.mxu1 %v3706_v44 }
 0x476   :  { %3433 = vmatprep.subr.bf16.mxu1 %v3768_v0 }
 0x479   :  { %3434 = vmatpush3.bf16.msra.mxu1 %v3708_v45 }
 0x47a   :  { %3465 = vmatprep.subr.bf16.mxu1 %v3768_v0 }
 0x527   :  { %v1231_v46 = vpop.f32.mrb[24].mxu0 }
 0x528   :  { %v1237_v47 = vadd.f32 %v1231_v46, %v1086_v25  ;;  %v3359_v48 = vpop.f32.mrb[25].mxu0  ;;  %v3716_v25 = vld [vmem:[%s4602_s5 + $0xd8] sm:$0xff]  }
 0x529   :  { %v1234_v49 = vpop.f32.mrb[26].mxu0 }
 0x52a   :  { %v3360_v50 = vpop.f32.mrb[27].mxu0 }
 0x52f   :  { %v1382_v51 = vpop.f32.mrb[40].mxu1 }
 0x530   :  { %v1388_v53 = vadd.f32 %v1382_v51, %v1237_v47  ;;  %v3385_v54 = vpop.f32.mrb[41].mxu1  ;;  %v2914_v51 = vld [vmem:[%s4604_s4 + $0x14] sm:$0xf] }
 0x531   :  { %v1385_v55 = vpop.f32.mrb[42].mxu1  ;;  %v3727_v54 = vld [vmem:[%s4602_s5 + $0x140] sm:$0xff]  }
 0x532   :  { %v1396_v56 = vadd.f32 %v2864_v52, %v1388_v53  ;;  %v3386_v57 = vpop.f32.mrb[43].mxu1 }
 0x533   :  { %v3728_v57 = vld [vmem:[%s4602_s5 + $0x148] sm:$0xff]  }
 0x534   :  { %v1397_v58 = vmax.f32 %v1396_v56, 0.0 }
 0x536   :  { %v1398_v59 = vpack.c.bf16 %v1397_v58, %v1397_v58  ;;  %v2904_v58 = vld [vmem:[%s4604_s4 + $0x10] sm:$0xf] }
 0x538   :  { %v4242_v60 = vsel %vm33_vm0, %v1398_v59, 0  ;;  %v3729_v59 = vld [vmem:[%s4602_s5 + $0x100] sm:$0xff]  }
 0x539   :  { %3388 = vmatpush3.bf16.msra.mxu0 %v4242_v60 }
 0x53a   :  { %3393 = vmatprep.subr.bf16.mxu0 %v3768_v0 }
 0x53c   :  { %3390 = vmatmul.mubr.msk.bf16.vlgmr.msra.gmra.mrb[28].mxu0 %vm29_vm2, %v1400_v61  ;;  %v3730_v61 = vld [vmem:[%s4602_s5 + $0x150] sm:$0xff]  }
 0x53d   :  { %3394 = vmatpush3.bf16.msra.mxu0 %v4242_v60  ;;  %3395 = vmatprep.mubr.msk.bf16.mxu0 %vm3769_vm1, %v3768_v0 }
 0x53e   :  { %3399 = vmatprep.subr.bf16.mxu0 %v3768_v0 }
 0x544   :  { %3396 = vmatmul.mubr.msk.bf16.vlgmr.msra.gmra.mrb[32].mxu0 %vm29_vm2, %v2866_v62  ;;  %v3731_v62 = vld [vmem:[%s4602_s5 + $0x108] sm:$0xff]  }
 0x545   :  { %3400 = vmatpush3.bf16.msra.mxu0 %v3697_v63  ;;  %3415 = vmatprep.mubr.msk.bf16.mxu0 %vm3769_vm1, %v3768_v0  ;;  %v3732_v63 = vld [vmem:[%s4602_s5 + $0x158] sm:$0xff]  }
 0x546   :  { %3401 = vmatprep.subr.bf16.mxu0 %v3768_v0 }
 0x549   :  { %3402 = vmatpush3.bf16.msra.mxu0 %v3699_v1  ;;  %v3733_v1 = vld [vmem:[%s4602_s5 + $0x110] sm:$0xff]  }
 0x54a   :  { %3403 = vmatprep.subr.bf16.mxu0 %v3768_v0 }
 0x54d   :  { %3404 = vmatpush3.bf16.msra.mxu0 %v3701_v2  ;;  %v3734_v2 = vld [vmem:[%s4602_s5 + $0x160] sm:$0xff]  }
 0x54e   :  { %3405 = vmatprep.subr.bf16.mxu0 %v3768_v0 }
 0x551   :  { %3406 = vmatpush3.bf16.msra.mxu0 %v3703_v3  ;;  %v3735_v3 = vld [vmem:[%s4602_s5 + $0x118] sm:$0xff]  }
 0x552   :  { %3407 = vmatprep.subr.bf16.mxu0 %v3768_v0 }
 0x555   :  { %3408 = vmatpush3.bf16.msra.mxu0 %v3705_v4  ;;  %v3736_v4 = vld [vmem:[%s4602_s5 + $0x168] sm:$0xff]  }
 0x556   :  { %3409 = vmatprep.subr.bf16.mxu0 %v3768_v0 }
 0x559   :  { %3410 = vmatpush3.bf16.msra.mxu0 %v3707_v5  ;;  %v3737_v5 = vld [vmem:[%s4602_s5 + $0x120] sm:$0xff]  }
 0x55a   :  { %3411 = vmatprep.subr.bf16.mxu0 %v3768_v0 }
 0x55d   :  { %3412 = vmatpush3.bf16.msra.mxu0 %v3709_v6  ;;  %v3738_v6 = vld [vmem:[%s4602_s5 + $0x170] sm:$0xff]  }
 0x55e   :  { %3413 = vmatprep.subr.bf16.mxu0 %v3768_v0 }
 0x561   :  { %3414 = vmatpush3.bf16.msra.mxu0 %v3710_v7  ;;  %v3739_v7 = vld [vmem:[%s4602_s5 + $0x128] sm:$0xff]  }
 0x562   :  { %3439 = vmatprep.subr.bf16.mxu0 %v3768_v0 }
 0x60f   :  { %v1441_v8 = vpop.f32.mrb[28].mxu0 }
 0x610   :  { %v1447_v9 = vpack.c.bf16 %v1441_v8, %v1441_v8  ;;  %v3391_v10 = vpop.f32.mrb[29].mxu0  ;;  %v3740_v8 = vld [vmem:[%s4602_s5 + $0x178] sm:$0xff]  }
 0x611   :  { %v1444_v11 = vpop.f32.mrb[30].mxu0  ;;  %v3742_v10 = vld [vmem:[%s4602_s5 + $0x138] sm:$0xff]  }
 0x612   :  { %3436 = vmatmul.mubr.bf16.vlgmr.msra.gmra.mrb[44].mxu1 %v1447_v9  ;;  %v3392_v12 = vpop.f32.mrb[31].mxu0  ;;  %v3741_v9 = vld [vmem:[%s4602_s5 + $0x130] sm:$0xff]  }
 0x613   :  { %3466 = vmatpush3.bf16.msra.mxu1 %v4242_v60  ;;  %3467 = vmatprep.mubr.msk.bf16.mxu1 %vm3769_vm1, %v3768_v0 }
 0x614   :  { %3471 = vmatprep.subr.bf16.mxu1 %v3768_v0 }
 0x617   :  { %v1503_v13 = vpop.f32.mrb[32].mxu0 }
 0x618   :  { %v1509_v15 = vpack.c.bf16 %v1503_v13, %v1503_v13  ;;  %v3397_v16 = vpop.f32.mrb[33].mxu0 }
 0x619   :  { %v1506_v18 = vpop.f32.mrb[34].mxu0 }
 0x61a   :  { %3416 = vmatmul.mubr.bf16.vlgmr.msra.gmra.mrb[36].mxu0 %v1509_v15  ;;  %3468 = vmatmul.mubr.msk.bf16.vlgmr.msra.gmra.mrb[48].mxu1 %vm29_vm2, %v2894_v14  ;;  %v3398_v19 = vpop.f32.mrb[35].mxu0 }
 0x61b   :  { %3440 = vmatpush3.bf16.msra.mxu0 %v4242_v60  ;;  %3441 = vmatprep.mubr.msk.bf16.mxu0 %vm3769_vm1, %v3768_v0 }
 0x61c   :  { %3472 = vmatpush3.bf16.msra.mxu1 %v3711_v17  ;;  %3445 = vmatprep.subr.bf16.mxu0 %v3768_v0 }
 0x61d   :  { %3473 = vmatprep.subr.bf16.mxu1 %v3768_v0  ;;  %3487 = vmatprep.mubr.msk.bf16.mxu1 %vm3769_vm1, %v3768_v0 }
 0x620   :  { %3474 = vmatpush3.bf16.msra.mxu1 %v3712_v20 }
 0x621   :  { %3475 = vmatprep.subr.bf16.mxu1 %v3768_v0 }
 0x622   :  { %3442 = vmatmul.mubr.msk.bf16.vlgmr.msra.gmra.mrb[40].mxu0 %vm29_vm2, %v2884_v21 }
 0x623   :  { %3446 = vmatpush3.bf16.msra.mxu0 %v3713_v22  ;;  %3461 = vmatprep.mubr.msk.bf16.mxu0 %vm3769_vm1, %v3768_v0 }
 0x624   :  { %3476 = vmatpush3.bf16.msra.mxu1 %v3714_v23  ;;  %3447 = vmatprep.subr.bf16.mxu0 %v3768_v0 }
 0x625   :  { %3477 = vmatprep.subr.bf16.mxu1 %v3768_v0 }
 0x627   :  { %3448 = vmatpush3.bf16.msra.mxu0 %v3715_v24 }
 0x628   :  { %3478 = vmatpush3.bf16.msra.mxu1 %v3716_v25  ;;  %3449 = vmatprep.subr.bf16.mxu0 %v3768_v0 }
 0x629   :  { %3479 = vmatprep.subr.bf16.mxu1 %v3768_v0 }
 0x62b   :  { %3450 = vmatpush3.bf16.msra.mxu0 %v3717_v26 }
 0x62c   :  { %3480 = vmatpush3.bf16.msra.mxu1 %v3718_v27  ;;  %3451 = vmatprep.subr.bf16.mxu0 %v3768_v0  ;;  %v2934_v27 = vld [vmem:[%s4604_s4 + $0x1c] sm:$0xf] }
 0x62d   :  { %3481 = vmatprep.subr.bf16.mxu1 %v3768_v0 }
 0x62f   :  { %3452 = vmatpush3.bf16.msra.mxu0 %v3719_v28 }
 0x630   :  { %3482 = vmatpush3.bf16.msra.mxu1 %v3720_v29  ;;  %3453 = vmatprep.subr.bf16.mxu0 %v3768_v0 }
 0x631   :  { %3483 = vmatprep.subr.bf16.mxu1 %v3768_v0 }
 0x633   :  { %3454 = vmatpush3.bf16.msra.mxu0 %v3721_v30  ;;  %v3744_v30 = vld [vmem:[%s4602_s5 + $0x1c0] sm:$0xff]  }
 0x634   :  { %3484 = vmatpush3.bf16.msra.mxu1 %v3722_v31  ;;  %3455 = vmatprep.subr.bf16.mxu0 %v3768_v0 }
 0x635   :  { %3485 = vmatprep.subr.bf16.mxu1 %v3768_v0 }
 0x637   :  { %3456 = vmatpush3.bf16.msra.mxu0 %v3723_v32 }
 0x638   :  { %3486 = vmatpush3.bf16.msra.mxu1 %v3724_v33  ;;  %3457 = vmatprep.subr.bf16.mxu0 %v3768_v0  ;;  %v3746_v33 = vld [vmem:[%s4602_s5 + $0x1c8] sm:$0xff]  }
 0x639   :  { %3517 = vmatprep.subr.bf16.mxu1 %v3768_v0 }
 0x63b   :  { %3458 = vmatpush3.bf16.msra.mxu0 %v3725_v34  ;;  %v2924_v34 = vld [vmem:[%s4604_s4 + $0x18] sm:$0xf] }
 0x63c   :  { %3459 = vmatprep.subr.bf16.mxu0 %v3768_v0 }
 0x63f   :  { %3460 = vmatpush3.bf16.msra.mxu0 %v3726_v35  ;;  %v3743_v35 = vld [vmem:[%s4602_s5 + $0x180] sm:$0xff]  }
 0x640   :  { %3491 = vmatprep.subr.bf16.mxu0 %v3768_v0 }
 0x6e5   :  { %v1696_v36 = vpop.f32.mrb[44].mxu1 }
 0x6e6   :  { %v3437_v37 = vpop.f32.mrb[45].mxu1 }
 0x6e7   :  { %v1699_v38 = vpop.f32.mrb[46].mxu1  ;;  %v3745_v37 = vld [vmem:[%s4602_s5 + $0x188] sm:$0xff]  }
 0x6e8   :  { %v3438_v39 = vpop.f32.mrb[47].mxu1  ;;  %v3750_v38 = vld [vmem:[%s4602_s5 + $0x1d8] sm:$0xff]  }
 0x6e9   :  { %v3747_v39 = vld [vmem:[%s4602_s5 + $0x190] sm:$0xff]  }
 0x6ed   :  { %v1608_v40 = vpop.f32.mrb[36].mxu0  ;;  %v1892_v41 = vpop.f32.mrb[48].mxu1 }
 0x6ee   :  { %v4376_v42 = vadd.f32 %v1696_v36, %v1608_v40  ;;  %v1898_v43 = vpack.c.bf16 %v1892_v41, %v1892_v41  ;;  %v3417_v44 = vpop.f32.mrb[37].mxu0  ;;  %v3469_v45 = vpop.f32.mrb[49].mxu1  ;;  %v3748_v36 = vld [vmem:[%s4602_s5 + $0x1d0] sm:$0xff]   ;;  %v3752_v40 = vld [vmem:[%s4602_s5 + $0x1e0] sm:$0xff]   ;;  %v3749_v41 = vld [vmem:[%s4602_s5 + $0x198] sm:$0xff]  }
 0x6ef   :  { %v1611_v46 = vpop.f32.mrb[38].mxu0  ;;  %v1895_v47 = vpop.f32.mrb[50].mxu1  ;;  %v3754_v44 = vld [vmem:[%s4602_s5 + $0x1e8] sm:$0xff]   ;;  %v3755_v45 = vld [vmem:[%s4602_s5 + $0x1b0] sm:$0xff]  }
 0x6f0   :  { %3488 = vmatmul.mubr.bf16.vlgmr.msra.gmra.mrb[52].mxu1 %v1898_v43  ;;  %v3418_v48 = vpop.f32.mrb[39].mxu0  ;;  %v3470_v49 = vpop.f32.mrb[51].mxu1  ;;  %v3753_v43 = vld [vmem:[%s4602_s5 + $0x1a8] sm:$0xff]   ;;  %v3756_v46 = vld [vmem:[%s4602_s5 + $0x1f0] sm:$0xff]   ;;  %v3757_v47 = vld [vmem:[%s4602_s5 + $0x1b8] sm:$0xff]  }
 0x6f1   :  { %3518 = vmatpush3.bf16.msra.mxu1 %v4242_v60  ;;  %3519 = vmatprep.mubr.msk.bf16.mxu1 %vm3769_vm1, %v3768_v0  ;;  %v3758_v48 = vld [vmem:[%s4602_s5 + $0x1f8] sm:$0xff]  }
 0x6f2   :  { %3523 = vmatprep.subr.bf16.mxu1 %v3768_v0 }
 0x6f5   :  { %v1741_v50 = vpop.f32.mrb[40].mxu0 }
 0x6f6   :  { %v1747_v52 = vpack.c.bf16 %v1741_v50, %v1741_v50  ;;  %v3443_v53 = vpop.f32.mrb[41].mxu0 }
 0x6f7   :  { %v1744_v55 = vpop.f32.mrb[42].mxu0 }
 0x6f8   :  { %3462 = vmatmul.mubr.bf16.vlgmr.msra.gmra.mrb[44].mxu0 %v1747_v52  ;;  %3520 = vmatmul.mubr.msk.bf16.vlgmr.msra.gmra.mrb[56].mxu1 %vm29_vm2, %v2914_v51  ;;  %v3444_v56 = vpop.f32.mrb[43].mxu0 }
 0x6f9   :  { %3492 = vmatpush3.bf16.msra.mxu0 %v4242_v60  ;;  %3493 = vmatprep.mubr.msk.bf16.mxu0 %vm3769_vm1, %v3768_v0 }
 0x6fa   :  { %3524 = vmatpush3.bf16.msra.mxu1 %v3727_v54  ;;  %3497 = vmatprep.subr.bf16.mxu0 %v3768_v0 }
 0x6fb   :  { %3525 = vmatprep.subr.bf16.mxu1 %v3768_v0  ;;  %3539 = vmatprep.mubr.msk.bf16.mxu1 %vm3769_vm1, %v3768_v0 }
 0x6fe   :  { %3526 = vmatpush3.bf16.msra.mxu1 %v3728_v57 }
 0x6ff   :  { %3527 = vmatprep.subr.bf16.mxu1 %v3768_v0 }
 0x700   :  { %3494 = vmatmul.mubr.msk.bf16.vlgmr.msra.gmra.mrb[48].mxu0 %vm29_vm2, %v2904_v58 }
 0x701   :  { %3498 = vmatpush3.bf16.msra.mxu0 %v3729_v59  ;;  %3513 = vmatprep.mubr.msk.bf16.mxu0 %vm3769_vm1, %v3768_v0 }
 0x702   :  { %3528 = vmatpush3.bf16.msra.mxu1 %v3730_v61  ;;  %3499 = vmatprep.subr.bf16.mxu0 %v3768_v0 }
 0x703   :  { %3529 = vmatprep.subr.bf16.mxu1 %v3768_v0 }
 0x705   :  { %3500 = vmatpush3.bf16.msra.mxu0 %v3731_v62 }
 0x706   :  { %3530 = vmatpush3.bf16.msra.mxu1 %v3732_v63  ;;  %3501 = vmatprep.subr.bf16.mxu0 %v3768_v0 }
 0x707   :  { %3531 = vmatprep.subr.bf16.mxu1 %v3768_v0 }
 0x709   :  { %3502 = vmatpush3.bf16.msra.mxu0 %v3733_v1 }
 0x70a   :  { %3532 = vmatpush3.bf16.msra.mxu1 %v3734_v2  ;;  %3503 = vmatprep.subr.bf16.mxu0 %v3768_v0 }
 0x70b   :  { %3533 = vmatprep.subr.bf16.mxu1 %v3768_v0 }
 0x70d   :  { %3504 = vmatpush3.bf16.msra.mxu0 %v3735_v3 }
 0x70e   :  { %3534 = vmatpush3.bf16.msra.mxu1 %v3736_v4  ;;  %3505 = vmatprep.subr.bf16.mxu0 %v3768_v0 }
 0x70f   :  { %3535 = vmatprep.subr.bf16.mxu1 %v3768_v0 }
 0x711   :  { %3506 = vmatpush3.bf16.msra.mxu0 %v3737_v5 }
 0x712   :  { %3536 = vmatpush3.bf16.msra.mxu1 %v3738_v6  ;;  %3507 = vmatprep.subr.bf16.mxu0 %v3768_v0 }
 0x713   :  { %3537 = vmatprep.subr.bf16.mxu1 %v3768_v0 }
 0x715   :  { %3508 = vmatpush3.bf16.msra.mxu0 %v3739_v7  ;;  %v2944_v7 = vld [vmem:[%s4604_s4 + $0x20] sm:$0xf] }
 0x716   :  { %3538 = vmatpush3.bf16.msra.mxu1 %v3740_v8  ;;  %3509 = vmatprep.subr.bf16.mxu0 %v3768_v0  ;;  %v3759_v8 = vld [vmem:[%s4602_s5 + $0x200] sm:$0xff]  }
 0x717   :  { %3569 = vmatprep.subr.bf16.mxu1 %v3768_v0 }
 0x719   :  { %3510 = vmatpush3.bf16.msra.mxu0 %v3741_v9  ;;  %v3761_v9 = vld [vmem:[%s4602_s5 + $0x210] sm:$0xff]  }
 0x71a   :  { %3511 = vmatprep.subr.bf16.mxu0 %v3768_v0 }
 0x71d   :  { %3512 = vmatpush3.bf16.msra.mxu0 %v3742_v10  ;;  %v3762_v10 = vld [vmem:[%s4602_s5 + $0x218] sm:$0xff]  }
 0x71e   :  { %3543 = vmatprep.subr.bf16.mxu0 %v3768_v0 }
 0x7c3   :  { %v1997_v11 = vpop.f32.mrb[52].mxu1 }
 0x7c4   :  { %v3489_v12 = vpop.f32.mrb[53].mxu1 }
 0x7c5   :  { %v2000_v13 = vpop.f32.mrb[54].mxu1  ;;  %v3764_v12 = vld [vmem:[%s4602_s5 + $0x228] sm:$0xff]  }
 0x7c6   :  { %v3490_v14 = vpop.f32.mrb[55].mxu1  ;;  %v3765_v13 = vld [vmem:[%s4602_s5 + $0x230] sm:$0xff]  }
 0x7c7   :  { %v3766_v14 = vld [vmem:[%s4602_s5 + $0x238] sm:$0xff]  }
 0x7cb   :  { %v1846_v15 = vpop.f32.mrb[44].mxu0  ;;  %v2194_v16 = vpop.f32.mrb[56].mxu1 }
 0x7cc   :  { %v1852_v17 = vadd.f32 %v1846_v15, %v4376_v42  ;;  %v2200_v18 = vpack.c.bf16 %v2194_v16, %v2194_v16  ;;  %v3463_v19 = vpop.f32.mrb[45].mxu0  ;;  %v3521_v20 = vpop.f32.mrb[57].mxu1  ;;  %v3751_v42 = vld [vmem:[%s4602_s5 + $0x1a0] sm:$0xff]  }
 0x7cd   :  { %v1849_v21 = vpop.f32.mrb[46].mxu0  ;;  %v2197_v22 = vpop.f32.mrb[58].mxu1 }
 0x7ce   :  { %3540 = vmatmul.mubr.bf16.vlgmr.msra.gmra.mrb[60].mxu1 %v2200_v18  ;;  %v3464_v23 = vpop.f32.mrb[47].mxu0  ;;  %v4463_v24 = vadd.f32 %v1997_v11, %v1852_v17  ;;  %v3522_v25 = vpop.f32.mrb[59].mxu1  ;;  %v3763_v11 = vld [vmem:[%s4602_s5 + $0x220] sm:$0xff]  }
 0x7cf   :  { %3570 = vmatpush3.bf16.msra.mxu1 %v4242_v60  ;;  %3571 = vmatprep.mubr.msk.bf16.mxu1 %vm3769_vm1, %v3768_v0 }
 0x7d0   :  { %3575 = vmatprep.subr.bf16.mxu1 %v3768_v0 }
 0x7d3   :  { %v2043_v26 = vpop.f32.mrb[48].mxu0 }
 0x7d4   :  { %v2049_v28 = vpack.c.bf16 %v2043_v26, %v2043_v26  ;;  %v3495_v29 = vpop.f32.mrb[49].mxu0 }
 0x7d5   :  { %v2046_v31 = vpop.f32.mrb[50].mxu0 }
 0x7d6   :  { %3514 = vmatmul.mubr.bf16.vlgmr.msra.gmra.mrb[52].mxu0 %v2049_v28  ;;  %v3496_v32 = vpop.f32.mrb[51].mxu0  ;;  %3572 = vmatmul.mubr.msk.bf16.vlgmr.msra.gmra.mrb[64].mxu1 %vm29_vm2, %v2934_v27  ;;  %v3767_v31 = vld [vmem:[%s4599_s0] sm:$0xf] }
 0x7d7   :  { %3544 = vmatpush3.bf16.msra.mxu0 %v4242_v60  ;;  %3545 = vmatprep.mubr.msk.bf16.mxu0 %vm3769_vm1, %v3768_v0  ;;  %v1399_v32 = vunpack.c.l.bf16 %v3767_v31 }
 0x7d8   :  { %3549 = vmatprep.subr.bf16.mxu0 %v3768_v0  ;;  %3576 = vmatpush3.bf16.msra.mxu1 %v3744_v30  ;;  %v2954_v30 = vld [vmem:[%s4605_s6] ss:$0 sm:$0xff] }
 0x7d9   :  { %3577 = vmatprep.subr.bf16.mxu1 %v3768_v0  ;;  %3591 = vmatprep.mubr.msk.bf16.mxu1 %vm3769_vm1, %v3768_v0 }
 0x7dc   :  { %3578 = vmatpush3.bf16.msra.mxu1 %v3746_v33 }
 0x7dd   :  { %3579 = vmatprep.subr.bf16.mxu1 %v3768_v0 }
 0x7de   :  { %3546 = vmatmul.mubr.msk.bf16.vlgmr.msra.gmra.mrb[56].mxu0 %vm29_vm2, %v2924_v34 }
 0x7df   :  { %3550 = vmatpush3.bf16.msra.mxu0 %v3743_v35  ;;  %3565 = vmatprep.mubr.msk.bf16.mxu0 %vm3769_vm1, %v3768_v0 }
 0x7e0   :  { %3551 = vmatprep.subr.bf16.mxu0 %v3768_v0  ;;  %3580 = vmatpush3.bf16.msra.mxu1 %v3748_v36 }
 0x7e1   :  { %3581 = vmatprep.subr.bf16.mxu1 %v3768_v0 }
 0x7e3   :  { %3552 = vmatpush3.bf16.msra.mxu0 %v3745_v37 }
 0x7e4   :  { %3553 = vmatprep.subr.bf16.mxu0 %v3768_v0  ;;  %3582 = vmatpush3.bf16.msra.mxu1 %v3750_v38 }
 0x7e5   :  { %3583 = vmatprep.subr.bf16.mxu1 %v3768_v0 }
 0x7e7   :  { %3554 = vmatpush3.bf16.msra.mxu0 %v3747_v39 }
 0x7e8   :  { %3555 = vmatprep.subr.bf16.mxu0 %v3768_v0  ;;  %3584 = vmatpush3.bf16.msra.mxu1 %v3752_v40 }
 0x7e9   :  { %3585 = vmatprep.subr.bf16.mxu1 %v3768_v0 }
 0x7eb   :  { %3556 = vmatpush3.bf16.msra.mxu0 %v3749_v41 }
 0x7ec   :  { %3557 = vmatprep.subr.bf16.mxu0 %v3768_v0  ;;  %3586 = vmatpush3.bf16.msra.mxu1 %v3754_v44 }
 0x7ed   :  { %3587 = vmatprep.subr.bf16.mxu1 %v3768_v0 }
 0x7ef   :  { %3558 = vmatpush3.bf16.msra.mxu0 %v3751_v42 }
 0x7f0   :  { %3559 = vmatprep.subr.bf16.mxu0 %v3768_v0  ;;  %3588 = vmatpush3.bf16.msra.mxu1 %v3756_v46 }
 0x7f1   :  { %3589 = vmatprep.subr.bf16.mxu1 %v3768_v0 }
 0x7f3   :  { %3560 = vmatpush3.bf16.msra.mxu0 %v3753_v43 }
 0x7f4   :  { %3561 = vmatprep.subr.bf16.mxu0 %v3768_v0  ;;  %3590 = vmatpush3.bf16.msra.mxu1 %v3758_v48 }
 0x7f7   :  { %3562 = vmatpush3.bf16.msra.mxu0 %v3755_v45 }
 0x7f8   :  { %3563 = vmatprep.subr.bf16.mxu0 %v3768_v0 }
 0x7fb   :  { %3564 = vmatpush3.bf16.msra.mxu0 %v3757_v47 }
 0x7fc   :  { %3595 = vmatprep.subr.bf16.mxu0 %v3768_v0 }
 0x8a1   :  { %v2299_v49 = vpop.f32.mrb[60].mxu1 }
 0x8a2   :  { %v3541_v50 = vpop.f32.mrb[61].mxu1 }
 0x8a3   :  { %v2302_v51 = vpop.f32.mrb[62].mxu1 }
 0x8a4   :  { %v3542_v52 = vpop.f32.mrb[63].mxu1 }
 0x8a9   :  { %v2148_v53 = vpop.f32.mrb[52].mxu0  ;;  %v2496_v54 = vpop.f32.mrb[64].mxu1 }
 0x8aa   :  { %v2154_v55 = vadd.f32 %v2148_v53, %v4463_v24  ;;  %v3515_v56 = vpop.f32.mrb[53].mxu0  ;;  %v2502_v57 = vpack.c.bf16 %v2496_v54, %v2496_v54  ;;  %v3573_v58 = vpop.f32.mrb[65].mxu1 }
 0x8ab   :  { %v2151_v59 = vpop.f32.mrb[54].mxu0  ;;  %v2499_v61 = vpop.f32.mrb[66].mxu1 }
 0x8ac   :  { %v2305_v62 = vadd.f32 %v2299_v49, %v2154_v55  ;;  %v3516_v63 = vpop.f32.mrb[55].mxu0  ;;  %3592 = vmatmul.mubr.bf16.vlgmr.msra.gmra.mrb[68].mxu1 %v2502_v57  ;;  %v3574_v1 = vpop.f32.mrb[67].mxu1 }
 0x8b1   :  { %v2345_v2 = vpop.f32.mrb[56].mxu0 }
 0x8b2   :  { %v2351_v3 = vpack.c.bf16 %v2345_v2, %v2345_v2  ;;  %v3547_v4 = vpop.f32.mrb[57].mxu0 }
 0x8b3   :  { %v2348_v5 = vpop.f32.mrb[58].mxu0 }
 0x8b4   :  { %3566 = vmatmul.mubr.bf16.vlgmr.msra.gmra.mrb[60].mxu0 %v2351_v3  ;;  %v3548_v6 = vpop.f32.mrb[59].mxu0 }
 0x8b5   :  { %3596 = vmatpush3.bf16.msra.mxu0 %v4242_v60  ;;  %3597 = vmatprep.mubr.msk.bf16.mxu0 %vm3769_vm1, %v3768_v0  ;;  %v3760_v60 = vld [vmem:[%s4602_s5 + $0x208] sm:$0xff]  }
 0x8b6   :  { %3601 = vmatprep.subr.bf16.mxu0 %v3768_v0 }
 0x8bc   :  { %3598 = vmatmul.mubr.msk.bf16.vlgmr.msra.gmra.mrb[64].mxu0 %vm29_vm2, %v2944_v7 }
 0x8bd   :  { %3602 = vmatpush3.bf16.msra.mxu0 %v3759_v8  ;;  %3617 = vmatprep.mubr.msk.bf16.mxu0 %vm3769_vm1, %v3768_v0 }
 0x8be   :  { %3603 = vmatprep.subr.bf16.mxu0 %v3768_v0 }
 0x8c1   :  { %3604 = vmatpush3.bf16.msra.mxu0 %v3760_v60 }
 0x8c2   :  { %3605 = vmatprep.subr.bf16.mxu0 %v3768_v0 }
 0x8c5   :  { %3606 = vmatpush3.bf16.msra.mxu0 %v3761_v9 }
 0x8c6   :  { %3607 = vmatprep.subr.bf16.mxu0 %v3768_v0 }
 0x8c9   :  { %3608 = vmatpush3.bf16.msra.mxu0 %v3762_v10 }
 0x8ca   :  { %3609 = vmatprep.subr.bf16.mxu0 %v3768_v0 }
 0x8cd   :  { %3610 = vmatpush3.bf16.msra.mxu0 %v3763_v11 }
 0x8ce   :  { %3611 = vmatprep.subr.bf16.mxu0 %v3768_v0 }
 0x8d1   :  { %3612 = vmatpush3.bf16.msra.mxu0 %v3764_v12 }
 0x8d2   :  { %3613 = vmatprep.subr.bf16.mxu0 %v3768_v0 }
 0x8d5   :  { %3614 = vmatpush3.bf16.msra.mxu0 %v3765_v13 }
 0x8d6   :  { %3615 = vmatprep.subr.bf16.mxu0 %v3768_v0 }
 0x8d9   :  { %3616 = vmatpush3.bf16.msra.mxu0 %v3766_v14 }
 0x97f   :  { %v2601_v15 = vpop.f32.mrb[68].mxu1 }
 0x980   :  { %v3593_v16 = vpop.f32.mrb[69].mxu1 }
 0x981   :  { %v2604_v17 = vpop.f32.mrb[70].mxu1 }
 0x982   :  { %v3594_v18 = vpop.f32.mrb[71].mxu1 }
 0x987   :  { %v2450_v19 = vpop.f32.mrb[60].mxu0 }
 0x988   :  { %v2456_v20 = vadd.f32 %v2450_v19, %v2305_v62  ;;  %v3567_v21 = vpop.f32.mrb[61].mxu0 }
 0x989   :  { %v2453_v22 = vpop.f32.mrb[62].mxu0 }
 0x98a   :  { %v2607_v23 = vadd.f32 %v2601_v15, %v2456_v20  ;;  %v3568_v24 = vpop.f32.mrb[63].mxu0 }
 0x98f   :  { %v2647_v25 = vpop.f32.mrb[64].mxu0 }
 0x990   :  { %v2653_v26 = vpack.c.bf16 %v2647_v25, %v2647_v25  ;;  %v3599_v27 = vpop.f32.mrb[65].mxu0 }
 0x991   :  { %v2650_v28 = vpop.f32.mrb[66].mxu0 }
 0x992   :  { %3618 = vmatmul.mubr.bf16.vlgmr.msra.gmra.mrb[68].mxu0 %v2653_v26  ;;  %v3600_v0 = vpop.f32.mrb[67].mxu0 }
 0xa65   :  { %v2752_v29 = vpop.f32.mrb[68].mxu0 }
 0xa66   :  { %v2758_v33 = vadd.f32 %v2752_v29, %v2607_v23  ;;  %v3619_v34 = vpop.f32.mrb[69].mxu0 }
 0xa67   :  { %v2755_v35 = vpop.f32.mrb[70].mxu0 }
 0xa68   :  { %v2766_v36 = vadd.f32 %v2954_v30, %v2758_v33  ;;  %v3620_v37 = vpop.f32.mrb[71].mxu0 }
 0xa6a   :  { %v2767_v38 = vadd.f32 %v2766_v36, %v1399_v32 }
 0xa6c   :  { %v2768_v39 = vmax.f32 %v2767_v38, 0.0 }
 0xa6e   :  { %v2769_v40 = vpack.c.bf16 %v2768_v39, %v2768_v39 }
 0xa70   :  { %2770 = vst [vmem:[%s4606_s7] sm:$0xf] %v2769_v40 }

</bundles_post_ra>
